<compile_context>
chip_gen: v6e
topology: v6e:2x2x1
jax: 0.10.0
libtpu: 0.0.40
codegen_flags: <defaults>
</compile_context>

<pallas_src>
import math

import jax
import jax.numpy as jnp
from jax.experimental import pallas as pl
from jax.experimental.pallas import tpu as pltpu

# Reduced-width VGG config with the same structure as models/vgg.py defaultcfg
# (Conv3x3(pad=1, bias=False) + BatchNorm2d + ReLU stacks, 'M' = MaxPool2d(2,2),
# then AvgPool2d(2) -> flatten -> Linear(cfg[-1], 10)). Kept small so the
# example runs quickly; all builders below are cfg-generic.
CFG = [16, 16, 'M', 32, 'M', 64, 64]
NUM_CLASSES = 10
BN_EPS = 1e-5


# ---------------------------------------------------------------------------
# Fused kernel
# ---------------------------------------------------------------------------
def _maxpool2x2(x):
    """2x2 stride-2 max pool on an NHWC value, entirely in-kernel."""
    n, h, w, c = x.shape
    ho, wo = h // 2, w // 2
    v = x.reshape(n, h, wo, 2, c)
    v = jnp.maximum(v[:, :, :, 0, :], v[:, :, :, 1, :])        # (n, h, wo, c)
    v = v.reshape(n, ho, 2, wo, c)
    return jnp.maximum(v[:, :, 0, :, :], v[:, :, 1, :, :])     # (n, ho, wo, c)


def make_fused_vgg_kernel(cfg, n_batch):
    """Build a kernel that runs the whole VGG forward in one invocation.

    Ref order: x, then (w, gamma, beta) per conv layer, fc_w, fc_b, out,
    then one VMEM scratch used as the zero-padded conv input buffer.
    """
    conv_cout = [v for v in cfg if v != 'M']
    n_conv = len(conv_cout)

    def kernel(*refs):
        x_ref = refs[0]
        conv_refs = refs[1:1 + 3 * n_conv]
        fc_w_ref = refs[1 + 3 * n_conv]
        fc_b_ref = refs[2 + 3 * n_conv]
        o_ref = refs[3 + 3 * n_conv]
        pad_ref = refs[4 + 3 * n_conv]          # (N, H0+2, W0+2, Cmax) f32

        x = x_ref[...]                          # (N, H0, W0, 3) f32
        ci = 0
        for v in cfg:
            if v == 'M':
                x = _maxpool2x2(x)
                continue
            w_ref, gamma_ref, beta_ref = conv_refs[3 * ci:3 * ci + 3]
            ci += 1
            _, h, w, cin = x.shape
            cout = v
            m = n_batch * h * w

            # 3x3 conv, padding=1: zero-pad into the reused VMEM scratch
            # (no HBM jnp.pad), then accumulate 9 tap matmuls with the batch
            # folded into the MXU M dimension. bf16 matmul inputs, f32 acc.
            pad_ref[...] = jnp.zeros_like(pad_ref)
            pad_ref[:, 1:1 + h, 1:1 + w, :cin] = x
            acc = jnp.zeros((m, cout), jnp.float32)
            for dy in range(3):
                for dx in range(3):
                    patch = pad_ref[:, dy:dy + h, dx:dx + w, :cin]
                    patch = patch.reshape(m, cin).astype(jnp.bfloat16)
                    acc = acc + jnp.dot(patch, w_ref[dy * 3 + dx],
                                        preferred_element_type=jnp.float32)

            # BatchNorm2d (training-mode batch stats, biased variance) + ReLU.
            # Single sweep over acc; scale/shift precomputed per channel; all
            # normalization math stays in f32 (v5e has no bf16 VPU/EUP path).
            inv_cnt = 1.0 / float(m)
            mean = jnp.sum(acc, axis=0, keepdims=True) * inv_cnt
            var = jnp.sum(acc * acc, axis=0, keepdims=True) * inv_cnt
            var = jnp.maximum(var - mean * mean, 0.0)   # guard cancellation
            scale = gamma_ref[...] * jax.lax.rsqrt(var + BN_EPS)
            shift = beta_ref[...] - mean * scale
            x = jnp.maximum(acc * scale + shift, 0.0).reshape(n_batch, h, w, cout)

        # Head: AvgPool2d(2) over the final 2x2 map + flatten + Linear.
        # The 0.25 averaging factor is folded into fc_w by the caller.
        s4 = (x[:, 0, 0, :] + x[:, 0, 1, :] +
              x[:, 1, 0, :] + x[:, 1, 1, :])            # (N, C)
        o_ref[...] = jnp.dot(s4, fc_w_ref[...],
                             preferred_element_type=jnp.float32) + fc_b_ref[...]

    return kernel


# ---------------------------------------------------------------------------
# Wrapper: one pallas_call for the whole network
# ---------------------------------------------------------------------------
def vgg_forward(x_nchw, convs, fc_w, fc_b, cfg):
    x = jnp.transpose(x_nchw, (0, 2, 3, 1)).astype(jnp.float32)  # NCHW -> NHWC
    n, h0, w0, _ = x.shape
    # After all 'M' stages the feature map must be 2x2 so AvgPool2d(2)+flatten
    # yields cfg[-1] features, matching the module's Linear(cfg[-1], 10).
    n_pool = sum(1 for v in cfg if v == 'M')
    assert h0 // (2 ** n_pool) == 2 and w0 // (2 ** n_pool) == 2
    c_max = max(v for v in cfg if v != 'M')

    args = [x]
    in_specs = [pl.BlockSpec(x.shape, lambda i: (0, 0, 0, 0))]
    for (w, g, b) in convs:
        args += [w, g, b]
        in_specs += [pl.BlockSpec(w.shape, lambda i: (0, 0, 0)),
                     pl.BlockSpec(g.shape, lambda i: (0, 0)),
                     pl.BlockSpec(b.shape, lambda i: (0, 0))]
    args += [fc_w, fc_b]
    in_specs += [pl.BlockSpec(fc_w.shape, lambda i: (0, 0)),
                 pl.BlockSpec(fc_b.shape, lambda i: (0, 0))]

    # Note: grid stays (1,) — BatchNorm needs cross-batch statistics, so the
    # batch cannot be sharded across grid steps / v7x TensorCores without
    # a cross-step reduction.
    kernel = make_fused_vgg_kernel(cfg, n)
    return pl.pallas_call(
        kernel,
        out_shape=jax.ShapeDtypeStruct((n, NUM_CLASSES), jnp.float32),
        grid=(1,),
        in_specs=in_specs,
        out_specs=pl.BlockSpec((n, NUM_CLASSES), lambda i: (0, 0)),
        scratch_shapes=[pltpu.VMEM((n, h0 + 2, w0 + 2, c_max), jnp.float32)],
        compiler_params=pltpu.CompilerParams(
            dimension_semantics=("arbitrary",)),
    )(*args)


# ---------------------------------------------------------------------------
# Parameter init (mirrors vgg._initialize_weights)
# ---------------------------------------------------------------------------
def init_params(key, cfg):
    convs = []
    in_c = 3
    for v in cfg:
        if v == 'M':
            continue
        key, wk = jax.random.split(key)
        fan = 3 * 3 * v                                   # k*k*out_channels
        std = math.sqrt(2.0 / fan)
        w = std * jax.random.normal(wk, (3, 3, in_c, v), jnp.float32)
        w = w.reshape(9, in_c, v).astype(jnp.bfloat16)    # bf16 MXU operands
        gamma = jnp.full((1, v), 0.5, jnp.float32)        # BN weight = 0.5
        beta = jnp.zeros((1, v), jnp.float32)             # BN bias = 0
        convs.append((w, gamma, beta))
        in_c = v
    key, fk = jax.random.split(key)
    fc_w = 0.01 * jax.random.normal(fk, (in_c, NUM_CLASSES), jnp.float32)
    fc_w = fc_w * 0.25        # fold the AvgPool2d(2) 1/4 factor into the FC
    fc_b = jnp.zeros((1, NUM_CLASSES), jnp.float32)
    return convs, fc_w, fc_b


if __name__ == "__main__":
    key = jax.random.PRNGKey(0)
    kx, kp = jax.random.split(key)
    # Spatial 8: two MaxPool stages (8 -> 4 -> 2) then AvgPool2d(2) -> 1x1,
    # so the flattened feature size equals CFG[-1], matching the Linear layer.
    x = jax.random.normal(kx, (2, 3, 8, 8), jnp.float32)  # NCHW, like PyTorch
    convs, fc_w, fc_b = init_params(kp, CFG)
    logits = vgg_forward(x, convs, fc_w, fc_b, CFG)
    logits = jax.block_until_ready(logits)
    assert logits.shape == (2, NUM_CLASSES)
    assert bool(jnp.all(jnp.isfinite(logits)))
    print("KERNEL_OK")
</pallas_src>

<mosaic_0001>
module attributes {stable_mosaic.version = 11 : i64} {
  func.func @kernel(%arg0: i32, %arg1: memref<2x8x8x3xf32, #tpu.memory_space<vmem>>, %arg2: memref<9x3x16xbf16, #tpu.memory_space<vmem>>, %arg3: memref<1x16xf32, #tpu.memory_space<vmem>>, %arg4: memref<1x16xf32, #tpu.memory_space<vmem>>, %arg5: memref<9x16x16xbf16, #tpu.memory_space<vmem>>, %arg6: memref<1x16xf32, #tpu.memory_space<vmem>>, %arg7: memref<1x16xf32, #tpu.memory_space<vmem>>, %arg8: memref<9x16x32xbf16, #tpu.memory_space<vmem>>, %arg9: memref<1x32xf32, #tpu.memory_space<vmem>>, %arg10: memref<1x32xf32, #tpu.memory_space<vmem>>, %arg11: memref<9x32x64xbf16, #tpu.memory_space<vmem>>, %arg12: memref<1x64xf32, #tpu.memory_space<vmem>>, %arg13: memref<1x64xf32, #tpu.memory_space<vmem>>, %arg14: memref<9x64x64xbf16, #tpu.memory_space<vmem>>, %arg15: memref<1x64xf32, #tpu.memory_space<vmem>>, %arg16: memref<1x64xf32, #tpu.memory_space<vmem>>, %arg17: memref<64x10xf32, #tpu.memory_space<vmem>>, %arg18: memref<1x10xf32, #tpu.memory_space<vmem>>, %arg19: memref<2x10xf32, #tpu.memory_space<vmem>>, %arg20: memref<2x10x10x64xf32, #tpu.memory_space<vmem>>) attributes {dimension_semantics = [#tpu.dimension_semantics<arbitrary>], iteration_bounds = array<i64: 1>, scalar_prefetch = 0 : i64, scratch_operands = 1 : i64, tpu.core_type = #tpu.core_type<tc>, window_params = [{pipeline_mode = #tpu.pipeline_mode<synchronous>, transform_indices = @transform_0, window_bounds = array<i64: 2, 8, 8, 3>}, {pipeline_mode = #tpu.pipeline_mode<synchronous>, transform_indices = @transform_1, window_bounds = array<i64: 9, 3, 16>}, {pipeline_mode = #tpu.pipeline_mode<synchronous>, transform_indices = @transform_2, window_bounds = array<i64: 1, 16>}, {pipeline_mode = #tpu.pipeline_mode<synchronous>, transform_indices = @transform_3, window_bounds = array<i64: 1, 16>}, {pipeline_mode = #tpu.pipeline_mode<synchronous>, transform_indices = @transform_4, window_bounds = array<i64: 9, 16, 16>}, {pipeline_mode = #tpu.pipeline_mode<synchronous>, transform_indices = @transform_5, window_bounds = array<i64: 1, 16>}, {pipeline_mode = #tpu.pipeline_mode<synchronous>, transform_indices = @transform_6, window_bounds = array<i64: 1, 16>}, {pipeline_mode = #tpu.pipeline_mode<synchronous>, transform_indices = @transform_7, window_bounds = array<i64: 9, 16, 32>}, {pipeline_mode = #tpu.pipeline_mode<synchronous>, transform_indices = @transform_8, window_bounds = array<i64: 1, 32>}, {pipeline_mode = #tpu.pipeline_mode<synchronous>, transform_indices = @transform_9, window_bounds = array<i64: 1, 32>}, {pipeline_mode = #tpu.pipeline_mode<synchronous>, transform_indices = @transform_10, window_bounds = array<i64: 9, 32, 64>}, {pipeline_mode = #tpu.pipeline_mode<synchronous>, transform_indices = @transform_11, window_bounds = array<i64: 1, 64>}, {pipeline_mode = #tpu.pipeline_mode<synchronous>, transform_indices = @transform_12, window_bounds = array<i64: 1, 64>}, {pipeline_mode = #tpu.pipeline_mode<synchronous>, transform_indices = @transform_13, window_bounds = array<i64: 9, 64, 64>}, {pipeline_mode = #tpu.pipeline_mode<synchronous>, transform_indices = @transform_14, window_bounds = array<i64: 1, 64>}, {pipeline_mode = #tpu.pipeline_mode<synchronous>, transform_indices = @transform_15, window_bounds = array<i64: 1, 64>}, {pipeline_mode = #tpu.pipeline_mode<synchronous>, transform_indices = @transform_16, window_bounds = array<i64: 64, 10>}, {pipeline_mode = #tpu.pipeline_mode<synchronous>, transform_indices = @transform_17, window_bounds = array<i64: 1, 10>}, {pipeline_mode = #tpu.pipeline_mode<synchronous>, transform_indices = @transform_18, window_bounds = array<i64: 2, 10>}]} {
    %c0 = arith.constant 0 : index
    %c0_0 = arith.constant 0 : index
    %c0_1 = arith.constant 0 : index
    %c0_2 = arith.constant 0 : index
    %0 = vector.load %arg1[%c0, %c0_0, %c0_1, %c0_2] : memref<2x8x8x3xf32, #tpu.memory_space<vmem>>, vector<2x8x8x3xf32>
    %cst = arith.constant 0.000000e+00 : f32
    %1 = vector.broadcast %cst : f32 to vector<2x10x10x64xf32>
    %c0_3 = arith.constant 0 : index
    %c0_4 = arith.constant 0 : index
    %c0_5 = arith.constant 0 : index
    %c0_6 = arith.constant 0 : index
    %2 = vector.load %arg20[%c0_3, %c0_4, %c0_5, %c0_6] : memref<2x10x10x64xf32, #tpu.memory_space<vmem>>, vector<2x10x10x64xf32>
    tpu.vector_store %arg20[%c0_3, %c0_4, %c0_5, %c0_6], %1 {strides = array<i32>} : memref<2x10x10x64xf32, #tpu.memory_space<vmem>>, vector<2x10x10x64xf32>,
    %c0_7 = arith.constant 0 : index
    %c1 = arith.constant 1 : index
    %c1_8 = arith.constant 1 : index
    %c0_9 = arith.constant 0 : index
    %3 = vector.load %arg20[%c0_7, %c1, %c1_8, %c0_9] : memref<2x10x10x64xf32, #tpu.memory_space<vmem>>, vector<2x8x8x3xf32>
    tpu.vector_store %arg20[%c0_7, %c1, %c1_8, %c0_9], %0 {strides = array<i32>} : memref<2x10x10x64xf32, #tpu.memory_space<vmem>>, vector<2x8x8x3xf32>,
    %cst_10 = arith.constant 0.000000e+00 : f32
    %4 = vector.broadcast %cst_10 : f32 to vector<128x16xf32>
    %c0_11 = arith.constant 0 : index
    %c0_12 = arith.constant 0 : index
    %c0_13 = arith.constant 0 : index
    %c0_14 = arith.constant 0 : index
    %5 = vector.load %arg20[%c0_11, %c0_12, %c0_13, %c0_14] : memref<2x10x10x64xf32, #tpu.memory_space<vmem>>, vector<2x8x8x3xf32>
    %6 = vector.shape_cast %5 : vector<2x8x8x3xf32> to vector<128x3xf32>
    %7 = arith.truncf %6 : vector<128x3xf32> to vector<128x3xbf16>
    %c0_15 = arith.constant 0 : index
    %c0_16 = arith.constant 0 : index
    %c0_17 = arith.constant 0 : index
    %8 = vector.load %arg2[%c0_15, %c0_16, %c0_17] : memref<9x3x16xbf16, #tpu.memory_space<vmem>>, vector<1x3x16xbf16>
    %9 = vector.shape_cast %8 : vector<1x3x16xbf16> to vector<3x16xbf16>
    %cst_18 = arith.constant dense<0.000000e+00> : vector<128x16xf32>
    %10 = tpu.matmul %7, %9, %cst_18 {dimension_numbers = #tpu.dot_dimension_numbers<[1], [0], [0], [1], [0, 0, 1, 1], [], []>} : vector<128x3xbf16>, vector<3x16xbf16>, vector<128x16xf32> -> vector<128x16xf32>
    %11 = arith.addf %4, %10 : vector<128x16xf32>
    %c0_19 = arith.constant 0 : index
    %c0_20 = arith.constant 0 : index
    %c1_21 = arith.constant 1 : index
    %c0_22 = arith.constant 0 : index
    %12 = vector.load %arg20[%c0_19, %c0_20, %c1_21, %c0_22] : memref<2x10x10x64xf32, #tpu.memory_space<vmem>>, vector<2x8x8x3xf32>
    %13 = vector.shape_cast %12 : vector<2x8x8x3xf32> to vector<128x3xf32>
    %14 = arith.truncf %13 : vector<128x3xf32> to vector<128x3xbf16>
    %c1_23 = arith.constant 1 : index
    %c0_24 = arith.constant 0 : index
    %c0_25 = arith.constant 0 : index
    %15 = vector.load %arg2[%c1_23, %c0_24, %c0_25] : memref<9x3x16xbf16, #tpu.memory_space<vmem>>, vector<1x3x16xbf16>
    %16 = vector.shape_cast %15 : vector<1x3x16xbf16> to vector<3x16xbf16>
    %cst_26 = arith.constant dense<0.000000e+00> : vector<128x16xf32>
    %17 = tpu.matmul %14, %16, %cst_26 {dimension_numbers = #tpu.dot_dimension_numbers<[1], [0], [0], [1], [0, 0, 1, 1], [], []>} : vector<128x3xbf16>, vector<3x16xbf16>, vector<128x16xf32> -> vector<128x16xf32>
    %18 = arith.addf %11, %17 : vector<128x16xf32>
    %c0_27 = arith.constant 0 : index
    %c0_28 = arith.constant 0 : index
    %c2 = arith.constant 2 : index
    %c0_29 = arith.constant 0 : index
    %19 = vector.load %arg20[%c0_27, %c0_28, %c2, %c0_29] : memref<2x10x10x64xf32, #tpu.memory_space<vmem>>, vector<2x8x8x3xf32>
    %20 = vector.shape_cast %19 : vector<2x8x8x3xf32> to vector<128x3xf32>
    %21 = arith.truncf %20 : vector<128x3xf32> to vector<128x3xbf16>
    %c2_30 = arith.constant 2 : index
    %c0_31 = arith.constant 0 : index
    %c0_32 = arith.constant 0 : index
    %22 = vector.load %arg2[%c2_30, %c0_31, %c0_32] : memref<9x3x16xbf16, #tpu.memory_space<vmem>>, vector<1x3x16xbf16>
    %23 = vector.shape_cast %22 : vector<1x3x16xbf16> to vector<3x16xbf16>
    %cst_33 = arith.constant dense<0.000000e+00> : vector<128x16xf32>
    %24 = tpu.matmul %21, %23, %cst_33 {dimension_numbers = #tpu.dot_dimension_numbers<[1], [0], [0], [1], [0, 0, 1, 1], [], []>} : vector<128x3xbf16>, vector<3x16xbf16>, vector<128x16xf32> -> vector<128x16xf32>
    %25 = arith.addf %18, %24 : vector<128x16xf32>
    %c0_34 = arith.constant 0 : index
    %c1_35 = arith.constant 1 : index
    %c0_36 = arith.constant 0 : index
    %c0_37 = arith.constant 0 : index
    %26 = vector.load %arg20[%c0_34, %c1_35, %c0_36, %c0_37] : memref<2x10x10x64xf32, #tpu.memory_space<vmem>>, vector<2x8x8x3xf32>
    %27 = vector.shape_cast %26 : vector<2x8x8x3xf32> to vector<128x3xf32>
    %28 = arith.truncf %27 : vector<128x3xf32> to vector<128x3xbf16>
    %c3 = arith.constant 3 : index
    %c0_38 = arith.constant 0 : index
    %c0_39 = arith.constant 0 : index
    %29 = vector.load %arg2[%c3, %c0_38, %c0_39] : memref<9x3x16xbf16, #tpu.memory_space<vmem>>, vector<1x3x16xbf16>
    %30 = vector.shape_cast %29 : vector<1x3x16xbf16> to vector<3x16xbf16>
    %cst_40 = arith.constant dense<0.000000e+00> : vector<128x16xf32>
    %31 = tpu.matmul %28, %30, %cst_40 {dimension_numbers = #tpu.dot_dimension_numbers<[1], [0], [0], [1], [0, 0, 1, 1], [], []>} : vector<128x3xbf16>, vector<3x16xbf16>, vector<128x16xf32> -> vector<128x16xf32>
    %32 = arith.addf %25, %31 : vector<128x16xf32>
    %c0_41 = arith.constant 0 : index
    %c1_42 = arith.constant 1 : index
    %c1_43 = arith.constant 1 : index
    %c0_44 = arith.constant 0 : index
    %33 = vector.load %arg20[%c0_41, %c1_42, %c1_43, %c0_44] : memref<2x10x10x64xf32, #tpu.memory_space<vmem>>, vector<2x8x8x3xf32>
    %34 = vector.shape_cast %33 : vector<2x8x8x3xf32> to vector<128x3xf32>
    %35 = arith.truncf %34 : vector<128x3xf32> to vector<128x3xbf16>
    %c4 = arith.constant 4 : index
    %c0_45 = arith.constant 0 : index
    %c0_46 = arith.constant 0 : index
    %36 = vector.load %arg2[%c4, %c0_45, %c0_46] : memref<9x3x16xbf16, #tpu.memory_space<vmem>>, vector<1x3x16xbf16>
    %37 = vector.shape_cast %36 : vector<1x3x16xbf16> to vector<3x16xbf16>
    %cst_47 = arith.constant dense<0.000000e+00> : vector<128x16xf32>
    %38 = tpu.matmul %35, %37, %cst_47 {dimension_numbers = #tpu.dot_dimension_numbers<[1], [0], [0], [1], [0, 0, 1, 1], [], []>} : vector<128x3xbf16>, vector<3x16xbf16>, vector<128x16xf32> -> vector<128x16xf32>
    %39 = arith.addf %32, %38 : vector<128x16xf32>
    %c0_48 = arith.constant 0 : index
    %c1_49 = arith.constant 1 : index
    %c2_50 = arith.constant 2 : index
    %c0_51 = arith.constant 0 : index
    %40 = vector.load %arg20[%c0_48, %c1_49, %c2_50, %c0_51] : memref<2x10x10x64xf32, #tpu.memory_space<vmem>>, vector<2x8x8x3xf32>
    %41 = vector.shape_cast %40 : vector<2x8x8x3xf32> to vector<128x3xf32>
    %42 = arith.truncf %41 : vector<128x3xf32> to vector<128x3xbf16>
    %c5 = arith.constant 5 : index
    %c0_52 = arith.constant 0 : index
    %c0_53 = arith.constant 0 : index
    %43 = vector.load %arg2[%c5, %c0_52, %c0_53] : memref<9x3x16xbf16, #tpu.memory_space<vmem>>, vector<1x3x16xbf16>
    %44 = vector.shape_cast %43 : vector<1x3x16xbf16> to vector<3x16xbf16>
    %cst_54 = arith.constant dense<0.000000e+00> : vector<128x16xf32>
    %45 = tpu.matmul %42, %44, %cst_54 {dimension_numbers = #tpu.dot_dimension_numbers<[1], [0], [0], [1], [0, 0, 1, 1], [], []>} : vector<128x3xbf16>, vector<3x16xbf16>, vector<128x16xf32> -> vector<128x16xf32>
    %46 = arith.addf %39, %45 : vector<128x16xf32>
    %c0_55 = arith.constant 0 : index
    %c2_56 = arith.constant 2 : index
    %c0_57 = arith.constant 0 : index
    %c0_58 = arith.constant 0 : index
    %47 = vector.load %arg20[%c0_55, %c2_56, %c0_57, %c0_58] : memref<2x10x10x64xf32, #tpu.memory_space<vmem>>, vector<2x8x8x3xf32>
    %48 = vector.shape_cast %47 : vector<2x8x8x3xf32> to vector<128x3xf32>
    %49 = arith.truncf %48 : vector<128x3xf32> to vector<128x3xbf16>
    %c6 = arith.constant 6 : index
    %c0_59 = arith.constant 0 : index
    %c0_60 = arith.constant 0 : index
    %50 = vector.load %arg2[%c6, %c0_59, %c0_60] : memref<9x3x16xbf16, #tpu.memory_space<vmem>>, vector<1x3x16xbf16>
    %51 = vector.shape_cast %50 : vector<1x3x16xbf16> to vector<3x16xbf16>
    %cst_61 = arith.constant dense<0.000000e+00> : vector<128x16xf32>
    %52 = tpu.matmul %49, %51, %cst_61 {dimension_numbers = #tpu.dot_dimension_numbers<[1], [0], [0], [1], [0, 0, 1, 1], [], []>} : vector<128x3xbf16>, vector<3x16xbf16>, vector<128x16xf32> -> vector<128x16xf32>
    %53 = arith.addf %46, %52 : vector<128x16xf32>
    %c0_62 = arith.constant 0 : index
    %c2_63 = arith.constant 2 : index
    %c1_64 = arith.constant 1 : index
    %c0_65 = arith.constant 0 : index
    %54 = vector.load %arg20[%c0_62, %c2_63, %c1_64, %c0_65] : memref<2x10x10x64xf32, #tpu.memory_space<vmem>>, vector<2x8x8x3xf32>
    %55 = vector.shape_cast %54 : vector<2x8x8x3xf32> to vector<128x3xf32>
    %56 = arith.truncf %55 : vector<128x3xf32> to vector<128x3xbf16>
    %c7 = arith.constant 7 : index
    %c0_66 = arith.constant 0 : index
    %c0_67 = arith.constant 0 : index
    %57 = vector.load %arg2[%c7, %c0_66, %c0_67] : memref<9x3x16xbf16, #tpu.memory_space<vmem>>, vector<1x3x16xbf16>
    %58 = vector.shape_cast %57 : vector<1x3x16xbf16> to vector<3x16xbf16>
    %cst_68 = arith.constant dense<0.000000e+00> : vector<128x16xf32>
    %59 = tpu.matmul %56, %58, %cst_68 {dimension_numbers = #tpu.dot_dimension_numbers<[1], [0], [0], [1], [0, 0, 1, 1], [], []>} : vector<128x3xbf16>, vector<3x16xbf16>, vector<128x16xf32> -> vector<128x16xf32>
    %60 = arith.addf %53, %59 : vector<128x16xf32>
    %c0_69 = arith.constant 0 : index
    %c2_70 = arith.constant 2 : index
    %c2_71 = arith.constant 2 : index
    %c0_72 = arith.constant 0 : index
    %61 = vector.load %arg20[%c0_69, %c2_70, %c2_71, %c0_72] : memref<2x10x10x64xf32, #tpu.memory_space<vmem>>, vector<2x8x8x3xf32>
    %62 = vector.shape_cast %61 : vector<2x8x8x3xf32> to vector<128x3xf32>
    %63 = arith.truncf %62 : vector<128x3xf32> to vector<128x3xbf16>
    %c8 = arith.constant 8 : index
    %c0_73 = arith.constant 0 : index
    %c0_74 = arith.constant 0 : index
    %64 = vector.load %arg2[%c8, %c0_73, %c0_74] : memref<9x3x16xbf16, #tpu.memory_space<vmem>>, vector<1x3x16xbf16>
    %65 = vector.shape_cast %64 : vector<1x3x16xbf16> to vector<3x16xbf16>
    %cst_75 = arith.constant dense<0.000000e+00> : vector<128x16xf32>
    %66 = tpu.matmul %63, %65, %cst_75 {dimension_numbers = #tpu.dot_dimension_numbers<[1], [0], [0], [1], [0, 0, 1, 1], [], []>} : vector<128x3xbf16>, vector<3x16xbf16>, vector<128x16xf32> -> vector<128x16xf32>
    %67 = arith.addf %60, %66 : vector<128x16xf32>
    %cst_76 = arith.constant dense<0.000000e+00> : vector<16xf32>
    %68 = vector.multi_reduction <add>, %67, %cst_76 [0] : vector<128x16xf32> to vector<16xf32>
    %69 = vector.shape_cast %68 : vector<16xf32> to vector<1x16xf32>
    %cst_77 = arith.constant 7.812500e-03 : f32
    %70 = vector.broadcast %cst_77 : f32 to vector<1x16xf32>
    %71 = arith.mulf %69, %70 : vector<1x16xf32>
    %72 = arith.mulf %67, %67 : vector<128x16xf32>
    %cst_78 = arith.constant dense<0.000000e+00> : vector<16xf32>
    %73 = vector.multi_reduction <add>, %72, %cst_78 [0] : vector<128x16xf32> to vector<16xf32>
    %74 = vector.shape_cast %73 : vector<16xf32> to vector<1x16xf32>
    %cst_79 = arith.constant 7.812500e-03 : f32
    %75 = vector.broadcast %cst_79 : f32 to vector<1x16xf32>
    %76 = arith.mulf %74, %75 : vector<1x16xf32>
    %77 = arith.mulf %71, %71 : vector<1x16xf32>
    %78 = arith.subf %76, %77 : vector<1x16xf32>
    %cst_80 = arith.constant 0.000000e+00 : f32
    %79 = vector.broadcast %cst_80 : f32 to vector<1x16xf32>
    %80 = arith.maximumf %78, %79 : vector<1x16xf32>
    %c0_81 = arith.constant 0 : index
    %c0_82 = arith.constant 0 : index
    %81 = vector.load %arg3[%c0_81, %c0_82] : memref<1x16xf32, #tpu.memory_space<vmem>>, vector<1x16xf32>
    %cst_83 = arith.constant 9.99999974E-6 : f32
    %82 = vector.broadcast %cst_83 : f32 to vector<1x16xf32>
    %83 = arith.addf %80, %82 : vector<1x16xf32>
    %84 = math.rsqrt %83 : vector<1x16xf32>
    %85 = arith.mulf %81, %84 : vector<1x16xf32>
    %c0_84 = arith.constant 0 : index
    %c0_85 = arith.constant 0 : index
    %86 = vector.load %arg4[%c0_84, %c0_85] : memref<1x16xf32, #tpu.memory_space<vmem>>, vector<1x16xf32>
    %87 = arith.mulf %71, %85 : vector<1x16xf32>
    %88 = arith.subf %86, %87 : vector<1x16xf32>
    %89 = vector.broadcast %85 : vector<1x16xf32> to vector<128x16xf32>
    %90 = arith.mulf %67, %89 : vector<128x16xf32>
    %91 = vector.broadcast %88 : vector<1x16xf32> to vector<128x16xf32>
    %92 = arith.addf %90, %91 : vector<128x16xf32>
    %cst_86 = arith.constant 0.000000e+00 : f32
    %93 = vector.broadcast %cst_86 : f32 to vector<128x16xf32>
    %94 = arith.maximumf %92, %93 : vector<128x16xf32>
    %95 = vector.shape_cast %94 : vector<128x16xf32> to vector<2x8x8x16xf32>
    %cst_87 = arith.constant 0.000000e+00 : f32
    %96 = vector.broadcast %cst_87 : f32 to vector<2x10x10x64xf32>
    %c0_88 = arith.constant 0 : index
    %c0_89 = arith.constant 0 : index
    %c0_90 = arith.constant 0 : index
    %c0_91 = arith.constant 0 : index
    %97 = vector.load %arg20[%c0_88, %c0_89, %c0_90, %c0_91] : memref<2x10x10x64xf32, #tpu.memory_space<vmem>>, vector<2x10x10x64xf32>
    tpu.vector_store %arg20[%c0_88, %c0_89, %c0_90, %c0_91], %96 {strides = array<i32>} : memref<2x10x10x64xf32, #tpu.memory_space<vmem>>, vector<2x10x10x64xf32>,
    %c0_92 = arith.constant 0 : index
    %c1_93 = arith.constant 1 : index
    %c1_94 = arith.constant 1 : index
    %c0_95 = arith.constant 0 : index
    %98 = vector.load %arg20[%c0_92, %c1_93, %c1_94, %c0_95] : memref<2x10x10x64xf32, #tpu.memory_space<vmem>>, vector<2x8x8x16xf32>
    tpu.vector_store %arg20[%c0_92, %c1_93, %c1_94, %c0_95], %95 {strides = array<i32>} : memref<2x10x10x64xf32, #tpu.memory_space<vmem>>, vector<2x8x8x16xf32>,
    %cst_96 = arith.constant 0.000000e+00 : f32
    %99 = vector.broadcast %cst_96 : f32 to vector<128x16xf32>
    %c0_97 = arith.constant 0 : index
    %c0_98 = arith.constant 0 : index
    %c0_99 = arith.constant 0 : index
    %c0_100 = arith.constant 0 : index
    %100 = vector.load %arg20[%c0_97, %c0_98, %c0_99, %c0_100] : memref<2x10x10x64xf32, #tpu.memory_space<vmem>>, vector<2x8x8x16xf32>
    %101 = vector.shape_cast %100 : vector<2x8x8x16xf32> to vector<128x16xf32>
    %102 = arith.truncf %101 : vector<128x16xf32> to vector<128x16xbf16>
    %c0_101 = arith.constant 0 : index
    %c0_102 = arith.constant 0 : index
    %c0_103 = arith.constant 0 : index
    %103 = vector.load %arg5[%c0_101, %c0_102, %c0_103] : memref<9x16x16xbf16, #tpu.memory_space<vmem>>, vector<1x16x16xbf16>
    %104 = vector.shape_cast %103 : vector<1x16x16xbf16> to vector<16x16xbf16>
    %cst_104 = arith.constant dense<0.000000e+00> : vector<128x16xf32>
    %105 = tpu.matmul %102, %104, %cst_104 {dimension_numbers = #tpu.dot_dimension_numbers<[1], [0], [0], [1], [0, 0, 1, 1], [], []>} : vector<128x16xbf16>, vector<16x16xbf16>, vector<128x16xf32> -> vector<128x16xf32>
    %106 = arith.addf %99, %105 : vector<128x16xf32>
    %c0_105 = arith.constant 0 : index
    %c0_106 = arith.constant 0 : index
    %c1_107 = arith.constant 1 : index
    %c0_108 = arith.constant 0 : index
    %107 = vector.load %arg20[%c0_105, %c0_106, %c1_107, %c0_108] : memref<2x10x10x64xf32, #tpu.memory_space<vmem>>, vector<2x8x8x16xf32>
    %108 = vector.shape_cast %107 : vector<2x8x8x16xf32> to vector<128x16xf32>
    %109 = arith.truncf %108 : vector<128x16xf32> to vector<128x16xbf16>
    %c1_109 = arith.constant 1 : index
    %c0_110 = arith.constant 0 : index
    %c0_111 = arith.constant 0 : index
    %110 = vector.load %arg5[%c1_109, %c0_110, %c0_111] : memref<9x16x16xbf16, #tpu.memory_space<vmem>>, vector<1x16x16xbf16>
    %111 = vector.shape_cast %110 : vector<1x16x16xbf16> to vector<16x16xbf16>
    %cst_112 = arith.constant dense<0.000000e+00> : vector<128x16xf32>
    %112 = tpu.matmul %109, %111, %cst_112 {dimension_numbers = #tpu.dot_dimension_numbers<[1], [0], [0], [1], [0, 0, 1, 1], [], []>} : vector<128x16xbf16>, vector<16x16xbf16>, vector<128x16xf32> -> vector<128x16xf32>
    %113 = arith.addf %106, %112 : vector<128x16xf32>
    %c0_113 = arith.constant 0 : index
    %c0_114 = arith.constant 0 : index
    %c2_115 = arith.constant 2 : index
    %c0_116 = arith.constant 0 : index
    %114 = vector.load %arg20[%c0_113, %c0_114, %c2_115, %c0_116] : memref<2x10x10x64xf32, #tpu.memory_space<vmem>>, vector<2x8x8x16xf32>
    %115 = vector.shape_cast %114 : vector<2x8x8x16xf32> to vector<128x16xf32>
    %116 = arith.truncf %115 : vector<128x16xf32> to vector<128x16xbf16>
    %c2_117 = arith.constant 2 : index
    %c0_118 = arith.constant 0 : index
    %c0_119 = arith.constant 0 : index
    %117 = vector.load %arg5[%c2_117, %c0_118, %c0_119] : memref<9x16x16xbf16, #tpu.memory_space<vmem>>, vector<1x16x16xbf16>
    %118 = vector.shape_cast %117 : vector<1x16x16xbf16> to vector<16x16xbf16>
    %cst_120 = arith.constant dense<0.000000e+00> : vector<128x16xf32>
    %119 = tpu.matmul %116, %118, %cst_120 {dimension_numbers = #tpu.dot_dimension_numbers<[1], [0], [0], [1], [0, 0, 1, 1], [], []>} : vector<128x16xbf16>, vector<16x16xbf16>, vector<128x16xf32> -> vector<128x16xf32>
    %120 = arith.addf %113, %119 : vector<128x16xf32>
    %c0_121 = arith.constant 0 : index
    %c1_122 = arith.constant 1 : index
    %c0_123 = arith.constant 0 : index
    %c0_124 = arith.constant 0 : index
    %121 = vector.load %arg20[%c0_121, %c1_122, %c0_123, %c0_124] : memref<2x10x10x64xf32, #tpu.memory_space<vmem>>, vector<2x8x8x16xf32>
    %122 = vector.shape_cast %121 : vector<2x8x8x16xf32> to vector<128x16xf32>
    %123 = arith.truncf %122 : vector<128x16xf32> to vector<128x16xbf16>
    %c3_125 = arith.constant 3 : index
    %c0_126 = arith.constant 0 : index
    %c0_127 = arith.constant 0 : index
    %124 = vector.load %arg5[%c3_125, %c0_126, %c0_127] : memref<9x16x16xbf16, #tpu.memory_space<vmem>>, vector<1x16x16xbf16>
    %125 = vector.shape_cast %124 : vector<1x16x16xbf16> to vector<16x16xbf16>
    %cst_128 = arith.constant dense<0.000000e+00> : vector<128x16xf32>
    %126 = tpu.matmul %123, %125, %cst_128 {dimension_numbers = #tpu.dot_dimension_numbers<[1], [0], [0], [1], [0, 0, 1, 1], [], []>} : vector<128x16xbf16>, vector<16x16xbf16>, vector<128x16xf32> -> vector<128x16xf32>
    %127 = arith.addf %120, %126 : vector<128x16xf32>
    %c0_129 = arith.constant 0 : index
    %c1_130 = arith.constant 1 : index
    %c1_131 = arith.constant 1 : index
    %c0_132 = arith.constant 0 : index
    %128 = vector.load %arg20[%c0_129, %c1_130, %c1_131, %c0_132] : memref<2x10x10x64xf32, #tpu.memory_space<vmem>>, vector<2x8x8x16xf32>
    %129 = vector.shape_cast %128 : vector<2x8x8x16xf32> to vector<128x16xf32>
    %130 = arith.truncf %129 : vector<128x16xf32> to vector<128x16xbf16>
    %c4_133 = arith.constant 4 : index
    %c0_134 = arith.constant 0 : index
    %c0_135 = arith.constant 0 : index
    %131 = vector.load %arg5[%c4_133, %c0_134, %c0_135] : memref<9x16x16xbf16, #tpu.memory_space<vmem>>, vector<1x16x16xbf16>
    %132 = vector.shape_cast %131 : vector<1x16x16xbf16> to vector<16x16xbf16>
    %cst_136 = arith.constant dense<0.000000e+00> : vector<128x16xf32>
    %133 = tpu.matmul %130, %132, %cst_136 {dimension_numbers = #tpu.dot_dimension_numbers<[1], [0], [0], [1], [0, 0, 1, 1], [], []>} : vector<128x16xbf16>, vector<16x16xbf16>, vector<128x16xf32> -> vector<128x16xf32>
    %134 = arith.addf %127, %133 : vector<128x16xf32>
    %c0_137 = arith.constant 0 : index
    %c1_138 = arith.constant 1 : index
    %c2_139 = arith.constant 2 : index
    %c0_140 = arith.constant 0 : index
    %135 = vector.load %arg20[%c0_137, %c1_138, %c2_139, %c0_140] : memref<2x10x10x64xf32, #tpu.memory_space<vmem>>, vector<2x8x8x16xf32>
    %136 = vector.shape_cast %135 : vector<2x8x8x16xf32> to vector<128x16xf32>
    %137 = arith.truncf %136 : vector<128x16xf32> to vector<128x16xbf16>
    %c5_141 = arith.constant 5 : index
    %c0_142 = arith.constant 0 : index
    %c0_143 = arith.constant 0 : index
    %138 = vector.load %arg5[%c5_141, %c0_142, %c0_143] : memref<9x16x16xbf16, #tpu.memory_space<vmem>>, vector<1x16x16xbf16>
    %139 = vector.shape_cast %138 : vector<1x16x16xbf16> to vector<16x16xbf16>
    %cst_144 = arith.constant dense<0.000000e+00> : vector<128x16xf32>
    %140 = tpu.matmul %137, %139, %cst_144 {dimension_numbers = #tpu.dot_dimension_numbers<[1], [0], [0], [1], [0, 0, 1, 1], [], []>} : vector<128x16xbf16>, vector<16x16xbf16>, vector<128x16xf32> -> vector<128x16xf32>
    %141 = arith.addf %134, %140 : vector<128x16xf32>
    %c0_145 = arith.constant 0 : index
    %c2_146 = arith.constant 2 : index
    %c0_147 = arith.constant 0 : index
    %c0_148 = arith.constant 0 : index
    %142 = vector.load %arg20[%c0_145, %c2_146, %c0_147, %c0_148] : memref<2x10x10x64xf32, #tpu.memory_space<vmem>>, vector<2x8x8x16xf32>
    %143 = vector.shape_cast %142 : vector<2x8x8x16xf32> to vector<128x16xf32>
    %144 = arith.truncf %143 : vector<128x16xf32> to vector<128x16xbf16>
    %c6_149 = arith.constant 6 : index
    %c0_150 = arith.constant 0 : index
    %c0_151 = arith.constant 0 : index
    %145 = vector.load %arg5[%c6_149, %c0_150, %c0_151] : memref<9x16x16xbf16, #tpu.memory_space<vmem>>, vector<1x16x16xbf16>
    %146 = vector.shape_cast %145 : vector<1x16x16xbf16> to vector<16x16xbf16>
    %cst_152 = arith.constant dense<0.000000e+00> : vector<128x16xf32>
    %147 = tpu.matmul %144, %146, %cst_152 {dimension_numbers = #tpu.dot_dimension_numbers<[1], [0], [0], [1], [0, 0, 1, 1], [], []>} : vector<128x16xbf16>, vector<16x16xbf16>, vector<128x16xf32> -> vector<128x16xf32>
    %148 = arith.addf %141, %147 : vector<128x16xf32>
    %c0_153 = arith.constant 0 : index
    %c2_154 = arith.constant 2 : index
    %c1_155 = arith.constant 1 : index
    %c0_156 = arith.constant 0 : index
    %149 = vector.load %arg20[%c0_153, %c2_154, %c1_155, %c0_156] : memref<2x10x10x64xf32, #tpu.memory_space<vmem>>, vector<2x8x8x16xf32>
    %150 = vector.shape_cast %149 : vector<2x8x8x16xf32> to vector<128x16xf32>
    %151 = arith.truncf %150 : vector<128x16xf32> to vector<128x16xbf16>
    %c7_157 = arith.constant 7 : index
    %c0_158 = arith.constant 0 : index
    %c0_159 = arith.constant 0 : index
    %152 = vector.load %arg5[%c7_157, %c0_158, %c0_159] : memref<9x16x16xbf16, #tpu.memory_space<vmem>>, vector<1x16x16xbf16>
    %153 = vector.shape_cast %152 : vector<1x16x16xbf16> to vector<16x16xbf16>
    %cst_160 = arith.constant dense<0.000000e+00> : vector<128x16xf32>
    %154 = tpu.matmul %151, %153, %cst_160 {dimension_numbers = #tpu.dot_dimension_numbers<[1], [0], [0], [1], [0, 0, 1, 1], [], []>} : vector<128x16xbf16>, vector<16x16xbf16>, vector<128x16xf32> -> vector<128x16xf32>
    %155 = arith.addf %148, %154 : vector<128x16xf32>
    %c0_161 = arith.constant 0 : index
    %c2_162 = arith.constant 2 : index
    %c2_163 = arith.constant 2 : index
    %c0_164 = arith.constant 0 : index
    %156 = vector.load %arg20[%c0_161, %c2_162, %c2_163, %c0_164] : memref<2x10x10x64xf32, #tpu.memory_space<vmem>>, vector<2x8x8x16xf32>
    %157 = vector.shape_cast %156 : vector<2x8x8x16xf32> to vector<128x16xf32>
    %158 = arith.truncf %157 : vector<128x16xf32> to vector<128x16xbf16>
    %c8_165 = arith.constant 8 : index
    %c0_166 = arith.constant 0 : index
    %c0_167 = arith.constant 0 : index
    %159 = vector.load %arg5[%c8_165, %c0_166, %c0_167] : memref<9x16x16xbf16, #tpu.memory_space<vmem>>, vector<1x16x16xbf16>
    %160 = vector.shape_cast %159 : vector<1x16x16xbf16> to vector<16x16xbf16>
    %cst_168 = arith.constant dense<0.000000e+00> : vector<128x16xf32>
    %161 = tpu.matmul %158, %160, %cst_168 {dimension_numbers = #tpu.dot_dimension_numbers<[1], [0], [0], [1], [0, 0, 1, 1], [], []>} : vector<128x16xbf16>, vector<16x16xbf16>, vector<128x16xf32> -> vector<128x16xf32>
    %162 = arith.addf %155, %161 : vector<128x16xf32>
    %cst_169 = arith.constant dense<0.000000e+00> : vector<16xf32>
    %163 = vector.multi_reduction <add>, %162, %cst_169 [0] : vector<128x16xf32> to vector<16xf32>
    %164 = vector.shape_cast %163 : vector<16xf32> to vector<1x16xf32>
    %cst_170 = arith.constant 7.812500e-03 : f32
    %165 = vector.broadcast %cst_170 : f32 to vector<1x16xf32>
    %166 = arith.mulf %164, %165 : vector<1x16xf32>
    %167 = arith.mulf %162, %162 : vector<128x16xf32>
    %cst_171 = arith.constant dense<0.000000e+00> : vector<16xf32>
    %168 = vector.multi_reduction <add>, %167, %cst_171 [0] : vector<128x16xf32> to vector<16xf32>
    %169 = vector.shape_cast %168 : vector<16xf32> to vector<1x16xf32>
    %cst_172 = arith.constant 7.812500e-03 : f32
    %170 = vector.broadcast %cst_172 : f32 to vector<1x16xf32>
    %171 = arith.mulf %169, %170 : vector<1x16xf32>
    %172 = arith.mulf %166, %166 : vector<1x16xf32>
    %173 = arith.subf %171, %172 : vector<1x16xf32>
    %cst_173 = arith.constant 0.000000e+00 : f32
    %174 = vector.broadcast %cst_173 : f32 to vector<1x16xf32>
    %175 = arith.maximumf %173, %174 : vector<1x16xf32>
    %c0_174 = arith.constant 0 : index
    %c0_175 = arith.constant 0 : index
    %176 = vector.load %arg6[%c0_174, %c0_175] : memref<1x16xf32, #tpu.memory_space<vmem>>, vector<1x16xf32>
    %cst_176 = arith.constant 9.99999974E-6 : f32
    %177 = vector.broadcast %cst_176 : f32 to vector<1x16xf32>
    %178 = arith.addf %175, %177 : vector<1x16xf32>
    %179 = math.rsqrt %178 : vector<1x16xf32>
    %180 = arith.mulf %176, %179 : vector<1x16xf32>
    %c0_177 = arith.constant 0 : index
    %c0_178 = arith.constant 0 : index
    %181 = vector.load %arg7[%c0_177, %c0_178] : memref<1x16xf32, #tpu.memory_space<vmem>>, vector<1x16xf32>
    %182 = arith.mulf %166, %180 : vector<1x16xf32>
    %183 = arith.subf %181, %182 : vector<1x16xf32>
    %184 = vector.broadcast %180 : vector<1x16xf32> to vector<128x16xf32>
    %185 = arith.mulf %162, %184 : vector<128x16xf32>
    %186 = vector.broadcast %183 : vector<1x16xf32> to vector<128x16xf32>
    %187 = arith.addf %185, %186 : vector<128x16xf32>
    %cst_179 = arith.constant 0.000000e+00 : f32
    %188 = vector.broadcast %cst_179 : f32 to vector<128x16xf32>
    %189 = arith.maximumf %187, %188 : vector<128x16xf32>
    %190 = vector.shape_cast %189 : vector<128x16xf32> to vector<2x8x8x16xf32>
    %191 = vector.shape_cast %190 : vector<2x8x8x16xf32> to vector<2x8x4x2x16xf32>
    %192 = vector.extract_strided_slice %191 {offsets = [0, 0, 0, 0, 0], sizes = [2, 8, 4, 1, 16], strides = [1, 1, 1, 1, 1]} : vector<2x8x4x2x16xf32> to vector<2x8x4x1x16xf32>
    %193 = vector.shape_cast %192 : vector<2x8x4x1x16xf32> to vector<2x8x4x16xf32>
    %194 = vector.extract_strided_slice %191 {offsets = [0, 0, 0, 1, 0], sizes = [2, 8, 4, 1, 16], strides = [1, 1, 1, 1, 1]} : vector<2x8x4x2x16xf32> to vector<2x8x4x1x16xf32>
    %195 = vector.shape_cast %194 : vector<2x8x4x1x16xf32> to vector<2x8x4x16xf32>
    %196 = arith.maximumf %193, %195 : vector<2x8x4x16xf32>
    %197 = vector.shape_cast %196 : vector<2x8x4x16xf32> to vector<2x4x2x4x16xf32>
    %198 = vector.extract_strided_slice %197 {offsets = [0, 0, 0, 0, 0], sizes = [2, 4, 1, 4, 16], strides = [1, 1, 1, 1, 1]} : vector<2x4x2x4x16xf32> to vector<2x4x1x4x16xf32>
    %199 = vector.shape_cast %198 : vector<2x4x1x4x16xf32> to vector<2x4x4x16xf32>
    %200 = vector.extract_strided_slice %197 {offsets = [0, 0, 1, 0, 0], sizes = [2, 4, 1, 4, 16], strides = [1, 1, 1, 1, 1]} : vector<2x4x2x4x16xf32> to vector<2x4x1x4x16xf32>
    %201 = vector.shape_cast %200 : vector<2x4x1x4x16xf32> to vector<2x4x4x16xf32>
    %202 = arith.maximumf %199, %201 : vector<2x4x4x16xf32>
    %cst_180 = arith.constant 0.000000e+00 : f32
    %203 = vector.broadcast %cst_180 : f32 to vector<2x10x10x64xf32>
    %c0_181 = arith.constant 0 : index
    %c0_182 = arith.constant 0 : index
    %c0_183 = arith.constant 0 : index
    %c0_184 = arith.constant 0 : index
    %204 = vector.load %arg20[%c0_181, %c0_182, %c0_183, %c0_184] : memref<2x10x10x64xf32, #tpu.memory_space<vmem>>, vector<2x10x10x64xf32>
    tpu.vector_store %arg20[%c0_181, %c0_182, %c0_183, %c0_184], %203 {strides = array<i32>} : memref<2x10x10x64xf32, #tpu.memory_space<vmem>>, vector<2x10x10x64xf32>,
    %c0_185 = arith.constant 0 : index
    %c1_186 = arith.constant 1 : index
    %c1_187 = arith.constant 1 : index
    %c0_188 = arith.constant 0 : index
    %205 = vector.load %arg20[%c0_185, %c1_186, %c1_187, %c0_188] : memref<2x10x10x64xf32, #tpu.memory_space<vmem>>, vector<2x4x4x16xf32>
    tpu.vector_store %arg20[%c0_185, %c1_186, %c1_187, %c0_188], %202 {strides = array<i32>} : memref<2x10x10x64xf32, #tpu.memory_space<vmem>>, vector<2x4x4x16xf32>,
    %cst_189 = arith.constant 0.000000e+00 : f32
    %206 = vector.broadcast %cst_189 : f32 to vector<32x32xf32>
    %c0_190 = arith.constant 0 : index
    %c0_191 = arith.constant 0 : index
    %c0_192 = arith.constant 0 : index
    %c0_193 = arith.constant 0 : index
    %207 = vector.load %arg20[%c0_190, %c0_191, %c0_192, %c0_193] : memref<2x10x10x64xf32, #tpu.memory_space<vmem>>, vector<2x4x4x16xf32>
    %208 = vector.shape_cast %207 : vector<2x4x4x16xf32> to vector<32x16xf32>
    %209 = arith.truncf %208 : vector<32x16xf32> to vector<32x16xbf16>
    %c0_194 = arith.constant 0 : index
    %c0_195 = arith.constant 0 : index
    %c0_196 = arith.constant 0 : index
    %210 = vector.load %arg8[%c0_194, %c0_195, %c0_196] : memref<9x16x32xbf16, #tpu.memory_space<vmem>>, vector<1x16x32xbf16>
    %211 = vector.shape_cast %210 : vector<1x16x32xbf16> to vector<16x32xbf16>
    %cst_197 = arith.constant dense<0.000000e+00> : vector<32x32xf32>
    %212 = tpu.matmul %209, %211, %cst_197 {dimension_numbers = #tpu.dot_dimension_numbers<[1], [0], [0], [1], [0, 0, 1, 1], [], []>} : vector<32x16xbf16>, vector<16x32xbf16>, vector<32x32xf32> -> vector<32x32xf32>
    %213 = arith.addf %206, %212 : vector<32x32xf32>
    %c0_198 = arith.constant 0 : index
    %c0_199 = arith.constant 0 : index
    %c1_200 = arith.constant 1 : index
    %c0_201 = arith.constant 0 : index
    %214 = vector.load %arg20[%c0_198, %c0_199, %c1_200, %c0_201] : memref<2x10x10x64xf32, #tpu.memory_space<vmem>>, vector<2x4x4x16xf32>
    %215 = vector.shape_cast %214 : vector<2x4x4x16xf32> to vector<32x16xf32>
    %216 = arith.truncf %215 : vector<32x16xf32> to vector<32x16xbf16>
    %c1_202 = arith.constant 1 : index
    %c0_203 = arith.constant 0 : index
    %c0_204 = arith.constant 0 : index
    %217 = vector.load %arg8[%c1_202, %c0_203, %c0_204] : memref<9x16x32xbf16, #tpu.memory_space<vmem>>, vector<1x16x32xbf16>
    %218 = vector.shape_cast %217 : vector<1x16x32xbf16> to vector<16x32xbf16>
    %cst_205 = arith.constant dense<0.000000e+00> : vector<32x32xf32>
    %219 = tpu.matmul %216, %218, %cst_205 {dimension_numbers = #tpu.dot_dimension_numbers<[1], [0], [0], [1], [0, 0, 1, 1], [], []>} : vector<32x16xbf16>, vector<16x32xbf16>, vector<32x32xf32> -> vector<32x32xf32>
    %220 = arith.addf %213, %219 : vector<32x32xf32>
    %c0_206 = arith.constant 0 : index
    %c0_207 = arith.constant 0 : index
    %c2_208 = arith.constant 2 : index
    %c0_209 = arith.constant 0 : index
    %221 = vector.load %arg20[%c0_206, %c0_207, %c2_208, %c0_209] : memref<2x10x10x64xf32, #tpu.memory_space<vmem>>, vector<2x4x4x16xf32>
    %222 = vector.shape_cast %221 : vector<2x4x4x16xf32> to vector<32x16xf32>
    %223 = arith.truncf %222 : vector<32x16xf32> to vector<32x16xbf16>
    %c2_210 = arith.constant 2 : index
    %c0_211 = arith.constant 0 : index
    %c0_212 = arith.constant 0 : index
    %224 = vector.load %arg8[%c2_210, %c0_211, %c0_212] : memref<9x16x32xbf16, #tpu.memory_space<vmem>>, vector<1x16x32xbf16>
    %225 = vector.shape_cast %224 : vector<1x16x32xbf16> to vector<16x32xbf16>
    %cst_213 = arith.constant dense<0.000000e+00> : vector<32x32xf32>
    %226 = tpu.matmul %223, %225, %cst_213 {dimension_numbers = #tpu.dot_dimension_numbers<[1], [0], [0], [1], [0, 0, 1, 1], [], []>} : vector<32x16xbf16>, vector<16x32xbf16>, vector<32x32xf32> -> vector<32x32xf32>
    %227 = arith.addf %220, %226 : vector<32x32xf32>
    %c0_214 = arith.constant 0 : index
    %c1_215 = arith.constant 1 : index
    %c0_216 = arith.constant 0 : index
    %c0_217 = arith.constant 0 : index
    %228 = vector.load %arg20[%c0_214, %c1_215, %c0_216, %c0_217] : memref<2x10x10x64xf32, #tpu.memory_space<vmem>>, vector<2x4x4x16xf32>
    %229 = vector.shape_cast %228 : vector<2x4x4x16xf32> to vector<32x16xf32>
    %230 = arith.truncf %229 : vector<32x16xf32> to vector<32x16xbf16>
    %c3_218 = arith.constant 3 : index
    %c0_219 = arith.constant 0 : index
    %c0_220 = arith.constant 0 : index
    %231 = vector.load %arg8[%c3_218, %c0_219, %c0_220] : memref<9x16x32xbf16, #tpu.memory_space<vmem>>, vector<1x16x32xbf16>
    %232 = vector.shape_cast %231 : vector<1x16x32xbf16> to vector<16x32xbf16>
    %cst_221 = arith.constant dense<0.000000e+00> : vector<32x32xf32>
    %233 = tpu.matmul %230, %232, %cst_221 {dimension_numbers = #tpu.dot_dimension_numbers<[1], [0], [0], [1], [0, 0, 1, 1], [], []>} : vector<32x16xbf16>, vector<16x32xbf16>, vector<32x32xf32> -> vector<32x32xf32>
    %234 = arith.addf %227, %233 : vector<32x32xf32>
    %c0_222 = arith.constant 0 : index
    %c1_223 = arith.constant 1 : index
    %c1_224 = arith.constant 1 : index
    %c0_225 = arith.constant 0 : index
    %235 = vector.load %arg20[%c0_222, %c1_223, %c1_224, %c0_225] : memref<2x10x10x64xf32, #tpu.memory_space<vmem>>, vector<2x4x4x16xf32>
    %236 = vector.shape_cast %235 : vector<2x4x4x16xf32> to vector<32x16xf32>
    %237 = arith.truncf %236 : vector<32x16xf32> to vector<32x16xbf16>
    %c4_226 = arith.constant 4 : index
    %c0_227 = arith.constant 0 : index
    %c0_228 = arith.constant 0 : index
    %238 = vector.load %arg8[%c4_226, %c0_227, %c0_228] : memref<9x16x32xbf16, #tpu.memory_space<vmem>>, vector<1x16x32xbf16>
    %239 = vector.shape_cast %238 : vector<1x16x32xbf16> to vector<16x32xbf16>
    %cst_229 = arith.constant dense<0.000000e+00> : vector<32x32xf32>
    %240 = tpu.matmul %237, %239, %cst_229 {dimension_numbers = #tpu.dot_dimension_numbers<[1], [0], [0], [1], [0, 0, 1, 1], [], []>} : vector<32x16xbf16>, vector<16x32xbf16>, vector<32x32xf32> -> vector<32x32xf32>
    %241 = arith.addf %234, %240 : vector<32x32xf32>
    %c0_230 = arith.constant 0 : index
    %c1_231 = arith.constant 1 : index
    %c2_232 = arith.constant 2 : index
    %c0_233 = arith.constant 0 : index
    %242 = vector.load %arg20[%c0_230, %c1_231, %c2_232, %c0_233] : memref<2x10x10x64xf32, #tpu.memory_space<vmem>>, vector<2x4x4x16xf32>
    %243 = vector.shape_cast %242 : vector<2x4x4x16xf32> to vector<32x16xf32>
    %244 = arith.truncf %243 : vector<32x16xf32> to vector<32x16xbf16>
    %c5_234 = arith.constant 5 : index
    %c0_235 = arith.constant 0 : index
    %c0_236 = arith.constant 0 : index
    %245 = vector.load %arg8[%c5_234, %c0_235, %c0_236] : memref<9x16x32xbf16, #tpu.memory_space<vmem>>, vector<1x16x32xbf16>
    %246 = vector.shape_cast %245 : vector<1x16x32xbf16> to vector<16x32xbf16>
    %cst_237 = arith.constant dense<0.000000e+00> : vector<32x32xf32>
    %247 = tpu.matmul %244, %246, %cst_237 {dimension_numbers = #tpu.dot_dimension_numbers<[1], [0], [0], [1], [0, 0, 1, 1], [], []>} : vector<32x16xbf16>, vector<16x32xbf16>, vector<32x32xf32> -> vector<32x32xf32>
    %248 = arith.addf %241, %247 : vector<32x32xf32>
    %c0_238 = arith.constant 0 : index
    %c2_239 = arith.constant 2 : index
    %c0_240 = arith.constant 0 : index
    %c0_241 = arith.constant 0 : index
    %249 = vector.load %arg20[%c0_238, %c2_239, %c0_240, %c0_241] : memref<2x10x10x64xf32, #tpu.memory_space<vmem>>, vector<2x4x4x16xf32>
    %250 = vector.shape_cast %249 : vector<2x4x4x16xf32> to vector<32x16xf32>
    %251 = arith.truncf %250 : vector<32x16xf32> to vector<32x16xbf16>
    %c6_242 = arith.constant 6 : index
    %c0_243 = arith.constant 0 : index
    %c0_244 = arith.constant 0 : index
    %252 = vector.load %arg8[%c6_242, %c0_243, %c0_244] : memref<9x16x32xbf16, #tpu.memory_space<vmem>>, vector<1x16x32xbf16>
    %253 = vector.shape_cast %252 : vector<1x16x32xbf16> to vector<16x32xbf16>
    %cst_245 = arith.constant dense<0.000000e+00> : vector<32x32xf32>
    %254 = tpu.matmul %251, %253, %cst_245 {dimension_numbers = #tpu.dot_dimension_numbers<[1], [0], [0], [1], [0, 0, 1, 1], [], []>} : vector<32x16xbf16>, vector<16x32xbf16>, vector<32x32xf32> -> vector<32x32xf32>
    %255 = arith.addf %248, %254 : vector<32x32xf32>
    %c0_246 = arith.constant 0 : index
    %c2_247 = arith.constant 2 : index
    %c1_248 = arith.constant 1 : index
    %c0_249 = arith.constant 0 : index
    %256 = vector.load %arg20[%c0_246, %c2_247, %c1_248, %c0_249] : memref<2x10x10x64xf32, #tpu.memory_space<vmem>>, vector<2x4x4x16xf32>
    %257 = vector.shape_cast %256 : vector<2x4x4x16xf32> to vector<32x16xf32>
    %258 = arith.truncf %257 : vector<32x16xf32> to vector<32x16xbf16>
    %c7_250 = arith.constant 7 : index
    %c0_251 = arith.constant 0 : index
    %c0_252 = arith.constant 0 : index
    %259 = vector.load %arg8[%c7_250, %c0_251, %c0_252] : memref<9x16x32xbf16, #tpu.memory_space<vmem>>, vector<1x16x32xbf16>
    %260 = vector.shape_cast %259 : vector<1x16x32xbf16> to vector<16x32xbf16>
    %cst_253 = arith.constant dense<0.000000e+00> : vector<32x32xf32>
    %261 = tpu.matmul %258, %260, %cst_253 {dimension_numbers = #tpu.dot_dimension_numbers<[1], [0], [0], [1], [0, 0, 1, 1], [], []>} : vector<32x16xbf16>, vector<16x32xbf16>, vector<32x32xf32> -> vector<32x32xf32>
    %262 = arith.addf %255, %261 : vector<32x32xf32>
    %c0_254 = arith.constant 0 : index
    %c2_255 = arith.constant 2 : index
    %c2_256 = arith.constant 2 : index
    %c0_257 = arith.constant 0 : index
    %263 = vector.load %arg20[%c0_254, %c2_255, %c2_256, %c0_257] : memref<2x10x10x64xf32, #tpu.memory_space<vmem>>, vector<2x4x4x16xf32>
    %264 = vector.shape_cast %263 : vector<2x4x4x16xf32> to vector<32x16xf32>
    %265 = arith.truncf %264 : vector<32x16xf32> to vector<32x16xbf16>
    %c8_258 = arith.constant 8 : index
    %c0_259 = arith.constant 0 : index
    %c0_260 = arith.constant 0 : index
    %266 = vector.load %arg8[%c8_258, %c0_259, %c0_260] : memref<9x16x32xbf16, #tpu.memory_space<vmem>>, vector<1x16x32xbf16>
    %267 = vector.shape_cast %266 : vector<1x16x32xbf16> to vector<16x32xbf16>
    %cst_261 = arith.constant dense<0.000000e+00> : vector<32x32xf32>
    %268 = tpu.matmul %265, %267, %cst_261 {dimension_numbers = #tpu.dot_dimension_numbers<[1], [0], [0], [1], [0, 0, 1, 1], [], []>} : vector<32x16xbf16>, vector<16x32xbf16>, vector<32x32xf32> -> vector<32x32xf32>
    %269 = arith.addf %262, %268 : vector<32x32xf32>
    %cst_262 = arith.constant dense<0.000000e+00> : vector<32xf32>
    %270 = vector.multi_reduction <add>, %269, %cst_262 [0] : vector<32x32xf32> to vector<32xf32>
    %271 = vector.shape_cast %270 : vector<32xf32> to vector<1x32xf32>
    %cst_263 = arith.constant 3.125000e-02 : f32
    %272 = vector.broadcast %cst_263 : f32 to vector<1x32xf32>
    %273 = arith.mulf %271, %272 : vector<1x32xf32>
    %274 = arith.mulf %269, %269 : vector<32x32xf32>
    %cst_264 = arith.constant dense<0.000000e+00> : vector<32xf32>
    %275 = vector.multi_reduction <add>, %274, %cst_264 [0] : vector<32x32xf32> to vector<32xf32>
    %276 = vector.shape_cast %275 : vector<32xf32> to vector<1x32xf32>
    %cst_265 = arith.constant 3.125000e-02 : f32
    %277 = vector.broadcast %cst_265 : f32 to vector<1x32xf32>
    %278 = arith.mulf %276, %277 : vector<1x32xf32>
    %279 = arith.mulf %273, %273 : vector<1x32xf32>
    %280 = arith.subf %278, %279 : vector<1x32xf32>
    %cst_266 = arith.constant 0.000000e+00 : f32
    %281 = vector.broadcast %cst_266 : f32 to vector<1x32xf32>
    %282 = arith.maximumf %280, %281 : vector<1x32xf32>
    %c0_267 = arith.constant 0 : index
    %c0_268 = arith.constant 0 : index
    %283 = vector.load %arg9[%c0_267, %c0_268] : memref<1x32xf32, #tpu.memory_space<vmem>>, vector<1x32xf32>
    %cst_269 = arith.constant 9.99999974E-6 : f32
    %284 = vector.broadcast %cst_269 : f32 to vector<1x32xf32>
    %285 = arith.addf %282, %284 : vector<1x32xf32>
    %286 = math.rsqrt %285 : vector<1x32xf32>
    %287 = arith.mulf %283, %286 : vector<1x32xf32>
    %c0_270 = arith.constant 0 : index
    %c0_271 = arith.constant 0 : index
    %288 = vector.load %arg10[%c0_270, %c0_271] : memref<1x32xf32, #tpu.memory_space<vmem>>, vector<1x32xf32>
    %289 = arith.mulf %273, %287 : vector<1x32xf32>
    %290 = arith.subf %288, %289 : vector<1x32xf32>
    %291 = vector.broadcast %287 : vector<1x32xf32> to vector<32x32xf32>
    %292 = arith.mulf %269, %291 : vector<32x32xf32>
    %293 = vector.broadcast %290 : vector<1x32xf32> to vector<32x32xf32>
    %294 = arith.addf %292, %293 : vector<32x32xf32>
    %cst_272 = arith.constant 0.000000e+00 : f32
    %295 = vector.broadcast %cst_272 : f32 to vector<32x32xf32>
    %296 = arith.maximumf %294, %295 : vector<32x32xf32>
    %297 = vector.shape_cast %296 : vector<32x32xf32> to vector<2x4x4x32xf32>
    %298 = vector.shape_cast %297 : vector<2x4x4x32xf32> to vector<2x4x2x2x32xf32>
    %299 = vector.extract_strided_slice %298 {offsets = [0, 0, 0, 0, 0], sizes = [2, 4, 2, 1, 32], strides = [1, 1, 1, 1, 1]} : vector<2x4x2x2x32xf32> to vector<2x4x2x1x32xf32>
    %300 = vector.shape_cast %299 : vector<2x4x2x1x32xf32> to vector<2x4x2x32xf32>
    %301 = vector.extract_strided_slice %298 {offsets = [0, 0, 0, 1, 0], sizes = [2, 4, 2, 1, 32], strides = [1, 1, 1, 1, 1]} : vector<2x4x2x2x32xf32> to vector<2x4x2x1x32xf32>
    %302 = vector.shape_cast %301 : vector<2x4x2x1x32xf32> to vector<2x4x2x32xf32>
    %303 = arith.maximumf %300, %302 : vector<2x4x2x32xf32>
    %304 = vector.shape_cast %303 : vector<2x4x2x32xf32> to vector<2x2x2x2x32xf32>
    %305 = vector.extract_strided_slice %304 {offsets = [0, 0, 0, 0, 0], sizes = [2, 2, 1, 2, 32], strides = [1, 1, 1, 1, 1]} : vector<2x2x2x2x32xf32> to vector<2x2x1x2x32xf32>
    %306 = vector.shape_cast %305 : vector<2x2x1x2x32xf32> to vector<2x2x2x32xf32>
    %307 = vector.extract_strided_slice %304 {offsets = [0, 0, 1, 0, 0], sizes = [2, 2, 1, 2, 32], strides = [1, 1, 1, 1, 1]} : vector<2x2x2x2x32xf32> to vector<2x2x1x2x32xf32>
    %308 = vector.shape_cast %307 : vector<2x2x1x2x32xf32> to vector<2x2x2x32xf32>
    %309 = arith.maximumf %306, %308 : vector<2x2x2x32xf32>
    %cst_273 = arith.constant 0.000000e+00 : f32
    %310 = vector.broadcast %cst_273 : f32 to vector<2x10x10x64xf32>
    %c0_274 = arith.constant 0 : index
    %c0_275 = arith.constant 0 : index
    %c0_276 = arith.constant 0 : index
    %c0_277 = arith.constant 0 : index
    %311 = vector.load %arg20[%c0_274, %c0_275, %c0_276, %c0_277] : memref<2x10x10x64xf32, #tpu.memory_space<vmem>>, vector<2x10x10x64xf32>
    tpu.vector_store %arg20[%c0_274, %c0_275, %c0_276, %c0_277], %310 {strides = array<i32>} : memref<2x10x10x64xf32, #tpu.memory_space<vmem>>, vector<2x10x10x64xf32>,
    %c0_278 = arith.constant 0 : index
    %c1_279 = arith.constant 1 : index
    %c1_280 = arith.constant 1 : index
    %c0_281 = arith.constant 0 : index
    %312 = vector.load %arg20[%c0_278, %c1_279, %c1_280, %c0_281] : memref<2x10x10x64xf32, #tpu.memory_space<vmem>>, vector<2x2x2x32xf32>
    tpu.vector_store %arg20[%c0_278, %c1_279, %c1_280, %c0_281], %309 {strides = array<i32>} : memref<2x10x10x64xf32, #tpu.memory_space<vmem>>, vector<2x2x2x32xf32>,
    %cst_282 = arith.constant 0.000000e+00 : f32
    %313 = vector.broadcast %cst_282 : f32 to vector<8x64xf32>
    %c0_283 = arith.constant 0 : index
    %c0_284 = arith.constant 0 : index
    %c0_285 = arith.constant 0 : index
    %c0_286 = arith.constant 0 : index
    %314 = vector.load %arg20[%c0_283, %c0_284, %c0_285, %c0_286] : memref<2x10x10x64xf32, #tpu.memory_space<vmem>>, vector<2x2x2x32xf32>
    %315 = vector.shape_cast %314 : vector<2x2x2x32xf32> to vector<8x32xf32>
    %316 = arith.truncf %315 : vector<8x32xf32> to vector<8x32xbf16>
    %c0_287 = arith.constant 0 : index
    %c0_288 = arith.constant 0 : index
    %c0_289 = arith.constant 0 : index
    %317 = vector.load %arg11[%c0_287, %c0_288, %c0_289] : memref<9x32x64xbf16, #tpu.memory_space<vmem>>, vector<1x32x64xbf16>
    %318 = vector.shape_cast %317 : vector<1x32x64xbf16> to vector<32x64xbf16>
    %cst_290 = arith.constant dense<0.000000e+00> : vector<8x64xf32>
    %319 = tpu.matmul %316, %318, %cst_290 {dimension_numbers = #tpu.dot_dimension_numbers<[1], [0], [0], [1], [0, 0, 1, 1], [], []>} : vector<8x32xbf16>, vector<32x64xbf16>, vector<8x64xf32> -> vector<8x64xf32>
    %320 = arith.addf %313, %319 : vector<8x64xf32>
    %c0_291 = arith.constant 0 : index
    %c0_292 = arith.constant 0 : index
    %c1_293 = arith.constant 1 : index
    %c0_294 = arith.constant 0 : index
    %321 = vector.load %arg20[%c0_291, %c0_292, %c1_293, %c0_294] : memref<2x10x10x64xf32, #tpu.memory_space<vmem>>, vector<2x2x2x32xf32>
    %322 = vector.shape_cast %321 : vector<2x2x2x32xf32> to vector<8x32xf32>
    %323 = arith.truncf %322 : vector<8x32xf32> to vector<8x32xbf16>
    %c1_295 = arith.constant 1 : index
    %c0_296 = arith.constant 0 : index
    %c0_297 = arith.constant 0 : index
    %324 = vector.load %arg11[%c1_295, %c0_296, %c0_297] : memref<9x32x64xbf16, #tpu.memory_space<vmem>>, vector<1x32x64xbf16>
    %325 = vector.shape_cast %324 : vector<1x32x64xbf16> to vector<32x64xbf16>
    %cst_298 = arith.constant dense<0.000000e+00> : vector<8x64xf32>
    %326 = tpu.matmul %323, %325, %cst_298 {dimension_numbers = #tpu.dot_dimension_numbers<[1], [0], [0], [1], [0, 0, 1, 1], [], []>} : vector<8x32xbf16>, vector<32x64xbf16>, vector<8x64xf32> -> vector<8x64xf32>
    %327 = arith.addf %320, %326 : vector<8x64xf32>
    %c0_299 = arith.constant 0 : index
    %c0_300 = arith.constant 0 : index
    %c2_301 = arith.constant 2 : index
    %c0_302 = arith.constant 0 : index
    %328 = vector.load %arg20[%c0_299, %c0_300, %c2_301, %c0_302] : memref<2x10x10x64xf32, #tpu.memory_space<vmem>>, vector<2x2x2x32xf32>
    %329 = vector.shape_cast %328 : vector<2x2x2x32xf32> to vector<8x32xf32>
    %330 = arith.truncf %329 : vector<8x32xf32> to vector<8x32xbf16>
    %c2_303 = arith.constant 2 : index
    %c0_304 = arith.constant 0 : index
    %c0_305 = arith.constant 0 : index
    %331 = vector.load %arg11[%c2_303, %c0_304, %c0_305] : memref<9x32x64xbf16, #tpu.memory_space<vmem>>, vector<1x32x64xbf16>
    %332 = vector.shape_cast %331 : vector<1x32x64xbf16> to vector<32x64xbf16>
    %cst_306 = arith.constant dense<0.000000e+00> : vector<8x64xf32>
    %333 = tpu.matmul %330, %332, %cst_306 {dimension_numbers = #tpu.dot_dimension_numbers<[1], [0], [0], [1], [0, 0, 1, 1], [], []>} : vector<8x32xbf16>, vector<32x64xbf16>, vector<8x64xf32> -> vector<8x64xf32>
    %334 = arith.addf %327, %333 : vector<8x64xf32>
    %c0_307 = arith.constant 0 : index
    %c1_308 = arith.constant 1 : index
    %c0_309 = arith.constant 0 : index
    %c0_310 = arith.constant 0 : index
    %335 = vector.load %arg20[%c0_307, %c1_308, %c0_309, %c0_310] : memref<2x10x10x64xf32, #tpu.memory_space<vmem>>, vector<2x2x2x32xf32>
    %336 = vector.shape_cast %335 : vector<2x2x2x32xf32> to vector<8x32xf32>
    %337 = arith.truncf %336 : vector<8x32xf32> to vector<8x32xbf16>
    %c3_311 = arith.constant 3 : index
    %c0_312 = arith.constant 0 : index
    %c0_313 = arith.constant 0 : index
    %338 = vector.load %arg11[%c3_311, %c0_312, %c0_313] : memref<9x32x64xbf16, #tpu.memory_space<vmem>>, vector<1x32x64xbf16>
    %339 = vector.shape_cast %338 : vector<1x32x64xbf16> to vector<32x64xbf16>
    %cst_314 = arith.constant dense<0.000000e+00> : vector<8x64xf32>
    %340 = tpu.matmul %337, %339, %cst_314 {dimension_numbers = #tpu.dot_dimension_numbers<[1], [0], [0], [1], [0, 0, 1, 1], [], []>} : vector<8x32xbf16>, vector<32x64xbf16>, vector<8x64xf32> -> vector<8x64xf32>
    %341 = arith.addf %334, %340 : vector<8x64xf32>
    %c0_315 = arith.constant 0 : index
    %c1_316 = arith.constant 1 : index
    %c1_317 = arith.constant 1 : index
    %c0_318 = arith.constant 0 : index
    %342 = vector.load %arg20[%c0_315, %c1_316, %c1_317, %c0_318] : memref<2x10x10x64xf32, #tpu.memory_space<vmem>>, vector<2x2x2x32xf32>
    %343 = vector.shape_cast %342 : vector<2x2x2x32xf32> to vector<8x32xf32>
    %344 = arith.truncf %343 : vector<8x32xf32> to vector<8x32xbf16>
    %c4_319 = arith.constant 4 : index
    %c0_320 = arith.constant 0 : index
    %c0_321 = arith.constant 0 : index
    %345 = vector.load %arg11[%c4_319, %c0_320, %c0_321] : memref<9x32x64xbf16, #tpu.memory_space<vmem>>, vector<1x32x64xbf16>
    %346 = vector.shape_cast %345 : vector<1x32x64xbf16> to vector<32x64xbf16>
    %cst_322 = arith.constant dense<0.000000e+00> : vector<8x64xf32>
    %347 = tpu.matmul %344, %346, %cst_322 {dimension_numbers = #tpu.dot_dimension_numbers<[1], [0], [0], [1], [0, 0, 1, 1], [], []>} : vector<8x32xbf16>, vector<32x64xbf16>, vector<8x64xf32> -> vector<8x64xf32>
    %348 = arith.addf %341, %347 : vector<8x64xf32>
    %c0_323 = arith.constant 0 : index
    %c1_324 = arith.constant 1 : index
    %c2_325 = arith.constant 2 : index
    %c0_326 = arith.constant 0 : index
    %349 = vector.load %arg20[%c0_323, %c1_324, %c2_325, %c0_326] : memref<2x10x10x64xf32, #tpu.memory_space<vmem>>, vector<2x2x2x32xf32>
    %350 = vector.shape_cast %349 : vector<2x2x2x32xf32> to vector<8x32xf32>
    %351 = arith.truncf %350 : vector<8x32xf32> to vector<8x32xbf16>
    %c5_327 = arith.constant 5 : index
    %c0_328 = arith.constant 0 : index
    %c0_329 = arith.constant 0 : index
    %352 = vector.load %arg11[%c5_327, %c0_328, %c0_329] : memref<9x32x64xbf16, #tpu.memory_space<vmem>>, vector<1x32x64xbf16>
    %353 = vector.shape_cast %352 : vector<1x32x64xbf16> to vector<32x64xbf16>
    %cst_330 = arith.constant dense<0.000000e+00> : vector<8x64xf32>
    %354 = tpu.matmul %351, %353, %cst_330 {dimension_numbers = #tpu.dot_dimension_numbers<[1], [0], [0], [1], [0, 0, 1, 1], [], []>} : vector<8x32xbf16>, vector<32x64xbf16>, vector<8x64xf32> -> vector<8x64xf32>
    %355 = arith.addf %348, %354 : vector<8x64xf32>
    %c0_331 = arith.constant 0 : index
    %c2_332 = arith.constant 2 : index
    %c0_333 = arith.constant 0 : index
    %c0_334 = arith.constant 0 : index
    %356 = vector.load %arg20[%c0_331, %c2_332, %c0_333, %c0_334] : memref<2x10x10x64xf32, #tpu.memory_space<vmem>>, vector<2x2x2x32xf32>
    %357 = vector.shape_cast %356 : vector<2x2x2x32xf32> to vector<8x32xf32>
    %358 = arith.truncf %357 : vector<8x32xf32> to vector<8x32xbf16>
    %c6_335 = arith.constant 6 : index
    %c0_336 = arith.constant 0 : index
    %c0_337 = arith.constant 0 : index
    %359 = vector.load %arg11[%c6_335, %c0_336, %c0_337] : memref<9x32x64xbf16, #tpu.memory_space<vmem>>, vector<1x32x64xbf16>
    %360 = vector.shape_cast %359 : vector<1x32x64xbf16> to vector<32x64xbf16>
    %cst_338 = arith.constant dense<0.000000e+00> : vector<8x64xf32>
    %361 = tpu.matmul %358, %360, %cst_338 {dimension_numbers = #tpu.dot_dimension_numbers<[1], [0], [0], [1], [0, 0, 1, 1], [], []>} : vector<8x32xbf16>, vector<32x64xbf16>, vector<8x64xf32> -> vector<8x64xf32>
    %362 = arith.addf %355, %361 : vector<8x64xf32>
    %c0_339 = arith.constant 0 : index
    %c2_340 = arith.constant 2 : index
    %c1_341 = arith.constant 1 : index
    %c0_342 = arith.constant 0 : index
    %363 = vector.load %arg20[%c0_339, %c2_340, %c1_341, %c0_342] : memref<2x10x10x64xf32, #tpu.memory_space<vmem>>, vector<2x2x2x32xf32>
    %364 = vector.shape_cast %363 : vector<2x2x2x32xf32> to vector<8x32xf32>
    %365 = arith.truncf %364 : vector<8x32xf32> to vector<8x32xbf16>
    %c7_343 = arith.constant 7 : index
    %c0_344 = arith.constant 0 : index
    %c0_345 = arith.constant 0 : index
    %366 = vector.load %arg11[%c7_343, %c0_344, %c0_345] : memref<9x32x64xbf16, #tpu.memory_space<vmem>>, vector<1x32x64xbf16>
    %367 = vector.shape_cast %366 : vector<1x32x64xbf16> to vector<32x64xbf16>
    %cst_346 = arith.constant dense<0.000000e+00> : vector<8x64xf32>
    %368 = tpu.matmul %365, %367, %cst_346 {dimension_numbers = #tpu.dot_dimension_numbers<[1], [0], [0], [1], [0, 0, 1, 1], [], []>} : vector<8x32xbf16>, vector<32x64xbf16>, vector<8x64xf32> -> vector<8x64xf32>
    %369 = arith.addf %362, %368 : vector<8x64xf32>
    %c0_347 = arith.constant 0 : index
    %c2_348 = arith.constant 2 : index
    %c2_349 = arith.constant 2 : index
    %c0_350 = arith.constant 0 : index
    %370 = vector.load %arg20[%c0_347, %c2_348, %c2_349, %c0_350] : memref<2x10x10x64xf32, #tpu.memory_space<vmem>>, vector<2x2x2x32xf32>
    %371 = vector.shape_cast %370 : vector<2x2x2x32xf32> to vector<8x32xf32>
    %372 = arith.truncf %371 : vector<8x32xf32> to vector<8x32xbf16>
    %c8_351 = arith.constant 8 : index
    %c0_352 = arith.constant 0 : index
    %c0_353 = arith.constant 0 : index
    %373 = vector.load %arg11[%c8_351, %c0_352, %c0_353] : memref<9x32x64xbf16, #tpu.memory_space<vmem>>, vector<1x32x64xbf16>
    %374 = vector.shape_cast %373 : vector<1x32x64xbf16> to vector<32x64xbf16>
    %cst_354 = arith.constant dense<0.000000e+00> : vector<8x64xf32>
    %375 = tpu.matmul %372, %374, %cst_354 {dimension_numbers = #tpu.dot_dimension_numbers<[1], [0], [0], [1], [0, 0, 1, 1], [], []>} : vector<8x32xbf16>, vector<32x64xbf16>, vector<8x64xf32> -> vector<8x64xf32>
    %376 = arith.addf %369, %375 : vector<8x64xf32>
    %cst_355 = arith.constant dense<0.000000e+00> : vector<64xf32>
    %377 = vector.multi_reduction <add>, %376, %cst_355 [0] : vector<8x64xf32> to vector<64xf32>
    %378 = vector.shape_cast %377 : vector<64xf32> to vector<1x64xf32>
    %cst_356 = arith.constant 1.250000e-01 : f32
    %379 = vector.broadcast %cst_356 : f32 to vector<1x64xf32>
    %380 = arith.mulf %378, %379 : vector<1x64xf32>
    %381 = arith.mulf %376, %376 : vector<8x64xf32>
    %cst_357 = arith.constant dense<0.000000e+00> : vector<64xf32>
    %382 = vector.multi_reduction <add>, %381, %cst_357 [0] : vector<8x64xf32> to vector<64xf32>
    %383 = vector.shape_cast %382 : vector<64xf32> to vector<1x64xf32>
    %cst_358 = arith.constant 1.250000e-01 : f32
    %384 = vector.broadcast %cst_358 : f32 to vector<1x64xf32>
    %385 = arith.mulf %383, %384 : vector<1x64xf32>
    %386 = arith.mulf %380, %380 : vector<1x64xf32>
    %387 = arith.subf %385, %386 : vector<1x64xf32>
    %cst_359 = arith.constant 0.000000e+00 : f32
    %388 = vector.broadcast %cst_359 : f32 to vector<1x64xf32>
    %389 = arith.maximumf %387, %388 : vector<1x64xf32>
    %c0_360 = arith.constant 0 : index
    %c0_361 = arith.constant 0 : index
    %390 = vector.load %arg12[%c0_360, %c0_361] : memref<1x64xf32, #tpu.memory_space<vmem>>, vector<1x64xf32>
    %cst_362 = arith.constant 9.99999974E-6 : f32
    %391 = vector.broadcast %cst_362 : f32 to vector<1x64xf32>
    %392 = arith.addf %389, %391 : vector<1x64xf32>
    %393 = math.rsqrt %392 : vector<1x64xf32>
    %394 = arith.mulf %390, %393 : vector<1x64xf32>
    %c0_363 = arith.constant 0 : index
    %c0_364 = arith.constant 0 : index
    %395 = vector.load %arg13[%c0_363, %c0_364] : memref<1x64xf32, #tpu.memory_space<vmem>>, vector<1x64xf32>
    %396 = arith.mulf %380, %394 : vector<1x64xf32>
    %397 = arith.subf %395, %396 : vector<1x64xf32>
    %398 = vector.broadcast %394 : vector<1x64xf32> to vector<8x64xf32>
    %399 = arith.mulf %376, %398 : vector<8x64xf32>
    %400 = vector.broadcast %397 : vector<1x64xf32> to vector<8x64xf32>
    %401 = arith.addf %399, %400 : vector<8x64xf32>
    %cst_365 = arith.constant 0.000000e+00 : f32
    %402 = vector.broadcast %cst_365 : f32 to vector<8x64xf32>
    %403 = arith.maximumf %401, %402 : vector<8x64xf32>
    %404 = vector.shape_cast %403 : vector<8x64xf32> to vector<2x2x2x64xf32>
    %cst_366 = arith.constant 0.000000e+00 : f32
    %405 = vector.broadcast %cst_366 : f32 to vector<2x10x10x64xf32>
    %c0_367 = arith.constant 0 : index
    %c0_368 = arith.constant 0 : index
    %c0_369 = arith.constant 0 : index
    %c0_370 = arith.constant 0 : index
    %406 = vector.load %arg20[%c0_367, %c0_368, %c0_369, %c0_370] : memref<2x10x10x64xf32, #tpu.memory_space<vmem>>, vector<2x10x10x64xf32>
    tpu.vector_store %arg20[%c0_367, %c0_368, %c0_369, %c0_370], %405 {strides = array<i32>} : memref<2x10x10x64xf32, #tpu.memory_space<vmem>>, vector<2x10x10x64xf32>,
    %c0_371 = arith.constant 0 : index
    %c1_372 = arith.constant 1 : index
    %c1_373 = arith.constant 1 : index
    %c0_374 = arith.constant 0 : index
    %407 = vector.load %arg20[%c0_371, %c1_372, %c1_373, %c0_374] : memref<2x10x10x64xf32, #tpu.memory_space<vmem>>, vector<2x2x2x64xf32>
    tpu.vector_store %arg20[%c0_371, %c1_372, %c1_373, %c0_374], %404 {strides = array<i32>} : memref<2x10x10x64xf32, #tpu.memory_space<vmem>>, vector<2x2x2x64xf32>,
    %cst_375 = arith.constant 0.000000e+00 : f32
    %408 = vector.broadcast %cst_375 : f32 to vector<8x64xf32>
    %c0_376 = arith.constant 0 : index
    %c0_377 = arith.constant 0 : index
    %c0_378 = arith.constant 0 : index
    %c0_379 = arith.constant 0 : index
    %409 = vector.load %arg20[%c0_376, %c0_377, %c0_378, %c0_379] : memref<2x10x10x64xf32, #tpu.memory_space<vmem>>, vector<2x2x2x64xf32>
    %410 = vector.shape_cast %409 : vector<2x2x2x64xf32> to vector<8x64xf32>
    %411 = arith.truncf %410 : vector<8x64xf32> to vector<8x64xbf16>
    %c0_380 = arith.constant 0 : index
    %c0_381 = arith.constant 0 : index
    %c0_382 = arith.constant 0 : index
    %412 = vector.load %arg14[%c0_380, %c0_381, %c0_382] : memref<9x64x64xbf16, #tpu.memory_space<vmem>>, vector<1x64x64xbf16>
    %413 = vector.shape_cast %412 : vector<1x64x64xbf16> to vector<64x64xbf16>
    %cst_383 = arith.constant dense<0.000000e+00> : vector<8x64xf32>
    %414 = tpu.matmul %411, %413, %cst_383 {dimension_numbers = #tpu.dot_dimension_numbers<[1], [0], [0], [1], [0, 0, 1, 1], [], []>} : vector<8x64xbf16>, vector<64x64xbf16>, vector<8x64xf32> -> vector<8x64xf32>
    %415 = arith.addf %408, %414 : vector<8x64xf32>
    %c0_384 = arith.constant 0 : index
    %c0_385 = arith.constant 0 : index
    %c1_386 = arith.constant 1 : index
    %c0_387 = arith.constant 0 : index
    %416 = vector.load %arg20[%c0_384, %c0_385, %c1_386, %c0_387] : memref<2x10x10x64xf32, #tpu.memory_space<vmem>>, vector<2x2x2x64xf32>
    %417 = vector.shape_cast %416 : vector<2x2x2x64xf32> to vector<8x64xf32>
    %418 = arith.truncf %417 : vector<8x64xf32> to vector<8x64xbf16>
    %c1_388 = arith.constant 1 : index
    %c0_389 = arith.constant 0 : index
    %c0_390 = arith.constant 0 : index
    %419 = vector.load %arg14[%c1_388, %c0_389, %c0_390] : memref<9x64x64xbf16, #tpu.memory_space<vmem>>, vector<1x64x64xbf16>
    %420 = vector.shape_cast %419 : vector<1x64x64xbf16> to vector<64x64xbf16>
    %cst_391 = arith.constant dense<0.000000e+00> : vector<8x64xf32>
    %421 = tpu.matmul %418, %420, %cst_391 {dimension_numbers = #tpu.dot_dimension_numbers<[1], [0], [0], [1], [0, 0, 1, 1], [], []>} : vector<8x64xbf16>, vector<64x64xbf16>, vector<8x64xf32> -> vector<8x64xf32>
    %422 = arith.addf %415, %421 : vector<8x64xf32>
    %c0_392 = arith.constant 0 : index
    %c0_393 = arith.constant 0 : index
    %c2_394 = arith.constant 2 : index
    %c0_395 = arith.constant 0 : index
    %423 = vector.load %arg20[%c0_392, %c0_393, %c2_394, %c0_395] : memref<2x10x10x64xf32, #tpu.memory_space<vmem>>, vector<2x2x2x64xf32>
    %424 = vector.shape_cast %423 : vector<2x2x2x64xf32> to vector<8x64xf32>
    %425 = arith.truncf %424 : vector<8x64xf32> to vector<8x64xbf16>
    %c2_396 = arith.constant 2 : index
    %c0_397 = arith.constant 0 : index
    %c0_398 = arith.constant 0 : index
    %426 = vector.load %arg14[%c2_396, %c0_397, %c0_398] : memref<9x64x64xbf16, #tpu.memory_space<vmem>>, vector<1x64x64xbf16>
    %427 = vector.shape_cast %426 : vector<1x64x64xbf16> to vector<64x64xbf16>
    %cst_399 = arith.constant dense<0.000000e+00> : vector<8x64xf32>
    %428 = tpu.matmul %425, %427, %cst_399 {dimension_numbers = #tpu.dot_dimension_numbers<[1], [0], [0], [1], [0, 0, 1, 1], [], []>} : vector<8x64xbf16>, vector<64x64xbf16>, vector<8x64xf32> -> vector<8x64xf32>
    %429 = arith.addf %422, %428 : vector<8x64xf32>
    %c0_400 = arith.constant 0 : index
    %c1_401 = arith.constant 1 : index
    %c0_402 = arith.constant 0 : index
    %c0_403 = arith.constant 0 : index
    %430 = vector.load %arg20[%c0_400, %c1_401, %c0_402, %c0_403] : memref<2x10x10x64xf32, #tpu.memory_space<vmem>>, vector<2x2x2x64xf32>
    %431 = vector.shape_cast %430 : vector<2x2x2x64xf32> to vector<8x64xf32>
    %432 = arith.truncf %431 : vector<8x64xf32> to vector<8x64xbf16>
    %c3_404 = arith.constant 3 : index
    %c0_405 = arith.constant 0 : index
    %c0_406 = arith.constant 0 : index
    %433 = vector.load %arg14[%c3_404, %c0_405, %c0_406] : memref<9x64x64xbf16, #tpu.memory_space<vmem>>, vector<1x64x64xbf16>
    %434 = vector.shape_cast %433 : vector<1x64x64xbf16> to vector<64x64xbf16>
    %cst_407 = arith.constant dense<0.000000e+00> : vector<8x64xf32>
    %435 = tpu.matmul %432, %434, %cst_407 {dimension_numbers = #tpu.dot_dimension_numbers<[1], [0], [0], [1], [0, 0, 1, 1], [], []>} : vector<8x64xbf16>, vector<64x64xbf16>, vector<8x64xf32> -> vector<8x64xf32>
    %436 = arith.addf %429, %435 : vector<8x64xf32>
    %c0_408 = arith.constant 0 : index
    %c1_409 = arith.constant 1 : index
    %c1_410 = arith.constant 1 : index
    %c0_411 = arith.constant 0 : index
    %437 = vector.load %arg20[%c0_408, %c1_409, %c1_410, %c0_411] : memref<2x10x10x64xf32, #tpu.memory_space<vmem>>, vector<2x2x2x64xf32>
    %438 = vector.shape_cast %437 : vector<2x2x2x64xf32> to vector<8x64xf32>
    %439 = arith.truncf %438 : vector<8x64xf32> to vector<8x64xbf16>
    %c4_412 = arith.constant 4 : index
    %c0_413 = arith.constant 0 : index
    %c0_414 = arith.constant 0 : index
    %440 = vector.load %arg14[%c4_412, %c0_413, %c0_414] : memref<9x64x64xbf16, #tpu.memory_space<vmem>>, vector<1x64x64xbf16>
    %441 = vector.shape_cast %440 : vector<1x64x64xbf16> to vector<64x64xbf16>
    %cst_415 = arith.constant dense<0.000000e+00> : vector<8x64xf32>
    %442 = tpu.matmul %439, %441, %cst_415 {dimension_numbers = #tpu.dot_dimension_numbers<[1], [0], [0], [1], [0, 0, 1, 1], [], []>} : vector<8x64xbf16>, vector<64x64xbf16>, vector<8x64xf32> -> vector<8x64xf32>
    %443 = arith.addf %436, %442 : vector<8x64xf32>
    %c0_416 = arith.constant 0 : index
    %c1_417 = arith.constant 1 : index
    %c2_418 = arith.constant 2 : index
    %c0_419 = arith.constant 0 : index
    %444 = vector.load %arg20[%c0_416, %c1_417, %c2_418, %c0_419] : memref<2x10x10x64xf32, #tpu.memory_space<vmem>>, vector<2x2x2x64xf32>
    %445 = vector.shape_cast %444 : vector<2x2x2x64xf32> to vector<8x64xf32>
    %446 = arith.truncf %445 : vector<8x64xf32> to vector<8x64xbf16>
    %c5_420 = arith.constant 5 : index
    %c0_421 = arith.constant 0 : index
    %c0_422 = arith.constant 0 : index
    %447 = vector.load %arg14[%c5_420, %c0_421, %c0_422] : memref<9x64x64xbf16, #tpu.memory_space<vmem>>, vector<1x64x64xbf16>
    %448 = vector.shape_cast %447 : vector<1x64x64xbf16> to vector<64x64xbf16>
    %cst_423 = arith.constant dense<0.000000e+00> : vector<8x64xf32>
    %449 = tpu.matmul %446, %448, %cst_423 {dimension_numbers = #tpu.dot_dimension_numbers<[1], [0], [0], [1], [0, 0, 1, 1], [], []>} : vector<8x64xbf16>, vector<64x64xbf16>, vector<8x64xf32> -> vector<8x64xf32>
    %450 = arith.addf %443, %449 : vector<8x64xf32>
    %c0_424 = arith.constant 0 : index
    %c2_425 = arith.constant 2 : index
    %c0_426 = arith.constant 0 : index
    %c0_427 = arith.constant 0 : index
    %451 = vector.load %arg20[%c0_424, %c2_425, %c0_426, %c0_427] : memref<2x10x10x64xf32, #tpu.memory_space<vmem>>, vector<2x2x2x64xf32>
    %452 = vector.shape_cast %451 : vector<2x2x2x64xf32> to vector<8x64xf32>
    %453 = arith.truncf %452 : vector<8x64xf32> to vector<8x64xbf16>
    %c6_428 = arith.constant 6 : index
    %c0_429 = arith.constant 0 : index
    %c0_430 = arith.constant 0 : index
    %454 = vector.load %arg14[%c6_428, %c0_429, %c0_430] : memref<9x64x64xbf16, #tpu.memory_space<vmem>>, vector<1x64x64xbf16>
    %455 = vector.shape_cast %454 : vector<1x64x64xbf16> to vector<64x64xbf16>
    %cst_431 = arith.constant dense<0.000000e+00> : vector<8x64xf32>
    %456 = tpu.matmul %453, %455, %cst_431 {dimension_numbers = #tpu.dot_dimension_numbers<[1], [0], [0], [1], [0, 0, 1, 1], [], []>} : vector<8x64xbf16>, vector<64x64xbf16>, vector<8x64xf32> -> vector<8x64xf32>
    %457 = arith.addf %450, %456 : vector<8x64xf32>
    %c0_432 = arith.constant 0 : index
    %c2_433 = arith.constant 2 : index
    %c1_434 = arith.constant 1 : index
    %c0_435 = arith.constant 0 : index
    %458 = vector.load %arg20[%c0_432, %c2_433, %c1_434, %c0_435] : memref<2x10x10x64xf32, #tpu.memory_space<vmem>>, vector<2x2x2x64xf32>
    %459 = vector.shape_cast %458 : vector<2x2x2x64xf32> to vector<8x64xf32>
    %460 = arith.truncf %459 : vector<8x64xf32> to vector<8x64xbf16>
    %c7_436 = arith.constant 7 : index
    %c0_437 = arith.constant 0 : index
    %c0_438 = arith.constant 0 : index
    %461 = vector.load %arg14[%c7_436, %c0_437, %c0_438] : memref<9x64x64xbf16, #tpu.memory_space<vmem>>, vector<1x64x64xbf16>
    %462 = vector.shape_cast %461 : vector<1x64x64xbf16> to vector<64x64xbf16>
    %cst_439 = arith.constant dense<0.000000e+00> : vector<8x64xf32>
    %463 = tpu.matmul %460, %462, %cst_439 {dimension_numbers = #tpu.dot_dimension_numbers<[1], [0], [0], [1], [0, 0, 1, 1], [], []>} : vector<8x64xbf16>, vector<64x64xbf16>, vector<8x64xf32> -> vector<8x64xf32>
    %464 = arith.addf %457, %463 : vector<8x64xf32>
    %c0_440 = arith.constant 0 : index
    %c2_441 = arith.constant 2 : index
    %c2_442 = arith.constant 2 : index
    %c0_443 = arith.constant 0 : index
    %465 = vector.load %arg20[%c0_440, %c2_441, %c2_442, %c0_443] : memref<2x10x10x64xf32, #tpu.memory_space<vmem>>, vector<2x2x2x64xf32>
    %466 = vector.shape_cast %465 : vector<2x2x2x64xf32> to vector<8x64xf32>
    %467 = arith.truncf %466 : vector<8x64xf32> to vector<8x64xbf16>
    %c8_444 = arith.constant 8 : index
    %c0_445 = arith.constant 0 : index
    %c0_446 = arith.constant 0 : index
    %468 = vector.load %arg14[%c8_444, %c0_445, %c0_446] : memref<9x64x64xbf16, #tpu.memory_space<vmem>>, vector<1x64x64xbf16>
    %469 = vector.shape_cast %468 : vector<1x64x64xbf16> to vector<64x64xbf16>
    %cst_447 = arith.constant dense<0.000000e+00> : vector<8x64xf32>
    %470 = tpu.matmul %467, %469, %cst_447 {dimension_numbers = #tpu.dot_dimension_numbers<[1], [0], [0], [1], [0, 0, 1, 1], [], []>} : vector<8x64xbf16>, vector<64x64xbf16>, vector<8x64xf32> -> vector<8x64xf32>
    %471 = arith.addf %464, %470 : vector<8x64xf32>
    %cst_448 = arith.constant dense<0.000000e+00> : vector<64xf32>
    %472 = vector.multi_reduction <add>, %471, %cst_448 [0] : vector<8x64xf32> to vector<64xf32>
    %473 = vector.shape_cast %472 : vector<64xf32> to vector<1x64xf32>
    %cst_449 = arith.constant 1.250000e-01 : f32
    %474 = vector.broadcast %cst_449 : f32 to vector<1x64xf32>
    %475 = arith.mulf %473, %474 : vector<1x64xf32>
    %476 = arith.mulf %471, %471 : vector<8x64xf32>
    %cst_450 = arith.constant dense<0.000000e+00> : vector<64xf32>
    %477 = vector.multi_reduction <add>, %476, %cst_450 [0] : vector<8x64xf32> to vector<64xf32>
    %478 = vector.shape_cast %477 : vector<64xf32> to vector<1x64xf32>
    %cst_451 = arith.constant 1.250000e-01 : f32
    %479 = vector.broadcast %cst_451 : f32 to vector<1x64xf32>
    %480 = arith.mulf %478, %479 : vector<1x64xf32>
    %481 = arith.mulf %475, %475 : vector<1x64xf32>
    %482 = arith.subf %480, %481 : vector<1x64xf32>
    %cst_452 = arith.constant 0.000000e+00 : f32
    %483 = vector.broadcast %cst_452 : f32 to vector<1x64xf32>
    %484 = arith.maximumf %482, %483 : vector<1x64xf32>
    %c0_453 = arith.constant 0 : index
    %c0_454 = arith.constant 0 : index
    %485 = vector.load %arg15[%c0_453, %c0_454] : memref<1x64xf32, #tpu.memory_space<vmem>>, vector<1x64xf32>
    %cst_455 = arith.constant 9.99999974E-6 : f32
    %486 = vector.broadcast %cst_455 : f32 to vector<1x64xf32>
    %487 = arith.addf %484, %486 : vector<1x64xf32>
    %488 = math.rsqrt %487 : vector<1x64xf32>
    %489 = arith.mulf %485, %488 : vector<1x64xf32>
    %c0_456 = arith.constant 0 : index
    %c0_457 = arith.constant 0 : index
    %490 = vector.load %arg16[%c0_456, %c0_457] : memref<1x64xf32, #tpu.memory_space<vmem>>, vector<1x64xf32>
    %491 = arith.mulf %475, %489 : vector<1x64xf32>
    %492 = arith.subf %490, %491 : vector<1x64xf32>
    %493 = vector.broadcast %489 : vector<1x64xf32> to vector<8x64xf32>
    %494 = arith.mulf %471, %493 : vector<8x64xf32>
    %495 = vector.broadcast %492 : vector<1x64xf32> to vector<8x64xf32>
    %496 = arith.addf %494, %495 : vector<8x64xf32>
    %cst_458 = arith.constant 0.000000e+00 : f32
    %497 = vector.broadcast %cst_458 : f32 to vector<8x64xf32>
    %498 = arith.maximumf %496, %497 : vector<8x64xf32>
    %499 = vector.shape_cast %498 : vector<8x64xf32> to vector<2x2x2x64xf32>
    %500 = vector.extract_strided_slice %499 {offsets = [0, 0, 0, 0], sizes = [2, 1, 1, 64], strides = [1, 1, 1, 1]} : vector<2x2x2x64xf32> to vector<2x1x1x64xf32>
    %501 = vector.shape_cast %500 : vector<2x1x1x64xf32> to vector<2x64xf32>
    %502 = vector.extract_strided_slice %499 {offsets = [0, 0, 1, 0], sizes = [2, 1, 1, 64], strides = [1, 1, 1, 1]} : vector<2x2x2x64xf32> to vector<2x1x1x64xf32>
    %503 = vector.shape_cast %502 : vector<2x1x1x64xf32> to vector<2x64xf32>
    %504 = arith.addf %501, %503 : vector<2x64xf32>
    %505 = vector.extract_strided_slice %499 {offsets = [0, 1, 0, 0], sizes = [2, 1, 1, 64], strides = [1, 1, 1, 1]} : vector<2x2x2x64xf32> to vector<2x1x1x64xf32>
    %506 = vector.shape_cast %505 : vector<2x1x1x64xf32> to vector<2x64xf32>
    %507 = arith.addf %504, %506 : vector<2x64xf32>
    %508 = vector.extract_strided_slice %499 {offsets = [0, 1, 1, 0], sizes = [2, 1, 1, 64], strides = [1, 1, 1, 1]} : vector<2x2x2x64xf32> to vector<2x1x1x64xf32>
    %509 = vector.shape_cast %508 : vector<2x1x1x64xf32> to vector<2x64xf32>
    %510 = arith.addf %507, %509 : vector<2x64xf32>
    %c0_459 = arith.constant 0 : index
    %c0_460 = arith.constant 0 : index
    %511 = vector.load %arg17[%c0_459, %c0_460] : memref<64x10xf32, #tpu.memory_space<vmem>>, vector<64x10xf32>
    %cst_461 = arith.constant dense<0.000000e+00> : vector<2x10xf32>
    %512 = tpu.matmul %510, %511, %cst_461 {dimension_numbers = #tpu.dot_dimension_numbers<[1], [0], [0], [1], [0, 0, 1, 1], [], []>} : vector<2x64xf32>, vector<64x10xf32>, vector<2x10xf32> -> vector<2x10xf32>
    %c0_462 = arith.constant 0 : index
    %c0_463 = arith.constant 0 : index
    %513 = vector.load %arg18[%c0_462, %c0_463] : memref<1x10xf32, #tpu.memory_space<vmem>>, vector<1x10xf32>
    %514 = vector.broadcast %513 : vector<1x10xf32> to vector<2x10xf32>
    %515 = arith.addf %512, %514 : vector<2x10xf32>
    %c0_464 = arith.constant 0 : index
    %c0_465 = arith.constant 0 : index
    %516 = vector.load %arg19[%c0_464, %c0_465] : memref<2x10xf32, #tpu.memory_space<vmem>>, vector<2x10xf32>
    tpu.vector_store %arg19[%c0_464, %c0_465], %515 {strides = array<i32>} : memref<2x10xf32, #tpu.memory_space<vmem>>, vector<2x10xf32>,
    return
  }
  func.func @transform_0(%arg0: i32) -> (i32, i32, i32, i32) {
    %c0_i32 = arith.constant 0 : i32
    %c0_i32_0 = arith.constant 0 : i32
    %c0_i32_1 = arith.constant 0 : i32
    %c0_i32_2 = arith.constant 0 : i32
    %c0_i32_3 = arith.constant 0 : i32
    return %c0_i32, %c0_i32_0, %c0_i32_1, %c0_i32_2 : i32, i32, i32, i32
  }
  func.func @transform_1(%arg0: i32) -> (i32, i32, i32) {
    %c0_i32 = arith.constant 0 : i32
    %c0_i32_0 = arith.constant 0 : i32
    %c0_i32_1 = arith.constant 0 : i32
    %c0_i32_2 = arith.constant 0 : i32
    return %c0_i32, %c0_i32_0, %c0_i32_1 : i32, i32, i32
  }
  func.func @transform_2(%arg0: i32) -> (i32, i32) {
    %c0_i32 = arith.constant 0 : i32
    %c0_i32_0 = arith.constant 0 : i32
    %c0_i32_1 = arith.constant 0 : i32
    return %c0_i32, %c0_i32_0 : i32, i32
  }
  func.func @transform_3(%arg0: i32) -> (i32, i32) {
    %c0_i32 = arith.constant 0 : i32
    %c0_i32_0 = arith.constant 0 : i32
    %c0_i32_1 = arith.constant 0 : i32
    return %c0_i32, %c0_i32_0 : i32, i32
  }
  func.func @transform_4(%arg0: i32) -> (i32, i32, i32) {
    %c0_i32 = arith.constant 0 : i32
    %c0_i32_0 = arith.constant 0 : i32
    %c0_i32_1 = arith.constant 0 : i32
    %c0_i32_2 = arith.constant 0 : i32
    return %c0_i32, %c0_i32_0, %c0_i32_1 : i32, i32, i32
  }
  func.func @transform_5(%arg0: i32) -> (i32, i32) {
    %c0_i32 = arith.constant 0 : i32
    %c0_i32_0 = arith.constant 0 : i32
    %c0_i32_1 = arith.constant 0 : i32
    return %c0_i32, %c0_i32_0 : i32, i32
  }
  func.func @transform_6(%arg0: i32) -> (i32, i32) {
    %c0_i32 = arith.constant 0 : i32
    %c0_i32_0 = arith.constant 0 : i32
    %c0_i32_1 = arith.constant 0 : i32
    return %c0_i32, %c0_i32_0 : i32, i32
  }
  func.func @transform_7(%arg0: i32) -> (i32, i32, i32) {
    %c0_i32 = arith.constant 0 : i32
    %c0_i32_0 = arith.constant 0 : i32
    %c0_i32_1 = arith.constant 0 : i32
    %c0_i32_2 = arith.constant 0 : i32
    return %c0_i32, %c0_i32_0, %c0_i32_1 : i32, i32, i32
  }
  func.func @transform_8(%arg0: i32) -> (i32, i32) {
    %c0_i32 = arith.constant 0 : i32
    %c0_i32_0 = arith.constant 0 : i32
    %c0_i32_1 = arith.constant 0 : i32
    return %c0_i32, %c0_i32_0 : i32, i32
  }
  func.func @transform_9(%arg0: i32) -> (i32, i32) {
    %c0_i32 = arith.constant 0 : i32
    %c0_i32_0 = arith.constant 0 : i32
    %c0_i32_1 = arith.constant 0 : i32
    return %c0_i32, %c0_i32_0 : i32, i32
  }
  func.func @transform_10(%arg0: i32) -> (i32, i32, i32) {
    %c0_i32 = arith.constant 0 : i32
    %c0_i32_0 = arith.constant 0 : i32
    %c0_i32_1 = arith.constant 0 : i32
    %c0_i32_2 = arith.constant 0 : i32
    return %c0_i32, %c0_i32_0, %c0_i32_1 : i32, i32, i32
  }
  func.func @transform_11(%arg0: i32) -> (i32, i32) {
    %c0_i32 = arith.constant 0 : i32
    %c0_i32_0 = arith.constant 0 : i32
    %c0_i32_1 = arith.constant 0 : i32
    return %c0_i32, %c0_i32_0 : i32, i32
  }
  func.func @transform_12(%arg0: i32) -> (i32, i32) {
    %c0_i32 = arith.constant 0 : i32
    %c0_i32_0 = arith.constant 0 : i32
    %c0_i32_1 = arith.constant 0 : i32
    return %c0_i32, %c0_i32_0 : i32, i32
  }
  func.func @transform_13(%arg0: i32) -> (i32, i32, i32) {
    %c0_i32 = arith.constant 0 : i32
    %c0_i32_0 = arith.constant 0 : i32
    %c0_i32_1 = arith.constant 0 : i32
    %c0_i32_2 = arith.constant 0 : i32
    return %c0_i32, %c0_i32_0, %c0_i32_1 : i32, i32, i32
  }
  func.func @transform_14(%arg0: i32) -> (i32, i32) {
    %c0_i32 = arith.constant 0 : i32
    %c0_i32_0 = arith.constant 0 : i32
    %c0_i32_1 = arith.constant 0 : i32
    return %c0_i32, %c0_i32_0 : i32, i32
  }
  func.func @transform_15(%arg0: i32) -> (i32, i32) {
    %c0_i32 = arith.constant 0 : i32
    %c0_i32_0 = arith.constant 0 : i32
    %c0_i32_1 = arith.constant 0 : i32
    return %c0_i32, %c0_i32_0 : i32, i32
  }
  func.func @transform_16(%arg0: i32) -> (i32, i32) {
    %c0_i32 = arith.constant 0 : i32
    %c0_i32_0 = arith.constant 0 : i32
    %c0_i32_1 = arith.constant 0 : i32
    return %c0_i32, %c0_i32_0 : i32, i32
  }
  func.func @transform_17(%arg0: i32) -> (i32, i32) {
    %c0_i32 = arith.constant 0 : i32
    %c0_i32_0 = arith.constant 0 : i32
    %c0_i32_1 = arith.constant 0 : i32
    return %c0_i32, %c0_i32_0 : i32, i32
  }
  func.func @transform_18(%arg0: i32) -> (i32, i32) {
    %c0_i32 = arith.constant 0 : i32
    %c0_i32_0 = arith.constant 0 : i32
    %c0_i32_1 = arith.constant 0 : i32
    return %c0_i32, %c0_i32_0 : i32, i32
  }
}

</mosaic_0001>

<bundles_post_ra>
// kernel: tpu_custom_call.1
= control target key start
LH: loop header
LB: loop body
LE: loop exit
PB: predicated region body
PF: predicated region fallthrough
CT: control target
= control target key end

     0   :  { %s12368_s0 = inlined_call_operand.vmem [shape: f32[2,8,8,3], index: 0, kind: input, shape index: {}]   ;;  %s12369_s1 = inlined_call_operand.vmem [shape: bf16[9,3,16], index: 1, kind: input, shape index: {}]   ;;  %s12370_s2 = inlined_call_operand.vmem [shape: f32[1,16], index: 2, kind: input, shape index: {}]   ;;  %s12371_s3 = inlined_call_operand.vmem [shape: f32[1,16], index: 3, kind: input, shape index: {}]   ;;  %s12372_s4 = inlined_call_operand.vmem [shape: bf16[9,16,16], index: 4, kind: input, shape index: {}]   ;;  %s12373_s5 = inlined_call_operand.vmem [shape: f32[1,16], index: 5, kind: input, shape index: {}]   ;;  %s12374_s6 = inlined_call_operand.vmem [shape: f32[1,16], index: 6, kind: input, shape index: {}]   ;;  %s12375_s7 = inlined_call_operand.hbm [shape: bf16[9,16,32], index: 7, kind: input, shape index: {}]   ;;  %s12376_s8 = inlined_call_operand.vmem [shape: f32[1,32], index: 8, kind: input, shape index: {}]   ;;  %s12377_s9 = inlined_call_operand.vmem [shape: f32[1,32], index: 9, kind: input, shape index: {}]   ;;  %s12378_s10 = inlined_call_operand.vmem [shape: bf16[9,32,64], index: 10, kind: input, shape index: {}]   ;;  %s12379_s11 = inlined_call_operand.vmem [shape: f32[1,64], index: 11, kind: input, shape index: {}]   ;;  %s12380_s12 = inlined_call_operand.vmem [shape: f32[1,64], index: 12, kind: input, shape index: {}]   ;;  %s12381_s13 = inlined_call_operand.hbm [shape: bf16[9,64,64], index: 13, kind: input, shape index: {}]   ;;  %s12382_s14 = inlined_call_operand.vmem [shape: f32[1,64], index: 14, kind: input, shape index: {}]   ;;  %s12383_s15 = inlined_call_operand.vmem [shape: f32[1,64], index: 15, kind: input, shape index: {}]   ;;  %s12384_s16 = inlined_call_operand.vmem [shape: f32[64,10], index: 16, kind: input, shape index: {}]   ;;  %s12385_s17 = inlined_call_operand.vmem [shape: f32[1,10], index: 17, kind: input, shape index: {}]   ;;  %s12386_s18 = inlined_call_operand.hbm [shape: f32[2,10], index: 18, kind: output, shape index: {}]  }
   0x1   :  { %12442 = sst [smem:[#allocation50_spill]] %s12368_s0 }
   0x2   :  { %12443 = sst [smem:[#allocation51_spill]] %s12369_s1 }
   0x3   :  { %12444 = sst [smem:[#allocation52_spill]] %s12370_s2 }
   0x4   :  { %23 = vsyncpa [#allocation4], 0 }
   0x5   :  { %24 = vsyncpa [#allocation7], 0 }
   0x6   :  { %25 = vsyncpa [#allocation5], 0  ;;  %s9048_s27 = smov [#allocation3]  }
   0x7   :  { %s45_s28 = sshll.u32 %s9048_s27, 4  ;;  %s46_s28 = int_to_ptr.vmem [resolvable:$true] %s45_s28 }
   0x8   :  { %s8990_s29 = scalar_lea.vmem %s46_s28, 1152  ;;  %p8995_p1 = scmp.lt.s32.totalorder %s46_s28, %s46_s28 }
   0x9   :  { %p8991_p0 = scmp.ne.s32.totalorder %s46_s28, %s8990_s29  ;;  %p8996_p2 = scmp.lt.s32.totalorder %s8990_s29, %s8990_s29 }
   0xb   :  { %p8997_p3 = por %p8996_p2, %p8995_p1 }
   0xd   :  { %p8998_p4 = pnand %p8997_p3, %p8991_p0 }
   0xf   :  { %9001 = shalt.err (!%p8998_p4)
}
  0x10   :  { %s9049_s30 = smov 64   ;;  %s9050_s0 = smov 4  }
  0x11   :  { %51 = dma.hbm_to_vmem [thread:$0]  %s12375_s7, 1152, %s46_s28, [#allocation4], %s9049_s30, %s9049_s30, %s9050_s0  }
  0x12   :  { %s9051_s20 = smov [#allocation6]  }
  0x13   :  { %s67_s21 = sshll.u32 %s9051_s20, 4  ;;  %s68_s21 = int_to_ptr.vmem [resolvable:$true] %s67_s21 }
  0x14   :  { %s9010_s22 = scalar_lea.vmem %s68_s21, 4608  ;;  %p9015_p6 = scmp.lt.s32.totalorder %s68_s21, %s68_s21 }
  0x15   :  { %p9011_p5 = scmp.ne.s32.totalorder %s68_s21, %s9010_s22  ;;  %p9016_p7 = scmp.lt.s32.totalorder %s9010_s22, %s9010_s22 }
  0x17   :  { %p9017_p8 = por %p9016_p7, %p9015_p6 }
  0x19   :  { %p9018_p9 = pnand %p9017_p8, %p9011_p5 }
  0x1b   :  { %9021 = shalt.err (!%p9018_p9)
}
  0x1c   :  { %73 = dma.hbm_to_vmem [thread:$0]  %s12381_s13, 4608, %s68_s21, [#allocation7], %s9049_s30, %s9049_s30, %s9050_s0  }
  0x1d   :  { %9042 = dma.done.wait [#allocation4], 1152  }
  0x1e   :  { %9043 = vsyncadd [#allocation4], 4294966144 }
  0x1f   :  { %9044 = dma.done.wait [#allocation7], 4608  }
  0x20   :  { %9045 = vsyncadd [#allocation7], 4294962688  ;;  %vm240_vm0 = vcmask 1040384   ;;  %vm105_vm1 = vcmask 523264   ;;  %vm107_vm2 = vcmask 517120   ;;  %vm241_vm3 = vcmask 1041408  }
  0x21   :  { %v9052_v0 = vmov 65535   ;;  %v12395_v2 = vmov 0.0   ;;  %vm148_vm4 = vcmask 23552   ;;  %s12445_s24 = sld [smem:[#allocation51_spill]]  ;;  %vm1631_vm5 = vcmask 130048  }
  0x22   :  { %v242_v1 = vsel %vm240_vm0, 4294967295, %v9052_v0  ;;  %106 = vst.msk [vmem:[#allocation2] sm:$0xff] %vm105_vm1, %v12395_v2  ;;  %109 = vst.msk [vmem:[#allocation2 + $0x10] sm:$0xff] %vm105_vm1, %v12395_v2  ;;  %s12446_s29 = sld [smem:[#allocation50_spill]]  ;;  %vm4349_vm6 = vcmask 1041409   ;;  %vm4351_vm7 = vcmask 1042434  }
  0x23   :  { %108 = vst.msk [vmem:[#allocation2 + $0x8] sm:$0x3] %vm107_vm2, %v12395_v2  ;;  %110 = vst.msk [vmem:[#allocation2 + $0x18] sm:$0x3] %vm107_vm2, %v12395_v2  ;;  %v9239_v3 = vsel %vm241_vm3, %v242_v1, 0  ;;  %s12538_s22 = sld [smem:[#allocation52_spill]] }
  0x24   :  { %111 = vst.msk [vmem:[#allocation2 + $0x20] sm:$0xff] %vm105_vm1, %v12395_v2  ;;  %113 = vst.msk [vmem:[#allocation2 + $0x30] sm:$0xff] %vm105_vm1, %v12395_v2  ;;  %vm4353_vm8 = vcmask 1043459   ;;  %vm4384_vm9 = vcmask 125952   ;;  %vm9055_vm10 = vmmov 0   ;;  %vm5230_vm11 = vcmask 261120  }
  0x25   :  { %112 = vst.msk [vmem:[#allocation2 + $0x28] sm:$0x3] %vm107_vm2, %v12395_v2  ;;  %114 = vst.msk [vmem:[#allocation2 + $0x38] sm:$0x3] %vm107_vm2, %v12395_v2  ;;  %vm5545_vm12 = vcmask 254976   ;;  %vm7560_vm13 = vcmask 74752  }
  0x26   :  { %115 = vst.msk [vmem:[#allocation2 + $0x40] sm:$0xff] %vm105_vm1, %v12395_v2  ;;  %117 = vst.msk [vmem:[#allocation2 + $0x50] sm:$0xff] %vm105_vm1, %v12395_v2 }
  0x27   :  { %116 = vst.msk [vmem:[#allocation2 + $0x48] sm:$0x3] %vm107_vm2, %v12395_v2  ;;  %118 = vst.msk [vmem:[#allocation2 + $0x58] sm:$0x3] %vm107_vm2, %v12395_v2  ;;  %v7578_v4 = vld [vmem:[%s12445_s24 + $0x2] sm:$0x3] }
  0x28   :  { %119 = vst.msk [vmem:[#allocation2 + $0x60] sm:$0xff] %vm105_vm1, %v12395_v2  ;;  %121 = vst.msk [vmem:[#allocation2 + $0x70] sm:$0xff] %vm105_vm1, %v12395_v2  ;;  %v189_v5 = vld [vmem:[%s12445_s24] sm:$0x3]  ;;  %v245_v7 = vand.u32 %v7578_v4, %v9239_v3  ;;  %v7595_v9 = vld [vmem:[%s12445_s24 + $0x4] sm:$0x3] }
  0x29   :  { %120 = vst.msk [vmem:[#allocation2 + $0x68] sm:$0x3] %vm107_vm2, %v12395_v2  ;;  %122 = vst.msk [vmem:[#allocation2 + $0x78] sm:$0x3] %vm107_vm2, %v12395_v2  ;;  %v89_v6 = vld [vmem:[%s12446_s29] sm:$0xff]  ;;  %v369_v8 = vand.u32 %v9239_v3, %v189_v5  ;;  %v90_v10 = vld [vmem:[%s12446_s29 + $0x8] sm:$0xff]  ;;  %v9265_v15 = vand.u32 %v7595_v9, %v9239_v3 }
  0x2a   :  { %123 = vst.msk [vmem:[#allocation2 + $0x80] sm:$0xff] %vm105_vm1, %v12395_v2  ;;  %125 = vst.msk [vmem:[#allocation2 + $0x90] sm:$0xff] %vm105_vm1, %v12395_v2  ;;  %v91_v11 = vld [vmem:[%s12446_s29 + $0x10] sm:$0xff]  ;;  %v190_v12 = vld [vmem:[#allocation2 + $0x1] sm:$0xff]  ;;  %8242 = vmatprep.subr.bf16.mxu0 %v245_v7 }
  0x2b   :  { %124 = vst.msk [vmem:[#allocation2 + $0x88] sm:$0x3] %vm107_vm2, %v12395_v2  ;;  %126 = vst.msk [vmem:[#allocation2 + $0x98] sm:$0x3] %vm107_vm2, %v12395_v2  ;;  %v165_v13 = vld [vmem:[#allocation2] sm:$0xff]  ;;  %8260 = vmatprep.subr.bf16.mxu1 %v369_v8  ;;  %v92_v16 = vld [vmem:[%s12446_s29 + $0x18] sm:$0xff]  ;;  %8243 = vmatpush3.bf16.msra.mxu0 %v245_v7 }
  0x2c   :  { %127 = vst.msk [vmem:[#allocation2 + $0xa0] sm:$0xff] %vm105_vm1, %v12395_v2  ;;  %129 = vst.msk [vmem:[#allocation2 + $0xb0] sm:$0xff] %vm105_vm1, %v12395_v2  ;;  %v9262_v14 = vld [vmem:[#allocation2 + $0x2] sm:$0xff]  ;;  %8261 = vmatpush3.bf16.msra.mxu1 %v369_v8  ;;  %v95_v19 = vld [vmem:[%s12446_s29 + $0x30] sm:$0xff]  ;;  %8278 = vmatprep.subr.bf16.mxu0 %v9265_v15 }
  0x2d   :  { %128 = vst.msk [vmem:[#allocation2 + $0xa8] sm:$0x3] %vm107_vm2, %v12395_v2  ;;  %130 = vst.msk [vmem:[#allocation2 + $0xb8] sm:$0x3] %vm107_vm2, %v12395_v2  ;;  %v93_v17 = vld [vmem:[%s12446_s29 + $0x20] sm:$0xff]  ;;  %v94_v18 = vld [vmem:[%s12446_s29 + $0x28] sm:$0xff] }
  0x2e   :  { %131 = vst.msk [vmem:[#allocation2 + $0xc0] sm:$0xff] %vm105_vm1, %v12395_v2  ;;  %133 = vst.msk [vmem:[#allocation2 + $0xd0] sm:$0xff] %vm105_vm1, %v12395_v2  ;;  %v97_v20 = vld [vmem:[%s12446_s29 + $0x40] sm:$0xff]  ;;  %v98_v24 = vld [vmem:[%s12446_s29 + $0x48] sm:$0xff] }
  0x2f   :  { %132 = vst.msk [vmem:[#allocation2 + $0xc8] sm:$0x3] %vm107_vm2, %v12395_v2  ;;  %134 = vst.msk [vmem:[#allocation2 + $0xd8] sm:$0x3] %vm107_vm2, %v12395_v2  ;;  %v99_v25 = vld [vmem:[%s12446_s29 + $0x50] sm:$0xff]  ;;  %v100_v26 = vld [vmem:[%s12446_s29 + $0x58] sm:$0xff] }
  0x30   :  { %135 = vst.msk [vmem:[#allocation2 + $0xe0] sm:$0xff] %vm105_vm1, %v12395_v2  ;;  %137 = vst.msk [vmem:[#allocation2 + $0xf0] sm:$0xff] %vm105_vm1, %v12395_v2  ;;  %v101_v27 = vld [vmem:[%s12446_s29 + $0x60] sm:$0xff]  ;;  %v102_v28 = vld [vmem:[%s12446_s29 + $0x68] sm:$0xff] }
  0x31   :  { %136 = vst.msk [vmem:[#allocation2 + $0xe8] sm:$0x3] %vm107_vm2, %v12395_v2  ;;  %138 = vst.msk [vmem:[#allocation2 + $0xf8] sm:$0x3] %vm107_vm2, %v12395_v2  ;;  %v103_v29 = vld [vmem:[%s12446_s29 + $0x70] sm:$0xff] }
  0x32   :  { %139 = vst.msk [vmem:[#allocation2 + $0x100] sm:$0xff] %vm105_vm1, %v12395_v2  ;;  %141 = vst.msk [vmem:[#allocation2 + $0x110] sm:$0xff] %vm105_vm1, %v12395_v2  ;;  %v7604_v30 = vld [vmem:[%s12445_s24 + $0x6] sm:$0x3]  ;;  %v7613_v43 = vld [vmem:[%s12445_s24 + $0x8] sm:$0x3] }
  0x33   :  { %140 = vst.msk [vmem:[#allocation2 + $0x108] sm:$0x3] %vm107_vm2, %v12395_v2  ;;  %142 = vst.msk [vmem:[#allocation2 + $0x118] sm:$0x3] %vm107_vm2, %v12395_v2  ;;  %v9296_v22 = vld [vmem:[#allocation2 + $0xa0] sm:$0xff]  ;;  %v685_v34 = vand.u32 %v7604_v30, %v9239_v3  ;;  %v9376_v48 = vand.u32 %v7613_v43, %v9239_v3 }
  0x34   :  { %143 = vst.msk [vmem:[#allocation2 + $0x120] sm:$0xff] %vm105_vm1, %v12395_v2  ;;  %145 = vst.msk [vmem:[#allocation2 + $0x130] sm:$0xff] %vm105_vm1, %v12395_v2  ;;  %v9291_v21 = vld [vmem:[#allocation2 + $0xa1] sm:$0xff] }
  0x35   :  { %144 = vst.msk [vmem:[#allocation2 + $0x128] sm:$0x3] %vm107_vm2, %v12395_v2  ;;  %146 = vst.msk [vmem:[#allocation2 + $0x138] sm:$0x3] %vm107_vm2, %v12395_v2  ;;  %v9298_v23 = vld [vmem:[#allocation2 + $0xa2] sm:$0xff]  ;;  %8296 = vmatprep.subr.bf16.mxu1 %v685_v34 }
  0x36   :  { %149 = vst.msk [vmem:[#allocation2 + $0x11] sm:$0xff] %vm148_vm4, %v89_v6  ;;  %150 = vst.msk [vmem:[#allocation2 + $0x21] sm:$0xff] %vm148_vm4, %v90_v10 }
  0x37   :  { %151 = vst.msk [vmem:[#allocation2 + $0x31] sm:$0xff] %vm148_vm4, %v91_v11  ;;  %152 = vst.msk [vmem:[#allocation2 + $0x41] sm:$0xff] %vm148_vm4, %v92_v16 }
  0x38   :  { %1794 = vst.msk [vmem:[#allocation2] sm:$0xff] %vm105_vm1, %v12395_v2  ;;  %1814 = vst.msk [vmem:[#allocation2 + $0xa0] sm:$0xff] %vm105_vm1, %v12395_v2 }
  0x39   :  { %1795 = vst.msk [vmem:[#allocation2 + $0x8] sm:$0x3] %vm107_vm2, %v12395_v2  ;;  %1815 = vst.msk [vmem:[#allocation2 + $0xa8] sm:$0x3] %vm107_vm2, %v12395_v2 }
  0x3a   :  { %153 = vst.msk [vmem:[#allocation2 + $0x51] sm:$0xff] %vm148_vm4, %v93_v17  ;;  %154 = vst.msk [vmem:[#allocation2 + $0x61] sm:$0xff] %vm148_vm4, %v94_v18 }
  0x3b   :  { %155 = vst.msk [vmem:[#allocation2 + $0x71] sm:$0xff] %vm148_vm4, %v95_v19  ;;  %157 = vst.msk [vmem:[#allocation2 + $0xb1] sm:$0xff] %vm148_vm4, %v97_v20  ;;  %v96_v19 = vld [vmem:[%s12446_s29 + $0x38] sm:$0xff] }
  0x3c   :  { %158 = vst.msk [vmem:[#allocation2 + $0xc1] sm:$0xff] %vm148_vm4, %v98_v24  ;;  %159 = vst.msk [vmem:[#allocation2 + $0xd1] sm:$0xff] %vm148_vm4, %v99_v25 }
  0x3d   :  { %160 = vst.msk [vmem:[#allocation2 + $0xe1] sm:$0xff] %vm148_vm4, %v100_v26  ;;  %161 = vst.msk [vmem:[#allocation2 + $0xf1] sm:$0xff] %vm148_vm4, %v101_v27  ;;  %v9329_v31 = vld [vmem:[#allocation2 + $0x11] sm:$0xff]  ;;  %v9340_v37 = vld [vmem:[#allocation2 + $0x21] sm:$0xff] }
  0x3e   :  { %v9331_v32 = vld [vmem:[#allocation2 + $0x12] sm:$0xff]  ;;  %162 = vst.msk [vmem:[#allocation2 + $0x101] sm:$0xff] %vm148_vm4, %v102_v28  ;;  %163 = vst.msk [vmem:[#allocation2 + $0x111] sm:$0xff] %vm148_vm4, %v103_v29  ;;  %v206_v35 = vpack.c.bf16 %v9329_v31, %v190_v12  ;;  %v9344_v39 = vld [vmem:[#allocation2 + $0x22] sm:$0xff] }
  0x3f   :  { %v9333_v33 = vld [vmem:[#allocation2 + $0x10] sm:$0xff]  ;;  %1797 = vst.msk [vmem:[#allocation2 + $0x18] sm:$0x3] %vm107_vm2, %v12395_v2  ;;  %v9354_v41 = vld [vmem:[#allocation2 + $0x20] sm:$0xff]  ;;  %1799 = vst.msk [vmem:[#allocation2 + $0x28] sm:$0x3] %vm107_vm2, %v12395_v2 }
  0x40   :  { %v181_v36 = vpack.c.bf16 %v9333_v33, %v165_v13  ;;  %v9342_v38 = vld [vmem:[#allocation2 + $0x31] sm:$0xff]  ;;  %1796 = vst.msk [vmem:[#allocation2 + $0x10] sm:$0xff] %vm105_vm1, %v12395_v2  ;;  %8244 = vmatprep.mubr.msk.bf16.mxu0 %vm148_vm4, %v206_v35  ;;  %v9369_v45 = vld [vmem:[#allocation2 + $0x41] sm:$0xff]  ;;  %1798 = vst.msk [vmem:[#allocation2 + $0x20] sm:$0xff] %vm105_vm1, %v12395_v2 }
  0x41   :  { %v9352_v40 = vpack.c.bf16 %v9342_v38, %v9340_v37  ;;  %v9356_v42 = vld [vmem:[#allocation2 + $0x30] sm:$0xff]  ;;  %v9373_v47 = vld [vmem:[#allocation2 + $0x42] sm:$0xff]  ;;  %156 = vst.msk [vmem:[#allocation2 + $0x81] sm:$0xff] %vm148_vm4, %v96_v19  ;;  %v104_v27 = vld [vmem:[%s12446_s29 + $0x78] sm:$0xff] }
  0x42   :  { %8262 = vmatprep.mubr.msk.bf16.mxu1 %vm148_vm4, %v181_v36  ;;  %v9367_v44 = vpack.c.bf16 %v9356_v42, %v9354_v41  ;;  %v9371_v46 = vld [vmem:[#allocation2 + $0x51] sm:$0xff]  ;;  %v9386_v50 = vld [vmem:[#allocation2 + $0x40] sm:$0xff]  ;;  %1803 = vst.msk [vmem:[#allocation2 + $0x48] sm:$0x3] %vm107_vm2, %v12395_v2  ;;  %v7622_v28 = vld [vmem:[%s12445_s24 + $0xa] sm:$0x3] }
  0x43   :  { %8245 = vmatmul.mubr.msk.bf16.vlgmr.msra.gmra.mxu0 %vm148_vm4, %v9352_v40  ;;  %v9384_v49 = vpack.c.bf16 %v9371_v46, %v9369_v45  ;;  %v9388_v51 = vld [vmem:[#allocation2 + $0x50] sm:$0xff]  ;;  %v9399_v53 = vld [vmem:[#allocation2 + $0x61] sm:$0xff]  ;;  %1802 = vst.msk [vmem:[#allocation2 + $0x40] sm:$0xff] %vm105_vm1, %v12395_v2  ;;  %v1017_v30 = vand.u32 %v7622_v28, %v9239_v3 }
  0x44   :  { %8263 = vmatmul.mubr.msk.bf16.vlgmr.msra.gmra.mxu1 %vm148_vm4, %v9367_v44  ;;  %8279 = vmatpush3.bf16.msra.mxu0 %v9265_v15  ;;  %v9397_v52 = vpack.c.bf16 %v9388_v51, %v9386_v50  ;;  %v9401_v54 = vld [vmem:[#allocation2 + $0x71] sm:$0xff]  ;;  %v9403_v55 = vld [vmem:[#allocation2 + $0x60] sm:$0xff]  ;;  %164 = vst.msk [vmem:[#allocation2 + $0x121] sm:$0xff] %vm148_vm4, %v104_v27 }
  0x45   :  { %8248 = vmatprep.mubr.msk.bf16.mxu0 %vm148_vm4, %v9384_v49  ;;  %v9409_v56 = vld [vmem:[#allocation2 + $0x70] sm:$0xff]  ;;  %8297 = vmatpush3.bf16.msra.mxu1 %v685_v34  ;;  %v9417_v59 = vld [vmem:[#allocation2 + $0xc1] sm:$0xff]  ;;  %v9426_v62 = vpack.c.bf16 %v9401_v54, %v9399_v53 }
  0x46   :  { %v9411_v57 = vld [vmem:[#allocation2 + $0xb1] sm:$0xff]  ;;  %8266 = vmatprep.mubr.msk.bf16.mxu1 %vm148_vm4, %v9397_v52  ;;  %v9419_v60 = vld [vmem:[#allocation2 + $0xc2] sm:$0xff]  ;;  %8314 = vmatprep.subr.bf16.mxu0 %v9376_v48  ;;  %v9434_v63 = vpack.c.bf16 %v9409_v56, %v9403_v55 }
  0x47   :  { %v9413_v58 = vld [vmem:[#allocation2 + $0xb0] sm:$0xff]  ;;  %v9421_v61 = vld [vmem:[#allocation2 + $0xc0] sm:$0xff]  ;;  %12447 = vst [vmem:[#allocation12_spill] sm:$0xff] %v9426_v62  ;;  %1819 = vst.msk [vmem:[#allocation2 + $0xc8] sm:$0x3] %vm107_vm2, %v12395_v2  ;;  %v210_v0 = vpack.c.bf16 %v9411_v57, %v9291_v21  ;;  %8332 = vmatprep.subr.bf16.mxu1 %v1017_v30 }
  0x48   :  { %1818 = vst.msk [vmem:[#allocation2 + $0xc0] sm:$0xff] %vm105_vm1, %v12395_v2  ;;  %12448 = vst [vmem:[#allocation13_spill] sm:$0xff] %v9434_v63  ;;  %v185_v1 = vpack.c.bf16 %v9413_v58, %v9296_v22  ;;  %v9440_v4 = vld [vmem:[#allocation2 + $0xd1] sm:$0xff]  ;;  %v9444_v6 = vld [vmem:[#allocation2 + $0xe1] sm:$0xff] }
  0x49   :  { %v9442_v5 = vld [vmem:[#allocation2 + $0xd0] sm:$0xff]  ;;  %v9448_v8 = vld [vmem:[#allocation2 + $0xe0] sm:$0xff]  ;;  %v9539_v29 = vpack.c.bf16 %v9440_v4, %v9417_v59 }
  0x4a   :  { %v9446_v7 = vld [vmem:[#allocation2 + $0xf1] sm:$0xff]  ;;  %v9456_v12 = vld [vmem:[#allocation2 + $0x62] sm:$0xff]  ;;  %v9548_v36 = vpack.c.bf16 %v9442_v5, %v9421_v61 }
  0x4b   :  { %v9450_v9 = vld [vmem:[#allocation2 + $0xf0] sm:$0xff]  ;;  %8249 = vmatmul.mubr.msk.bf16.gmra.mxu0 %vm148_vm4, %v9426_v62  ;;  %v9460_v13 = vld [vmem:[#allocation2 + $0x101] sm:$0xff]  ;;  %1806 = vst.msk [vmem:[#allocation2 + $0x60] sm:$0xff] %vm105_vm1, %v12395_v2  ;;  %12449 = vst [vmem:[#allocation14_spill] sm:$0xff] %v9539_v29  ;;  %v9552_v43 = vpack.c.bf16 %v9446_v7, %v9444_v6 }
  0x4c   :  { %v9452_v10 = vld [vmem:[#allocation2 + $0x32] sm:$0xff]  ;;  %v9464_v16 = vld [vmem:[#allocation2 + $0x100] sm:$0xff]  ;;  %1807 = vst.msk [vmem:[#allocation2 + $0x68] sm:$0x3] %vm107_vm2, %v12395_v2  ;;  %8267 = vmatmul.mubr.msk.bf16.gmra.mxu1 %vm148_vm4, %v9434_v63  ;;  %8252 = vmatprep.mubr.msk.bf16.mxu0 %vm148_vm4, %v210_v0  ;;  %12451 = vst [vmem:[#allocation16_spill] sm:$0xff] %v9548_v36  ;;  %v9562_v27 = vpack.c.bf16 %v9450_v9, %v9448_v8 }
  0x4d   :  { %v9454_v11 = vld [vmem:[#allocation2 + $0x52] sm:$0xff]  ;;  %1800 = vst.msk [vmem:[#allocation2 + $0x30] sm:$0xff] %vm105_vm1, %v12395_v2  ;;  %v9493_v22 = vld [vmem:[#allocation2 + $0xe2] sm:$0xff]  ;;  %8270 = vmatprep.mubr.msk.bf16.mxu1 %vm148_vm4, %v185_v1  ;;  %12452 = vst [vmem:[#allocation17_spill] sm:$0xff] %v9552_v43 }
  0x4e   :  { %v9462_v15 = vld [vmem:[#allocation2 + $0x111] sm:$0xff]  ;;  %1804 = vst.msk [vmem:[#allocation2 + $0x50] sm:$0xff] %vm105_vm1, %v12395_v2  ;;  %v9506_v25 = vld [vmem:[#allocation2 + $0x102] sm:$0xff]  ;;  %1822 = vst.msk [vmem:[#allocation2 + $0xe0] sm:$0xff] %vm105_vm1, %v12395_v2 }
  0x4f   :  { %v9466_v17 = vld [vmem:[#allocation2 + $0x110] sm:$0xff]  ;;  %1805 = vst.msk [vmem:[#allocation2 + $0x58] sm:$0x3] %vm107_vm2, %v12395_v2  ;;  %1801 = vst.msk [vmem:[#allocation2 + $0x38] sm:$0x3] %vm107_vm2, %v12395_v2  ;;  %v9596_v62 = vld [vmem:[#allocation2 + $0x122] sm:$0xff] }
  0x50   :  { %v9468_v18 = vld [vmem:[#allocation2 + $0x72] sm:$0xff]  ;;  %1823 = vst.msk [vmem:[#allocation2 + $0xe8] sm:$0x3] %vm107_vm2, %v12395_v2  ;;  %1827 = vst.msk [vmem:[#allocation2 + $0x108] sm:$0x3] %vm107_vm2, %v12395_v2  ;;  %v9612_v63 = vpack.c.bf16 %v9466_v17, %v9464_v16 }
  0x51   :  { %v9473_v20 = vld [vmem:[#allocation2 + $0xb2] sm:$0xff]  ;;  %1808 = vst.msk [vmem:[#allocation2 + $0x70] sm:$0xff] %vm105_vm1, %v12395_v2  ;;  %1826 = vst.msk [vmem:[#allocation2 + $0x100] sm:$0xff] %vm105_vm1, %v12395_v2 }
  0x52   :  { %v9491_v21 = vld [vmem:[#allocation2 + $0xd2] sm:$0xff]  ;;  %1816 = vst.msk [vmem:[#allocation2 + $0xb0] sm:$0xff] %vm105_vm1, %v12395_v2  ;;  %12456 = vst [vmem:[#allocation21_spill] sm:$0xff] %v9562_v27 }
  0x53   :  { %v9495_v24 = vld [vmem:[#allocation2 + $0xf2] sm:$0xff]  ;;  %1817 = vst.msk [vmem:[#allocation2 + $0xb8] sm:$0x3] %vm107_vm2, %v12395_v2  ;;  %1809 = vst.msk [vmem:[#allocation2 + $0x78] sm:$0x3] %vm107_vm2, %v12395_v2  ;;  %8253 = vmatmul.mubr.msk.bf16.gmra.mxu0 %vm148_vm4, %v9539_v29  ;;  %v9594_v29 = vld [vmem:[#allocation2 + $0x121] sm:$0xff] }
  0x54   :  { %v9508_v26 = vld [vmem:[#allocation2 + $0x112] sm:$0xff]  ;;  %1821 = vst.msk [vmem:[#allocation2 + $0xd8] sm:$0x3] %vm107_vm2, %v12395_v2  ;;  %1825 = vst.msk [vmem:[#allocation2 + $0xf8] sm:$0x3] %vm107_vm2, %v12395_v2  ;;  %8271 = vmatmul.mubr.msk.bf16.gmra.mxu1 %vm148_vm4, %v9548_v36  ;;  %8256 = vmatprep.mubr.msk.bf16.mxu0 %vm148_vm4, %v9552_v43  ;;  %v484_v36 = vpack.c.bf16 %v9331_v32, %v9262_v14  ;;  %v650_v43 = vpack.c.bf16 %v9354_v41, %v9333_v33 }
  0x55   :  { %1820 = vst.msk [vmem:[#allocation2 + $0xd0] sm:$0xff] %vm105_vm1, %v12395_v2  ;;  %1824 = vst.msk [vmem:[#allocation2 + $0xf0] sm:$0xff] %vm105_vm1, %v12395_v2  ;;  %v9542_v34 = vld [vmem:[#allocation2 + $0x90] sm:$0xff]  ;;  %8274 = vmatprep.mubr.msk.bf16.mxu1 %vm148_vm4, %v9562_v27  ;;  %v9608_v27 = vpack.c.bf16 %v9462_v15, %v9460_v13  ;;  %v7640_v14 = vld [vmem:[%s12445_s24 + $0xe] sm:$0x3]  ;;  %v9632_v33 = vpack.c.bf16 %v9452_v10, %v9344_v39  ;;  %v651_v41 = vpack.c.bf16 %v9386_v50, %v9356_v42 }
  0x56   :  { %1828 = vst.msk [vmem:[#allocation2 + $0x110] sm:$0xff] %vm105_vm1, %v12395_v2  ;;  %v9544_v35 = vld [vmem:[#allocation2 + $0x91] sm:$0xff]  ;;  %v9653_v42 = vpack.c.bf16 %v9468_v18, %v9456_v12  ;;  %v654_v50 = vpack.c.bf16 %v9421_v61, %v9413_v58  ;;  %v9686_v58 = vpack.c.bf16 %v9508_v26, %v9506_v25 }
  0x57   :  { %1829 = vst.msk [vmem:[#allocation2 + $0x118] sm:$0x3] %vm107_vm2, %v12395_v2  ;;  %12450 = vst [vmem:[#allocation15_spill] sm:$0xff] %v9544_v35  ;;  %v9554_v0 = vld [vmem:[#allocation2 + $0x92] sm:$0xff]  ;;  %v9580_v35 = vld [vmem:[#allocation2 + $0x82] sm:$0xff] }
  0x58   :  { %12453 = vst [vmem:[#allocation18_spill] sm:$0xff] %v9554_v0  ;;  %v9556_v1 = vld [vmem:[#allocation2 + $0x130] sm:$0xff]  ;;  %1812 = vst.msk [vmem:[#allocation2 + $0x90] sm:$0xff] %vm105_vm1, %v12395_v2  ;;  %v9576_v0 = vld [vmem:[#allocation2 + $0x80] sm:$0xff] }
  0x59   :  { %12454 = vst [vmem:[#allocation19_spill] sm:$0xff] %v9556_v1  ;;  %v9558_v19 = vld [vmem:[#allocation2 + $0x131] sm:$0xff]  ;;  %1813 = vst.msk [vmem:[#allocation2 + $0x98] sm:$0x3] %vm107_vm2, %v12395_v2 }
  0x5a   :  { %12455 = vst [vmem:[#allocation20_spill] sm:$0xff] %v9558_v19  ;;  %v9568_v28 = vld [vmem:[#allocation2 + $0x132] sm:$0xff]  ;;  %v9578_v19 = vld [vmem:[#allocation2 + $0x81] sm:$0xff]  ;;  %1831 = vst.msk [vmem:[#allocation2 + $0x128] sm:$0x3] %vm107_vm2, %v12395_v2 }
  0x5b   :  { %12457 = vst [vmem:[#allocation22_spill] sm:$0xff] %v9568_v28  ;;  %1832 = vst.msk [vmem:[#allocation2 + $0x130] sm:$0xff] %vm105_vm1, %v12395_v2  ;;  %v9592_v28 = vld [vmem:[#allocation2 + $0x120] sm:$0xff]  ;;  %8257 = vmatmul.mubr.msk.bf16.gmra.mxu0 %vm148_vm4, %v9608_v27 }
  0x5c   :  { %1833 = vst.msk [vmem:[#allocation2 + $0x138] sm:$0x3] %vm107_vm2, %v12395_v2  ;;  %1811 = vst.msk [vmem:[#allocation2 + $0x88] sm:$0x3] %vm107_vm2, %v12395_v2  ;;  %8275 = vmatmul.mubr.msk.bf16.gmra.mxu1 %vm148_vm4, %v9612_v63  ;;  %8280 = vmatprep.mubr.msk.bf16.mxu0 %vm148_vm4, %v484_v36  ;;  %v9638_v36 = vpack.c.bf16 %v9454_v11, %v9373_v47  ;;  %v657_v61 = vpack.c.bf16 %v9592_v28, %v9466_v17 }
  0x5d   :  { %1810 = vst.msk [vmem:[#allocation2 + $0x80] sm:$0xff] %vm105_vm1, %v12395_v2  ;;  %1830 = vst.msk [vmem:[#allocation2 + $0x120] sm:$0xff] %vm105_vm1, %v12395_v2  ;;  %8298 = vmatprep.mubr.msk.bf16.mxu1 %vm148_vm4, %v650_v43  ;;  %v7631_v2 = vld [vmem:[%s12445_s24 + $0xc] sm:$0x3]  ;;  %v652_v43 = vpack.c.bf16 %v9403_v55, %v9388_v51  ;;  %v9668_v51 = vpack.c.bf16 %v9491_v21, %v9419_v60  ;;  %v655_v55 = vpack.c.bf16 %v9448_v8, %v9442_v5 }
  0x5e   :  { %12458 = vst [vmem:[#allocation23_spill] sm:$0xff] %v9608_v27  ;;  %v1184_v1 = vand.u32 %v7631_v2, %v9239_v3  ;;  %v1350_v27 = vand.u32 %v7640_v14, %v9239_v3  ;;  %v653_v2 = vpack.c.bf16 %v9576_v0, %v9409_v56  ;;  %v656_v56 = vpack.c.bf16 %v9464_v16, %v9450_v9  ;;  %v7649_v9 = vld [vmem:[%s12445_s24 + $0x10] sm:$0x3]  ;;  %s9056_s24 = smov [#allocation8]  }
  0x5f   :  { %v816_v5 = vpack.c.bf16 %v9340_v37, %v9329_v31  ;;  %v982_v8 = vpack.c.bf16 %v9344_v39, %v9331_v32  ;;  %v817_v16 = vpack.c.bf16 %v9369_v45, %v9342_v38  ;;  %v983_v31 = vpack.c.bf16 %v9373_v47, %v9452_v10  ;;  %s7568_s27 = sshll.u32 %s9056_s24, 4  ;;  %s7569_s27 = int_to_ptr.vmem [resolvable:$true] %s7568_s27 }
  0x60   :  { %v818_v32 = vpack.c.bf16 %v9399_v53, %v9371_v46  ;;  %v984_v37 = vpack.c.bf16 %v9456_v12, %v9454_v11  ;;  %v1516_v39 = vand.u32 %v7649_v9, %v9239_v3  ;;  %v819_v38 = vpack.c.bf16 %v9578_v19, %v9401_v54  ;;  %v12466_v11 = vld [vmem:[#allocation17_spill] sm:$0xff]  ;;  %v12469_v17 = vld [vmem:[#allocation19_spill] sm:$0xff]  ;;  %s9022_s28 = scalar_lea.vmem %s7569_s27, 32  ;;  %p9027_p11 = scmp.lt.s32.totalorder %s7569_s27, %s7569_s27 }
  0x61   :  { %v985_v45 = vpack.c.bf16 %v9580_v35, %v9468_v18  ;;  %v820_v3 = vpack.c.bf16 %v9417_v59, %v9411_v57  ;;  %v986_v46 = vpack.c.bf16 %v9419_v60, %v9473_v20  ;;  %v821_v47 = vpack.c.bf16 %v9444_v6, %v9440_v4  ;;  %v12459_v4 = vld [vmem:[#allocation13_spill] sm:$0xff]  ;;  %v12460_v6 = vld [vmem:[#allocation12_spill] sm:$0xff]  ;;  %p9023_p10 = scmp.ne.s32.totalorder %s7569_s27, %s9022_s28  ;;  %p9028_p12 = scmp.lt.s32.totalorder %s9022_s28, %s9022_s28 }
  0x62   :  { %v987_v53 = vpack.c.bf16 %v9493_v22, %v9491_v21  ;;  %v822_v54 = vpack.c.bf16 %v9460_v13, %v9446_v7  ;;  %v988_v57 = vpack.c.bf16 %v9506_v25, %v9495_v24  ;;  %v823_v59 = vpack.c.bf16 %v9594_v29, %v9462_v15  ;;  %v12461_v7 = vld [vmem:[#allocation15_spill] sm:$0xff]  ;;  %v12468_v13 = vld [vmem:[#allocation20_spill] sm:$0xff]  ;;  %v12472_v21 = vld [vmem:[#allocation22_spill] sm:$0xff] }
  0x63   :  { %8281 = vmatmul.mubr.msk.bf16.vlgmr.msra.gmra.mxu0 %vm148_vm4, %v9632_v33  ;;  %v989_v60 = vpack.c.bf16 %v9596_v62, %v9508_v26  ;;  %v1318_v10 = vpack.c.bf16 %v12461_v7, %v9578_v19  ;;  %v1322_v15 = vpack.c.bf16 %v12468_v13, %v9594_v29  ;;  %v12470_v18 = vpack.c.bf16 %v12469_v17, %v9592_v28  ;;  %p9029_p13 = por %p9028_p12, %p9027_p11 }
  0x64   :  { %8315 = vmatpush3.bf16.msra.mxu0 %v9376_v48  ;;  %8299 = vmatmul.mubr.msk.bf16.vlgmr.msra.gmra.mxu1 %vm148_vm4, %v651_v41  ;;  %v488_v48 = vpack.c.bf16 %v9473_v20, %v9298_v23  ;;  %v9674_v23 = vpack.c.bf16 %v9495_v24, %v9493_v22  ;;  %v1488_v22 = vpack.c.bf16 %v12472_v21, %v9596_v62 }
  0x65   :  { %8284 = vmatprep.mubr.msk.bf16.mxu0 %vm148_vm4, %v9638_v36  ;;  %8302 = vmatprep.mubr.msk.bf16.mxu1 %vm148_vm4, %v652_v43  ;;  %v12467_v12 = vld [vmem:[#allocation23_spill] sm:$0xff]  ;;  %p9030_p0 = pnand %p9029_p13, %p9023_p10 }
  0x66   :  { %8333 = vmatpush3.bf16.msra.mxu1 %v1017_v30  ;;  %8350 = vmatprep.subr.bf16.mxu0 %v1184_v1 }
  0x67   :  { %8368 = vmatprep.subr.bf16.mxu1 %v1350_v27 }
  0x6b   :  { %8285 = vmatmul.mubr.msk.bf16.gmra.mxu0 %vm148_vm4, %v9653_v42 }
  0x6c   :  { %8303 = vmatmul.mubr.msk.bf16.gmra.mxu1 %vm148_vm4, %v653_v2  ;;  %8288 = vmatprep.mubr.msk.bf16.mxu0 %vm148_vm4, %v488_v48 }
  0x6d   :  { %8306 = vmatprep.mubr.msk.bf16.mxu1 %vm148_vm4, %v654_v50 }
  0x73   :  { %8289 = vmatmul.mubr.msk.bf16.gmra.mxu0 %vm148_vm4, %v9668_v51 }
  0x74   :  { %8307 = vmatmul.mubr.msk.bf16.gmra.mxu1 %vm148_vm4, %v655_v55  ;;  %8292 = vmatprep.mubr.msk.bf16.mxu0 %vm148_vm4, %v9674_v23 }
  0x75   :  { %8310 = vmatprep.mubr.msk.bf16.mxu1 %vm148_vm4, %v656_v56 }
  0x7b   :  { %8293 = vmatmul.mubr.msk.bf16.gmra.mxu0 %vm148_vm4, %v9686_v58 }
  0x7c   :  { %8311 = vmatmul.mubr.msk.bf16.gmra.mxu1 %vm148_vm4, %v657_v61  ;;  %8316 = vmatprep.mubr.msk.bf16.mxu0 %vm148_vm4, %v816_v5 }
  0x7d   :  { %8334 = vmatprep.mubr.msk.bf16.mxu1 %vm148_vm4, %v982_v8 }
  0x83   :  { %8317 = vmatmul.mubr.msk.bf16.vlgmr.msra.gmra.mxu0 %vm148_vm4, %v817_v16 }
  0x84   :  { %8351 = vmatpush3.bf16.msra.mxu0 %v1184_v1  ;;  %8335 = vmatmul.mubr.msk.bf16.vlgmr.msra.gmra.mxu1 %vm148_vm4, %v983_v31 }
  0x85   :  { %8320 = vmatprep.mubr.msk.bf16.mxu0 %vm148_vm4, %v818_v32  ;;  %8338 = vmatprep.mubr.msk.bf16.mxu1 %vm148_vm4, %v984_v37 }
  0x86   :  { %8369 = vmatpush3.bf16.msra.mxu1 %v1350_v27  ;;  %8386 = vmatprep.subr.bf16.mxu0 %v1516_v39 }
  0x8b   :  { %8321 = vmatmul.mubr.msk.bf16.gmra.mxu0 %vm148_vm4, %v819_v38 }
  0x8c   :  { %8339 = vmatmul.mubr.msk.bf16.gmra.mxu1 %vm148_vm4, %v985_v45  ;;  %8324 = vmatprep.mubr.msk.bf16.mxu0 %vm148_vm4, %v820_v3 }
  0x8d   :  { %8342 = vmatprep.mubr.msk.bf16.mxu1 %vm148_vm4, %v986_v46 }
  0x93   :  { %8325 = vmatmul.mubr.msk.bf16.gmra.mxu0 %vm148_vm4, %v821_v47 }
  0x94   :  { %8343 = vmatmul.mubr.msk.bf16.gmra.mxu1 %vm148_vm4, %v987_v53  ;;  %8328 = vmatprep.mubr.msk.bf16.mxu0 %vm148_vm4, %v822_v54 }
  0x95   :  { %8346 = vmatprep.mubr.msk.bf16.mxu1 %vm148_vm4, %v988_v57 }
  0x9b   :  { %8329 = vmatmul.mubr.msk.bf16.gmra.mxu0 %vm148_vm4, %v823_v59 }
  0x9c   :  { %8347 = vmatmul.mubr.msk.bf16.gmra.mxu1 %vm148_vm4, %v989_v60  ;;  %8352 = vmatprep.mubr.msk.bf16.mxu0 %vm148_vm4, %v9367_v44  ;;  %v12462_v44 = vpack.c.bf16 %v9542_v34, %v9576_v0 }
  0x9d   :  { %8370 = vmatprep.mubr.msk.bf16.mxu1 %vm148_vm4, %v9352_v40  ;;  %v12463_v40 = vld [vmem:[#allocation16_spill] sm:$0xff] }
  0xa3   :  { %8353 = vmatmul.mubr.msk.bf16.vlgmr.msra.gmra.mxu0 %vm148_vm4, %v9397_v52  ;;  %v12465_v52 = vld [vmem:[#allocation21_spill] sm:$0xff] }
  0xa4   :  { %8387 = vmatpush3.bf16.msra.mxu0 %v1516_v39  ;;  %8371 = vmatmul.mubr.msk.bf16.vlgmr.msra.gmra.mxu1 %vm148_vm4, %v9384_v49  ;;  %v12464_v49 = vld [vmem:[#allocation14_spill] sm:$0xff] }
  0xa5   :  { %8356 = vmatprep.mubr.msk.bf16.mxu0 %vm148_vm4, %v12459_v4  ;;  %8374 = vmatprep.mubr.msk.bf16.mxu1 %vm148_vm4, %v12460_v6 }
  0xab   :  { %8357 = vmatmul.mubr.msk.bf16.gmra.mxu0 %vm148_vm4, %v12462_v44 }
  0xac   :  { %8375 = vmatmul.mubr.msk.bf16.gmra.mxu1 %vm148_vm4, %v1318_v10  ;;  %8360 = vmatprep.mubr.msk.bf16.mxu0 %vm148_vm4, %v12463_v40 }
  0xad   :  { %8378 = vmatprep.mubr.msk.bf16.mxu1 %vm148_vm4, %v12464_v49 }
  0xb3   :  { %8361 = vmatmul.mubr.msk.bf16.gmra.mxu0 %vm148_vm4, %v12465_v52 }
  0xb4   :  { %8379 = vmatmul.mubr.msk.bf16.gmra.mxu1 %vm148_vm4, %v12466_v11  ;;  %8364 = vmatprep.mubr.msk.bf16.mxu0 %vm148_vm4, %v9612_v63  ;;  %v12471_v63 = vld [vmem:[#allocation18_spill] sm:$0xff] }
  0xb5   :  { %8382 = vmatprep.mubr.msk.bf16.mxu1 %vm148_vm4, %v12467_v12  ;;  %v1484_v20 = vpack.c.bf16 %v12471_v63, %v9580_v35 }
  0xbb   :  { %8365 = vmatmul.mubr.msk.bf16.gmra.mxu0 %vm148_vm4, %v12470_v18 }
  0xbc   :  { %8383 = vmatmul.mubr.msk.bf16.gmra.mxu1 %vm148_vm4, %v1322_v15  ;;  %8388 = vmatprep.mubr.msk.bf16.mxu0 %vm148_vm4, %v9632_v33 }
  0xc3   :  { %8389 = vmatmul.mubr.msk.bf16.vlgmr.msra.gmra.mxu0 %vm148_vm4, %v9638_v36 }
  0xc4   :  { %8392 = vmatprep.mubr.msk.bf16.mxu0 %vm148_vm4, %v9653_v42 }
  0xcb   :  { %8393 = vmatmul.mubr.msk.bf16.gmra.mxu0 %vm148_vm4, %v1484_v20 }
  0xcc   :  { %8396 = vmatprep.mubr.msk.bf16.mxu0 %vm148_vm4, %v9668_v51 }
  0xd3   :  { %8397 = vmatmul.mubr.msk.bf16.gmra.mxu0 %vm148_vm4, %v9674_v23 }
  0xd4   :  { %8400 = vmatprep.mubr.msk.bf16.mxu0 %vm148_vm4, %v9686_v58 }
  0xdb   :  { %8401 = vmatmul.mubr.msk.bf16.gmra.mxu0 %vm148_vm4, %v1488_v22 }
 0x103   :  { %v8246_v24 = vpop.f32.mrf.mxu0 }
 0x104   :  { %v8264_v25 = vpop.f32.mrf.mxu1 }
 0x105   :  { %v414_v26 = vadd.f32 %v8264_v25, %v8246_v24  ;;  %v281_v29 = vpop.f32.mrf.mxu0 }
 0x106   :  { %v405_v30 = vpop.f32.mrf.mxu1 }
 0x107   :  { %v406_v34 = vadd.f32 %v405_v30, %v281_v29  ;;  %v8247_v35 = vpop.f32.mrf.mxu0 }
 0x108   :  { %v8265_v0 = vpop.f32.mrf.mxu1 }
 0x109   :  { %v417_v1 = vadd.f32 %v8265_v0, %v8247_v35  ;;  %v9801_v19 = vpop.f32.mrf.mxu0 }
 0x10a   :  { %v9803_v27 = vpop.f32.mrf.mxu1 }
 0x10b   :  { %v8250_v28 = vpop.f32.mrf.mxu0 }
 0x10c   :  { %v8268_v14 = vpop.f32.mrf.mxu1 }
 0x10d   :  { %v430_v33 = vadd.f32 %v8268_v14, %v8250_v28  ;;  %v297_v41 = vpop.f32.mrf.mxu0 }
 0x10e   :  { %v421_v62 = vpop.f32.mrf.mxu1 }
 0x10f   :  { %v422_v36 = vadd.f32 %v421_v62, %v297_v41  ;;  %v8251_v43 = vpop.f32.mrf.mxu0 }
 0x110   :  { %v8269_v42 = vpop.f32.mrf.mxu1 }
 0x111   :  { %v433_v2 = vadd.f32 %v8269_v42, %v8251_v43  ;;  %v9805_v48 = vpop.f32.mrf.mxu0 }
 0x112   :  { %v9807_v50 = vpop.f32.mrf.mxu1 }
 0x113   :  { %v8254_v51 = vpop.f32.mrf.mxu0 }
 0x114   :  { %v8272_v55 = vpop.f32.mrf.mxu1 }
 0x115   :  { %v446_v23 = vadd.f32 %v8272_v55, %v8254_v51  ;;  %v313_v56 = vpop.f32.mrf.mxu0 }
 0x116   :  { %v437_v58 = vpop.f32.mrf.mxu1 }
 0x117   :  { %v438_v61 = vadd.f32 %v437_v58, %v313_v56  ;;  %v8255_v5 = vpop.f32.mrf.mxu0 }
 0x118   :  { %v8273_v8 = vpop.f32.mrf.mxu1 }
 0x119   :  { %v449_v9 = vadd.f32 %v8273_v8, %v8255_v5  ;;  %v9809_v16 = vpop.f32.mrf.mxu0 }
 0x11a   :  { %v9811_v31 = vpop.f32.mrf.mxu1 }
 0x11b   :  { %v8258_v32 = vpop.f32.mrf.mxu0 }
 0x11c   :  { %v8276_v37 = vpop.f32.mrf.mxu1 }
 0x11d   :  { %v462_v39 = vadd.f32 %v8276_v37, %v8258_v32  ;;  %v329_v38 = vpop.f32.mrf.mxu0 }
 0x11e   :  { %v453_v45 = vpop.f32.mrf.mxu1 }
 0x11f   :  { %v454_v3 = vadd.f32 %v453_v45, %v329_v38  ;;  %v8259_v46 = vpop.f32.mrf.mxu0 }
 0x120   :  { %v8277_v47 = vpop.f32.mrf.mxu1 }
 0x121   :  { %v465_v53 = vadd.f32 %v8277_v47, %v8259_v46  ;;  %v9813_v54 = vpop.f32.mrf.mxu0 }
 0x122   :  { %v9815_v57 = vpop.f32.mrf.mxu1 }
 0x123   :  { %v8282_v59 = vpop.f32.mrf.mxu0 }
 0x124   :  { %v620_v60 = vadd.f32 %v8282_v59, %v414_v26  ;;  %v8300_v4 = vpop.f32.mrf.mxu1 }
 0x125   :  { %v555_v6 = vpop.f32.mrf.mxu0 }
 0x126   :  { %v9817_v7 = vadd.f32 %v555_v6, %v406_v34  ;;  %v786_v10 = vadd.f32 %v8300_v4, %v620_v60  ;;  %v9819_v44 = vpop.f32.mrf.mxu1 }
 0x127   :  { %v8283_v40 = vpop.f32.mrf.mxu0 }
 0x128   :  { %v9821_v49 = vadd.f32 %v8283_v40, %v417_v1  ;;  %v9823_v52 = vpop.f32.mrf.mxu1 }
 0x129   :  { %v9825_v11 = vpop.f32.mrf.mxu0 }
 0x12a   :  { %v9827_v12 = vpop.f32.mrf.mxu1 }
 0x12b   :  { %v8286_v13 = vpop.f32.mrf.mxu0 }
 0x12c   :  { %v624_v15 = vadd.f32 %v8286_v13, %v430_v33  ;;  %v8304_v17 = vpop.f32.mrf.mxu1 }
 0x12d   :  { %v571_v18 = vpop.f32.mrf.mxu0 }
 0x12e   :  { %v9829_v63 = vadd.f32 %v571_v18, %v422_v36  ;;  %v790_v20 = vadd.f32 %v8304_v17, %v624_v15  ;;  %v9831_v21 = vpop.f32.mrf.mxu1 }
 0x12f   :  { %v8287_v22 = vpop.f32.mrf.mxu0 }
 0x130   :  { %v9833_v24 = vadd.f32 %v8287_v22, %v433_v2  ;;  %v9835_v25 = vpop.f32.mrf.mxu1 }
 0x131   :  { %v9837_v26 = vpop.f32.mrf.mxu0 }
 0x132   :  { %v9839_v29 = vpop.f32.mrf.mxu1 }
 0x133   :  { %v8290_v30 = vpop.f32.mrf.mxu0 }
 0x134   :  { %v628_v34 = vadd.f32 %v8290_v30, %v446_v23  ;;  %v8308_v35 = vpop.f32.mrf.mxu1 }
 0x135   :  { %v587_v0 = vpop.f32.mrf.mxu0 }
 0x136   :  { %v9841_v1 = vadd.f32 %v587_v0, %v438_v61  ;;  %v794_v28 = vadd.f32 %v8308_v35, %v628_v34  ;;  %v9843_v14 = vpop.f32.mrf.mxu1 }
 0x137   :  { %v8291_v33 = vpop.f32.mrf.mxu0 }
 0x138   :  { %v9845_v41 = vadd.f32 %v8291_v33, %v449_v9  ;;  %v9847_v62 = vpop.f32.mrf.mxu1 }
 0x139   :  { %v9849_v36 = vpop.f32.mrf.mxu0 }
 0x13a   :  { %v9851_v43 = vpop.f32.mrf.mxu1 }
 0x13b   :  { %v8294_v42 = vpop.f32.mrf.mxu0 }
 0x13c   :  { %v632_v2 = vadd.f32 %v8294_v42, %v462_v39  ;;  %v8312_v51 = vpop.f32.mrf.mxu1 }
 0x13d   :  { %v603_v55 = vpop.f32.mrf.mxu0 }
 0x13e   :  { %v9853_v23 = vadd.f32 %v603_v55, %v454_v3  ;;  %v798_v56 = vadd.f32 %v8312_v51, %v632_v2  ;;  %v9855_v58 = vpop.f32.mrf.mxu1  ;;  %v8829_v55 = vld [vmem:[%s12372_s4] sm:$0xff]  }
 0x13f   :  { %v8295_v61 = vpop.f32.mrf.mxu0  ;;  %8422 = vmatprep.subr.bf16.mxu0 %v8829_v55 }
 0x140   :  { %v9857_v5 = vadd.f32 %v8295_v61, %v465_v53  ;;  %v9859_v8 = vpop.f32.mrf.mxu1  ;;  %8423 = vmatpush3.bf16.msra.mxu0 %v8829_v55 }
 0x141   :  { %v9861_v9 = vpop.f32.mrf.mxu0 }
 0x142   :  { %v9863_v32 = vpop.f32.mrf.mxu1 }
 0x143   :  { %v8318_v37 = vpop.f32.mrf.mxu0 }
 0x144   :  { %v9865_v38 = vadd.f32 %v8318_v37, %v786_v10  ;;  %v9867_v39 = vpop.f32.mrf.mxu1 }
 0x145   :  { %v9869_v45 = vpop.f32.mrf.mxu0 }
 0x146   :  { %v9871_v3 = vpop.f32.mrf.mxu1 }
 0x147   :  { %v9873_v46 = vpop.f32.mrf.mxu0 }
 0x148   :  { %v9875_v47 = vpop.f32.mrf.mxu1 }
 0x149   :  { %v9877_v53 = vpop.f32.mrf.mxu0 }
 0x14a   :  { %v9879_v59 = vpop.f32.mrf.mxu1 }
 0x14b   :  { %v8322_v60 = vpop.f32.mrf.mxu0 }
 0x14c   :  { %v9881_v4 = vadd.f32 %v8322_v60, %v790_v20  ;;  %v9883_v6 = vpop.f32.mrf.mxu1 }
 0x14d   :  { %v9885_v10 = vpop.f32.mrf.mxu0 }
 0x14e   :  { %v9887_v40 = vpop.f32.mrf.mxu1 }
 0x14f   :  { %v9889_v13 = vpop.f32.mrf.mxu0 }
 0x150   :  { %v9891_v15 = vpop.f32.mrf.mxu1 }
 0x151   :  { %v9893_v17 = vpop.f32.mrf.mxu0 }
 0x152   :  { %v9895_v18 = vpop.f32.mrf.mxu1 }
 0x153   :  { %12473 = vst [vmem:[#allocation13_spill] sm:$0xff] %v9895_v18  ;;  %v8326_v22 = vpop.f32.mrf.mxu0 }
 0x154   :  { %v9897_v30 = vadd.f32 %v8326_v22, %v794_v28  ;;  %v9899_v34 = vpop.f32.mrf.mxu1  ;;  %v8828_v28 = vld [vmem:[%s12372_s4 + $0x8] sm:$0xff]  }
 0x155   :  { %12475 = vst [vmem:[#allocation15_spill] sm:$0xff] %v9899_v34  ;;  %v9901_v20 = vpop.f32.mrf.mxu0  ;;  %8404 = vmatprep.subr.bf16.mxu1 %v8828_v28 }
 0x156   :  { %12474 = vst [vmem:[#allocation12_spill] sm:$0xff] %v9897_v30  ;;  %v9903_v35 = vpop.f32.mrf.mxu1  ;;  %8405 = vmatpush3.bf16.msra.mxu1 %v8828_v28  ;;  %v12496_v30 = vmov 0.0  }
 0x157   :  { %12476 = vst [vmem:[#allocation16_spill] sm:$0xff] %v9903_v35  ;;  %v9905_v0 = vpop.f32.mrf.mxu0 }
 0x158   :  { %v9907_v33 = vpop.f32.mrf.mxu1 }
 0x159   :  { %12477 = vst [vmem:[#allocation14_spill] sm:$0xff] %v9907_v33  ;;  %v9909_v42 = vpop.f32.mrf.mxu0 }
 0x15a   :  { %12478 = vst [vmem:[#allocation21_spill] sm:$0xff] %v9909_v42  ;;  %v9911_v2 = vpop.f32.mrf.mxu1  ;;  %v9973_v42 = vld [vmem:[#allocation2 + $0xa0] sm:$0xff] }
 0x15b   :  { %12479 = vst [vmem:[#allocation17_spill] sm:$0xff] %v9911_v2  ;;  %v8330_v51 = vpop.f32.mrf.mxu0  ;;  %12499 = vst [vmem:[#allocation37_spill] sm:$0xff] %v9973_v42 }
 0x15c   :  { %v9919_v61 = vadd.f32 %v8330_v51, %v798_v56  ;;  %v9921_v37 = vpop.f32.mrf.mxu1 }
 0x15d   :  { %12481 = vst [vmem:[#allocation20_spill] sm:$0xff] %v9921_v37  ;;  %v9923_v60 = vpop.f32.mrf.mxu0 }
 0x15e   :  { %12480 = vst [vmem:[#allocation23_spill] sm:$0xff] %v9919_v61  ;;  %12482 = vst [vmem:[#allocation19_spill] sm:$0xff] %v9923_v60  ;;  %v9925_v22 = vpop.f32.mrf.mxu1 }
 0x15f   :  { %12483 = vst [vmem:[#allocation18_spill] sm:$0xff] %v9925_v22  ;;  %v9927_v2 = vpop.f32.mrf.mxu0  ;;  %v9944_v22 = vld [vmem:[%s12372_s4 + $0x10] sm:$0xff]  }
 0x160   :  { %12484 = vst [vmem:[#allocation22_spill] sm:$0xff] %v9927_v2  ;;  %v9929_v33 = vpop.f32.mrf.mxu1  ;;  %12489 = vst [vmem:[#allocation28_spill] sm:$0xff] %v9944_v22  ;;  %8440 = vmatprep.subr.bf16.mxu1 %v9944_v22  ;;  %v9959_v2 = vld [vmem:[#allocation2] sm:$0xff] }
 0x161   :  { %12485 = vst [vmem:[#allocation24_spill] sm:$0xff] %v9929_v33  ;;  %v9931_v35 = vpop.f32.mrf.mxu0  ;;  %12493 = vst [vmem:[#allocation32_spill] sm:$0xff] %v9959_v2  ;;  %v9977_v2 = vld [vmem:[#allocation2 + $0xa2] sm:$0xff] }
 0x162   :  { %12486 = vst [vmem:[#allocation25_spill] sm:$0xff] %v9931_v35  ;;  %v9933_v34 = vpop.f32.mrf.mxu1  ;;  %v9957_v35 = vld [vmem:[#allocation2 + $0x1] sm:$0xff]  ;;  %12500 = vst [vmem:[#allocation38_spill] sm:$0xff] %v9977_v2 }
 0x163   :  { %12487 = vst [vmem:[#allocation26_spill] sm:$0xff] %v9933_v34  ;;  %v9935_v56 = vpop.f32.mrf.mxu0  ;;  %12492 = vst [vmem:[#allocation31_spill] sm:$0xff] %v9957_v35  ;;  %v9997_v35 = vld [vmem:[#allocation2 + $0x91] sm:$0xff] }
 0x164   :  { %v9937_v51 = vpop.f32.mrf.mxu1  ;;  %12505 = vst [vmem:[#allocation43_spill] sm:$0xff] %v9997_v35  ;;  %v784_v35 = vadd.f32 %v9819_v44, %v9817_v7  ;;  %v787_v7 = vadd.f32 %v9823_v52, %v9821_v49  ;;  %v788_v49 = vadd.f32 %v9831_v21, %v9829_v63  ;;  %v791_v52 = vadd.f32 %v9835_v25, %v9833_v24 }
 0x165   :  { %12488 = vst [vmem:[#allocation27_spill] sm:$0xff] %v9937_v51  ;;  %v9939_v37 = vpop.f32.mrf.mxu0  ;;  %v9961_v51 = vld [vmem:[#allocation2 + $0x2] sm:$0xff]  ;;  %v795_v63 = vadd.f32 %v9847_v62, %v9845_v41  ;;  %v1118_v21 = vadd.f32 %v9867_v39, %v9865_v38  ;;  %v1122_v39 = vadd.f32 %v9883_v6, %v9881_v4  ;;  %v12513_v4 = vld [vmem:[#allocation21_spill] sm:$0xff] }
 0x166   :  { %v9946_v28 = vpop.f32.mrf.mxu1  ;;  %12494 = vst [vmem:[#allocation33_spill] sm:$0xff] %v9961_v51  ;;  %4149 = vst.msk [vmem:[#allocation2] sm:$0xff] %vm105_vm1, %v12496_v30 }
 0x167   :  { %v9948_v55 = vpop.f32.mrf.mxu0  ;;  %4150 = vst.msk [vmem:[#allocation2 + $0x8] sm:$0x3] %vm107_vm2, %v12496_v30  ;;  %v1285_v62 = vadd.f32 %v9935_v56, %v1118_v21 }
 0x168   :  { %v9951_v33 = vpop.f32.mrf.mxu1  ;;  %5458 = vst.msk [vmem:[#allocation2 + $0x8] sm:$0x3] %vm107_vm2, %v12496_v30 }
 0x169   :  { %12490 = vst [vmem:[#allocation29_spill] sm:$0xff] %v9951_v33  ;;  %v9953_v34 = vpop.f32.mrf.mxu0  ;;  %v9971_v33 = vld [vmem:[#allocation2 + $0xa1] sm:$0xff]  ;;  %6404 = vst.msk [vmem:[#allocation2 + $0x8] sm:$0x3] %vm107_vm2, %v12496_v30 }
 0x16a   :  { %v9963_v60 = vpop.f32.mrf.mxu1  ;;  %12498 = vst [vmem:[#allocation36_spill] sm:$0xff] %v9971_v33  ;;  %4169 = vst.msk [vmem:[#allocation2 + $0xa0] sm:$0xff] %vm105_vm1, %v12496_v30  ;;  %v9995_v33 = vld [vmem:[#allocation2 + $0x90] sm:$0xff] }
 0x16b   :  { %v9955_v61 = vpop.f32.mrf.mxu0  ;;  %12495 = vst [vmem:[#allocation34_spill] sm:$0xff] %v9963_v60  ;;  %4170 = vst.msk [vmem:[#allocation2 + $0xa8] sm:$0x3] %vm107_vm2, %v12496_v30  ;;  %v10001_v60 = vld [vmem:[#allocation2 + $0x131] sm:$0xff] }
 0x16c   :  { %12491 = vst [vmem:[#allocation30_spill] sm:$0xff] %v9955_v61  ;;  %5478 = vst.msk [vmem:[#allocation2 + $0xa8] sm:$0x3] %vm107_vm2, %v12496_v30  ;;  %v9989_v42 = vpop.f32.mrf.mxu1  ;;  %v9999_v61 = vld [vmem:[#allocation2 + $0x130] sm:$0xff]  ;;  %v12517_v56 = vld [vmem:[#allocation27_spill] sm:$0xff] }
 0x16d   :  { %v9969_v22 = vpop.f32.mrf.mxu0  ;;  %12502 = vst [vmem:[#allocation40_spill] sm:$0xff] %v9989_v42  ;;  %6424 = vst.msk [vmem:[#allocation2 + $0xa8] sm:$0x3] %vm107_vm2, %v12496_v30 }
 0x16e   :  { %12497 = vst [vmem:[#allocation35_spill] sm:$0xff] %v9969_v22  ;;  %12504 = vst [vmem:[#allocation42_spill] sm:$0xff] %v9995_v33  ;;  %v10003_v22 = vld [vmem:[#allocation2 + $0x92] sm:$0xff] }
 0x16f   :  { %v9985_v51 = vpop.f32.mrf.mxu0  ;;  %12506 = vst [vmem:[#allocation44_spill] sm:$0xff] %v9999_v61  ;;  %12507 = vst [vmem:[#allocation45_spill] sm:$0xff] %v10001_v60  ;;  %v10017_v61 = vpop.f32.mrf.mxu1 }
 0x170   :  { %12501 = vst [vmem:[#allocation39_spill] sm:$0xff] %v9985_v51  ;;  %12508 = vst [vmem:[#allocation46_spill] sm:$0xff] %v10003_v22  ;;  %v10005_v51 = vld [vmem:[#allocation2 + $0x132] sm:$0xff]  ;;  %v409_v22 = vadd.f32 %v9803_v27, %v9801_v19 }
 0x171   :  { %v9993_v2 = vpop.f32.mrf.mxu0  ;;  %12509 = vst [vmem:[#allocation47_spill] sm:$0xff] %v10005_v51  ;;  %4167 = vst.msk [vmem:[#allocation2 + $0x90] sm:$0xff] %vm105_vm1, %v12496_v30 }
 0x172   :  { %12503 = vst [vmem:[#allocation41_spill] sm:$0xff] %v9993_v2  ;;  %4168 = vst.msk [vmem:[#allocation2 + $0x98] sm:$0x3] %vm107_vm2, %v12496_v30  ;;  %v619_v33 = vadd.f32 %v9825_v11, %v409_v22  ;;  %v950_v2 = vadd.f32 %v9869_v45, %v784_v35 }
 0x173   :  { %v10007_v18 = vpop.f32.mrf.mxu0  ;;  %4187 = vst.msk [vmem:[#allocation2 + $0x130] sm:$0xff] %vm105_vm1, %v12496_v30  ;;  %5475 = vst.msk [vmem:[#allocation2 + $0x90] sm:$0xff] %vm105_vm1, %v12496_v30 }
 0x174   :  { %12510 = vst [vmem:[#allocation48_spill] sm:$0xff] %v10007_v18  ;;  %4188 = vst.msk [vmem:[#allocation2 + $0x138] sm:$0x3] %vm107_vm2, %v12496_v30  ;;  %v10044_v18 = vpop.f32.mrf.mxu1  ;;  %v785_v44 = vadd.f32 %v9827_v12, %v619_v33  ;;  %v12514_v33 = vld [vmem:[#allocation12_spill] sm:$0xff] }
 0x175   :  { %5476 = vst.msk [vmem:[#allocation2 + $0x98] sm:$0x3] %vm107_vm2, %v12496_v30  ;;  %5496 = vst.msk [vmem:[#allocation2 + $0x138] sm:$0x3] %vm107_vm2, %v12496_v30  ;;  %v10027_v51 = vpop.f32.mrf.mxu0 }
 0x176   :  { %5495 = vst.msk [vmem:[#allocation2 + $0x130] sm:$0xff] %vm105_vm1, %v12496_v30  ;;  %12511 = vst [vmem:[#allocation49_spill] sm:$0xff] %v10027_v51  ;;  %v425_v51 = vadd.f32 %v9807_v50, %v9805_v48  ;;  %v10059_v11 = vpop.f32.mrf.mxu1  ;;  %v457_v48 = vadd.f32 %v9815_v57, %v9813_v54 }
 0x177   :  { %6421 = vst.msk [vmem:[#allocation2 + $0x90] sm:$0xff] %vm105_vm1, %v12496_v30  ;;  %6441 = vst.msk [vmem:[#allocation2 + $0x130] sm:$0xff] %vm105_vm1, %v12496_v30  ;;  %v10039_v60 = vpop.f32.mrf.mxu0 }
 0x178   :  { %6422 = vst.msk [vmem:[#allocation2 + $0x98] sm:$0x3] %vm107_vm2, %v12496_v30  ;;  %6442 = vst.msk [vmem:[#allocation2 + $0x138] sm:$0x3] %vm107_vm2, %v12496_v30  ;;  %v441_v30 = vadd.f32 %v9811_v31, %v9809_v16  ;;  %v623_v19 = vadd.f32 %v9837_v26, %v425_v51  ;;  %v953_v16 = vadd.f32 %v9873_v46, %v787_v7  ;;  %v10089_v25 = vpop.f32.mrf.mxu1  ;;  %v12520_v7 = vld [vmem:[#allocation25_spill] sm:$0xff] }
 0x179   :  { %v10048_v42 = vpop.f32.mrf.mxu0  ;;  %v1116_v31 = vadd.f32 %v9871_v3, %v950_v2  ;;  %v951_v26 = vadd.f32 %v9877_v53, %v785_v44  ;;  %v631_v54 = vadd.f32 %v9861_v9, %v457_v48  ;;  %v792_v3 = vadd.f32 %v9843_v14, %v9841_v1  ;;  %v12515_v2 = vld [vmem:[#allocation15_spill] sm:$0xff] }
 0x17a   :  { %v627_v50 = vadd.f32 %v9849_v36, %v441_v30  ;;  %v789_v12 = vadd.f32 %v9839_v29, %v623_v19  ;;  %v10080_v36 = vld [vmem:[%s12372_s4 + $0x18] sm:$0xff]   ;;  %v954_v9 = vadd.f32 %v9885_v10, %v788_v49  ;;  %v957_v46 = vadd.f32 %v9889_v13, %v791_v52  ;;  %v12521_v44 = vld [vmem:[#allocation35_spill] sm:$0xff] }
 0x17b   :  { %v10054_v27 = vpop.f32.mrf.mxu0  ;;  %v1283_v24 = vadd.f32 %v9939_v37, %v1116_v31  ;;  %8458 = vmatprep.subr.bf16.mxu0 %v10080_v36  ;;  %v796_v1 = vadd.f32 %v9855_v58, %v9853_v23  ;;  %v1119_v14 = vadd.f32 %v9875_v47, %v953_v16  ;;  %v1117_v41 = vadd.f32 %v9879_v59, %v951_v26  ;;  %v12516_v37 = vld [vmem:[#allocation19_spill] sm:$0xff]  ;;  %v12519_v19 = vld [vmem:[#allocation22_spill] sm:$0xff]  ;;  %v12523_v26 = vld [vmem:[#allocation29_spill] sm:$0xff] }
 0x17c   :  { %v793_v29 = vadd.f32 %v9851_v43, %v627_v50  ;;  %v955_v53 = vadd.f32 %v9893_v17, %v789_v12  ;;  %v799_v43 = vadd.f32 %v9859_v8, %v9857_v5  ;;  %v797_v38 = vadd.f32 %v9863_v32, %v631_v54  ;;  %v10113_v17 = vpop.f32.mrf.mxu1  ;;  %v12512_v32 = vld [vmem:[#allocation13_spill] sm:$0xff]  ;;  %v12522_v16 = vld [vmem:[#allocation14_spill] sm:$0xff] }
 0x17d   :  { %v10064_v45 = vpop.f32.mrf.mxu0  ;;  %v958_v10 = vadd.f32 %v9901_v20, %v792_v3  ;;  %v961_v23 = vadd.f32 %v9905_v0, %v795_v63  ;;  %v1286_v58 = vadd.f32 %v9948_v55, %v1119_v14  ;;  %v1449_v47 = vadd.f32 %v9946_v28, %v1283_v24  ;;  %v12524_v52 = vld [vmem:[#allocation34_spill] sm:$0xff]  ;;  %v12525_v63 = vld [vmem:[#allocation17_spill] sm:$0xff]  ;;  %v12526_v24 = vld [vmem:[#allocation23_spill] sm:$0xff] }
 0x17e   :  { %v1284_v59 = vadd.f32 %v9953_v34, %v1117_v41  ;;  %v1120_v5 = vadd.f32 %v9887_v40, %v954_v9  ;;  %v1123_v8 = vadd.f32 %v9891_v15, %v957_v46  ;;  %v1121_v35 = vadd.f32 %v12512_v32, %v955_v53  ;;  %v12518_v34 = vld [vmem:[#allocation16_spill] sm:$0xff]  ;;  %v8381_v54 = vpop.f32.mrf.mxu1  ;;  %v12528_v46 = vld [vmem:[#allocation30_spill] sm:$0xff] }
 0x17f   :  { %v10075_v57 = vpop.f32.mrf.mxu0  ;;  %v959_v6 = vadd.f32 %v12513_v4, %v793_v29  ;;  %v1126_v0 = vadd.f32 %v12515_v2, %v12514_v33  ;;  %v962_v22 = vadd.f32 %v12516_v37, %v796_v1  ;;  %v1451_v51 = vadd.f32 %v12517_v56, %v1285_v62  ;;  %v12527_v29 = vld [vmem:[#allocation20_spill] sm:$0xff]  ;;  %v12529_v1 = vld [vmem:[#allocation39_spill] sm:$0xff]  ;;  %v12530_v62 = vld [vmem:[#allocation18_spill] sm:$0xff] }
 0x180   :  { %v1124_v55 = vadd.f32 %v12518_v34, %v958_v10  ;;  %v965_v40 = vadd.f32 %v12519_v19, %v799_v43  ;;  %v963_v15 = vadd.f32 %v12520_v7, %v797_v38  ;;  %v1287_v48 = vadd.f32 %v12521_v44, %v1120_v5  ;;  %v12533_v5 = vld [vmem:[#allocation41_spill] sm:$0xff]  ;;  %v1421_v4 = vpop.f32.mrf.mxu1  ;;  %v12534_v37 = vld [vmem:[#allocation40_spill] sm:$0xff] }
 0x181   :  { %v10095_v30 = vpop.f32.mrf.mxu0  ;;  %v1127_v31 = vadd.f32 %v12522_v16, %v961_v23  ;;  %v1452_v49 = vadd.f32 %v12523_v26, %v1286_v58  ;;  %v1450_v12 = vadd.f32 %v12524_v52, %v1284_v59  ;;  %v1125_v21 = vadd.f32 %v12525_v63, %v959_v6  ;;  %v12531_v23 = vld [vmem:[#allocation24_spill] sm:$0xff]  ;;  %v12535_v44 = vld [vmem:[#allocation49_spill] sm:$0xff] }
 0x182   :  { %v10137_v9 = vadd.f32 %v12527_v29, %v12526_v24  ;;  %v1289_v53 = vadd.f32 %v12528_v46, %v1122_v39  ;;  %v1290_v14 = vadd.f32 %v12529_v1, %v1123_v8  ;;  %v1128_v43 = vadd.f32 %v12530_v62, %v962_v22  ;;  %v8384_v26 = vpop.f32.mrf.mxu1  ;;  %v12536_v24 = vld [vmem:[#allocation48_spill] sm:$0xff] }
 0x183   :  { %v8390_v13 = vpop.f32.mrf.mxu0  ;;  %v10149_v58 = vadd.f32 %v12531_v23, %v965_v40  ;;  %v1453_v39 = vadd.f32 %v10017_v61, %v1287_v48  ;;  %v1288_v8 = vadd.f32 %v12533_v5, %v1121_v35  ;;  %v1291_v48 = vadd.f32 %v12535_v44, %v1124_v55 }
 0x184   :  { %v10132_v3 = vadd.f32 %v8390_v13, %v1451_v51  ;;  %v1455_v22 = vadd.f32 %v12534_v37, %v1289_v53  ;;  %v1456_v61 = vadd.f32 %v10044_v18, %v1290_v14  ;;  %v1293_v29 = vadd.f32 %v12536_v24, %v1126_v0 }
 0x185   :  { %v1552_v20 = vpop.f32.mrf.mxu0  ;;  %v1292_v23 = vadd.f32 %v10048_v42, %v1125_v21  ;;  %v1297_v44 = vadd.f32 %v10054_v27, %v10137_v9 }
 0x186   :  { %v10123_v28 = vadd.f32 %v1552_v20, %v1449_v47  ;;  %v12532_v47 = vld [vmem:[#allocation26_spill] sm:$0xff]  ;;  %v1672_v6 = vmul.f32 %v10132_v3, %v10132_v3  ;;  %v1635_v35 = vsel %vm1631_vm5, %v10132_v3, 0.0 }
 0x187   :  { %v8391_v50 = vpop.f32.mrf.mxu0  ;;  %v10152_v59 = vadd.f32 %v12532_v47, %v963_v15  ;;  %v1454_v15 = vadd.f32 %v10059_v11, %v1288_v8  ;;  %v1294_v11 = vadd.f32 %v10039_v60, %v1127_v31  ;;  %v1434_v60 = vpop.f32.mrf.mxu1 }
 0x188   :  { %v1670_v38 = vmul.f32 %v10123_v28, %v10123_v28  ;;  %v10144_v10 = vadd.f32 %v8391_v50, %v1452_v49  ;;  %v1632_v20 = vsel %vm1631_vm5, %v10123_v28, 0.0  ;;  %v1689_v49 = vsel %vm1631_vm5, %v1672_v6, 0.0 }
 0x189   :  { %v1555_v41 = vpop.f32.mrf.mxu0  ;;  %v1459_v6 = vadd.f32 %v10089_v25, %v1293_v29 }
 0x18a   :  { %v10146_v13 = vadd.f32 %v1555_v41, %v1450_v12  ;;  %v1686_v34 = vsel %vm1631_vm5, %v1670_v38, 0.0  ;;  %v1673_v19 = vmul.f32 %v10144_v10, %v10144_v10  ;;  %v1637_v52 = vsel %vm1631_vm5, %v10144_v10, 0.0 }
 0x18b   :  { %v8394_v32 = vpop.f32.mrf.mxu0  ;;  %v1457_v38 = vadd.f32 %v10113_v17, %v1291_v48  ;;  %v1460_v17 = vadd.f32 %v8381_v54, %v1294_v11  ;;  %v8385_v54 = vpop.f32.mrf.mxu1 }
 0x18c   :  { %v1633_v33 = vsel %vm1631_vm5, %v10146_v13, 0.0  ;;  %v1671_v2 = vmul.f32 %v10146_v13, %v10146_v13  ;;  %v10179_v12 = vadd.f32 %v8394_v32, %v1455_v22  ;;  %v1691_v1 = vsel %vm1631_vm5, %v1673_v19, 0.0 }
 0x18d   :  { %v1634_v56 = vadd.f32 %v1633_v33, %v1632_v20  ;;  %v1568_v51 = vpop.f32.mrf.mxu0 }
 0x18e   :  { %v1687_v40 = vsel %vm1631_vm5, %v1671_v2, 0.0  ;;  %v10172_v7 = vadd.f32 %v1568_v51, %v1453_v39  ;;  %v1676_v31 = vmul.f32 %v10179_v12, %v10179_v12  ;;  %v1643_v33 = vsel %vm1631_vm5, %v10179_v12, 0.0 }
 0x18f   :  { %v1636_v50 = vadd.f32 %v1635_v35, %v1634_v56  ;;  %v1688_v18 = vadd.f32 %v1687_v40, %v1686_v34  ;;  %v8395_v16 = vpop.f32.mrf.mxu0  ;;  %v1295_v35 = vadd.f32 %v10064_v45, %v1128_v43  ;;  %v1298_v45 = vadd.f32 %v10075_v57, %v10149_v58  ;;  %v1437_v57 = vpop.f32.mrf.mxu1 }
 0x190   :  { %v1674_v63 = vmul.f32 %v10172_v7, %v10172_v7  ;;  %v1639_v14 = vsel %vm1631_vm5, %v10172_v7, 0.0  ;;  %v10188_v41 = vadd.f32 %v8395_v16, %v1456_v61  ;;  %v1458_v61 = vadd.f32 %v1421_v4, %v1292_v23 }
 0x191   :  { %v1690_v46 = vadd.f32 %v1689_v49, %v1688_v18  ;;  %v1638_v55 = vadd.f32 %v1637_v52, %v1636_v50  ;;  %v1571_v53 = vpop.f32.mrf.mxu0  ;;  %v1697_v34 = vsel %vm1631_vm5, %v1676_v31, 0.0  ;;  %v1461_v52 = vadd.f32 %v1434_v60, %v1295_v35 }
 0x192   :  { %v10190_v62 = vadd.f32 %v1571_v53, %v1454_v15  ;;  %v1693_v5 = vsel %vm1631_vm5, %v1674_v63, 0.0  ;;  %v1677_v2 = vmul.f32 %v10188_v41, %v10188_v41  ;;  %v1645_v19 = vsel %vm1631_vm5, %v10188_v41, 0.0 }
 0x193   :  { %v1640_v47 = vadd.f32 %v1639_v14, %v1638_v55  ;;  %v1692_v0 = vadd.f32 %v1691_v1, %v1690_v46  ;;  %v8398_v39 = vpop.f32.mrf.mxu0  ;;  %v1296_v63 = vadd.f32 %v10095_v30, %v10152_v59  ;;  %v1463_v55 = vadd.f32 %v8384_v26, %v1297_v44 }
 0x194   :  { %v1641_v8 = vsel %vm1631_vm5, %v10190_v62, 0.0  ;;  %v1675_v32 = vmul.f32 %v10190_v62, %v10190_v62  ;;  %v10213_v40 = vadd.f32 %v8398_v39, %v1459_v6  ;;  %v1699_v50 = vsel %vm1631_vm5, %v1677_v2, 0.0 }
 0x195   :  { %v1694_v20 = vadd.f32 %v1693_v5, %v1692_v0  ;;  %v1642_v42 = vadd.f32 %v1641_v8, %v1640_v47  ;;  %v1584_v21 = vpop.f32.mrf.mxu0  ;;  %v1464_v47 = vadd.f32 %v8385_v54, %v1298_v45  ;;  %v1462_v0 = vadd.f32 %v1437_v57, %v1296_v63 }
 0x196   :  { %v1695_v37 = vsel %vm1631_vm5, %v1675_v32, 0.0  ;;  %v10207_v22 = vadd.f32 %v1584_v21, %v1457_v38  ;;  %v1680_v58 = vmul.f32 %v10213_v40, %v10213_v40  ;;  %v1651_v30 = vsel %vm1631_vm5, %v10213_v40, 0.0 }
 0x197   :  { %v1644_v56 = vadd.f32 %v1643_v33, %v1642_v42  ;;  %v1696_v51 = vadd.f32 %v1695_v37, %v1694_v20  ;;  %v8399_v25 = vpop.f32.mrf.mxu0 }
 0x198   :  { %v1678_v15 = vmul.f32 %v10207_v22, %v10207_v22  ;;  %v1647_v18 = vsel %vm1631_vm5, %v10207_v22, 0.0  ;;  %v10224_v16 = vadd.f32 %v8399_v25, %v1460_v17  ;;  %v1705_v26 = vsel %vm1631_vm5, %v1680_v58, 0.0 }
 0x199   :  { %v1698_v43 = vadd.f32 %v1697_v34, %v1696_v51  ;;  %v1646_v4 = vadd.f32 %v1645_v19, %v1644_v56  ;;  %v1587_v48 = vpop.f32.mrf.mxu0 }
 0x19a   :  { %v10226_v49 = vadd.f32 %v1587_v48, %v1458_v61  ;;  %v1701_v29 = vsel %vm1631_vm5, %v1678_v15, 0.0  ;;  %v1681_v59 = vmul.f32 %v10224_v16, %v10224_v16  ;;  %v1653_v5 = vsel %vm1631_vm5, %v10224_v16, 0.0 }
 0x19b   :  { %v1648_v27 = vadd.f32 %v1647_v18, %v1646_v4  ;;  %v1700_v9 = vadd.f32 %v1699_v50, %v1698_v43  ;;  %v8402_v24 = vpop.f32.mrf.mxu0 }
 0x19c   :  { %v1649_v11 = vsel %vm1631_vm5, %v10226_v49, 0.0  ;;  %v1679_v46 = vmul.f32 %v10226_v49, %v10226_v49  ;;  %v10247_v8 = vadd.f32 %v8402_v24, %v1463_v55  ;;  %v1707_v42 = vsel %vm1631_vm5, %v1681_v59, 0.0 }
 0x19d   :  { %v1702_v53 = vadd.f32 %v1701_v29, %v1700_v9  ;;  %v1650_v1 = vadd.f32 %v1649_v11, %v1648_v27  ;;  %v1600_v14 = vpop.f32.mrf.mxu0 }
 0x19e   :  { %v1703_v38 = vsel %vm1631_vm5, %v1679_v46, 0.0  ;;  %v10242_v23 = vadd.f32 %v1600_v14, %v1461_v52  ;;  %v1684_v35 = vmul.f32 %v10247_v8, %v10247_v8  ;;  %v1659_v19 = vsel %vm1631_vm5, %v10247_v8, 0.0 }
 0x19f   :  { %v1652_v39 = vadd.f32 %v1651_v30, %v1650_v1  ;;  %v1704_v60 = vadd.f32 %v1703_v38, %v1702_v53  ;;  %v8403_v31 = vpop.f32.mrf.mxu0 }
 0x1a0   :  { %v1682_v32 = vmul.f32 %v10242_v23, %v10242_v23  ;;  %v1655_v21 = vsel %vm1631_vm5, %v10242_v23, 0.0  ;;  %v10254_v33 = vadd.f32 %v8403_v31, %v1464_v47  ;;  %v1713_v4 = vsel %vm1631_vm5, %v1684_v35, 0.0 }
 0x1a1   :  { %v1706_v6 = vadd.f32 %v1705_v26, %v1704_v60  ;;  %v1654_v17 = vadd.f32 %v1653_v5, %v1652_v39  ;;  %v1603_v20 = vpop.f32.mrf.mxu0  ;;  %v1735_v60 = vlaneseq  ;;  %v1727_v26 = vld [vmem:[%s12538_s22] sm:$0x1] }
 0x1a2   :  { %v1628_v2 = vadd.f32 %v1603_v20, %v1462_v0  ;;  %v1709_v56 = vsel %vm1631_vm5, %v1682_v32, 0.0  ;;  %v1685_v15 = vmul.f32 %v10254_v33, %v10254_v33  ;;  %v1661_v48 = vsel %vm1631_vm5, %v10254_v33, 0.0 }
 0x1a3   :  { %v1656_v37 = vadd.f32 %v1655_v21, %v1654_v17  ;;  %v1708_v61 = vadd.f32 %v1707_v42, %v1706_v6  ;;  %v10269_v31 = vshrl.u32 %v1735_v60, 7  ;;  %v1731_v17 = vld [vmem:[%s12371_s3] sm:$0x1] }
 0x1a4   :  { %v1657_v51 = vsel %vm1631_vm5, %v1628_v2, 0.0  ;;  %v1683_v25 = vmul.f32 %v1628_v2, %v1628_v2  ;;  %v1715_v52 = vsel %vm1631_vm5, %v1685_v15, 0.0 }
 0x1a5   :  { %v1710_v54 = vadd.f32 %v1709_v56, %v1708_v61  ;;  %v1658_v34 = vadd.f32 %v1657_v51, %v1656_v37  ;;  %12537 = vst [vmem:[#allocation13_spill] sm:$0xff] %v10269_v31  ;;  %v10275_v5 = vsub.s32 0, %v10269_v31  ;;  %v12548_v31 = vld [vmem:[#allocation33_spill] sm:$0xff] }
 0x1a6   :  { %v1711_v44 = vsel %vm1631_vm5, %v1683_v25, 0.0 }
 0x1a7   :  { %v1660_v45 = vadd.f32 %v1659_v19, %v1658_v34  ;;  %v1712_v43 = vadd.f32 %v1711_v44, %v1710_v54  ;;  %12539 = vst [vmem:[#allocation21_spill] sm:$0xff] %v10275_v5 }
 0x1a9   :  { %v1662_v50 = vadd.f32 %v1661_v48, %v1660_v45  ;;  %v1714_v18 = vadd.f32 %v1713_v4, %v1712_v43 }
 0x1ab   :  { %v1663_v63 = vrot.slane %v1662_v50, 4  ;;  %v1716_v27 = vadd.f32 %v1715_v52, %v1714_v18 }
 0x1ad   :  { %v1664_v9 = vadd.f32 %v1663_v63, %v1662_v50  ;;  %v1717_v24 = vrot.slane %v1716_v27, 4 }
 0x1af   :  { %v1665_v57 = vrot.slane %v1664_v9, 2  ;;  %v1718_v58 = vadd.f32 %v1717_v24, %v1716_v27 }
 0x1b1   :  { %v1666_v29 = vadd.f32 %v1665_v57, %v1664_v9  ;;  %v1719_v11 = vrot.slane %v1718_v58, 2 }
 0x1b3   :  { %v1667_v46 = vrot.slane %v1666_v29, 1  ;;  %v1720_v55 = vadd.f32 %v1719_v11, %v1718_v58 }
 0x1b5   :  { %v1668_v53 = vadd.f32 %v1667_v46, %v1666_v29  ;;  %v1721_v1 = vrot.slane %v1720_v55, 1 }
 0x1b7   :  { %v1669_v14 = vmul.f32 0.0078125, %v1668_v53  ;;  %v1722_v30 = vadd.f32 %v1721_v1, %v1720_v55 }
 0x1b9   :  { %v1723_v59 = vmul.f32 0.0078125, %v1722_v30  ;;  %v1724_v38 = vmul.f32 %v1669_v14, %v1669_v14 }
 0x1bb   :  { %v1725_v47 = vsub.f32 %v1723_v59, %v1724_v38 }
 0x1bd   :  { %v1726_v0 = vmax.f32 %v1725_v47, 0.0 }
 0x1bf   :  { %v1728_v39 = vadd.f32 1e-05, %v1726_v0 }
 0x1c1   :  { %8972 = vrsqrt.f32 %v1728_v39  ;;  %v12540_v39 = vld [vmem:[#allocation31_spill] sm:$0xff] }
 0x1ce   :  { %v8973_v32 = vpop.eup %8972 }
 0x1cf   :  { %v1730_v6 = vmul.f32 %v8973_v32, %v1727_v26  ;;  %v12541_v26 = vld [vmem:[#allocation32_spill] sm:$0xff] }
 0x1d1   :  { %v1732_v20 = vmul.f32 %v1730_v6, %v1669_v14  ;;  %v1738_v42 = vrot.slane %v1730_v6, %v10275_v5 }
 0x1d3   :  { %v1733_v21 = vsub.f32 %v1731_v17, %v1732_v20  ;;  %v1753_v37 = vmul.f32 %v1738_v42, %v1628_v2  ;;  %v1740_v61 = vmul.f32 %v1738_v42, %v10123_v28  ;;  %v1741_v35 = vmul.f32 %v1738_v42, %v10146_v13 }
 0x1d4   :  { %v1742_v56 = vmul.f32 %v1738_v42, %v10132_v3  ;;  %v1743_v51 = vmul.f32 %v1738_v42, %v10144_v10  ;;  %v1744_v25 = vmul.f32 %v1738_v42, %v10172_v7  ;;  %v1745_v54 = vmul.f32 %v1738_v42, %v10190_v62 }
 0x1d5   :  { %v1760_v34 = vrot.slane %v1733_v21, %v10275_v5  ;;  %v1746_v19 = vmul.f32 %v1738_v42, %v10179_v12  ;;  %v1748_v15 = vmul.f32 %v1738_v42, %v10207_v22  ;;  %v1749_v2 = vmul.f32 %v1738_v42, %v10226_v49 }
 0x1d6   :  { %v1750_v28 = vmul.f32 %v1738_v42, %v10213_v40  ;;  %v1751_v13 = vmul.f32 %v1738_v42, %v10224_v16  ;;  %v1752_v3 = vmul.f32 %v1738_v42, %v10242_v23  ;;  %v1754_v10 = vmul.f32 %v1738_v42, %v10247_v8 }
 0x1d7   :  { %v1775_v44 = vadd.f32 %v1760_v34, %v1753_v37  ;;  %v1762_v7 = vadd.f32 %v1760_v34, %v1740_v61  ;;  %v1763_v45 = vadd.f32 %v1760_v34, %v1741_v35  ;;  %v1764_v62 = vadd.f32 %v1760_v34, %v1742_v56 }
 0x1d8   :  { %v1765_v43 = vadd.f32 %v1760_v34, %v1743_v51  ;;  %v1766_v4 = vadd.f32 %v1760_v34, %v1744_v25  ;;  %v1767_v48 = vadd.f32 %v1760_v34, %v1745_v54  ;;  %v1768_v12 = vadd.f32 %v1760_v34, %v1746_v19  ;;  %v10354_v25 = vld [vmem:[%s12372_s4 + $0x20] sm:$0xff]   ;;  %v10359_v54 = vld [vmem:[%s12372_s4 + $0x28] sm:$0xff]  }
 0x1d9   :  { %v1791_v50 = vmax.f32 %v1775_v44, 0.0  ;;  %v1778_v22 = vmax.f32 %v1762_v7, 0.0  ;;  %v1779_v18 = vmax.f32 %v1763_v45, 0.0  ;;  %v1780_v49 = vmax.f32 %v1764_v62, 0.0  ;;  %v12542_v19 = vld [vmem:[#allocation28_spill] sm:$0xff] }
 0x1da   :  { %v1781_v52 = vmax.f32 %v1765_v43, 0.0  ;;  %v1782_v40 = vmax.f32 %v1766_v4, 0.0  ;;  %v1783_v63 = vmax.f32 %v1767_v48, 0.0  ;;  %v1784_v16 = vmax.f32 %v1768_v12, 0.0 }
 0x1db   :  { %1847 = vst.msk [vmem:[#allocation2 + $0x101] sm:$0xff] %vm1631_vm5, %v1791_v50  ;;  %1834 = vst.msk [vmem:[#allocation2 + $0x11] sm:$0xff] %vm1631_vm5, %v1778_v22  ;;  %v1770_v23 = vadd.f32 %v1760_v34, %v1748_v15  ;;  %v1771_v8 = vadd.f32 %v1760_v34, %v1749_v2  ;;  %v1772_v27 = vadd.f32 %v1760_v34, %v1750_v28 }
 0x1dc   :  { %1835 = vst.msk [vmem:[#allocation2 + $0x21] sm:$0xff] %vm1631_vm5, %v1779_v18  ;;  %1836 = vst.msk [vmem:[#allocation2 + $0x31] sm:$0xff] %vm1631_vm5, %v1780_v49  ;;  %v1773_v9 = vadd.f32 %v1760_v34, %v1751_v13  ;;  %v1774_v24 = vadd.f32 %v1760_v34, %v1752_v3  ;;  %v1776_v57 = vadd.f32 %v1760_v34, %v1754_v10  ;;  %v12543_v18 = vmov 0.0   ;;  %v12544_v49 = vld [vmem:[#allocation36_spill] sm:$0xff] }
 0x1dd   :  { %1837 = vst.msk [vmem:[#allocation2 + $0x41] sm:$0xff] %vm1631_vm5, %v1781_v52  ;;  %1838 = vst.msk [vmem:[#allocation2 + $0x51] sm:$0xff] %vm1631_vm5, %v1782_v40  ;;  %v1747_v58 = vmul.f32 %v1738_v42, %v10188_v41  ;;  %v1755_v29 = vmul.f32 %v1738_v42, %v10254_v33  ;;  %v1786_v11 = vmax.f32 %v1770_v23, 0.0  ;;  %v1787_v46 = vmax.f32 %v1771_v8, 0.0  ;;  %v12545_v40 = vld [vmem:[#allocation37_spill] sm:$0xff] }
 0x1de   :  { %1839 = vst.msk [vmem:[#allocation2 + $0x61] sm:$0xff] %vm1631_vm5, %v1783_v63  ;;  %1840 = vst.msk [vmem:[#allocation2 + $0x71] sm:$0xff] %vm1631_vm5, %v1784_v16  ;;  %v1788_v55 = vmax.f32 %v1772_v27, 0.0  ;;  %v1789_v53 = vmax.f32 %v1773_v9, 0.0  ;;  %v1790_v1 = vmax.f32 %v1774_v24, 0.0  ;;  %v1792_v14 = vmax.f32 %v1776_v57, 0.0 }
 0x1df   :  { %v1769_v30 = vadd.f32 %v1760_v34, %v1747_v58  ;;  %v1777_v59 = vadd.f32 %v1760_v34, %v1755_v29  ;;  %1842 = vst.msk [vmem:[#allocation2 + $0xb1] sm:$0xff] %vm1631_vm5, %v1786_v11  ;;  %1843 = vst.msk [vmem:[#allocation2 + $0xc1] sm:$0xff] %vm1631_vm5, %v1787_v46 }
 0x1e0   :  { %1844 = vst.msk [vmem:[#allocation2 + $0xd1] sm:$0xff] %vm1631_vm5, %v1788_v55  ;;  %1845 = vst.msk [vmem:[#allocation2 + $0xe1] sm:$0xff] %vm1631_vm5, %v1789_v53 }
 0x1e1   :  { %1846 = vst.msk [vmem:[#allocation2 + $0xf1] sm:$0xff] %vm1631_vm5, %v1790_v1  ;;  %1848 = vst.msk [vmem:[#allocation2 + $0x111] sm:$0xff] %vm1631_vm5, %v1792_v14  ;;  %v1785_v41 = vmax.f32 %v1769_v30, 0.0  ;;  %v1793_v33 = vmax.f32 %v1777_v59, 0.0 }
 0x1e2   :  { %v10311_v38 = vld [vmem:[#allocation2 + $0x11] sm:$0xff]  ;;  %v10435_v9 = vld [vmem:[#allocation2 + $0x101] sm:$0xff] }
 0x1e3   :  { %v10313_v47 = vld [vmem:[#allocation2 + $0x10] sm:$0xff]  ;;  %v10315_v0 = vld [vmem:[#allocation2 + $0x21] sm:$0xff]  ;;  %1841 = vst.msk [vmem:[#allocation2 + $0x81] sm:$0xff] %vm1631_vm5, %v1785_v41  ;;  %1849 = vst.msk [vmem:[#allocation2 + $0x121] sm:$0xff] %vm1631_vm5, %v1793_v33  ;;  %v1892_v60 = vpack.c.bf16 %v10311_v38, %v12540_v39 }
 0x1e4   :  { %v1866_v32 = vpack.c.bf16 %v10313_v47, %v12541_v26  ;;  %v10323_v6 = vld [vmem:[#allocation2 + $0x31] sm:$0xff]  ;;  %v10325_v17 = vld [vmem:[#allocation2 + $0x20] sm:$0xff] }
 0x1e5   :  { %v10327_v20 = vld [vmem:[#allocation2 + $0x30] sm:$0xff]  ;;  %v10331_v42 = vpack.c.bf16 %v10323_v6, %v10315_v0  ;;  %v10337_v37 = vld [vmem:[#allocation2 + $0x41] sm:$0xff]  ;;  %8406 = vmatprep.mubr.msk.bf16.mxu1 %vm1631_vm5, %v1892_v60 }
 0x1e6   :  { %v10335_v21 = vpack.c.bf16 %v10327_v20, %v10325_v17  ;;  %v10339_v61 = vld [vmem:[#allocation2 + $0x51] sm:$0xff]  ;;  %v10341_v35 = vld [vmem:[#allocation2 + $0x40] sm:$0xff]  ;;  %8424 = vmatprep.mubr.msk.bf16.mxu0 %vm1631_vm5, %v1866_v32 }
 0x1e7   :  { %v10347_v56 = vpack.c.bf16 %v10339_v61, %v10337_v37  ;;  %v10349_v51 = vld [vmem:[#allocation2 + $0x50] sm:$0xff]  ;;  %8407 = vmatmul.mubr.msk.bf16.vlgmr.msra.gmra.mxu1 %vm1631_vm5, %v10331_v42  ;;  %v10374_v15 = vld [vmem:[#allocation2 + $0x61] sm:$0xff] }
 0x1e8   :  { %8425 = vmatmul.mubr.msk.bf16.vlgmr.msra.gmra.mxu0 %vm1631_vm5, %v10335_v21  ;;  %v10367_v34 = vpack.c.bf16 %v10349_v51, %v10341_v35  ;;  %8441 = vmatpush3.bf16.msra.mxu1 %v12542_v19  ;;  %v10377_v2 = vld [vmem:[#allocation2 + $0x71] sm:$0xff]  ;;  %v10379_v28 = vld [vmem:[#allocation2 + $0x60] sm:$0xff] }
 0x1e9   :  { %8410 = vmatprep.mubr.msk.bf16.mxu1 %vm1631_vm5, %v10347_v56  ;;  %8459 = vmatpush3.bf16.msra.mxu0 %v10080_v36  ;;  %v10381_v13 = vld [vmem:[#allocation2 + $0x70] sm:$0xff]  ;;  %v10391_v7 = vld [vmem:[#allocation2 + $0x22] sm:$0xff]  ;;  %v10395_v36 = vpack.c.bf16 %v10377_v2, %v10374_v15 }
 0x1ea   :  { %8428 = vmatprep.mubr.msk.bf16.mxu0 %vm1631_vm5, %v10367_v34  ;;  %8476 = vmatprep.subr.bf16.mxu1 %v10354_v25  ;;  %v10385_v3 = vld [vmem:[#allocation2 + $0xb1] sm:$0xff]  ;;  %v10399_v45 = vpack.c.bf16 %v10381_v13, %v10379_v28  ;;  %v10401_v62 = vld [vmem:[#allocation2 + $0xc1] sm:$0xff]  ;;  %4154 = vst.msk [vmem:[#allocation2 + $0x28] sm:$0x3] %vm107_vm2, %v12543_v18 }
 0x1eb   :  { %8494 = vmatprep.subr.bf16.mxu0 %v10359_v54  ;;  %v10387_v10 = vld [vmem:[#allocation2 + $0xb0] sm:$0xff]  ;;  %v10405_v4 = vld [vmem:[#allocation2 + $0xc0] sm:$0xff]  ;;  %4153 = vst.msk [vmem:[#allocation2 + $0x20] sm:$0xff] %vm105_vm1, %v12543_v18  ;;  %v1896_v52 = vpack.c.bf16 %v10385_v3, %v12544_v49 }
 0x1ec   :  { %v10389_v44 = vld [vmem:[#allocation2 + $0x12] sm:$0xff]  ;;  %v10411_v50 = vld [vmem:[#allocation2 + $0x42] sm:$0xff]  ;;  %v1870_v63 = vpack.c.bf16 %v10387_v10, %v12545_v40  ;;  %5462 = vst.msk [vmem:[#allocation2 + $0x28] sm:$0x3] %vm107_vm2, %v12543_v18 }
 0x1ed   :  { %v10403_v43 = vld [vmem:[#allocation2 + $0xd1] sm:$0xff]  ;;  %4152 = vst.msk [vmem:[#allocation2 + $0x18] sm:$0x3] %vm107_vm2, %v12543_v18  ;;  %v10427_v16 = vld [vmem:[#allocation2 + $0xe1] sm:$0xff]  ;;  %4158 = vst.msk [vmem:[#allocation2 + $0x48] sm:$0x3] %vm107_vm2, %v12543_v18  ;;  %v2173_v5 = vpack.c.bf16 %v10389_v44, %v12548_v31  ;;  %v2344_v31 = vpack.c.bf16 %v10341_v35, %v10327_v20  ;;  %v2345_v20 = vpack.c.bf16 %v10379_v28, %v10349_v51 }
 0x1ee   :  { %v10407_v48 = vld [vmem:[#allocation2 + $0xd0] sm:$0xff]  ;;  %4151 = vst.msk [vmem:[#allocation2 + $0x10] sm:$0xff] %vm105_vm1, %v12543_v18  ;;  %v10431_v8 = vld [vmem:[#allocation2 + $0xe0] sm:$0xff]  ;;  %4157 = vst.msk [vmem:[#allocation2 + $0x40] sm:$0xff] %vm105_vm1, %v12543_v18 }
 0x1ef   :  { %v10409_v12 = vld [vmem:[#allocation2 + $0x32] sm:$0xff]  ;;  %v10439_v57 = vld [vmem:[#allocation2 + $0x100] sm:$0xff]  ;;  %5460 = vst.msk [vmem:[#allocation2 + $0x18] sm:$0x3] %vm107_vm2, %v12543_v18  ;;  %8411 = vmatmul.mubr.msk.bf16.gmra.mxu1 %vm1631_vm5, %v10395_v36  ;;  %6408 = vst.msk [vmem:[#allocation2 + $0x28] sm:$0x3] %vm107_vm2, %v12543_v18  ;;  %v10625_v40 = vpack.c.bf16 %v10407_v48, %v10405_v4  ;;  %v2348_v28 = vpack.c.bf16 %v10431_v8, %v10407_v48 }
 0x1f0   :  { %v10413_v22 = vld [vmem:[#allocation2 + $0x52] sm:$0xff]  ;;  %v10441_v58 = vld [vmem:[#allocation2 + $0x62] sm:$0xff]  ;;  %4156 = vst.msk [vmem:[#allocation2 + $0x38] sm:$0x3] %vm107_vm2, %v12543_v18  ;;  %8429 = vmatmul.mubr.msk.bf16.gmra.mxu0 %vm1631_vm5, %v10399_v45  ;;  %6406 = vst.msk [vmem:[#allocation2 + $0x18] sm:$0x3] %vm107_vm2, %v12543_v18  ;;  %8414 = vmatprep.mubr.msk.bf16.mxu1 %vm1631_vm5, %v1896_v52  ;;  %v10621_v52 = vpack.c.bf16 %v10403_v43, %v10401_v62 }
 0x1f1   :  { %v10429_v23 = vld [vmem:[#allocation2 + $0xf1] sm:$0xff]  ;;  %4155 = vst.msk [vmem:[#allocation2 + $0x30] sm:$0xff] %vm105_vm1, %v12543_v18  ;;  %4159 = vst.msk [vmem:[#allocation2 + $0x50] sm:$0xff] %vm105_vm1, %v12543_v18  ;;  %v10469_v55 = vld [vmem:[#allocation2 + $0xc2] sm:$0xff]  ;;  %8432 = vmatprep.mubr.msk.bf16.mxu0 %vm1631_vm5, %v1870_v63 }
 0x1f2   :  { %v10433_v27 = vld [vmem:[#allocation2 + $0xf0] sm:$0xff]  ;;  %4160 = vst.msk [vmem:[#allocation2 + $0x58] sm:$0x3] %vm107_vm2, %v12543_v18  ;;  %5464 = vst.msk [vmem:[#allocation2 + $0x38] sm:$0x3] %vm107_vm2, %v12543_v18  ;;  %v10493_v1 = vld [vmem:[#allocation2 + $0x80] sm:$0xff]  ;;  %v10637_v63 = vpack.c.bf16 %v10429_v23, %v10427_v16 }
 0x1f3   :  { %v10437_v24 = vld [vmem:[#allocation2 + $0x111] sm:$0xff]  ;;  %5466 = vst.msk [vmem:[#allocation2 + $0x48] sm:$0x3] %vm107_vm2, %v12543_v18  ;;  %5468 = vst.msk [vmem:[#allocation2 + $0x58] sm:$0x3] %vm107_vm2, %v12543_v18  ;;  %v10495_v14 = vld [vmem:[#allocation2 + $0xe2] sm:$0xff]  ;;  %v10641_v49 = vpack.c.bf16 %v10433_v27, %v10431_v8  ;;  %v2513_v8 = vpack.c.bf16 %v10315_v0, %v10311_v38  ;;  %v2515_v38 = vpack.c.bf16 %v10374_v15, %v10339_v61 }
 0x1f4   :  { %v10443_v29 = vld [vmem:[#allocation2 + $0x72] sm:$0xff]  ;;  %4161 = vst.msk [vmem:[#allocation2 + $0x60] sm:$0xff] %vm105_vm1, %v12543_v18  ;;  %v10499_v59 = vld [vmem:[#allocation2 + $0x102] sm:$0xff]  ;;  %4173 = vst.msk [vmem:[#allocation2 + $0xc0] sm:$0xff] %vm105_vm1, %v12543_v18  ;;  %v10653_v19 = vpack.c.bf16 %v10437_v24, %v10435_v9  ;;  %v2517_v61 = vpack.c.bf16 %v10401_v62, %v10385_v3  ;;  %v2519_v3 = vpack.c.bf16 %v10435_v9, %v10429_v23 }
 0x1f5   :  { %v10465_v11 = vld [vmem:[#allocation2 + $0x110] sm:$0xff]  ;;  %4162 = vst.msk [vmem:[#allocation2 + $0x68] sm:$0x3] %vm107_vm2, %v12543_v18  ;;  %4164 = vst.msk [vmem:[#allocation2 + $0x78] sm:$0x3] %vm107_vm2, %v12543_v18  ;;  %v10529_v33 = vld [vmem:[#allocation2 + $0x120] sm:$0xff]  ;;  %v10697_v35 = vpack.c.bf16 %v10443_v29, %v10441_v58 }
 0x1f6   :  { %v10467_v46 = vld [vmem:[#allocation2 + $0xb2] sm:$0xff]  ;;  %4163 = vst.msk [vmem:[#allocation2 + $0x70] sm:$0xff] %vm105_vm1, %v12543_v18  ;;  %5469 = vst.msk [vmem:[#allocation2 + $0x60] sm:$0xff] %vm105_vm1, %v12543_v18  ;;  %v10531_v39 = vld [vmem:[#allocation2 + $0x81] sm:$0xff]  ;;  %v2350_v48 = vpack.c.bf16 %v10529_v33, %v10465_v11 }
 0x1f7   :  { %v10471_v53 = vld [vmem:[#allocation2 + $0xd2] sm:$0xff]  ;;  %4171 = vst.msk [vmem:[#allocation2 + $0xb0] sm:$0xff] %vm105_vm1, %v12543_v18  ;;  %5471 = vst.msk [vmem:[#allocation2 + $0x70] sm:$0xff] %vm105_vm1, %v12543_v18  ;;  %v10559_v60 = vld [vmem:[#allocation2 + $0x82] sm:$0xff]  ;;  %8415 = vmatmul.mubr.msk.bf16.gmra.mxu1 %vm1631_vm5, %v10621_v52  ;;  %v2687_v15 = vpack.c.bf16 %v10469_v55, %v10467_v46 }
 0x1f8   :  { %v10497_v30 = vld [vmem:[#allocation2 + $0xf2] sm:$0xff]  ;;  %4172 = vst.msk [vmem:[#allocation2 + $0xb8] sm:$0x3] %vm107_vm2, %v12543_v18  ;;  %6410 = vst.msk [vmem:[#allocation2 + $0x38] sm:$0x3] %vm107_vm2, %v12543_v18  ;;  %v10563_v26 = vld [vmem:[#allocation2 + $0x121] sm:$0xff]  ;;  %8433 = vmatmul.mubr.msk.bf16.gmra.mxu0 %vm1631_vm5, %v10625_v40  ;;  %8418 = vmatprep.mubr.msk.bf16.mxu1 %vm1631_vm5, %v10637_v63 }
 0x1f9   :  { %6412 = vst.msk [vmem:[#allocation2 + $0x48] sm:$0x3] %vm107_vm2, %v12543_v18  ;;  %6414 = vst.msk [vmem:[#allocation2 + $0x58] sm:$0x3] %vm107_vm2, %v12543_v18  ;;  %v10527_v41 = vld [vmem:[#allocation2 + $0x112] sm:$0xff]  ;;  %v10565_v32 = vld [vmem:[#allocation2 + $0x122] sm:$0xff]  ;;  %8436 = vmatprep.mubr.msk.bf16.mxu0 %vm1631_vm5, %v10641_v49  ;;  %v2689_v62 = vpack.c.bf16 %v10499_v59, %v10497_v30 }
 0x1fa   :  { %5470 = vst.msk [vmem:[#allocation2 + $0x68] sm:$0x3] %vm107_vm2, %v12543_v18  ;;  %5472 = vst.msk [vmem:[#allocation2 + $0x78] sm:$0x3] %vm107_vm2, %v12543_v18  ;;  %v8836_v0 = vld [vmem:[%s12372_s4 + $0x40] sm:$0xff]  }
 0x1fb   :  { %4174 = vst.msk [vmem:[#allocation2 + $0xc8] sm:$0x3] %vm107_vm2, %v12543_v18  ;;  %4176 = vst.msk [vmem:[#allocation2 + $0xd8] sm:$0x3] %vm107_vm2, %v12543_v18 }
 0x1fc   :  { %4175 = vst.msk [vmem:[#allocation2 + $0xd0] sm:$0xff] %vm105_vm1, %v12543_v18  ;;  %6415 = vst.msk [vmem:[#allocation2 + $0x60] sm:$0xff] %vm105_vm1, %v12543_v18 }
 0x1fd   :  { %5480 = vst.msk [vmem:[#allocation2 + $0xb8] sm:$0x3] %vm107_vm2, %v12543_v18  ;;  %6416 = vst.msk [vmem:[#allocation2 + $0x68] sm:$0x3] %vm107_vm2, %v12543_v18 }
 0x1fe   :  { %6417 = vst.msk [vmem:[#allocation2 + $0x70] sm:$0xff] %vm105_vm1, %v12543_v18  ;;  %4177 = vst.msk [vmem:[#allocation2 + $0xe0] sm:$0xff] %vm105_vm1, %v12543_v18 }
 0x1ff   :  { %6418 = vst.msk [vmem:[#allocation2 + $0x78] sm:$0x3] %vm107_vm2, %v12543_v18  ;;  %5482 = vst.msk [vmem:[#allocation2 + $0xc8] sm:$0x3] %vm107_vm2, %v12543_v18  ;;  %8419 = vmatmul.mubr.msk.bf16.gmra.mxu1 %vm1631_vm5, %v10653_v19 }
 0x200   :  { %5484 = vst.msk [vmem:[#allocation2 + $0xd8] sm:$0x3] %vm107_vm2, %v12543_v18  ;;  %4178 = vst.msk [vmem:[#allocation2 + $0xe8] sm:$0x3] %vm107_vm2, %v12543_v18  ;;  %8442 = vmatprep.mubr.msk.bf16.mxu1 %vm1631_vm5, %v2173_v5  ;;  %v8835_v5 = vld [vmem:[%s12372_s4 + $0x38] sm:$0xff]  }
 0x201   :  { %4180 = vst.msk [vmem:[#allocation2 + $0xf8] sm:$0x3] %vm107_vm2, %v12543_v18  ;;  %4182 = vst.msk [vmem:[#allocation2 + $0x108] sm:$0x3] %vm107_vm2, %v12543_v18 }
 0x202   :  { %4179 = vst.msk [vmem:[#allocation2 + $0xf0] sm:$0xff] %vm105_vm1, %v12543_v18  ;;  %4181 = vst.msk [vmem:[#allocation2 + $0x100] sm:$0xff] %vm105_vm1, %v12543_v18 }
 0x203   :  { %6426 = vst.msk [vmem:[#allocation2 + $0xb8] sm:$0x3] %vm107_vm2, %v12543_v18  ;;  %6428 = vst.msk [vmem:[#allocation2 + $0xc8] sm:$0x3] %vm107_vm2, %v12543_v18 }
 0x204   :  { %6430 = vst.msk [vmem:[#allocation2 + $0xd8] sm:$0x3] %vm107_vm2, %v12543_v18  ;;  %5486 = vst.msk [vmem:[#allocation2 + $0xe8] sm:$0x3] %vm107_vm2, %v12543_v18 }
 0x205   :  { %5488 = vst.msk [vmem:[#allocation2 + $0xf8] sm:$0x3] %vm107_vm2, %v12543_v18  ;;  %4184 = vst.msk [vmem:[#allocation2 + $0x118] sm:$0x3] %vm107_vm2, %v12543_v18 }
 0x206   :  { %4183 = vst.msk [vmem:[#allocation2 + $0x110] sm:$0xff] %vm105_vm1, %v12543_v18  ;;  %5489 = vst.msk [vmem:[#allocation2 + $0x100] sm:$0xff] %vm105_vm1, %v12543_v18 }
 0x207   :  { %5490 = vst.msk [vmem:[#allocation2 + $0x108] sm:$0x3] %vm107_vm2, %v12543_v18  ;;  %4166 = vst.msk [vmem:[#allocation2 + $0x88] sm:$0x3] %vm107_vm2, %v12543_v18 }
 0x208   :  { %4165 = vst.msk [vmem:[#allocation2 + $0x80] sm:$0xff] %vm105_vm1, %v12543_v18  ;;  %5491 = vst.msk [vmem:[#allocation2 + $0x110] sm:$0xff] %vm105_vm1, %v12543_v18 }
 0x209   :  { %6432 = vst.msk [vmem:[#allocation2 + $0xe8] sm:$0x3] %vm107_vm2, %v12543_v18  ;;  %6434 = vst.msk [vmem:[#allocation2 + $0xf8] sm:$0x3] %vm107_vm2, %v12543_v18 }
 0x20a   :  { %5492 = vst.msk [vmem:[#allocation2 + $0x118] sm:$0x3] %vm107_vm2, %v12543_v18  ;;  %6436 = vst.msk [vmem:[#allocation2 + $0x108] sm:$0x3] %vm107_vm2, %v12543_v18 }
 0x20b   :  { %6435 = vst.msk [vmem:[#allocation2 + $0x100] sm:$0xff] %vm105_vm1, %v12543_v18  ;;  %4185 = vst.msk [vmem:[#allocation2 + $0x120] sm:$0xff] %vm105_vm1, %v12543_v18 }
 0x20c   :  { %4186 = vst.msk [vmem:[#allocation2 + $0x128] sm:$0x3] %vm107_vm2, %v12543_v18  ;;  %5474 = vst.msk [vmem:[#allocation2 + $0x88] sm:$0x3] %vm107_vm2, %v12543_v18 }
 0x20d   :  { %5473 = vst.msk [vmem:[#allocation2 + $0x80] sm:$0xff] %vm105_vm1, %v12543_v18  ;;  %6437 = vst.msk [vmem:[#allocation2 + $0x110] sm:$0xff] %vm105_vm1, %v12543_v18 }
 0x20e   :  { %6438 = vst.msk [vmem:[#allocation2 + $0x118] sm:$0x3] %vm107_vm2, %v12543_v18  ;;  %5494 = vst.msk [vmem:[#allocation2 + $0x128] sm:$0x3] %vm107_vm2, %v12543_v18 }
 0x20f   :  { %5493 = vst.msk [vmem:[#allocation2 + $0x120] sm:$0xff] %vm105_vm1, %v12543_v18  ;;  %12546 = vst [vmem:[#allocation12_spill] sm:$0xff] %v10621_v52  ;;  %v2343_v52 = vpack.c.bf16 %v10325_v17, %v10313_v47  ;;  %v10677_v47 = vpack.c.bf16 %v10413_v22, %v10411_v50  ;;  %v8834_v17 = vld [vmem:[%s12372_s4 + $0x30] sm:$0xff]  }
 0x210   :  { %6419 = vst.msk [vmem:[#allocation2 + $0x80] sm:$0xff] %vm105_vm1, %v12543_v18  ;;  %6439 = vst.msk [vmem:[#allocation2 + $0x120] sm:$0xff] %vm105_vm1, %v12543_v18 }
 0x211   :  { %6420 = vst.msk [vmem:[#allocation2 + $0x88] sm:$0x3] %vm107_vm2, %v12543_v18  ;;  %6440 = vst.msk [vmem:[#allocation2 + $0x128] sm:$0x3] %vm107_vm2, %v12543_v18  ;;  %v10657_v18 = vpack.c.bf16 %v10465_v11, %v10439_v57  ;;  %v2684_v11 = vpack.c.bf16 %v10411_v50, %v10409_v12  ;;  %v12552_v50 = vld [vmem:[#allocation42_spill] sm:$0xff] }
 0x212   :  { %12547 = vst [vmem:[#allocation15_spill] sm:$0xff] %v10637_v63  ;;  %v10671_v63 = vpack.c.bf16 %v10409_v12, %v10391_v7  ;;  %v12551_v12 = vpack.c.bf16 %v10565_v32, %v10527_v41 }
 0x213   :  { %8437 = vmatmul.mubr.msk.bf16.gmra.mxu0 %vm1631_vm5, %v10657_v18 }
 0x214   :  { %8460 = vmatprep.mubr.msk.bf16.mxu0 %vm1631_vm5, %v2343_v52  ;;  %8443 = vmatmul.mubr.msk.bf16.vlgmr.msra.gmra.mxu1 %vm1631_vm5, %v10671_v63  ;;  %v2346_v52 = vpack.c.bf16 %v10493_v1, %v10381_v13  ;;  %v10718_v13 = vpack.c.bf16 %v10497_v30, %v10495_v14 }
 0x215   :  { %8477 = vmatpush3.bf16.msra.mxu1 %v10354_v25  ;;  %8446 = vmatprep.mubr.msk.bf16.mxu1 %vm1631_vm5, %v10677_v47  ;;  %v2347_v25 = vpack.c.bf16 %v10405_v4, %v10387_v10  ;;  %v2349_v10 = vpack.c.bf16 %v10439_v57, %v10433_v27  ;;  %v10730_v4 = vpack.c.bf16 %v10527_v41, %v10499_v59 }
 0x216   :  { %8512 = vmatprep.subr.bf16.mxu1 %v8834_v17  ;;  %v2683_v27 = vpack.c.bf16 %v10391_v7, %v10389_v44  ;;  %v2514_v57 = vpack.c.bf16 %v10337_v37, %v10323_v6  ;;  %v2685_v44 = vpack.c.bf16 %v10441_v58, %v10413_v22  ;;  %v2516_v6 = vpack.c.bf16 %v10531_v39, %v10377_v2 }
 0x217   :  { %v2686_v37 = vpack.c.bf16 %v10559_v60, %v10443_v29  ;;  %v2518_v2 = vpack.c.bf16 %v10427_v16, %v10403_v43  ;;  %v2688_v7 = vpack.c.bf16 %v10495_v14, %v10471_v53  ;;  %v12550_v43 = vpack.c.bf16 %v10563_v26, %v10437_v24  ;;  %v12559_v24 = vld [vmem:[#allocation47_spill] sm:$0xff] }
 0x218   :  { %v2856_v22 = vpack.c.bf16 %v12552_v50, %v10493_v1  ;;  %v3200_v58 = vpack.c.bf16 %v12559_v24, %v10565_v32 }
 0x21b   :  { %8461 = vmatmul.mubr.msk.bf16.vlgmr.msra.gmra.mxu0 %vm1631_vm5, %v2344_v31  ;;  %v12549_v31 = vld [vmem:[#allocation38_spill] sm:$0xff] }
 0x21c   :  { %8464 = vmatprep.mubr.msk.bf16.mxu0 %vm1631_vm5, %v2345_v20  ;;  %8495 = vmatpush3.bf16.msra.mxu0 %v10359_v54  ;;  %v2177_v51 = vpack.c.bf16 %v10467_v46, %v12549_v31  ;;  %v10712_v54 = vpack.c.bf16 %v10471_v53, %v10469_v55 }
 0x21d   :  { %8530 = vmatprep.subr.bf16.mxu0 %v8835_v5  ;;  %8447 = vmatmul.mubr.msk.bf16.gmra.mxu1 %vm1631_vm5, %v10697_v35 }
 0x21e   :  { %8450 = vmatprep.mubr.msk.bf16.mxu1 %vm1631_vm5, %v2177_v51 }
 0x223   :  { %8465 = vmatmul.mubr.msk.bf16.gmra.mxu0 %vm1631_vm5, %v2346_v52 }
 0x224   :  { %8468 = vmatprep.mubr.msk.bf16.mxu0 %vm1631_vm5, %v2347_v25 }
 0x225   :  { %8451 = vmatmul.mubr.msk.bf16.gmra.mxu1 %vm1631_vm5, %v10712_v54 }
 0x226   :  { %8454 = vmatprep.mubr.msk.bf16.mxu1 %vm1631_vm5, %v10718_v13 }
 0x22b   :  { %8469 = vmatmul.mubr.msk.bf16.gmra.mxu0 %vm1631_vm5, %v2348_v28 }
 0x22c   :  { %8472 = vmatprep.mubr.msk.bf16.mxu0 %vm1631_vm5, %v2349_v10 }
 0x22d   :  { %8455 = vmatmul.mubr.msk.bf16.gmra.mxu1 %vm1631_vm5, %v10730_v4 }
 0x22e   :  { %8478 = vmatprep.mubr.msk.bf16.mxu1 %vm1631_vm5, %v2513_v8 }
 0x233   :  { %8473 = vmatmul.mubr.msk.bf16.gmra.mxu0 %vm1631_vm5, %v2350_v48 }
 0x234   :  { %8496 = vmatprep.mubr.msk.bf16.mxu0 %vm1631_vm5, %v2683_v27 }
 0x235   :  { %8479 = vmatmul.mubr.msk.bf16.vlgmr.msra.gmra.mxu1 %vm1631_vm5, %v2514_v57 }
 0x236   :  { %8513 = vmatpush3.bf16.msra.mxu1 %v8834_v17  ;;  %8482 = vmatprep.mubr.msk.bf16.mxu1 %vm1631_vm5, %v2515_v38 }
 0x237   :  { %8548 = vmatprep.subr.bf16.mxu1 %v8836_v0 }
 0x23b   :  { %8497 = vmatmul.mubr.msk.bf16.vlgmr.msra.gmra.mxu0 %vm1631_vm5, %v2684_v11 }
 0x23c   :  { %8500 = vmatprep.mubr.msk.bf16.mxu0 %vm1631_vm5, %v2685_v44  ;;  %8531 = vmatpush3.bf16.msra.mxu0 %v8835_v5 }
 0x23d   :  { %8483 = vmatmul.mubr.msk.bf16.gmra.mxu1 %vm1631_vm5, %v2516_v6 }
 0x23e   :  { %8486 = vmatprep.mubr.msk.bf16.mxu1 %vm1631_vm5, %v2517_v61 }
 0x243   :  { %8501 = vmatmul.mubr.msk.bf16.gmra.mxu0 %vm1631_vm5, %v2686_v37 }
 0x244   :  { %8504 = vmatprep.mubr.msk.bf16.mxu0 %vm1631_vm5, %v2687_v15 }
 0x245   :  { %8487 = vmatmul.mubr.msk.bf16.gmra.mxu1 %vm1631_vm5, %v2518_v2 }
 0x246   :  { %8490 = vmatprep.mubr.msk.bf16.mxu1 %vm1631_vm5, %v2519_v3 }
 0x24b   :  { %8505 = vmatmul.mubr.msk.bf16.gmra.mxu0 %vm1631_vm5, %v2688_v7 }
 0x24c   :  { %8508 = vmatprep.mubr.msk.bf16.mxu0 %vm1631_vm5, %v2689_v62 }
 0x24d   :  { %8491 = vmatmul.mubr.msk.bf16.gmra.mxu1 %vm1631_vm5, %v12550_v43 }
 0x24e   :  { %8514 = vmatprep.mubr.msk.bf16.mxu1 %vm1631_vm5, %v10335_v21  ;;  %v12553_v21 = vld [vmem:[#allocation43_spill] sm:$0xff] }
 0x24f   :  { %v3026_v16 = vpack.c.bf16 %v12553_v21, %v10531_v39 }
 0x253   :  { %8509 = vmatmul.mubr.msk.bf16.gmra.mxu0 %vm1631_vm5, %v12551_v12 }
 0x254   :  { %8532 = vmatprep.mubr.msk.bf16.mxu0 %vm1631_vm5, %v10331_v42  ;;  %v12554_v42 = vld [vmem:[#allocation12_spill] sm:$0xff] }
 0x255   :  { %8515 = vmatmul.mubr.msk.bf16.vlgmr.msra.gmra.mxu1 %vm1631_vm5, %v10367_v34  ;;  %v12556_v34 = vld [vmem:[#allocation44_spill] sm:$0xff] }
 0x256   :  { %8549 = vmatpush3.bf16.msra.mxu1 %v8836_v0  ;;  %8518 = vmatprep.mubr.msk.bf16.mxu1 %vm1631_vm5, %v10399_v45  ;;  %v12557_v45 = vld [vmem:[#allocation45_spill] sm:$0xff] }
 0x257   :  { %v3030_v23 = vpack.c.bf16 %v12557_v45, %v10563_v26 }
 0x25b   :  { %8533 = vmatmul.mubr.msk.bf16.vlgmr.msra.gmra.mxu0 %vm1631_vm5, %v10347_v56  ;;  %v12555_v56 = vld [vmem:[#allocation15_spill] sm:$0xff] }
 0x25c   :  { %8536 = vmatprep.mubr.msk.bf16.mxu0 %vm1631_vm5, %v10395_v36  ;;  %v2860_v36 = vpack.c.bf16 %v12556_v34, %v10529_v33 }
 0x25d   :  { %8519 = vmatmul.mubr.msk.bf16.gmra.mxu1 %vm1631_vm5, %v2856_v22 }
 0x25e   :  { %8522 = vmatprep.mubr.msk.bf16.mxu1 %vm1631_vm5, %v10625_v40 }
 0x263   :  { %8537 = vmatmul.mubr.msk.bf16.gmra.mxu0 %vm1631_vm5, %v3026_v16 }
 0x264   :  { %8540 = vmatprep.mubr.msk.bf16.mxu0 %vm1631_vm5, %v12554_v42 }
 0x265   :  { %8523 = vmatmul.mubr.msk.bf16.gmra.mxu1 %vm1631_vm5, %v10641_v49 }
 0x266   :  { %8526 = vmatprep.mubr.msk.bf16.mxu1 %vm1631_vm5, %v10657_v18  ;;  %v12558_v18 = vld [vmem:[#allocation46_spill] sm:$0xff] }
 0x267   :  { %v3196_v9 = vpack.c.bf16 %v12558_v18, %v10559_v60 }
 0x26b   :  { %8541 = vmatmul.mubr.msk.bf16.gmra.mxu0 %vm1631_vm5, %v12555_v56 }
 0x26c   :  { %8544 = vmatprep.mubr.msk.bf16.mxu0 %vm1631_vm5, %v10653_v19 }
 0x26d   :  { %8527 = vmatmul.mubr.msk.bf16.gmra.mxu1 %vm1631_vm5, %v2860_v36 }
 0x26e   :  { %8550 = vmatprep.mubr.msk.bf16.mxu1 %vm1631_vm5, %v10671_v63 }
 0x273   :  { %8545 = vmatmul.mubr.msk.bf16.gmra.mxu0 %vm1631_vm5, %v3030_v23 }
 0x275   :  { %8551 = vmatmul.mubr.msk.bf16.vlgmr.msra.gmra.mxu1 %vm1631_vm5, %v10677_v47 }
 0x276   :  { %8554 = vmatprep.mubr.msk.bf16.mxu1 %vm1631_vm5, %v10697_v35 }
 0x27d   :  { %8555 = vmatmul.mubr.msk.bf16.gmra.mxu1 %vm1631_vm5, %v3196_v9 }
 0x27e   :  { %8558 = vmatprep.mubr.msk.bf16.mxu1 %vm1631_vm5, %v10712_v54 }
 0x285   :  { %8559 = vmatmul.mubr.msk.bf16.gmra.mxu1 %vm1631_vm5, %v10718_v13 }
 0x286   :  { %8562 = vmatprep.mubr.msk.bf16.mxu1 %vm1631_vm5, %v10730_v4 }
 0x28d   :  { %8563 = vmatmul.mubr.msk.bf16.gmra.mxu1 %vm1631_vm5, %v3200_v58 }
 0x2a7   :  { %v8408_v29 = vpop.f32.mrf.mxu1 }
 0x2a8   :  { %v8426_v46 = vpop.f32.mrf.mxu0 }
 0x2a9   :  { %v2103_v55 = vadd.f32 %v8426_v46, %v8408_v29  ;;  %v1967_v53 = vpop.f32.mrf.mxu1 }
 0x2aa   :  { %v2094_v1 = vpop.f32.mrf.mxu0 }
 0x2ab   :  { %v2095_v14 = vadd.f32 %v2094_v1, %v1967_v53  ;;  %v8409_v30 = vpop.f32.mrf.mxu1 }
 0x2ac   :  { %v8427_v59 = vpop.f32.mrf.mxu0 }
 0x2ad   :  { %v2106_v41 = vadd.f32 %v8427_v59, %v8409_v30  ;;  %v10844_v33 = vpop.f32.mrf.mxu1 }
 0x2ae   :  { %v10846_v39 = vpop.f32.mrf.mxu0 }
 0x2af   :  { %v8412_v60 = vpop.f32.mrf.mxu1 }
 0x2b0   :  { %v8430_v26 = vpop.f32.mrf.mxu0 }
 0x2b1   :  { %v2119_v19 = vadd.f32 %v8430_v26, %v8412_v60  ;;  %v1983_v49 = vpop.f32.mrf.mxu1 }
 0x2b2   :  { %v2110_v32 = vpop.f32.mrf.mxu0 }
 0x2b3   :  { %v10848_v40 = vadd.f32 %v2110_v32, %v1983_v49  ;;  %v8413_v63 = vpop.f32.mrf.mxu1 }
 0x2b4   :  { %v8431_v47 = vpop.f32.mrf.mxu0 }
 0x2b5   :  { %v2122_v17 = vadd.f32 %v8431_v47, %v8413_v63  ;;  %v10850_v5 = vpop.f32.mrf.mxu1 }
 0x2b6   :  { %v10852_v20 = vpop.f32.mrf.mxu0 }
 0x2b7   :  { %v8416_v35 = vpop.f32.mrf.mxu1 }
 0x2b8   :  { %v8434_v52 = vpop.f32.mrf.mxu0 }
 0x2b9   :  { %v2135_v31 = vadd.f32 %v8434_v52, %v8416_v35  ;;  %v1999_v51 = vpop.f32.mrf.mxu1 }
 0x2ba   :  { %v2126_v25 = vpop.f32.mrf.mxu0 }
 0x2bb   :  { %v2127_v54 = vadd.f32 %v2126_v25, %v1999_v51  ;;  %v8417_v28 = vpop.f32.mrf.mxu1 }
 0x2bc   :  { %v8435_v13 = vpop.f32.mrf.mxu0 }
 0x2bd   :  { %v2138_v10 = vadd.f32 %v8435_v13, %v8417_v28  ;;  %v2002_v4 = vpop.f32.mrf.mxu1 }
 0x2be   :  { %v2129_v48 = vpop.f32.mrf.mxu0 }
 0x2bf   :  { %v8420_v8 = vpop.f32.mrf.mxu1  ;;  %v2130_v49 = vadd.f32 %v2129_v48, %v2002_v4 }
 0x2c1   :  { %v2015_v11 = vpop.f32.mrf.mxu1 }
 0x2c3   :  { %v8421_v44 = vpop.f32.mrf.mxu1 }
 0x2c5   :  { %v2018_v61 = vpop.f32.mrf.mxu1 }
 0x2d3   :  { %v8438_v27 = vpop.f32.mrf.mxu0 }
 0x2d4   :  { %v2151_v57 = vadd.f32 %v8438_v27, %v8420_v8  ;;  %v8444_v2 = vpop.f32.mrf.mxu1 }
 0x2d5   :  { %v2142_v38 = vpop.f32.mrf.mxu0  ;;  %v2313_v3 = vadd.f32 %v8444_v2, %v2103_v55 }
 0x2d6   :  { %v2143_v0 = vadd.f32 %v2142_v38, %v2015_v11  ;;  %v2248_v62 = vpop.f32.mrf.mxu1 }
 0x2d7   :  { %v8439_v6 = vpop.f32.mrf.mxu0  ;;  %v10856_v50 = vadd.f32 %v2248_v62, %v2095_v14 }
 0x2d8   :  { %v2154_v37 = vadd.f32 %v8439_v6, %v8421_v44  ;;  %v8445_v22 = vpop.f32.mrf.mxu1 }
 0x2d9   :  { %v2145_v15 = vpop.f32.mrf.mxu0  ;;  %v10860_v16 = vadd.f32 %v8445_v22, %v2106_v41 }
 0x2da   :  { %v10862_v42 = vpop.f32.mrf.mxu1  ;;  %v2146_v4 = vadd.f32 %v2145_v15, %v2018_v61 }
 0x2db   :  { %v8462_v7 = vpop.f32.mrf.mxu0 }
 0x2dc   :  { %v2483_v12 = vadd.f32 %v8462_v7, %v2313_v3 }
 0x2dd   :  { %v10854_v43 = vpop.f32.mrf.mxu0  ;;  %v8448_v34 = vpop.f32.mrf.mxu1 }
 0x2de   :  { %v2317_v45 = vadd.f32 %v8448_v34, %v2119_v19 }
 0x2df   :  { %v10858_v21 = vpop.f32.mrf.mxu0  ;;  %v10866_v23 = vpop.f32.mrf.mxu1 }
 0x2e1   :  { %v10864_v56 = vpop.f32.mrf.mxu0  ;;  %v8449_v24 = vpop.f32.mrf.mxu1 }
 0x2e2   :  { %v10872_v29 = vadd.f32 %v8449_v24, %v2122_v17 }
 0x2e3   :  { %v8466_v36 = vpop.f32.mrf.mxu0  ;;  %v10874_v46 = vpop.f32.mrf.mxu1 }
 0x2e4   :  { %v2487_v9 = vadd.f32 %v8466_v36, %v2317_v45 }
 0x2e5   :  { %v10868_v18 = vpop.f32.mrf.mxu0  ;;  %v8452_v53 = vpop.f32.mrf.mxu1 }
 0x2e6   :  { %v2321_v14 = vadd.f32 %v8452_v53, %v2135_v31 }
 0x2e7   :  { %v10870_v58 = vpop.f32.mrf.mxu0  ;;  %v2280_v30 = vpop.f32.mrf.mxu1 }
 0x2e8   :  { %v10880_v60 = vadd.f32 %v2280_v30, %v2127_v54 }
 0x2e9   :  { %v10876_v55 = vpop.f32.mrf.mxu0  ;;  %v8453_v26 = vpop.f32.mrf.mxu1 }
 0x2ea   :  { %v10884_v32 = vadd.f32 %v8453_v26, %v2138_v10 }
 0x2eb   :  { %v8470_v1 = vpop.f32.mrf.mxu0  ;;  %v2283_v63 = vpop.f32.mrf.mxu1 }
 0x2ec   :  { %v2491_v41 = vadd.f32 %v8470_v1, %v2321_v14  ;;  %v10888_v17 = vadd.f32 %v2283_v63, %v2130_v49 }
 0x2ed   :  { %v10878_v59 = vpop.f32.mrf.mxu0  ;;  %v8456_v35 = vpop.f32.mrf.mxu1 }
 0x2ee   :  { %v2325_v31 = vadd.f32 %v8456_v35, %v2151_v57 }
 0x2ef   :  { %v10882_v19 = vpop.f32.mrf.mxu0  ;;  %v2296_v51 = vpop.f32.mrf.mxu1 }
 0x2f0   :  { %v10892_v54 = vadd.f32 %v2296_v51, %v2143_v0 }
 0x2f1   :  { %v10886_v47 = vpop.f32.mrf.mxu0  ;;  %v8457_v13 = vpop.f32.mrf.mxu1 }
 0x2f2   :  { %v10896_v10 = vadd.f32 %v8457_v13, %v2154_v37 }
 0x2f3   :  { %v8474_v52 = vpop.f32.mrf.mxu0  ;;  %v2299_v48 = vpop.f32.mrf.mxu1 }
 0x2f4   :  { %v2495_v28 = vadd.f32 %v8474_v52, %v2325_v31  ;;  %v10900_v11 = vadd.f32 %v2299_v48, %v2146_v4 }
 0x2f5   :  { %v10890_v25 = vpop.f32.mrf.mxu0  ;;  %v8480_v38 = vpop.f32.mrf.mxu1 }
 0x2f6   :  { %v10904_v57 = vadd.f32 %v8480_v38, %v2483_v12 }
 0x2f7   :  { %v10894_v8 = vpop.f32.mrf.mxu0  ;;  %v2588_v6 = vpop.f32.mrf.mxu1 }
 0x2f9   :  { %v10898_v27 = vpop.f32.mrf.mxu0  ;;  %v8481_v0 = vpop.f32.mrf.mxu1 }
 0x2fb   :  { %v10902_v44 = vpop.f32.mrf.mxu0  ;;  %v2591_v3 = vpop.f32.mrf.mxu1 }
 0x2fd   :  { %v2758_v2 = vpop.f32.mrf.mxu0  ;;  %v8484_v37 = vpop.f32.mrf.mxu1 }
 0x2fe   :  { %v10912_v15 = vadd.f32 %v8484_v37, %v2487_v9 }
 0x2ff   :  { %v10906_v7 = vpop.f32.mrf.mxu0  ;;  %v10914_v22 = vpop.f32.mrf.mxu1 }
 0x301   :  { %v10908_v62 = vpop.f32.mrf.mxu0  ;;  %v10918_v36 = vpop.f32.mrf.mxu1 }
 0x303   :  { %v10910_v61 = vpop.f32.mrf.mxu0  ;;  %v10922_v45 = vpop.f32.mrf.mxu1 }
 0x305   :  { %v10916_v34 = vpop.f32.mrf.mxu0  ;;  %v8488_v53 = vpop.f32.mrf.mxu1 }
 0x306   :  { %v10928_v14 = vadd.f32 %v8488_v53, %v2491_v41 }
 0x307   :  { %v10920_v12 = vpop.f32.mrf.mxu0  ;;  %v10930_v30 = vpop.f32.mrf.mxu1 }
 0x308   :  { %12561 = vst [vmem:[#allocation27_spill] sm:$0xff] %v10928_v14 }
 0x309   :  { %v10924_v24 = vpop.f32.mrf.mxu0  ;;  %v10934_v26 = vpop.f32.mrf.mxu1 }
 0x30b   :  { %v10926_v1 = vpop.f32.mrf.mxu0  ;;  %v10938_v63 = vpop.f32.mrf.mxu1 }
 0x30c   :  { %12560 = vst [vmem:[#allocation19_spill] sm:$0xff] %v10926_v1 }
 0x30d   :  { %v10932_v9 = vpop.f32.mrf.mxu0  ;;  %v8492_v52 = vpop.f32.mrf.mxu1 }
 0x30e   :  { %12562 = vst [vmem:[#allocation16_spill] sm:$0xff] %v10932_v9  ;;  %v10944_v51 = vadd.f32 %v8492_v52, %v2495_v28 }
 0x30f   :  { %v10936_v49 = vpop.f32.mrf.mxu0  ;;  %v10946_v13 = vpop.f32.mrf.mxu1 }
 0x310   :  { %12563 = vst [vmem:[#allocation22_spill] sm:$0xff] %v10936_v49  ;;  %12566 = vst [vmem:[#allocation14_spill] sm:$0xff] %v10944_v51 }
 0x311   :  { %v10940_v35 = vpop.f32.mrf.mxu0  ;;  %v10950_v4 = vpop.f32.mrf.mxu1 }
 0x312   :  { %12564 = vst [vmem:[#allocation25_spill] sm:$0xff] %v10940_v35  ;;  %12568 = vst [vmem:[#allocation34_spill] sm:$0xff] %v10950_v4  ;;  %v2098_v4 = vadd.f32 %v10846_v39, %v10844_v33  ;;  %v2315_v33 = vadd.f32 %v10866_v23, %v10848_v40  ;;  %v2488_v40 = vadd.f32 %v10870_v58, %v10872_v29 }
 0x313   :  { %v10942_v31 = vpop.f32.mrf.mxu0  ;;  %v10954_v38 = vpop.f32.mrf.mxu1  ;;  %v2493_v58 = vadd.f32 %v10890_v25, %v10892_v54  ;;  %v2827_v25 = vadd.f32 %v10910_v61, %v10912_v15 }
 0x314   :  { %12565 = vst [vmem:[#allocation35_spill] sm:$0xff] %v10942_v31  ;;  %12570 = vst [vmem:[#allocation23_spill] sm:$0xff] %v10954_v38 }
 0x315   :  { %v10948_v41 = vpop.f32.mrf.mxu0  ;;  %v8516_v53 = vpop.f32.mrf.mxu1 }
 0x316   :  { %12567 = vst [vmem:[#allocation29_spill] sm:$0xff] %v10948_v41 }
 0x317   :  { %v10952_v48 = vpop.f32.mrf.mxu0  ;;  %v2928_v35 = vpop.f32.mrf.mxu1 }
 0x318   :  { %12569 = vst [vmem:[#allocation17_spill] sm:$0xff] %v10952_v48 }
 0x319   :  { %v10956_v37 = vpop.f32.mrf.mxu0  ;;  %v8517_v31 = vpop.f32.mrf.mxu1  ;;  %v12582_v61 = vld [vmem:[#allocation34_spill] sm:$0xff] }
 0x31a   :  { %12571 = vst [vmem:[#allocation20_spill] sm:$0xff] %v10956_v37 }
 0x31b   :  { %v10958_v49 = vpop.f32.mrf.mxu0  ;;  %v2931_v28 = vpop.f32.mrf.mxu1 }
 0x31c   :  { %12572 = vst [vmem:[#allocation30_spill] sm:$0xff] %v10958_v49 }
 0x31d   :  { %v3098_v9 = vpop.f32.mrf.mxu0  ;;  %v10962_v51 = vpop.f32.mrf.mxu1 }
 0x31e   :  { %12574 = vst [vmem:[#allocation18_spill] sm:$0xff] %v10962_v51 }
 0x31f   :  { %v10960_v52 = vpop.f32.mrf.mxu0  ;;  %v10964_v41 = vpop.f32.mrf.mxu1 }
 0x320   :  { %12573 = vst [vmem:[#allocation39_spill] sm:$0xff] %v10960_v52  ;;  %12575 = vst [vmem:[#allocation24_spill] sm:$0xff] %v10964_v41 }
 0x321   :  { %v10966_v1 = vpop.f32.mrf.mxu0  ;;  %v10968_v48 = vpop.f32.mrf.mxu1 }
 0x322   :  { %12576 = vst [vmem:[#allocation26_spill] sm:$0xff] %v10966_v1  ;;  %12577 = vst [vmem:[#allocation41_spill] sm:$0xff] %v10968_v48  ;;  %v2481_v1 = vadd.f32 %v10854_v43, %v10856_v50  ;;  %v2312_v48 = vadd.f32 %v10862_v42, %v2098_v4  ;;  %v2484_v43 = vadd.f32 %v10858_v21, %v10860_v16 }
 0x323   :  { %v10970_v38 = vpop.f32.mrf.mxu1  ;;  %v10972_v37 = vpop.f32.mrf.mxu0  ;;  %v2489_v21 = vadd.f32 %v10878_v59, %v10880_v60  ;;  %v2492_v16 = vadd.f32 %v10882_v19, %v10884_v32 }
 0x324   :  { %12578 = vst [vmem:[#allocation40_spill] sm:$0xff] %v10970_v38  ;;  %12579 = vst [vmem:[#allocation49_spill] sm:$0xff] %v10972_v37  ;;  %v2114_v38 = vadd.f32 %v10852_v20, %v10850_v5  ;;  %v2482_v50 = vadd.f32 %v10864_v56, %v2312_v48  ;;  %v2654_v20 = vadd.f32 %v8481_v0, %v2484_v43 }
 0x325   :  { %v10974_v14 = vpop.f32.mrf.mxu1  ;;  %v10980_v52 = vpop.f32.mrf.mxu0  ;;  %v2823_v56 = vadd.f32 %v10902_v44, %v10904_v57  ;;  %v2659_v54 = vadd.f32 %v10930_v30, %v2489_v21 }
 0x326   :  { %12580 = vst [vmem:[#allocation48_spill] sm:$0xff] %v10974_v14  ;;  %v2651_v14 = vadd.f32 %v2588_v6, %v2481_v1  ;;  %v2316_v39 = vadd.f32 %v10874_v46, %v2114_v38  ;;  %v2652_v4 = vadd.f32 %v2591_v3, %v2482_v50  ;;  %v2485_v1 = vadd.f32 %v10868_v18, %v2315_v33  ;;  %v12589_v33 = vld [vmem:[#allocation22_spill] sm:$0xff] }
 0x327   :  { %v10976_v49 = vpop.f32.mrf.mxu1  ;;  %v10991_v41 = vpop.f32.mrf.mxu0  ;;  %v2490_v18 = vadd.f32 %v10886_v47, %v10888_v17  ;;  %v2824_v59 = vadd.f32 %v10906_v7, %v2654_v20  ;;  %v2993_v32 = vadd.f32 %v8516_v53, %v2823_v56  ;;  %v2496_v47 = vadd.f32 %v10894_v8, %v10896_v10 }
 0x328   :  { %12581 = vst [vmem:[#allocation31_spill] sm:$0xff] %v10976_v49  ;;  %v2821_v5 = vadd.f32 %v2758_v2, %v2651_v14  ;;  %v2486_v23 = vadd.f32 %v10876_v55, %v2316_v39  ;;  %v2655_v29 = vadd.f32 %v10914_v22, %v2485_v1  ;;  %v2658_v55 = vadd.f32 %v10918_v36, %v2488_v40  ;;  %v12583_v14 = vld [vmem:[#allocation30_spill] sm:$0xff] }
 0x329   :  { %v10982_v51 = vpop.f32.mrf.mxu1  ;;  %v11003_v6 = vpop.f32.mrf.mxu0  ;;  %v2822_v60 = vadd.f32 %v10908_v62, %v2652_v4  ;;  %v2494_v17 = vadd.f32 %v10898_v27, %v10900_v11  ;;  %v2662_v7 = vadd.f32 %v10934_v26, %v2492_v16  ;;  %v2994_v62 = vadd.f32 %v8517_v31, %v2824_v59  ;;  %v12585_v31 = vld [vmem:[#allocation19_spill] sm:$0xff]  ;;  %v12591_v50 = vld [vmem:[#allocation26_spill] sm:$0xff]  ;;  %v12592_v4 = vld [vmem:[#allocation25_spill] sm:$0xff] }
 0x32a   :  { %v2991_v2 = vadd.f32 %v2928_v35, %v2821_v5  ;;  %v2656_v19 = vadd.f32 %v10922_v45, %v2486_v23  ;;  %v2825_v36 = vadd.f32 %v10916_v34, %v2655_v29  ;;  %v2828_v45 = vadd.f32 %v10920_v12, %v2658_v55  ;;  %v12586_v34 = vld [vmem:[#allocation16_spill] sm:$0xff]  ;;  %v12587_v12 = vld [vmem:[#allocation23_spill] sm:$0xff]  ;;  %v12593_v40 = vld [vmem:[#allocation14_spill] sm:$0xff] }
 0x32b   :  { %v10989_v37 = vpop.f32.mrf.mxu1  ;;  %v11028_v44 = vpop.f32.mrf.mxu0  ;;  %v2992_v22 = vadd.f32 %v2931_v28, %v2822_v60  ;;  %v2660_v8 = vadd.f32 %v10938_v63, %v2490_v18  ;;  %v2663_v10 = vadd.f32 %v10946_v13, %v2493_v58  ;;  %v2666_v15 = vadd.f32 %v12582_v61, %v2496_v47  ;;  %v12588_v63 = vld [vmem:[#allocation24_spill] sm:$0xff]  ;;  %v12594_v23 = vld [vmem:[#allocation35_spill] sm:$0xff]  ;;  %v12595_v16 = vld [vmem:[#allocation29_spill] sm:$0xff] }
 0x32c   :  { %v3161_v3 = vadd.f32 %v3098_v9, %v2991_v2  ;;  %v2826_v11 = vadd.f32 %v10924_v24, %v2656_v19  ;;  %v3163_v30 = vadd.f32 %v12583_v14, %v2993_v32  ;;  %v12584_v9 = vld [vmem:[#allocation27_spill] sm:$0xff]  ;;  %v2829_v38 = vadd.f32 %v12586_v34, %v2659_v54  ;;  %v12596_v2 = vld [vmem:[#allocation18_spill] sm:$0xff]  ;;  %v12597_v29 = vld [vmem:[#allocation17_spill] sm:$0xff] }
 0x32d   :  { %v10996_v49 = vpop.f32.mrf.mxu1  ;;  %v3130_v35 = vpop.f32.mrf.mxu0  ;;  %v2831_v48 = vadd.f32 %v12585_v31, %v12584_v9  ;;  %v2664_v53 = vadd.f32 %v12587_v12, %v2494_v17  ;;  %v2995_v28 = vadd.f32 %v12588_v63, %v2825_v36  ;;  %v2832_v39 = vadd.f32 %v12589_v33, %v2662_v7  ;;  %v12590_v24 = vld [vmem:[#allocation39_spill] sm:$0xff]  ;;  %v12598_v47 = vld [vmem:[#allocation20_spill] sm:$0xff] }
 0x32e   :  { %v3164_v43 = vadd.f32 %v12590_v24, %v2994_v62  ;;  %v3162_v5 = vadd.f32 %v12591_v50, %v2992_v22  ;;  %v2830_v1 = vadd.f32 %v12592_v4, %v2660_v8  ;;  %v11060_v21 = vadd.f32 %v12594_v23, %v12593_v40 }
 0x32f   :  { %v11001_v42 = vpop.f32.mrf.mxu1  ;;  %v2833_v56 = vadd.f32 %v12595_v16, %v2663_v10  ;;  %v2997_v18 = vadd.f32 %v12596_v2, %v2827_v25  ;;  %v11065_v55 = vadd.f32 %v12597_v29, %v2666_v15  ;;  %v8543_v59 = vpop.f32.mrf.mxu0  ;;  %v11074_v17 = vadd.f32 %v12598_v47, %v2664_v53  ;;  %v12600_v25 = vld [vmem:[#allocation40_spill] sm:$0xff] }
 0x330   :  { %v3165_v54 = vadd.f32 %v10980_v52, %v2995_v28  ;;  %v12602_v52 = vld [vmem:[#allocation31_spill] sm:$0xff]  ;;  %v3000_v47 = vadd.f32 %v10989_v37, %v2830_v1 }
 0x331   :  { %v11009_v46 = vpop.f32.mrf.mxu1  ;;  %v2999_v15 = vadd.f32 %v12602_v52, %v2829_v38 }
 0x333   :  { %v11023_v0 = vpop.f32.mrf.mxu1  ;;  %v3169_v40 = vadd.f32 %v3130_v35, %v2999_v15 }
 0x335   :  { %v8552_v57 = vpop.f32.mrf.mxu1 }
 0x336   :  { %v11055_v20 = vadd.f32 %v8552_v57, %v3163_v30  ;;  %v12599_v57 = vld [vmem:[#allocation41_spill] sm:$0xff]  ;;  %v3133_v30 = vpop.f32.mrf.mxu0 }
 0x337   :  { %v3268_v27 = vpop.f32.mrf.mxu1  ;;  %v2998_v7 = vadd.f32 %v12599_v57, %v2828_v45  ;;  %v3170_v52 = vadd.f32 %v3133_v30, %v3000_v47 }
 0x338   :  { %v11045_v26 = vadd.f32 %v3268_v27, %v3161_v3  ;;  %v2996_v3 = vadd.f32 %v12600_v25, %v2826_v11  ;;  %v3387_v22 = vmul.f32 %v11055_v20, %v11055_v20  ;;  %v12601_v27 = vld [vmem:[#allocation49_spill] sm:$0xff]  ;;  %v3350_v45 = vsel %vm1631_vm5, %v11055_v20, 0.0 }
 0x339   :  { %v8553_v13 = vpop.f32.mrf.mxu1  ;;  %v3167_v61 = vadd.f32 %v12601_v27, %v2997_v18  ;;  %v3168_v53 = vadd.f32 %v10991_v41, %v2998_v7 }
 0x33a   :  { %v3385_v60 = vmul.f32 %v11045_v26, %v11045_v26  ;;  %v11069_v19 = vadd.f32 %v8553_v13, %v3164_v43  ;;  %v3347_v36 = vsel %vm1631_vm5, %v11045_v26, 0.0  ;;  %v3166_v63 = vadd.f32 %v11003_v6, %v2996_v3  ;;  %v8546_v6 = vpop.f32.mrf.mxu0 }
 0x33b   :  { %v3271_v58 = vpop.f32.mrf.mxu1  ;;  %v3404_v33 = vsel %vm1631_vm5, %v3387_v22, 0.0 }
 0x33c   :  { %v11071_v32 = vadd.f32 %v3271_v58, %v3162_v5  ;;  %v3401_v9 = vsel %vm1631_vm5, %v3385_v60, 0.0  ;;  %v3388_v31 = vmul.f32 %v11069_v19, %v11069_v19  ;;  %v3352_v24 = vsel %vm1631_vm5, %v11069_v19, 0.0  ;;  %v12603_v5 = vld [vmem:[#allocation48_spill] sm:$0xff]  ;;  %v3146_v22 = vpop.f32.mrf.mxu0 }
 0x33d   :  { %v8556_v62 = vpop.f32.mrf.mxu1  ;;  %v3001_v4 = vadd.f32 %v12603_v5, %v2831_v48  ;;  %v3002_v60 = vadd.f32 %v10982_v51, %v2832_v39  ;;  %v3003_v51 = vadd.f32 %v11001_v42, %v2833_v56 }
 0x33e   :  { %v3348_v8 = vsel %vm1631_vm5, %v11071_v32, 0.0  ;;  %v3386_v10 = vmul.f32 %v11071_v32, %v11071_v32  ;;  %v11102_v43 = vadd.f32 %v8556_v62, %v3167_v61  ;;  %v3406_v2 = vsel %vm1631_vm5, %v3388_v31, 0.0 }
 0x33f   :  { %v3349_v11 = vadd.f32 %v3348_v8, %v3347_v36  ;;  %v3284_v14 = vpop.f32.mrf.mxu1  ;;  %v3171_v62 = vadd.f32 %v11028_v44, %v3001_v4  ;;  %v3172_v61 = vadd.f32 %v8543_v59, %v3002_v60  ;;  %v3173_v31 = vadd.f32 %v3146_v22, %v3003_v51 }
 0x340   :  { %v3402_v34 = vsel %vm1631_vm5, %v3386_v10, 0.0  ;;  %v11095_v12 = vadd.f32 %v3284_v14, %v3165_v54  ;;  %v3391_v57 = vmul.f32 %v11102_v43, %v11102_v43  ;;  %v3358_v36 = vsel %vm1631_vm5, %v11102_v43, 0.0 }
 0x341   :  { %v3351_v38 = vadd.f32 %v3350_v45, %v3349_v11  ;;  %v3403_v28 = vadd.f32 %v3402_v34, %v3401_v9  ;;  %v8557_v13 = vpop.f32.mrf.mxu1  ;;  %v3005_v9 = vadd.f32 %v10996_v49, %v11060_v21  ;;  %v3004_v49 = vadd.f32 %v11023_v0, %v11074_v17 }
 0x342   :  { %v3389_v50 = vmul.f32 %v11095_v12, %v11095_v12  ;;  %v3354_v18 = vsel %vm1631_vm5, %v11095_v12, 0.0  ;;  %v11110_v58 = vadd.f32 %v8557_v13, %v3168_v53  ;;  %v3412_v42 = vsel %vm1631_vm5, %v3391_v57, 0.0  ;;  %v8547_v53 = vpop.f32.mrf.mxu0 }
 0x343   :  { %v3405_v23 = vadd.f32 %v3404_v33, %v3403_v28  ;;  %v3353_v41 = vadd.f32 %v3352_v24, %v3351_v38  ;;  %v3287_v16 = vpop.f32.mrf.mxu1  ;;  %v3006_v33 = vadd.f32 %v11009_v46, %v11065_v55 }
 0x344   :  { %v11112_v29 = vadd.f32 %v3287_v16, %v3166_v63  ;;  %v3408_v7 = vsel %vm1631_vm5, %v3389_v50, 0.0  ;;  %v3392_v8 = vmul.f32 %v11110_v58, %v11110_v58  ;;  %v3360_v56 = vsel %vm1631_vm5, %v11110_v58, 0.0 }
 0x345   :  { %v3355_v54 = vadd.f32 %v3354_v18, %v3353_v41  ;;  %v3407_v48 = vadd.f32 %v3406_v2, %v3405_v23  ;;  %v8560_v35 = vpop.f32.mrf.mxu1  ;;  %v3175_v41 = vadd.f32 %v8546_v6, %v3005_v9  ;;  %v3149_v2 = vpop.f32.mrf.mxu0  ;;  %v3176_v47 = vadd.f32 %v8547_v53, %v3006_v33  ;;  %v8837_v33 = vld [vmem:[#allocation3 + $0x8] sm:$0xff]  }
 0x346   :  { %v3356_v25 = vsel %vm1631_vm5, %v11112_v29, 0.0  ;;  %v3390_v3 = vmul.f32 %v11112_v29, %v11112_v29  ;;  %v11135_v11 = vadd.f32 %v8560_v35, %v3171_v62  ;;  %v3414_v63 = vsel %vm1631_vm5, %v3392_v8, 0.0  ;;  %8566 = vmatprep.subr.bf16.mxu0 %v8837_v33 }
 0x347   :  { %v3409_v39 = vadd.f32 %v3408_v7, %v3407_v48  ;;  %v3357_v37 = vadd.f32 %v3356_v25, %v3355_v54  ;;  %v3300_v1 = vpop.f32.mrf.mxu1  ;;  %v3174_v54 = vadd.f32 %v3149_v2, %v3004_v49  ;;  %v8838_v49 = vld [vmem:[#allocation3] sm:$0xff]   ;;  %8567 = vmatpush3.bf16.msra.mxu0 %v8837_v33 }
 0x348   :  { %v3410_v10 = vsel %vm1631_vm5, %v3390_v3, 0.0  ;;  %v11130_v27 = vadd.f32 %v3300_v1, %v3169_v40  ;;  %v3395_v5 = vmul.f32 %v11135_v11, %v11135_v11  ;;  %v3366_v0 = vsel %vm1631_vm5, %v11135_v11, 0.0  ;;  %8572 = vmatprep.subr.bf16.mxu1 %v8838_v49 }
 0x349   :  { %v3359_v15 = vadd.f32 %v3358_v36, %v3357_v37  ;;  %v3411_v44 = vadd.f32 %v3410_v10, %v3409_v39  ;;  %v8561_v45 = vpop.f32.mrf.mxu1  ;;  %8573 = vmatpush3.bf16.msra.mxu1 %v8838_v49 }
 0x34a   :  { %v3393_v14 = vmul.f32 %v11130_v27, %v11130_v27  ;;  %v3362_v38 = vsel %vm1631_vm5, %v11130_v27, 0.0  ;;  %v11144_v28 = vadd.f32 %v8561_v45, %v3172_v61  ;;  %v3420_v6 = vsel %vm1631_vm5, %v3395_v5, 0.0 }
 0x34b   :  { %v3413_v34 = vadd.f32 %v3412_v42, %v3411_v44  ;;  %v3361_v59 = vadd.f32 %v3360_v56, %v3359_v15  ;;  %v3303_v30 = vpop.f32.mrf.mxu1 }
 0x34c   :  { %v11146_v13 = vadd.f32 %v3303_v30, %v3170_v52  ;;  %v3416_v4 = vsel %vm1631_vm5, %v3393_v14, 0.0  ;;  %v3396_v17 = vmul.f32 %v11144_v28, %v11144_v28  ;;  %v3368_v7 = vsel %vm1631_vm5, %v11144_v28, 0.0 }
 0x34d   :  { %v3363_v21 = vadd.f32 %v3362_v38, %v3361_v59  ;;  %v3415_v24 = vadd.f32 %v3414_v63, %v3413_v34  ;;  %v8564_v50 = vpop.f32.mrf.mxu1 }
 0x34e   :  { %v3364_v40 = vsel %vm1631_vm5, %v11146_v13, 0.0  ;;  %v3394_v23 = vmul.f32 %v11146_v13, %v11146_v13  ;;  %v11169_v25 = vadd.f32 %v8564_v50, %v3175_v41  ;;  %v3422_v37 = vsel %vm1631_vm5, %v3396_v17, 0.0 }
 0x34f   :  { %v3417_v16 = vadd.f32 %v3416_v4, %v3415_v24  ;;  %v3365_v46 = vadd.f32 %v3364_v40, %v3363_v21  ;;  %v3316_v55 = vpop.f32.mrf.mxu1 }
 0x350   :  { %v3418_v18 = vsel %vm1631_vm5, %v3394_v23, 0.0  ;;  %v11164_v60 = vadd.f32 %v3316_v55, %v3173_v31  ;;  %v3399_v61 = vmul.f32 %v11169_v25, %v11169_v25  ;;  %v3374_v56 = vsel %vm1631_vm5, %v11169_v25, 0.0 }
 0x351   :  { %v3367_v48 = vadd.f32 %v3366_v0, %v3365_v46  ;;  %v3419_v35 = vadd.f32 %v3418_v18, %v3417_v16  ;;  %v8565_v57 = vpop.f32.mrf.mxu1  ;;  %v11196_v0 = vld [vmem:[#allocation3 + $0x10] sm:$0xff]  }
 0x352   :  { %v3397_v3 = vmul.f32 %v11164_v60, %v11164_v60  ;;  %v3370_v1 = vsel %vm1631_vm5, %v11164_v60, 0.0  ;;  %v11176_v22 = vadd.f32 %v8565_v57, %v3176_v47  ;;  %v3428_v59 = vsel %vm1631_vm5, %v3399_v61, 0.0  ;;  %12604 = vst [vmem:[#allocation32_spill] sm:$0xff] %v11196_v0  ;;  %8578 = vmatprep.subr.bf16.mxu0 %v11196_v0  ;;  %v11199_v57 = vld [vmem:[#allocation3 + $0x18] sm:$0xff]  }
 0x353   :  { %v3421_v62 = vadd.f32 %v3420_v6, %v3419_v35  ;;  %v3369_v51 = vadd.f32 %v3368_v7, %v3367_v48  ;;  %v3319_v39 = vpop.f32.mrf.mxu1  ;;  %12605 = vst [vmem:[#allocation28_spill] sm:$0xff] %v11199_v57  ;;  %8584 = vmatprep.subr.bf16.mxu1 %v11199_v57  ;;  %v3442_v7 = vld [vmem:[%s12373_s5] sm:$0x1] }
 0x354   :  { %v11178_v36 = vadd.f32 %v3319_v39, %v3174_v54  ;;  %v3424_v52 = vsel %vm1631_vm5, %v3397_v3, 0.0  ;;  %v3400_v14 = vmul.f32 %v11176_v22, %v11176_v22  ;;  %v3376_v30 = vsel %vm1631_vm5, %v11176_v22, 0.0 }
 0x355   :  { %v3371_v8 = vadd.f32 %v3370_v1, %v3369_v51  ;;  %v3423_v10 = vadd.f32 %v3422_v37, %v3421_v62  ;;  %v9054_v62 = vmov 1983009808   ;;  %v3446_v37 = vld [vmem:[%s12374_s6] sm:$0x1] }
 0x356   :  { %v3372_v15 = vsel %vm1631_vm5, %v11178_v36, 0.0  ;;  %v3398_v44 = vmul.f32 %v11178_v36, %v11178_v36  ;;  %v3430_v38 = vsel %vm1631_vm5, %v3400_v14, 0.0  ;;  %v3527_v51 = vunpack.c.l.s4 %v9054_v62 }
 0x357   :  { %v3425_v45 = vadd.f32 %v3424_v52, %v3423_v10  ;;  %v3373_v42 = vadd.f32 %v3372_v15, %v3371_v8  ;;  %v12606_v8 = vld [vmem:[#allocation21_spill] sm:$0xff] }
 0x358   :  { %v3426_v9 = vsel %vm1631_vm5, %v3398_v44, 0.0  ;;  %v3528_v61 = vunpack.c.0.s8 %v3527_v51 }
 0x359   :  { %v3375_v31 = vadd.f32 %v3374_v56, %v3373_v42  ;;  %v3427_v34 = vadd.f32 %v3426_v9, %v3425_v45 }
 0x35b   :  { %v3377_v53 = vadd.f32 %v3376_v30, %v3375_v31  ;;  %v3429_v63 = vadd.f32 %v3428_v59, %v3427_v34  ;;  %v12607_v30 = vld [vmem:[#allocation13_spill] sm:$0xff] }
 0x35d   :  { %v3378_v21 = vrot.slane %v3377_v53, 4  ;;  %v3431_v24 = vadd.f32 %v3430_v38, %v3429_v63 }
 0x35f   :  { %v3379_v50 = vadd.f32 %v3378_v21, %v3377_v53  ;;  %v3432_v5 = vrot.slane %v3431_v24, 4 }
 0x361   :  { %v3380_v4 = vrot.slane %v3379_v50, 2  ;;  %v3433_v40 = vadd.f32 %v3432_v5, %v3431_v24 }
 0x363   :  { %v3381_v23 = vadd.f32 %v3380_v4, %v3379_v50  ;;  %v3434_v41 = vrot.slane %v3433_v40, 2 }
 0x365   :  { %v3382_v16 = vrot.slane %v3381_v23, 1  ;;  %v3435_v46 = vadd.f32 %v3434_v41, %v3433_v40 }
 0x367   :  { %v3383_v55 = vadd.f32 %v3382_v16, %v3381_v23  ;;  %v3436_v2 = vrot.slane %v3435_v46, 1 }
 0x369   :  { %v3384_v17 = vmul.f32 0.0078125, %v3383_v55  ;;  %v3437_v18 = vadd.f32 %v3436_v2, %v3435_v46 }
 0x36b   :  { %v3438_v47 = vmul.f32 0.0078125, %v3437_v18  ;;  %v3439_v54 = vmul.f32 %v3384_v17, %v3384_v17 }
 0x36d   :  { %v3440_v48 = vsub.f32 %v3438_v47, %v3439_v54 }
 0x36f   :  { %v3441_v35 = vmax.f32 %v3440_v48, 0.0 }
 0x371   :  { %v3443_v6 = vadd.f32 1e-05, %v3441_v35 }
 0x373   :  { %8974 = vrsqrt.f32 %v3443_v6 }
 0x380   :  { %v8975_v3 = vpop.eup %8974 }
 0x381   :  { %v3445_v39 = vmul.f32 %v8975_v3, %v3442_v7 }
 0x383   :  { %v3447_v1 = vmul.f32 %v3445_v39, %v3384_v17  ;;  %v3453_v10 = vrot.slane %v3445_v39, %v12606_v8 }
 0x385   :  { %v3448_v52 = vsub.f32 %v3446_v37, %v3447_v1  ;;  %v3455_v15 = vmul.f32 %v3453_v10, %v11045_v26  ;;  %v3456_v44 = vmul.f32 %v3453_v10, %v11071_v32  ;;  %v3460_v45 = vmul.f32 %v3453_v10, %v11112_v29 }
 0x386   :  { %v3461_v42 = vmul.f32 %v3453_v10, %v11102_v43  ;;  %v3462_v56 = vmul.f32 %v3453_v10, %v11110_v58  ;;  %v3463_v14 = vmul.f32 %v3453_v10, %v11130_v27  ;;  %v3464_v9 = vmul.f32 %v3453_v10, %v11146_v13 }
 0x387   :  { %v3465_v31 = vmul.f32 %v3453_v10, %v11135_v11  ;;  %v3466_v34 = vmul.f32 %v3453_v10, %v11144_v28  ;;  %v3467_v59 = vmul.f32 %v3453_v10, %v11164_v60  ;;  %v3468_v26 = vmul.f32 %v3453_v10, %v11178_v36 }
 0x388   :  { %v3469_v32 = vmul.f32 %v3453_v10, %v11169_v25  ;;  %v3457_v29 = vmul.f32 %v3453_v10, %v11055_v20  ;;  %v3458_v43 = vmul.f32 %v3453_v10, %v11069_v19  ;;  %v3470_v58 = vmul.f32 %v3453_v10, %v11176_v22 }
 0x389   :  { %v3475_v27 = vrot.slane %v3448_v52, %v12606_v8  ;;  %v11226_v13 = vsub.s32 %v3528_v61, %v12607_v30  ;;  %v3459_v11 = vmul.f32 %v3453_v10, %v11095_v12 }
 0x38b   :  { %12608 = vst [vmem:[#allocation36_spill] sm:$0xff] %v11226_v13  ;;  %v3477_v28 = vadd.f32 %v3475_v27, %v3455_v15  ;;  %v3478_v53 = vadd.f32 %v3475_v27, %v3456_v44  ;;  %v3479_v60 = vadd.f32 %v3475_v27, %v3457_v29  ;;  %v3480_v63 = vadd.f32 %v3475_v27, %v3458_v43 }
 0x38c   :  { %v3481_v36 = vadd.f32 %v3475_v27, %v3459_v11  ;;  %v3482_v38 = vadd.f32 %v3475_v27, %v3460_v45  ;;  %v3483_v25 = vadd.f32 %v3475_v27, %v3461_v42  ;;  %v3484_v33 = vadd.f32 %v3475_v27, %v3462_v56 }
 0x38d   :  { %v3485_v20 = vadd.f32 %v3475_v27, %v3463_v14  ;;  %v3486_v49 = vadd.f32 %v3475_v27, %v3464_v9  ;;  %v3487_v19 = vadd.f32 %v3475_v27, %v3465_v31  ;;  %v3488_v21 = vadd.f32 %v3475_v27, %v3466_v34 }
 0x38e   :  { %v3489_v22 = vadd.f32 %v3475_v27, %v3467_v59  ;;  %v3490_v24 = vadd.f32 %v3475_v27, %v3468_v26  ;;  %v3491_v50 = vadd.f32 %v3475_v27, %v3469_v32  ;;  %v3492_v5 = vadd.f32 %v3475_v27, %v3470_v58 }
 0x38f   :  { %v3493_v4 = vmax.f32 %v3477_v28, 0.0  ;;  %v3494_v40 = vmax.f32 %v3478_v53, 0.0  ;;  %v3495_v23 = vmax.f32 %v3479_v60, 0.0  ;;  %v3496_v12 = vmax.f32 %v3480_v63, 0.0 }
 0x390   :  { %v3497_v41 = vmax.f32 %v3481_v36, 0.0  ;;  %v3498_v16 = vmax.f32 %v3482_v38, 0.0  ;;  %v3499_v46 = vmax.f32 %v3483_v25, 0.0  ;;  %v3500_v55 = vmax.f32 %v3484_v33, 0.0 }
 0x391   :  { %v3501_v2 = vmax.f32 %v3485_v20, 0.0  ;;  %v3502_v17 = vmax.f32 %v3486_v49, 0.0  ;;  %v3503_v18 = vmax.f32 %v3487_v19, 0.0  ;;  %v11229_v47 = vmax.f32 %v3488_v21, 0.0 }
 0x392   :  { %v11231_v54 = vmax.f32 %v3489_v22, 0.0  ;;  %v11233_v48 = vmax.f32 %v3490_v24, 0.0  ;;  %v11235_v35 = vmax.f32 %v3491_v50, 0.0  ;;  %v11237_v6 = vmax.f32 %v3492_v5, 0.0 }
 0x393   :  { %v3525_v7 = vcombine.high %v3493_v4, %v3493_v4  ;;  %v11240_v3 = vrot.slane %v3493_v4, %v11226_v13  ;;  %v3542_v62 = vcombine.high %v3494_v40, %v3494_v40  ;;  %v11243_v51 = vrot.slane %v3494_v40, %v11226_v13 }
 0x394   :  { %v3559_v39 = vcombine.high %v3495_v23, %v3495_v23  ;;  %v11246_v37 = vrot.slane %v3495_v23, %v11226_v13  ;;  %v3576_v1 = vcombine.high %v3496_v12, %v3496_v12  ;;  %v11249_v10 = vrot.slane %v3496_v12, %v11226_v13 }
 0x395   :  { %12609 = vst [vmem:[#allocation37_spill] sm:$0xff] %v11240_v3  ;;  %12610 = vst [vmem:[#allocation33_spill] sm:$0xff] %v11243_v51  ;;  %v11252_v61 = vrot.slane %v3525_v7, %v11226_v13  ;;  %v11256_v52 = vcombine.high %v11240_v3, %v11240_v3  ;;  %v11259_v15 = vrot.slane %v3542_v62, %v11226_v13 }
 0x396   :  { %v11263_v44 = vcombine.high %v11243_v51, %v11243_v51  ;;  %v11266_v45 = vrot.slane %v3559_v39, %v11226_v13  ;;  %v11270_v42 = vcombine.high %v11246_v37, %v11246_v37  ;;  %v11273_v56 = vrot.slane %v3576_v1, %v11226_v13 }
 0x397   :  { %12611 = vst [vmem:[#allocation38_spill] sm:$0xff] %v11252_v61  ;;  %12612 = vst [vmem:[#allocation42_spill] sm:$0xff] %v11256_v52  ;;  %v11277_v14 = vcombine.high %v11249_v10, %v11249_v10  ;;  %v11281_v9 = vcombine.high %v11252_v61, %v11252_v61  ;;  %v11285_v31 = vcombine.high %v11259_v15, %v11259_v15 }
 0x398   :  { %v3593_v34 = vcombine.high %v3497_v41, %v3497_v41  ;;  %v11288_v59 = vrot.slane %v3497_v41, %v11226_v13  ;;  %v11292_v26 = vcombine.high %v11266_v45, %v11266_v45  ;;  %v11296_v32 = vcombine.high %v11273_v56, %v11273_v56 }
 0x399   :  { %12613 = vst [vmem:[#allocation43_spill] sm:$0xff] %v11281_v9  ;;  %v3610_v29 = vcombine.high %v3498_v16, %v3498_v16  ;;  %v11299_v43 = vrot.slane %v3498_v16, %v11226_v13  ;;  %v3627_v30 = vcombine.high %v3499_v46, %v3499_v46  ;;  %v11309_v11 = vrot.slane %v3499_v46, %v11226_v13 }
 0x39a   :  { %v11302_v58 = vrot.slane %v3593_v34, %v11226_v13  ;;  %v11306_v27 = vcombine.high %v11288_v59, %v11288_v59  ;;  %v3644_v60 = vcombine.high %v3500_v55, %v3500_v55  ;;  %v11319_v63 = vrot.slane %v3500_v55, %v11226_v13 }
 0x39b   :  { %v11312_v28 = vrot.slane %v3610_v29, %v11226_v13  ;;  %v11316_v53 = vcombine.high %v11299_v43, %v11299_v43  ;;  %v11326_v38 = vrot.slane %v3627_v30, %v11226_v13  ;;  %v11330_v25 = vcombine.high %v11309_v11, %v11309_v11 }
 0x39c   :  { %v11323_v36 = vcombine.high %v11302_v58, %v11302_v58  ;;  %v3661_v33 = vcombine.high %v3501_v2, %v3501_v2  ;;  %v11337_v49 = vrot.slane %v3644_v60, %v11226_v13  ;;  %v11341_v19 = vcombine.high %v11319_v63, %v11319_v63 }
 0x39d   :  { %v11334_v20 = vcombine.high %v11312_v28, %v11312_v28  ;;  %v11344_v21 = vrot.slane %v3501_v2, %v11226_v13  ;;  %v11348_v22 = vcombine.high %v11326_v38, %v11326_v38  ;;  %v3678_v50 = vcombine.high %v3502_v17, %v3502_v17 }
 0x39e   :  { %v11351_v24 = vrot.slane %v3661_v33, %v11226_v13  ;;  %v11354_v5 = vrot.slane %v3502_v17, %v11226_v13  ;;  %v11358_v4 = vcombine.high %v11337_v49, %v11337_v49  ;;  %v3695_v23 = vcombine.high %v3503_v18, %v3503_v18 }
 0x39f   :  { %v11362_v40 = vcombine.high %v11344_v21, %v11344_v21  ;;  %v11365_v12 = vrot.slane %v3503_v18, %v11226_v13  ;;  %v11372_v16 = vrot.slane %v3678_v50, %v11226_v13  ;;  %v3712_v55 = vcombine.high %v11229_v47, %v11229_v47 }
 0x3a0   :  { %v11369_v41 = vcombine.high %v11351_v24, %v11351_v24  ;;  %v11376_v46 = vcombine.high %v11354_v5, %v11354_v5  ;;  %v11381_v2 = vrot.slane %v3695_v23, %v11226_v13  ;;  %v11389_v18 = vrot.slane %v11229_v47, %v11226_v13 }
 0x3a1   :  { %12614 = vst [vmem:[#allocation12_spill] sm:$0xff] %v11365_v12  ;;  %v11385_v17 = vcombine.high %v11365_v12, %v11365_v12  ;;  %v3729_v7 = vcombine.high %v11231_v54, %v11231_v54  ;;  %v11395_v62 = vcombine.high %v11372_v16, %v11372_v16  ;;  %v11398_v39 = vrot.slane %v3712_v55, %v11226_v13 }
 0x3a2   :  { %12615 = vst [vmem:[#allocation15_spill] sm:$0xff] %v11381_v2  ;;  %12617 = vst [vmem:[#allocation45_spill] sm:$0xff] %v11389_v18  ;;  %v11402_v1 = vrot.slane %v11231_v54, %v11226_v13  ;;  %v3746_v34 = vcombine.high %v11233_v48, %v11233_v48  ;;  %v11408_v47 = vcombine.high %v11381_v2, %v11381_v2  ;;  %v12631_v2 = vmov %v11240_v3 }
 0x3a3   :  { %12616 = vst [vmem:[#allocation44_spill] sm:$0xff] %v11385_v17  ;;  %v11412_v29 = vcombine.high %v11389_v18, %v11389_v18  ;;  %v11415_v30 = vrot.slane %v3729_v7, %v11226_v13  ;;  %v11419_v60 = vrot.slane %v11233_v48, %v11226_v13  ;;  %v11423_v54 = vcombine.high %v11398_v39, %v11398_v39 }
 0x3a4   :  { %v11427_v33 = vcombine.high %v11402_v1, %v11402_v1  ;;  %v11430_v50 = vrot.slane %v3746_v34, %v11226_v13  ;;  %v3763_v23 = vcombine.high %v11235_v35, %v11235_v35  ;;  %v11444_v7 = vrot.slane %v11235_v35, %v11226_v13 }
 0x3a5   :  { %12618 = vst [vmem:[#allocation46_spill] sm:$0xff] %v11415_v30  ;;  %12619 = vst [vmem:[#allocation47_spill] sm:$0xff] %v11419_v60  ;;  %v11436_v55 = vcombine.high %v11415_v30, %v11415_v30  ;;  %v11440_v48 = vcombine.high %v11419_v60, %v11419_v60  ;;  %v3780_v57 = vcombine.high %v11237_v6, %v11237_v6  ;;  %v12632_v9 = vrot.slane %v12631_v2, 9 }
 0x3a6   :  { %12622 = vst [vmem:[#allocation27_spill] sm:$0xff] %v11444_v7  ;;  %v11450_v34 = vcombine.high %v11430_v50, %v11430_v50  ;;  %v11453_v0 = vrot.slane %v3763_v23, %v11226_v13  ;;  %v11457_v8 = vrot.slane %v11237_v6, %v11226_v13  ;;  %v11462_v35 = vcombine.high %v11444_v7, %v11444_v7 }
 0x3a7   :  { %12620 = vst [vmem:[#allocation34_spill] sm:$0xff] %v11436_v55  ;;  %12621 = vst [vmem:[#allocation30_spill] sm:$0xff] %v11440_v48  ;;  %v11465_v60 = vrot.slane %v3780_v57, %v11226_v13  ;;  %v12626_v12 = vmov %v11436_v55  ;;  %v11545_v55 = vmax.f32 %v12631_v2, %v12632_v9  ;;  %v12636_v48 = vld [vmem:[#allocation43_spill] sm:$0xff]  ;;  %v12639_v2 = vrot.slane %v11263_v44, 9 }
 0x3a8   :  { %12623 = vst [vmem:[#allocation19_spill] sm:$0xff] %v11450_v34  ;;  %v11471_v23 = vcombine.high %v11453_v0, %v11453_v0  ;;  %v11475_v6 = vcombine.high %v11457_v8, %v11457_v8  ;;  %v12629_v18 = vmov %v11450_v34  ;;  %v12633_v34 = vmov %v11256_v52 }
 0x3a9   :  { %v11481_v57 = vcombine.high %v11465_v60, %v11465_v60  ;;  %v12634_v7 = vrot.slane %v12633_v34, 9  ;;  %v12635_v52 = vrot.slane %v11252_v61, 9  ;;  %v12637_v30 = vrot.slane %v12636_v48, 9 }
 0x3aa   :  { %12624 = vst [vmem:[#allocation16_spill] sm:$0xff] %v11475_v6 }
 0x3ab   :  { %12625 = vst [vmem:[#allocation23_spill] sm:$0xff] %v11481_v57  ;;  %v11550_v13 = vmax.f32 %v12633_v34, %v12634_v7  ;;  %v11555_v6 = vmax.f32 %v11252_v61, %v12635_v52  ;;  %v11560_v3 = vmax.f32 %v12636_v48, %v12637_v30  ;;  %v12638_v57 = vrot.slane %v11243_v51, 9 }
 0x3ac   :  { %v12627_v17 = vld [vmem:[#allocation47_spill] sm:$0xff]  ;;  %v11570_v7 = vmax.f32 %v11263_v44, %v12639_v2  ;;  %v12640_v34 = vrot.slane %v11259_v15, 9  ;;  %v12641_v52 = vrot.slane %v11285_v31, 9  ;;  %v12642_v48 = vrot.slane %v11246_v37, 9 }
 0x3ad   :  { %v11565_v9 = vmax.f32 %v11243_v51, %v12638_v57  ;;  %v12643_v57 = vrot.slane %v11270_v42, 9  ;;  %v12644_v2 = vrot.slane %v11266_v45, 9 }
 0x3ae   :  { %v11575_v61 = vmax.f32 %v11259_v15, %v12640_v34  ;;  %v11580_v30 = vmax.f32 %v11285_v31, %v12641_v52  ;;  %v11585_v51 = vmax.f32 %v11246_v37, %v12642_v48  ;;  %v12645_v34 = vrot.slane %v11292_v26, 9 }
 0x3af   :  { %v11590_v44 = vmax.f32 %v11270_v42, %v12643_v57  ;;  %v11595_v15 = vmax.f32 %v11266_v45, %v12644_v2  ;;  %v12646_v52 = vrot.slane %v11249_v10, 9  ;;  %v12647_v48 = vrot.slane %v11277_v14, 9 }
 0x3b0   :  { %v11600_v31 = vmax.f32 %v11292_v26, %v12645_v34  ;;  %v12648_v57 = vrot.slane %v11273_v56, 9  ;;  %v12649_v2 = vrot.slane %v11296_v32, 9  ;;  %v12650_v34 = vrot.slane %v11288_v59, 9 }
 0x3b1   :  { %v11605_v37 = vmax.f32 %v11249_v10, %v12646_v52  ;;  %v11610_v42 = vmax.f32 %v11277_v14, %v12647_v48  ;;  %v12651_v52 = vrot.slane %v11306_v27, 9  ;;  %v12652_v48 = vrot.slane %v11302_v58, 9 }
 0x3b2   :  { %v11615_v45 = vmax.f32 %v11273_v56, %v12648_v57  ;;  %v11620_v26 = vmax.f32 %v11296_v32, %v12649_v2  ;;  %v11625_v10 = vmax.f32 %v11288_v59, %v12650_v34  ;;  %v12653_v57 = vrot.slane %v11323_v36, 9 }
 0x3b3   :  { %v11630_v14 = vmax.f32 %v11306_v27, %v12651_v52  ;;  %v11635_v56 = vmax.f32 %v11302_v58, %v12652_v48  ;;  %v12654_v2 = vrot.slane %v11299_v43, 9  ;;  %v12655_v34 = vrot.slane %v11316_v53, 9 }
 0x3b4   :  { %v11640_v32 = vmax.f32 %v11323_v36, %v12653_v57  ;;  %v12656_v52 = vrot.slane %v11312_v28, 9  ;;  %v12657_v48 = vrot.slane %v11334_v20, 9  ;;  %v12658_v57 = vrot.slane %v11309_v11, 9 }
 0x3b5   :  { %v11645_v59 = vmax.f32 %v11299_v43, %v12654_v2  ;;  %v11650_v27 = vmax.f32 %v11316_v53, %v12655_v34  ;;  %v12659_v2 = vrot.slane %v11330_v25, 9  ;;  %v12660_v34 = vrot.slane %v11326_v38, 9 }
 0x3b6   :  { %v11655_v58 = vmax.f32 %v11312_v28, %v12656_v52  ;;  %v11660_v36 = vmax.f32 %v11334_v20, %v12657_v48  ;;  %v11665_v43 = vmax.f32 %v11309_v11, %v12658_v57  ;;  %v12661_v52 = vrot.slane %v11348_v22, 9 }
 0x3b7   :  { %v11670_v53 = vmax.f32 %v11330_v25, %v12659_v2  ;;  %v11675_v28 = vmax.f32 %v11326_v38, %v12660_v34  ;;  %v12662_v48 = vrot.slane %v11319_v63, 9  ;;  %v12663_v57 = vrot.slane %v11341_v19, 9 }
 0x3b8   :  { %v11680_v20 = vmax.f32 %v11348_v22, %v12661_v52  ;;  %v12664_v2 = vrot.slane %v11337_v49, 9  ;;  %v12665_v34 = vrot.slane %v11358_v4, 9  ;;  %v12666_v52 = vrot.slane %v11344_v21, 9 }
 0x3b9   :  { %v11685_v11 = vmax.f32 %v11319_v63, %v12662_v48  ;;  %v11690_v25 = vmax.f32 %v11341_v19, %v12663_v57  ;;  %v12667_v48 = vrot.slane %v11362_v40, 9  ;;  %v12669_v57 = vrot.slane %v11351_v24, 9 }
 0x3ba   :  { %v11695_v38 = vmax.f32 %v11337_v49, %v12664_v2  ;;  %v11700_v22 = vmax.f32 %v11358_v4, %v12665_v34  ;;  %v11705_v63 = vmax.f32 %v11344_v21, %v12666_v52  ;;  %v12671_v2 = vrot.slane %v11369_v41, 9 }
 0x3bb   :  { %v11710_v19 = vmax.f32 %v11362_v40, %v12667_v48  ;;  %v11715_v49 = vmax.f32 %v11351_v24, %v12669_v57  ;;  %v12673_v34 = vrot.slane %v11354_v5, 9  ;;  %v12674_v52 = vrot.slane %v11376_v46, 9 }
 0x3bc   :  { %v11720_v4 = vmax.f32 %v11369_v41, %v12671_v2  ;;  %v12675_v48 = vrot.slane %v11372_v16, 9  ;;  %v12676_v57 = vrot.slane %v11395_v62, 9  ;;  %v12678_v2 = vld [vmem:[#allocation12_spill] sm:$0xff] }
 0x3bd   :  { %12668 = vst [vmem:[#allocation24_spill] sm:$0xff] %v11710_v19  ;;  %12670 = vst [vmem:[#allocation22_spill] sm:$0xff] %v11715_v49  ;;  %v11725_v21 = vmax.f32 %v11354_v5, %v12673_v34  ;;  %v11730_v40 = vmax.f32 %v11376_v46, %v12674_v52  ;;  %v12680_v34 = vld [vmem:[#allocation44_spill] sm:$0xff]  ;;  %v12682_v52 = vld [vmem:[#allocation15_spill] sm:$0xff] }
 0x3be   :  { %12672 = vst [vmem:[#allocation39_spill] sm:$0xff] %v11720_v4  ;;  %v11735_v24 = vmax.f32 %v11372_v16, %v12675_v48  ;;  %v11740_v41 = vmax.f32 %v11395_v62, %v12676_v57  ;;  %v12679_v4 = vrot.slane %v12678_v2, 9  ;;  %v12681_v49 = vrot.slane %v12680_v34, 9  ;;  %v12686_v57 = vld [vmem:[#allocation45_spill] sm:$0xff] }
 0x3bf   :  { %v12683_v19 = vrot.slane %v12682_v52, 9  ;;  %v12684_v48 = vrot.slane %v11408_v47, 9 }
 0x3c0   :  { %12677 = vst [vmem:[#allocation26_spill] sm:$0xff] %v11740_v41  ;;  %v11745_v5 = vmax.f32 %v12678_v2, %v12679_v4  ;;  %v11750_v46 = vmax.f32 %v12680_v34, %v12681_v49  ;;  %v12687_v41 = vrot.slane %v12686_v57, 9  ;;  %v12688_v2 = vrot.slane %v11412_v29, 9 }
 0x3c1   :  { %v11755_v16 = vmax.f32 %v12682_v52, %v12683_v19  ;;  %v11760_v62 = vmax.f32 %v11408_v47, %v12684_v48  ;;  %v12689_v34 = vrot.slane %v11398_v39, 9  ;;  %v12690_v52 = vrot.slane %v11423_v54, 9 }
 0x3c2   :  { %v11765_v4 = vmax.f32 %v12686_v57, %v12687_v41  ;;  %v11770_v49 = vmax.f32 %v11412_v29, %v12688_v2  ;;  %v12691_v48 = vrot.slane %v11402_v1, 9  ;;  %v12693_v57 = vrot.slane %v11427_v33, 9  ;;  %v12694_v2 = vld [vmem:[#allocation46_spill] sm:$0xff] }
 0x3c3   :  { %12685 = vst [vmem:[#allocation25_spill] sm:$0xff] %v11760_v62  ;;  %v11775_v19 = vmax.f32 %v11398_v39, %v12689_v34  ;;  %v11780_v47 = vmax.f32 %v11423_v54, %v12690_v52  ;;  %v12695_v62 = vrot.slane %v12694_v2, 9  ;;  %v12696_v34 = vrot.slane %v12626_v12, 9 }
 0x3c4   :  { %v11785_v41 = vmax.f32 %v11402_v1, %v12691_v48  ;;  %v11790_v29 = vmax.f32 %v11427_v33, %v12693_v57  ;;  %v12698_v52 = vrot.slane %v12627_v17, 9  ;;  %v12699_v48 = vld [vmem:[#allocation30_spill] sm:$0xff]  ;;  %v12701_v57 = vrot.slane %v11430_v50, 9 }
 0x3c5   :  { %v11795_v39 = vmax.f32 %v12694_v2, %v12695_v62  ;;  %v11800_v54 = vmax.f32 %v12626_v12, %v12696_v34  ;;  %v12702_v2 = vrot.slane %v12629_v18, 9  ;;  %v12703_v34 = vld [vmem:[#allocation27_spill] sm:$0xff] }
 0x3c6   :  { %12692 = vst [vmem:[#allocation14_spill] sm:$0xff] %v11785_v41  ;;  %v11805_v1 = vmax.f32 %v12627_v17, %v12698_v52  ;;  %v12700_v41 = vrot.slane %v12699_v48, 9  ;;  %v11815_v62 = vmax.f32 %v11430_v50, %v12701_v57  ;;  %v12706_v52 = vrot.slane %v11462_v35, 9 }
 0x3c7   :  { %12697 = vst [vmem:[#allocation35_spill] sm:$0xff] %v11800_v54  ;;  %v11820_v12 = vmax.f32 %v12629_v18, %v12702_v2  ;;  %v12704_v54 = vrot.slane %v12703_v34, 9  ;;  %v12709_v57 = vrot.slane %v11471_v23, 9  ;;  %v12710_v2 = vrot.slane %v11457_v8, 9 }
 0x3c8   :  { %v11810_v33 = vmax.f32 %v12699_v48, %v12700_v41  ;;  %v11830_v41 = vmax.f32 %v11462_v35, %v12706_v52  ;;  %v12707_v48 = vrot.slane %v11453_v0, 9  ;;  %v12713_v52 = vrot.slane %v11465_v60, 9 }
 0x3c9   :  { %v11825_v17 = vmax.f32 %v12703_v34, %v12704_v54  ;;  %v11840_v18 = vmax.f32 %v11471_v23, %v12709_v57  ;;  %v11845_v54 = vmax.f32 %v11457_v8, %v12710_v2  ;;  %v12711_v34 = vld [vmem:[#allocation16_spill] sm:$0xff]  ;;  %v4117_v57 = vmax.f32 %v11545_v55, %v11565_v9 }
 0x3ca   :  { %v11835_v50 = vmax.f32 %v11453_v0, %v12707_v48  ;;  %v11855_v0 = vmax.f32 %v11465_v60, %v12713_v52  ;;  %v12714_v48 = vld [vmem:[#allocation23_spill] sm:$0xff]  ;;  %v4118_v8 = vmax.f32 %v11550_v13, %v11570_v7  ;;  %v4120_v2 = vmax.f32 %v11560_v3, %v11580_v30 }
 0x3cb   :  { %12705 = vst [vmem:[#allocation29_spill] sm:$0xff] %v11825_v17  ;;  %v12712_v17 = vrot.slane %v12711_v34, 9  ;;  %v4121_v60 = vmax.f32 %v11585_v51, %v11605_v37  ;;  %v4124_v55 = vmax.f32 %v11600_v31, %v11620_v26  ;;  %v4125_v13 = vmax.f32 %v11625_v10, %v11645_v59  ;;  %v12717_v37 = vld [vmem:[#allocation22_spill] sm:$0xff]  ;;  %v12719_v26 = vld [vmem:[#allocation39_spill] sm:$0xff]  ;;  %v12720_v59 = vld [vmem:[#allocation25_spill] sm:$0xff] }
 0x3cc   :  { %12708 = vst [vmem:[#allocation18_spill] sm:$0xff] %v11835_v50  ;;  %v12715_v50 = vrot.slane %v12714_v48, 9  ;;  %v4127_v3 = vmax.f32 %v11635_v56, %v11655_v58  ;;  %v4128_v9 = vmax.f32 %v11640_v32, %v11660_v36  ;;  %v4129_v7 = vmax.f32 %v11665_v43, %v11685_v11 }
 0x3cd   :  { %v11850_v35 = vmax.f32 %v12711_v34, %v12712_v17  ;;  %v4119_v17 = vmax.f32 %v11555_v6, %v11575_v61  ;;  %v4122_v34 = vmax.f32 %v11590_v44, %v11610_v42  ;;  %v4126_v6 = vmax.f32 %v11630_v14, %v11650_v27  ;;  %v12721_v58 = vld [vmem:[#allocation14_spill] sm:$0xff] }
 0x3ce   :  { %v11860_v23 = vmax.f32 %v12714_v48, %v12715_v50  ;;  %v4123_v50 = vmax.f32 %v11595_v15, %v11615_v45  ;;  %v4130_v61 = vmax.f32 %v11670_v53, %v11690_v25  ;;  %v4131_v30 = vmax.f32 %v11675_v28, %v11695_v38  ;;  %v12716_v15 = vld [vmem:[#allocation24_spill] sm:$0xff]  ;;  %v12718_v45 = vld [vmem:[#allocation26_spill] sm:$0xff]  ;;  %v12722_v28 = vld [vmem:[#allocation35_spill] sm:$0xff] }
 0x3cf   :  { %v4132_v51 = vmax.f32 %v11680_v20, %v11700_v22  ;;  %v4133_v44 = vmax.f32 %v11705_v63, %v11725_v21  ;;  %v4134_v31 = vmax.f32 %v12716_v15, %v11730_v40  ;;  %v4135_v42 = vmax.f32 %v12717_v37, %v11735_v24  ;;  %v12725_v40 = vld [vmem:[#allocation21_spill] sm:$0xff] }
 0x3d0   :  { %v4136_v10 = vmax.f32 %v12719_v26, %v12718_v45  ;;  %v4137_v14 = vmax.f32 %v11745_v5, %v11765_v4  ;;  %v4138_v56 = vmax.f32 %v11750_v46, %v11770_v49  ;;  %v4139_v32 = vmax.f32 %v11755_v16, %v11775_v19 }
 0x3d1   :  { %v4140_v27 = vmax.f32 %v12720_v59, %v11780_v47  ;;  %v4141_v36 = vmax.f32 %v12721_v58, %v11805_v1  ;;  %v4142_v43 = vmax.f32 %v11790_v29, %v11810_v33  ;;  %v4143_v53 = vmax.f32 %v11795_v39, %v11815_v62 }
 0x3d2   :  { %v4144_v20 = vmax.f32 %v12722_v28, %v11820_v12  ;;  %v12723_v11 = vld [vmem:[#allocation29_spill] sm:$0xff]  ;;  %v4146_v38 = vmax.f32 %v11830_v41, %v11850_v35  ;;  %v4148_v21 = vmax.f32 %v11840_v18, %v11860_v23  ;;  %v4224_v24 = vrot.slane %v4117_v57, %v12725_v40 }
 0x3d3   :  { %v4145_v25 = vmax.f32 %v12723_v11, %v11845_v54  ;;  %v12724_v22 = vld [vmem:[#allocation18_spill] sm:$0xff]  ;;  %v4228_v5 = vrot.slane %v4118_v8, %v12725_v40  ;;  %v4232_v46 = vrot.slane %v4119_v17, %v12725_v40  ;;  %v4236_v16 = vrot.slane %v4120_v2, %v12725_v40 }
 0x3d4   :  { %v4147_v63 = vmax.f32 %v12724_v22, %v11855_v0  ;;  %v4240_v4 = vrot.slane %v4121_v60, %v12725_v40  ;;  %v4244_v49 = vrot.slane %v4122_v34, %v12725_v40  ;;  %v4248_v19 = vrot.slane %v4123_v50, %v12725_v40 }
 0x3d5   :  { %v4252_v47 = vrot.slane %v4124_v55, %v12725_v40  ;;  %v4256_v29 = vrot.slane %v4125_v13, %v12725_v40  ;;  %v4260_v39 = vrot.slane %v4126_v6, %v12725_v40  ;;  %v4264_v1 = vrot.slane %v4127_v3, %v12725_v40 }
 0x3d6   :  { %v4268_v33 = vrot.slane %v4128_v9, %v12725_v40  ;;  %v4272_v62 = vrot.slane %v4129_v7, %v12725_v40  ;;  %v4276_v12 = vrot.slane %v4130_v61, %v12725_v40  ;;  %v4280_v41 = vrot.slane %v4131_v30, %v12725_v40 }
 0x3d7   :  { %v4284_v18 = vrot.slane %v4132_v51, %v12725_v40  ;;  %v4288_v54 = vrot.slane %v4133_v44, %v12725_v40  ;;  %v4292_v35 = vrot.slane %v4134_v31, %v12725_v40  ;;  %v4296_v52 = vrot.slane %v4135_v42, %v12725_v40 }
 0x3d8   :  { %v4300_v0 = vrot.slane %v4136_v10, %v12725_v40  ;;  %v4304_v48 = vrot.slane %v4137_v14, %v12725_v40  ;;  %v4308_v23 = vrot.slane %v4138_v56, %v12725_v40  ;;  %v4312_v57 = vrot.slane %v4139_v32, %v12725_v40 }
 0x3d9   :  { %v4316_v8 = vrot.slane %v4140_v27, %v12725_v40  ;;  %v4320_v17 = vrot.slane %v4141_v36, %v12725_v40  ;;  %v4324_v2 = vrot.slane %v4142_v43, %v12725_v40  ;;  %v4328_v60 = vrot.slane %v4143_v53, %v12725_v40 }
 0x3da   :  { %v4332_v34 = vrot.slane %v4144_v20, %v12725_v40  ;;  %v4336_v50 = vrot.slane %v4145_v25, %v12725_v40  ;;  %v4340_v55 = vrot.slane %v4146_v38, %v12725_v40  ;;  %v4344_v13 = vrot.slane %v4147_v63, %v12725_v40 }
 0x3db   :  { %v4348_v6 = vrot.slane %v4148_v21, %v12725_v40  ;;  %v4350_v3 = vsel %vm4349_vm6, %v4228_v5, %v4224_v24  ;;  %v4355_v9 = vsel %vm4349_vm6, %v4244_v49, %v4240_v4  ;;  %v4358_v7 = vsel %vm4349_vm6, %v4260_v39, %v4256_v29  ;;  %v8853_v24 = vld [vmem:[#allocation3 + $0x20] sm:$0xff]   ;;  %v8862_v49 = vld [vmem:[#allocation3 + $0x28] sm:$0xff]  }
 0x3dc   :  { %v4361_v61 = vsel %vm4349_vm6, %v4276_v12, %v4272_v62  ;;  %v4352_v30 = vsel %vm4351_vm7, %v4232_v46, %v4350_v3  ;;  %v4356_v51 = vsel %vm4351_vm7, %v4248_v19, %v4355_v9  ;;  %v4359_v44 = vsel %vm4351_vm7, %v4264_v1, %v4358_v7  ;;  %v12727_v1 = vld [vmem:[#allocation32_spill] sm:$0xff]  ;;  %v8873_v3 = vld [vmem:[#allocation3 + $0x40] sm:$0xff]  }
 0x3dd   :  { %v4362_v15 = vsel %vm4351_vm7, %v4280_v41, %v4361_v61  ;;  %v4354_v31 = vsel %vm4353_vm8, %v4236_v16, %v4352_v30  ;;  %v4357_v37 = vsel %vm4353_vm8, %v4252_v47, %v4356_v51  ;;  %v4360_v42 = vsel %vm4353_vm8, %v4268_v33, %v4359_v44  ;;  %v12728_v41 = vld [vmem:[#allocation28_spill] sm:$0xff] }
 0x3de   :  { %v4363_v45 = vsel %vm4353_vm8, %v4284_v18, %v4362_v15  ;;  %v4364_v26 = vsel %vm4349_vm6, %v4292_v35, %v4288_v54  ;;  %v4367_v10 = vsel %vm4349_vm6, %v4308_v23, %v4304_v48  ;;  %v4370_v14 = vsel %vm4349_vm6, %v4324_v2, %v4320_v17  ;;  %4385 = vst.msk [vmem:[#allocation2 + $0x11] sm:$0xf] %vm4384_vm9, %v4354_v31 }
 0x3df   :  { %v4373_v56 = vsel %vm4349_vm6, %v4340_v55, %v4336_v50  ;;  %4386 = vst.msk [vmem:[#allocation2 + $0x21] sm:$0xf] %vm4384_vm9, %v4357_v37  ;;  %4387 = vst.msk [vmem:[#allocation2 + $0x31] sm:$0xf] %vm4384_vm9, %v4360_v42  ;;  %v4365_v32 = vsel %vm4351_vm7, %v4296_v52, %v4364_v26  ;;  %v4368_v59 = vsel %vm4351_vm7, %v4312_v57, %v4367_v10  ;;  %v12726_v39 = vmov 0.0   ;;  %v8863_v52 = vld [vmem:[#allocation3 + $0x30] sm:$0xff]  }
 0x3e0   :  { %4388 = vst.msk [vmem:[#allocation2 + $0x41] sm:$0xf] %vm4384_vm9, %v4363_v45  ;;  %v4371_v27 = vsel %vm4351_vm7, %v4328_v60, %v4370_v14  ;;  %v4374_v58 = vsel %vm4351_vm7, %v4344_v13, %v4373_v56  ;;  %v4366_v36 = vsel %vm4353_vm8, %v4300_v0, %v4365_v32  ;;  %v4369_v43 = vsel %vm4353_vm8, %v4316_v8, %v4368_v59  ;;  %v8872_v57 = vld [vmem:[#allocation3 + $0x38] sm:$0xff]  }
 0x3e1   :  { %v4372_v53 = vsel %vm4353_vm8, %v4332_v34, %v4371_v27  ;;  %v4375_v28 = vsel %vm4353_vm8, %v4348_v6, %v4374_v58  ;;  %4389 = vst.msk [vmem:[#allocation2 + $0xb1] sm:$0xf] %vm4384_vm9, %v4366_v36  ;;  %4390 = vst.msk [vmem:[#allocation2 + $0xc1] sm:$0xf] %vm4384_vm9, %v4369_v43 }
 0x3e2   :  { %4391 = vst.msk [vmem:[#allocation2 + $0xd1] sm:$0xf] %vm4384_vm9, %v4372_v53  ;;  %4392 = vst.msk [vmem:[#allocation2 + $0xe1] sm:$0xf] %vm4384_vm9, %v4375_v28  ;;  %v8882_v28 = vld [vmem:[%s12378_s10 + $0x18] sm:$0xff]  }
 0x3e5   :  { %v8839_v20 = vld [vmem:[#allocation2 + $0x1] ss:$16 sps:$4 sm:$0xff]  }
 0x3e6   :  { %v8840_v11 = vld [vmem:[#allocation2 + $0x21] ss:$16 sps:$4 sm:$0xff]  }
 0x3e7   :  { %v8841_v25 = vld [vmem:[#allocation2] ss:$16 sps:$4 sm:$0xff]   ;;  %v4445_v38 = vpack.c.bf16 %v8840_v11, %v8839_v20  ;;  %v8883_v20 = vld [vmem:[%s12378_s10 + $0x8] sm:$0xff]  }
 0x3e8   :  { %v8842_v22 = vld [vmem:[#allocation2 + $0x20] ss:$16 sps:$4 sm:$0xff]  }
 0x3e9   :  { %v8844_v63 = vld [vmem:[#allocation2 + $0xa1] ss:$16 sps:$4 sm:$0xff]   ;;  %8568 = vmatprep.mubr.msk.bf16.mxu0 %vm1631_vm5, %v4445_v38  ;;  %v4417_v5 = vpack.c.bf16 %v8842_v22, %v8841_v25 }
 0x3ea   :  { %v8845_v21 = vld [vmem:[#allocation2 + $0xc1] ss:$16 sps:$4 sm:$0xff]  }
 0x3eb   :  { %v4446_v46 = vpack.c.bf16 %v8845_v21, %v8844_v63  ;;  %v8846_v16 = vld [vmem:[#allocation2 + $0xa0] ss:$16 sps:$4 sm:$0xff]   ;;  %8574 = vmatprep.mubr.msk.bf16.mxu1 %vm1631_vm5, %v4417_v5 }
 0x3ec   :  { %v8847_v4 = vld [vmem:[#allocation2 + $0xc0] ss:$16 sps:$4 sm:$0xff]  }
 0x3ed   :  { %v8848_v19 = vld [vmem:[#allocation2 + $0x2] ss:$16 sps:$4 sm:$0xff]   ;;  %8569 = vmatmul.mubr.msk.bf16.vlgmr.msra.gmra.mxu0 %vm1631_vm5, %v4446_v46  ;;  %v4418_v47 = vpack.c.bf16 %v8847_v4, %v8846_v16 }
 0x3ee   :  { %v8849_v29 = vld [vmem:[#allocation2 + $0x22] ss:$16 sps:$4 sm:$0xff]   ;;  %5457 = vst.msk [vmem:[#allocation2] sm:$0xff] %vm105_vm1, %v12726_v39  ;;  %8579 = vmatpush3.bf16.msra.mxu0 %v12727_v1 }
 0x3ef   :  { %v8850_v33 = vld [vmem:[#allocation2 + $0x10] ss:$16 sps:$4 sm:$0xff]   ;;  %8575 = vmatmul.mubr.msk.bf16.vlgmr.msra.gmra.mxu1 %vm1631_vm5, %v4418_v47  ;;  %v4596_v62 = vpack.c.bf16 %v8849_v29, %v8848_v19  ;;  %8590 = vmatprep.subr.bf16.mxu0 %v8853_v24 }
 0x3f0   :  { %v8851_v12 = vld [vmem:[#allocation2 + $0x30] ss:$16 sps:$4 sm:$0xff]   ;;  %8585 = vmatpush3.bf16.msra.mxu1 %v12728_v41 }
 0x3f1   :  { %v8854_v18 = vld [vmem:[#allocation2 + $0xa2] ss:$16 sps:$4 sm:$0xff]   ;;  %8580 = vmatprep.mubr.msk.bf16.mxu0 %vm1631_vm5, %v4596_v62  ;;  %v4690_v35 = vpack.c.bf16 %v8851_v12, %v8850_v33  ;;  %8596 = vmatprep.subr.bf16.mxu1 %v8862_v49 }
 0x3f2   :  { %v8855_v54 = vld [vmem:[#allocation2 + $0xc2] ss:$16 sps:$4 sm:$0xff]   ;;  %5477 = vst.msk [vmem:[#allocation2 + $0xa0] sm:$0xff] %vm105_vm1, %v12726_v39 }
 0x3f3   :  { %v8856_v0 = vld [vmem:[#allocation2 + $0xb0] ss:$16 sps:$4 sm:$0xff]   ;;  %8586 = vmatprep.mubr.msk.bf16.mxu1 %vm1631_vm5, %v4690_v35  ;;  %v4597_v23 = vpack.c.bf16 %v8855_v54, %v8854_v18 }
 0x3f4   :  { %v8857_v48 = vld [vmem:[#allocation2 + $0xd0] ss:$16 sps:$4 sm:$0xff]  }
 0x3f5   :  { %v8858_v8 = vld [vmem:[#allocation2 + $0x11] ss:$16 sps:$4 sm:$0xff]   ;;  %8581 = vmatmul.mubr.msk.bf16.vlgmr.msra.gmra.mxu0 %vm1631_vm5, %v4597_v23  ;;  %v4691_v2 = vpack.c.bf16 %v8857_v48, %v8856_v0 }
 0x3f6   :  { %v8859_v17 = vld [vmem:[#allocation2 + $0x31] ss:$16 sps:$4 sm:$0xff]   ;;  %8591 = vmatpush3.bf16.msra.mxu0 %v8853_v24 }
 0x3f7   :  { %v4784_v60 = vpack.c.bf16 %v8859_v17, %v8858_v8  ;;  %v8860_v34 = vld [vmem:[#allocation2 + $0x12] ss:$16 sps:$4 sm:$0xff]   ;;  %8587 = vmatmul.mubr.msk.bf16.vlgmr.msra.gmra.mxu1 %vm1631_vm5, %v4691_v2  ;;  %8602 = vmatprep.subr.bf16.mxu0 %v8863_v52 }
 0x3f8   :  { %v8861_v50 = vld [vmem:[#allocation2 + $0x32] ss:$16 sps:$4 sm:$0xff]   ;;  %5459 = vst.msk [vmem:[#allocation2 + $0x10] sm:$0xff] %vm105_vm1, %v12726_v39  ;;  %8597 = vmatpush3.bf16.msra.mxu1 %v8862_v49 }
 0x3f9   :  { %8592 = vmatprep.mubr.msk.bf16.mxu0 %vm1631_vm5, %v4784_v60  ;;  %v4878_v55 = vpack.c.bf16 %v8861_v50, %v8860_v34  ;;  %v8864_v13 = vld [vmem:[#allocation2 + $0xb1] ss:$16 sps:$4 sm:$0xff]   ;;  %8608 = vmatprep.subr.bf16.mxu1 %v8872_v57 }
 0x3fa   :  { %v8865_v6 = vld [vmem:[#allocation2 + $0xd1] ss:$16 sps:$4 sm:$0xff]  }
 0x3fb   :  { %8598 = vmatprep.mubr.msk.bf16.mxu1 %vm1631_vm5, %v4878_v55  ;;  %v8866_v9 = vld [vmem:[#allocation2 + $0xb2] ss:$16 sps:$4 sm:$0xff]   ;;  %v4785_v61 = vpack.c.bf16 %v8865_v6, %v8864_v13 }
 0x3fc   :  { %v8867_v7 = vld [vmem:[#allocation2 + $0xd2] ss:$16 sps:$4 sm:$0xff]   ;;  %5479 = vst.msk [vmem:[#allocation2 + $0xb0] sm:$0xff] %vm105_vm1, %v12726_v39 }
 0x3fd   :  { %v8868_v30 = vld [vmem:[#allocation2 + $0x20] ss:$16 sps:$4 sm:$0xff]   ;;  %8593 = vmatmul.mubr.msk.bf16.vlgmr.msra.gmra.mxu0 %vm1631_vm5, %v4785_v61  ;;  %v4879_v44 = vpack.c.bf16 %v8867_v7, %v8866_v9 }
 0x3fe   :  { %v8869_v51 = vld [vmem:[#allocation2 + $0x40] ss:$16 sps:$4 sm:$0xff]   ;;  %8603 = vmatpush3.bf16.msra.mxu0 %v8863_v52 }
 0x3ff   :  { %v8870_v15 = vld [vmem:[#allocation2 + $0x21] ss:$16 sps:$4 sm:$0xff]   ;;  %v4972_v31 = vpack.c.bf16 %v8869_v51, %v8868_v30  ;;  %8599 = vmatmul.mubr.msk.bf16.vlgmr.msra.gmra.mxu1 %vm1631_vm5, %v4879_v44  ;;  %8614 = vmatprep.subr.bf16.mxu0 %v8873_v3 }
 0x400   :  { %v8871_v37 = vld [vmem:[#allocation2 + $0x41] ss:$16 sps:$4 sm:$0xff]   ;;  %8609 = vmatpush3.bf16.msra.mxu1 %v8872_v57 }
 0x401   :  { %v8874_v42 = vld [vmem:[#allocation2 + $0xc0] ss:$16 sps:$4 sm:$0xff]   ;;  %8604 = vmatprep.mubr.msk.bf16.mxu0 %vm1631_vm5, %v4972_v31  ;;  %v5066_v26 = vpack.c.bf16 %v8871_v37, %v8870_v15  ;;  %8620 = vmatprep.subr.bf16.mxu1 %v12726_v39 }
 0x402   :  { %v8875_v45 = vld [vmem:[#allocation2 + $0xe0] ss:$16 sps:$4 sm:$0xff]  }
 0x403   :  { %v8876_v10 = vld [vmem:[#allocation2 + $0xc1] ss:$16 sps:$4 sm:$0xff]   ;;  %8610 = vmatprep.mubr.msk.bf16.mxu1 %vm1631_vm5, %v5066_v26  ;;  %v4973_v32 = vpack.c.bf16 %v8875_v45, %v8874_v42 }
 0x404   :  { %v8877_v14 = vld [vmem:[#allocation2 + $0xe1] ss:$16 sps:$4 sm:$0xff]  }
 0x405   :  { %v8878_v56 = vld [vmem:[#allocation2 + $0x22] ss:$16 sps:$4 sm:$0xff]   ;;  %8605 = vmatmul.mubr.msk.bf16.vlgmr.msra.gmra.mxu0 %vm1631_vm5, %v4973_v32  ;;  %v5067_v36 = vpack.c.bf16 %v8877_v14, %v8876_v10 }
 0x406   :  { %v8879_v59 = vld [vmem:[#allocation2 + $0x42] ss:$16 sps:$4 sm:$0xff]   ;;  %5461 = vst.msk [vmem:[#allocation2 + $0x20] sm:$0xff] %vm105_vm1, %v12726_v39  ;;  %5463 = vst.msk [vmem:[#allocation2 + $0x30] sm:$0xff] %vm105_vm1, %v12726_v39  ;;  %8615 = vmatpush3.bf16.msra.mxu0 %v8873_v3 }
 0x407   :  { %5465 = vst.msk [vmem:[#allocation2 + $0x40] sm:$0xff] %vm105_vm1, %v12726_v39  ;;  %5467 = vst.msk [vmem:[#allocation2 + $0x50] sm:$0xff] %vm105_vm1, %v12726_v39  ;;  %v8880_v27 = vld [vmem:[#allocation2 + $0xc2] ss:$16 sps:$4 sm:$0xff]   ;;  %v5160_v43 = vpack.c.bf16 %v8879_v59, %v8878_v56  ;;  %8611 = vmatmul.mubr.msk.bf16.vlgmr.msra.gmra.mxu1 %vm1631_vm5, %v5067_v36  ;;  %8628 = vmatprep.subr.bf16.mxu0 %v12726_v39 }
 0x408   :  { %v8881_v58 = vld [vmem:[#allocation2 + $0xe2] ss:$16 sps:$4 sm:$0xff]   ;;  %6411 = vst.msk [vmem:[#allocation2 + $0x40] sm:$0xff] %vm105_vm1, %v12726_v39  ;;  %6413 = vst.msk [vmem:[#allocation2 + $0x50] sm:$0xff] %vm105_vm1, %v12726_v39  ;;  %8624 = vmatprep.mubr.msk.bf16.mxu1 %vm9055_vm10, %v12726_v39  ;;  %8621 = vmatpush3.bf16.msra.mxu1 %v8882_v28 }
 0x409   :  { %5485 = vst.msk [vmem:[#allocation2 + $0xe0] sm:$0xff] %vm105_vm1, %v12726_v39  ;;  %5487 = vst.msk [vmem:[#allocation2 + $0xf0] sm:$0xff] %vm105_vm1, %v12726_v39  ;;  %8616 = vmatprep.mubr.msk.bf16.mxu0 %vm1631_vm5, %v5160_v43  ;;  %v5161_v53 = vpack.c.bf16 %v8881_v58, %v8880_v27  ;;  %v8884_v11 = vld [vmem:[%s12378_s10 + $0x10] sm:$0xff]   ;;  %v8885_v25 = vld [vmem:[%s12378_s10] sm:$0xff]   ;;  %8622 = vmatprep.subr.bf16.mxu1 %v12726_v39 }
 0x40a   :  { %5481 = vst.msk [vmem:[#allocation2 + $0xc0] sm:$0xff] %vm105_vm1, %v12726_v39  ;;  %5483 = vst.msk [vmem:[#allocation2 + $0xd0] sm:$0xff] %vm105_vm1, %v12726_v39 }
 0x40b   :  { %6431 = vst.msk [vmem:[#allocation2 + $0xe0] sm:$0xff] %vm105_vm1, %v12726_v39  ;;  %6433 = vst.msk [vmem:[#allocation2 + $0xf0] sm:$0xff] %vm105_vm1, %v12726_v39 }
 0x40c   :  { %8623 = vmatpush3.bf16.msra.mxu1 %v8884_v11 }
 0x40d   :  { %8617 = vmatmul.mubr.msk.bf16.vlgmr.msra.gmra.mxu0 %vm1631_vm5, %v5161_v53  ;;  %8636 = vmatprep.subr.bf16.mxu1 %v12726_v39 }
 0x40e   :  { %8632 = vmatprep.mubr.msk.bf16.mxu0 %vm9055_vm10, %v12726_v39  ;;  %8629 = vmatpush3.bf16.msra.mxu0 %v8883_v20 }
 0x40f   :  { %8630 = vmatprep.subr.bf16.mxu0 %v12726_v39 }
 0x412   :  { %8631 = vmatpush3.bf16.msra.mxu0 %v8885_v25 }
 0x413   :  { %8644 = vmatprep.subr.bf16.mxu0 %v12726_v39 }
 0x4ad   :  { %v8570_v38 = vpop.f32.mrf.mxu0 }
 0x4af   :  { %v8576_v22 = vpop.f32.mrf.mxu1  ;;  %v4496_v63 = vpop.f32.mrf.mxu0 }
 0x4b0   :  { %v4566_v18 = vadd.f32 %v8576_v22, %v8570_v38 }
 0x4b1   :  { %v4557_v21 = vpop.f32.mrf.mxu1  ;;  %v8571_v24 = vpop.f32.mrf.mxu0 }
 0x4b2   :  { %v4558_v62 = vadd.f32 %v4557_v21, %v4496_v63 }
 0x4b3   :  { %v8577_v5 = vpop.f32.mrf.mxu1  ;;  %v4499_v46 = vpop.f32.mrf.mxu0 }
 0x4b4   :  { %v4569_v0 = vadd.f32 %v8577_v5, %v8571_v24 }
 0x4b5   :  { %v4560_v16 = vpop.f32.mrf.mxu1  ;;  %v8582_v4 = vpop.f32.mrf.mxu0 }
 0x4b6   :  { %v4561_v48 = vadd.f32 %v4560_v16, %v4499_v46  ;;  %v4664_v23 = vadd.f32 %v8582_v4, %v4566_v18 }
 0x4b7   :  { %v8588_v49 = vpop.f32.mrf.mxu1  ;;  %v4647_v19 = vpop.f32.mrf.mxu0 }
 0x4b8   :  { %v4662_v54 = vadd.f32 %v4647_v19, %v4558_v62  ;;  %v4758_v55 = vadd.f32 %v8588_v49, %v4664_v23 }
 0x4b9   :  { %v4741_v47 = vpop.f32.mrf.mxu1  ;;  %v8583_v29 = vpop.f32.mrf.mxu0 }
 0x4ba   :  { %v4756_v17 = vadd.f32 %v4741_v47, %v4662_v54  ;;  %v4665_v2 = vadd.f32 %v8583_v29, %v4569_v0 }
 0x4bb   :  { %v8589_v1 = vpop.f32.mrf.mxu1  ;;  %v4650_v33 = vpop.f32.mrf.mxu0 }
 0x4bc   :  { %v4663_v60 = vadd.f32 %v4650_v33, %v4561_v48  ;;  %v4759_v9 = vadd.f32 %v8589_v1, %v4665_v2 }
 0x4bd   :  { %v4744_v12 = vpop.f32.mrf.mxu1  ;;  %v8594_v41 = vpop.f32.mrf.mxu0 }
 0x4be   :  { %v4757_v7 = vadd.f32 %v4744_v12, %v4663_v60  ;;  %v4852_v61 = vadd.f32 %v8594_v41, %v4758_v55 }
 0x4bf   :  { %v8600_v35 = vpop.f32.mrf.mxu1  ;;  %v4835_v52 = vpop.f32.mrf.mxu0 }
 0x4c0   :  { %v4850_v13 = vadd.f32 %v4835_v52, %v4756_v17  ;;  %v4946_v45 = vadd.f32 %v8600_v35, %v4852_v61 }
 0x4c1   :  { %v4929_v57 = vpop.f32.mrf.mxu1  ;;  %v8595_v8 = vpop.f32.mrf.mxu0 }
 0x4c2   :  { %v4944_v44 = vadd.f32 %v4929_v57, %v4850_v13  ;;  %v4853_v15 = vadd.f32 %v8595_v8, %v4759_v9 }
 0x4c3   :  { %v8601_v34 = vpop.f32.mrf.mxu1  ;;  %v4838_v50 = vpop.f32.mrf.mxu0 }
 0x4c4   :  { %v4851_v31 = vadd.f32 %v4838_v50, %v4757_v7  ;;  %v4947_v14 = vadd.f32 %v8601_v34, %v4853_v15  ;;  %v5266_v15 = vld [vmem:[%s12376_s8] sm:$0x1] }
 0x4c5   :  { %v4932_v6 = vpop.f32.mrf.mxu1  ;;  %v8606_v3 = vpop.f32.mrf.mxu0 }
 0x4c6   :  { %v4945_v56 = vadd.f32 %v4932_v6, %v4851_v31  ;;  %v5040_v32 = vadd.f32 %v8606_v3, %v4946_v45 }
 0x4c7   :  { %v8612_v30 = vpop.f32.mrf.mxu1  ;;  %v5023_v51 = vpop.f32.mrf.mxu0 }
 0x4c8   :  { %v5038_v26 = vadd.f32 %v5023_v51, %v4944_v44  ;;  %v5134_v28 = vadd.f32 %v8612_v30, %v5040_v32 }
 0x4c9   :  { %v5117_v37 = vpop.f32.mrf.mxu1  ;;  %v8607_v42 = vpop.f32.mrf.mxu0 }
 0x4ca   :  { %v5132_v58 = vadd.f32 %v5117_v37, %v5038_v26  ;;  %v5041_v36 = vadd.f32 %v8607_v42, %v4947_v14  ;;  %v5270_v42 = vld [vmem:[%s12377_s9] sm:$0x1] }
 0x4cb   :  { %v5026_v10 = vpop.f32.mrf.mxu0  ;;  %v8613_v59 = vpop.f32.mrf.mxu1 }
 0x4cc   :  { %v5039_v43 = vadd.f32 %v5026_v10, %v4945_v56  ;;  %v5135_v38 = vadd.f32 %v8613_v59, %v5041_v36 }
 0x4cd   :  { %v8618_v27 = vpop.f32.mrf.mxu0  ;;  %v5120_v11 = vpop.f32.mrf.mxu1 }
 0x4ce   :  { %v5133_v22 = vadd.f32 %v5120_v11, %v5039_v43  ;;  %v5228_v63 = vadd.f32 %v8618_v27, %v5134_v28 }
 0x4cf   :  { %v5211_v53 = vpop.f32.mrf.mxu0 }
 0x4d0   :  { %v5226_v20 = vadd.f32 %v5211_v53, %v5132_v58  ;;  %v5247_v16 = vmul.f32 %v5228_v63, %v5228_v63  ;;  %v5234_v29 = vsel %vm5230_vm11, %v5228_v63, 0.0 }
 0x4d1   :  { %v8619_v25 = vpop.f32.mrf.mxu0 }
 0x4d2   :  { %v5245_v24 = vmul.f32 %v5226_v20, %v5226_v20  ;;  %v5229_v5 = vadd.f32 %v8619_v25, %v5135_v38  ;;  %v5231_v4 = vsel %vm5230_vm11, %v5226_v20, 0.0  ;;  %v5252_v18 = vsel %vm5230_vm11, %v5247_v16, 0.0 }
 0x4d3   :  { %v5214_v21 = vpop.f32.mrf.mxu0 }
 0x4d4   :  { %v5227_v46 = vadd.f32 %v5214_v21, %v5133_v22  ;;  %v5249_v1 = vsel %vm5230_vm11, %v5245_v24, 0.0  ;;  %v5248_v33 = vmul.f32 %v5229_v5, %v5229_v5  ;;  %v5236_v54 = vsel %vm5230_vm11, %v5229_v5, 0.0  ;;  %v12729_v21 = vld [vmem:[#allocation36_spill] sm:$0xff] }
 0x4d6   :  { %v5232_v49 = vsel %vm5230_vm11, %v5227_v46, 0.0  ;;  %v5246_v19 = vmul.f32 %v5227_v46, %v5227_v46  ;;  %v5254_v0 = vsel %vm5230_vm11, %v5248_v33, 0.0 }
 0x4d7   :  { %v5233_v47 = vadd.f32 %v5232_v49, %v5231_v4 }
 0x4d8   :  { %v5250_v62 = vsel %vm5230_vm11, %v5246_v19, 0.0 }
 0x4d9   :  { %v5235_v12 = vadd.f32 %v5234_v29, %v5233_v47  ;;  %v5251_v41 = vadd.f32 %v5250_v62, %v5249_v1 }
 0x4db   :  { %v5237_v35 = vadd.f32 %v5236_v54, %v5235_v12  ;;  %v5253_v52 = vadd.f32 %v5252_v18, %v5251_v41 }
 0x4dd   :  { %v5238_v48 = vrot.slane %v5237_v35, 4  ;;  %v5255_v23 = vadd.f32 %v5254_v0, %v5253_v52 }
 0x4df   :  { %v5239_v57 = vadd.f32 %v5238_v48, %v5237_v35  ;;  %v5256_v8 = vrot.slane %v5255_v23, 4 }
 0x4e1   :  { %v5240_v17 = vrot.slane %v5239_v57, 2  ;;  %v5257_v2 = vadd.f32 %v5256_v8, %v5255_v23 }
 0x4e3   :  { %v5241_v60 = vadd.f32 %v5240_v17, %v5239_v57  ;;  %v5258_v34 = vrot.slane %v5257_v2, 2 }
 0x4e5   :  { %v5242_v50 = vrot.slane %v5241_v60, 1  ;;  %v5259_v55 = vadd.f32 %v5258_v34, %v5257_v2 }
 0x4e7   :  { %v5243_v13 = vadd.f32 %v5242_v50, %v5241_v60  ;;  %v5260_v6 = vrot.slane %v5259_v55, 1 }
 0x4e9   :  { %v5244_v3 = vmul.f32 0.03125, %v5243_v13  ;;  %v5261_v9 = vadd.f32 %v5260_v6, %v5259_v55 }
 0x4eb   :  { %v5262_v7 = vmul.f32 0.03125, %v5261_v9  ;;  %v5263_v61 = vmul.f32 %v5244_v3, %v5244_v3 }
 0x4ed   :  { %v5264_v30 = vsub.f32 %v5262_v7, %v5263_v61 }
 0x4ef   :  { %v5265_v51 = vmax.f32 %v5264_v30, 0.0 }
 0x4f1   :  { %v5267_v44 = vadd.f32 1e-05, %v5265_v51 }
 0x4f3   :  { %8976 = vrsqrt.f32 %v5267_v44 }
 0x500   :  { %v8977_v31 = vpop.eup %8976 }
 0x501   :  { %v5269_v37 = vmul.f32 %v8977_v31, %v5266_v15 }
 0x503   :  { %v5271_v45 = vmul.f32 %v5269_v37, %v5244_v3  ;;  %v5277_v26 = vrot.slane %v5269_v37, %v12725_v40 }
 0x505   :  { %v5272_v10 = vsub.f32 %v5270_v42, %v5271_v45  ;;  %v5279_v14 = vmul.f32 %v5277_v26, %v5226_v20  ;;  %v5280_v56 = vmul.f32 %v5277_v26, %v5227_v46  ;;  %v5281_v32 = vmul.f32 %v5277_v26, %v5228_v63 }
 0x506   :  { %v5282_v59 = vmul.f32 %v5277_v26, %v5229_v5 }
 0x507   :  { %v5287_v27 = vrot.slane %v5272_v10, %v12725_v40 }
 0x509   :  { %v5289_v58 = vadd.f32 %v5287_v27, %v5279_v14  ;;  %v5290_v36 = vadd.f32 %v5287_v27, %v5280_v56  ;;  %v5291_v43 = vadd.f32 %v5287_v27, %v5281_v32  ;;  %v5292_v53 = vadd.f32 %v5287_v27, %v5282_v59 }
 0x50b   :  { %v5293_v28 = vmax.f32 %v5289_v58, 0.0  ;;  %v5294_v11 = vmax.f32 %v5290_v36, 0.0  ;;  %v5295_v25 = vmax.f32 %v5291_v43, 0.0  ;;  %v5296_v38 = vmax.f32 %v5292_v53, 0.0 }
 0x50d   :  { %v5301_v22 = vcombine.high %v5293_v28, %v5293_v28  ;;  %v5308_v24 = vrot.slane %v5293_v28, %v12729_v21  ;;  %v5318_v16 = vcombine.high %v5294_v11, %v5294_v11  ;;  %v5325_v4 = vrot.slane %v5294_v11, %v12729_v21 }
 0x50e   :  { %v5335_v20 = vcombine.high %v5295_v25, %v5295_v25  ;;  %v5342_v63 = vrot.slane %v5295_v25, %v12729_v21  ;;  %v5352_v5 = vcombine.high %v5296_v38, %v5296_v38  ;;  %v5359_v46 = vrot.slane %v5296_v38, %v12729_v21 }
 0x50f   :  { %v5315_v49 = vrot.slane %v5301_v22, %v12729_v21  ;;  %v5316_v19 = vcombine.high %v5308_v24, %v5308_v24  ;;  %v5332_v47 = vrot.slane %v5318_v16, %v12729_v21  ;;  %v5333_v29 = vcombine.high %v5325_v4, %v5325_v4 }
 0x510   :  { %v5349_v1 = vrot.slane %v5335_v20, %v12729_v21  ;;  %v5350_v33 = vcombine.high %v5342_v63, %v5342_v63  ;;  %v5366_v62 = vrot.slane %v5352_v5, %v12729_v21  ;;  %v5367_v12 = vcombine.high %v5359_v46, %v5359_v46 }
 0x511   :  { %v5317_v41 = vcombine.high %v5315_v49, %v5315_v49  ;;  %v5334_v18 = vcombine.high %v5332_v47, %v5332_v47  ;;  %v7846_v54 = vrot.slane %v5308_v24, 9  ;;  %v7847_v35 = vrot.slane %v5316_v19, 9 }
 0x512   :  { %v5351_v52 = vcombine.high %v5349_v1, %v5349_v1  ;;  %v5368_v0 = vcombine.high %v5366_v62, %v5366_v62  ;;  %v7848_v48 = vrot.slane %v5315_v49, 9  ;;  %v7850_v23 = vrot.slane %v5325_v4, 9 }
 0x513   :  { %v7849_v57 = vrot.slane %v5317_v41, 9  ;;  %v7851_v8 = vrot.slane %v5333_v29, 9  ;;  %v7852_v17 = vrot.slane %v5332_v47, 9  ;;  %v7853_v2 = vrot.slane %v5334_v18, 9 }
 0x514   :  { %v7854_v60 = vrot.slane %v5342_v63, 9  ;;  %v7855_v34 = vrot.slane %v5350_v33, 9  ;;  %v7856_v50 = vrot.slane %v5349_v1, 9  ;;  %v7857_v55 = vrot.slane %v5351_v52, 9 }
 0x515   :  { %v7858_v13 = vrot.slane %v5359_v46, 9  ;;  %v7859_v6 = vrot.slane %v5367_v12, 9  ;;  %v7860_v3 = vrot.slane %v5366_v62, 9  ;;  %v7861_v9 = vrot.slane %v5368_v0, 9 }
 0x516   :  { %v5433_v7 = vmax.f32 %v5308_v24, %v7846_v54  ;;  %v5434_v61 = vmax.f32 %v5316_v19, %v7847_v35  ;;  %v5435_v30 = vmax.f32 %v5315_v49, %v7848_v48  ;;  %v5436_v51 = vmax.f32 %v5317_v41, %v7849_v57 }
 0x517   :  { %v5437_v44 = vmax.f32 %v5325_v4, %v7850_v23  ;;  %v5438_v15 = vmax.f32 %v5333_v29, %v7851_v8  ;;  %v5439_v31 = vmax.f32 %v5332_v47, %v7852_v17  ;;  %v5440_v37 = vmax.f32 %v5334_v18, %v7853_v2  ;;  %v8891_v23 = vld [vmem:[%s12378_s10 + $0x38] sm:$0xff]  }
 0x518   :  { %v5441_v42 = vmax.f32 %v5342_v63, %v7854_v60  ;;  %v5442_v45 = vmax.f32 %v5350_v33, %v7855_v34  ;;  %v5443_v26 = vmax.f32 %v5349_v1, %v7856_v50  ;;  %v5444_v10 = vmax.f32 %v5351_v52, %v7857_v55  ;;  %v8892_v55 = vld [vmem:[%s12378_s10 + $0x20] sm:$0xff]  }
 0x519   :  { %v5445_v14 = vmax.f32 %v5359_v46, %v7858_v13  ;;  %v5446_v56 = vmax.f32 %v5367_v12, %v7859_v6  ;;  %v5447_v32 = vmax.f32 %v5366_v62, %v7860_v3  ;;  %v5448_v59 = vmax.f32 %v5368_v0, %v7861_v9  ;;  %v8890_v0 = vld [vmem:[%s12378_s10 + $0x28] sm:$0xff]   ;;  %v8893_v9 = vld [vmem:[%s12378_s10 + $0x30] sm:$0xff]  }
 0x51a   :  { %v5449_v27 = vmax.f32 %v5433_v7, %v5435_v30  ;;  %v5450_v58 = vmax.f32 %v5434_v61, %v5436_v51  ;;  %v5451_v36 = vmax.f32 %v5437_v44, %v5439_v31  ;;  %v5452_v43 = vmax.f32 %v5438_v15, %v5440_v37  ;;  %v8898_v15 = vld [vmem:[%s12378_s10 + $0x48] sm:$0xff]  }
 0x51b   :  { %v5453_v53 = vmax.f32 %v5441_v42, %v5443_v26  ;;  %v5454_v28 = vmax.f32 %v5442_v45, %v5444_v10  ;;  %v5455_v11 = vmax.f32 %v5445_v14, %v5447_v32  ;;  %v5456_v25 = vmax.f32 %v5446_v56, %v5448_v59  ;;  %v8899_v10 = vld [vmem:[%s12378_s10 + $0x58] sm:$0xff]  }
 0x51c   :  { %v5508_v38 = vrot.slane %v5449_v27, %v12725_v40  ;;  %v5512_v22 = vrot.slane %v5450_v58, %v12725_v40  ;;  %v5516_v24 = vrot.slane %v5451_v36, %v12725_v40  ;;  %v5520_v16 = vrot.slane %v5452_v43, %v12725_v40  ;;  %v8900_v36 = vld [vmem:[%s12378_s10 + $0x40] sm:$0xff]  }
 0x51d   :  { %v5524_v4 = vrot.slane %v5453_v53, %v12725_v40  ;;  %v5528_v20 = vrot.slane %v5454_v28, %v12725_v40  ;;  %v5532_v63 = vrot.slane %v5455_v11, %v12725_v40  ;;  %v5536_v5 = vrot.slane %v5456_v25, %v12725_v40  ;;  %v8901_v28 = vld [vmem:[%s12378_s10 + $0x50] sm:$0xff]   ;;  %v8906_v25 = vld [vmem:[%s12378_s10 + $0x68] sm:$0xff]  }
 0x51e   :  { %v5537_v46 = vsel %vm4349_vm6, %v5512_v22, %v5508_v38  ;;  %v5538_v49 = vsel %vm4349_vm6, %v5520_v16, %v5516_v24  ;;  %v8907_v16 = vld [vmem:[%s12378_s10 + $0x78] sm:$0xff]  }
 0x51f   :  { %v5539_v19 = vsel %vm4349_vm6, %v5528_v20, %v5524_v4  ;;  %v5540_v47 = vsel %vm4349_vm6, %v5536_v5, %v5532_v63  ;;  %5546 = vst.msk [vmem:[#allocation2 + $0x11] sm:$0x3] %vm5545_vm12, %v5537_v46  ;;  %5547 = vst.msk [vmem:[#allocation2 + $0x21] sm:$0x3] %vm5545_vm12, %v5538_v49  ;;  %v8908_v4 = vld [vmem:[%s12378_s10 + $0x60] sm:$0xff]   ;;  %v8909_v49 = vld [vmem:[%s12378_s10 + $0x70] sm:$0xff]  }
 0x520   :  { %5548 = vst.msk [vmem:[#allocation2 + $0xb1] sm:$0x3] %vm5545_vm12, %v5539_v19  ;;  %5549 = vst.msk [vmem:[#allocation2 + $0xc1] sm:$0x3] %vm5545_vm12, %v5540_v47  ;;  %v8914_v47 = vld [vmem:[%s12378_s10 + $0x88] sm:$0xff]  }
 0x526   :  { %v8886_v29 = vld [vmem:[#allocation2 + $0x1] ss:$16 sps:$4 sm:$0x33]  }
 0x527   :  { %v8887_v1 = vld [vmem:[#allocation2 + $0xa1] ss:$16 sps:$4 sm:$0x33]   ;;  %v5597_v33 = vrot.slane %v8886_v29, %v12729_v21 }
 0x528   :  { %v5604_v62 = vrot.slane %v8887_v1, %v12729_v21  ;;  %v8888_v12 = vld [vmem:[#allocation2] ss:$16 sps:$4 sm:$0x33]   ;;  %v8894_v18 = vld [vmem:[#allocation2 + $0x2] ss:$16 sps:$4 sm:$0x33]  }
 0x529   :  { %v8889_v41 = vld [vmem:[#allocation2 + $0xa0] ss:$16 sps:$4 sm:$0x33]   ;;  %v5566_v35 = vrot.slane %v8888_v12, %v12729_v21  ;;  %v8895_v48 = vld [vmem:[#allocation2 + $0xa2] ss:$16 sps:$4 sm:$0x33]   ;;  %v5739_v17 = vrot.slane %v8894_v18, %v12729_v21 }
 0x52a   :  { %v5605_v54 = vcombine.low %v5597_v33, %v5604_v62  ;;  %v5573_v52 = vrot.slane %v8889_v41, %v12729_v21  ;;  %6403 = vst.msk [vmem:[#allocation2] sm:$0xff] %vm105_vm1, %v12726_v39  ;;  %6423 = vst.msk [vmem:[#allocation2 + $0xa0] sm:$0xff] %vm105_vm1, %v12726_v39  ;;  %v5746_v2 = vrot.slane %v8895_v48, %v12729_v21  ;;  %v8896_v60 = vld [vmem:[#allocation2 + $0x10] ss:$16 sps:$4 sm:$0x33]  }
 0x52b   :  { %v8897_v34 = vld [vmem:[#allocation2 + $0xb0] ss:$16 sps:$4 sm:$0x33]   ;;  %v5827_v13 = vrot.slane %v8896_v60, %v12729_v21  ;;  %v8904_v30 = vld [vmem:[#allocation2 + $0x12] ss:$16 sps:$4 sm:$0x33]  }
 0x52c   :  { %v5607_v57 = vpack.c.bf16 %v5605_v54, %v5605_v54  ;;  %v5574_v8 = vcombine.low %v5566_v35, %v5573_v52  ;;  %v5834_v6 = vrot.slane %v8897_v34, %v12729_v21  ;;  %v8902_v3 = vld [vmem:[#allocation2 + $0x11] ss:$16 sps:$4 sm:$0x33]   ;;  %v5747_v61 = vcombine.low %v5739_v17, %v5746_v2  ;;  %v8920_v52 = vld [vmem:[#allocation6 + $0x30] sm:$0xff]  }
 0x52d   :  { %v8903_v7 = vld [vmem:[#allocation2 + $0xb1] ss:$16 sps:$4 sm:$0x33]   ;;  %6405 = vst.msk [vmem:[#allocation2 + $0x10] sm:$0xff] %vm105_vm1, %v12726_v39  ;;  %v5915_v37 = vrot.slane %v8902_v3, %v12729_v21  ;;  %v6003_v59 = vrot.slane %v8904_v30, %v12729_v21 }
 0x52e   :  { %8625 = vmatmul.mubr.msk.bf16.vlgmr.msra.gmra.mxu1 %vm5230_vm11, %v5607_v57  ;;  %v5576_v50 = vpack.c.bf16 %v5574_v8, %v5574_v8  ;;  %v8905_v51 = vld [vmem:[#allocation2 + $0xb2] ss:$16 sps:$4 sm:$0x33]   ;;  %v5835_v44 = vcombine.low %v5827_v13, %v5834_v6  ;;  %v5749_v31 = vpack.c.bf16 %v5747_v61, %v5747_v61  ;;  %v5922_v42 = vrot.slane %v8903_v7, %v12729_v21  ;;  %v8910_v45 = vld [vmem:[#allocation2 + $0x20] ss:$16 sps:$4 sm:$0x33]  }
 0x52f   :  { %8637 = vmatpush3.bf16.msra.mxu1 %v8890_v0  ;;  %8640 = vmatprep.mubr.msk.bf16.mxu1 %vm9055_vm10, %v12726_v39  ;;  %6425 = vst.msk [vmem:[#allocation2 + $0xb0] sm:$0xff] %vm105_vm1, %v12726_v39  ;;  %v8912_v26 = vld [vmem:[#allocation2 + $0x21] ss:$16 sps:$4 sm:$0x33]   ;;  %v6010_v27 = vrot.slane %v8905_v51, %v12729_v21  ;;  %v6091_v22 = vrot.slane %v8910_v45, %v12729_v21  ;;  %v8921_v0 = vld [vmem:[#allocation6 + $0x10] sm:$0xff]   ;;  %v8924_v57 = vld [vmem:[#allocation6 + $0x20] sm:$0xff]  }
 0x530   :  { %8633 = vmatmul.mubr.msk.bf16.vlgmr.msra.gmra.mxu0 %vm5230_vm11, %v5576_v50  ;;  %8638 = vmatprep.subr.bf16.mxu1 %v12726_v39  ;;  %v8911_v14 = vld [vmem:[#allocation2 + $0xc0] ss:$16 sps:$4 sm:$0x33]   ;;  %v5837_v32 = vpack.c.bf16 %v5835_v44, %v5835_v44  ;;  %v8916_v58 = vld [vmem:[#allocation2 + $0x22] ss:$16 sps:$4 sm:$0x33]   ;;  %v5923_v53 = vcombine.low %v5915_v37, %v5922_v42  ;;  %v6179_v63 = vrot.slane %v8912_v26, %v12729_v21 }
 0x531   :  { %8645 = vmatpush3.bf16.msra.mxu0 %v8891_v23  ;;  %8648 = vmatprep.mubr.msk.bf16.mxu0 %vm9055_vm10, %v12726_v39  ;;  %v8913_v56 = vld [vmem:[#allocation2 + $0xc1] ss:$16 sps:$4 sm:$0x33]   ;;  %6407 = vst.msk [vmem:[#allocation2 + $0x20] sm:$0xff] %vm105_vm1, %v12726_v39  ;;  %6409 = vst.msk [vmem:[#allocation2 + $0x30] sm:$0xff] %vm105_vm1, %v12726_v39  ;;  %v6011_v11 = vcombine.low %v6003_v59, %v6010_v27  ;;  %v6098_v24 = vrot.slane %v8911_v14, %v12729_v21  ;;  %v8925_v8 = vld [vmem:[#allocation6] sm:$0xff]  }
 0x532   :  { %8646 = vmatprep.subr.bf16.mxu0 %v12726_v39  ;;  %v8917_v43 = vld [vmem:[#allocation2 + $0xc2] ss:$16 sps:$4 sm:$0x33]   ;;  %v5925_v38 = vpack.c.bf16 %v5923_v53, %v5923_v53  ;;  %v6186_v5 = vrot.slane %v8913_v56, %v12729_v21  ;;  %v6267_v1 = vrot.slane %v8916_v58, %v12729_v21 }
 0x533   :  { %8639 = vmatpush3.bf16.msra.mxu1 %v8892_v55  ;;  %6427 = vst.msk [vmem:[#allocation2 + $0xc0] sm:$0xff] %vm105_vm1, %v12726_v39  ;;  %6429 = vst.msk [vmem:[#allocation2 + $0xd0] sm:$0xff] %vm105_vm1, %v12726_v39  ;;  %v6013_v20 = vpack.c.bf16 %v6011_v11, %v6011_v11  ;;  %v6099_v46 = vcombine.low %v6091_v22, %v6098_v24  ;;  %v6274_v33 = vrot.slane %v8917_v43, %v12729_v21  ;;  %v8915_v12 = vld [vmem:[%s12378_s10 + $0x80] sm:$0xff]   ;;  %v8922_v48 = vld [vmem:[#allocation6 + $0x28] sm:$0xff]  }
 0x534   :  { %8652 = vmatprep.subr.bf16.mxu1 %v12726_v39  ;;  %v6187_v19 = vcombine.low %v6179_v63, %v6186_v5  ;;  %v8918_v54 = vld [vmem:[#allocation6 + $0x38] sm:$0xff]   ;;  %v8923_v23 = vld [vmem:[#allocation6 + $0x8] sm:$0xff]  }
 0x535   :  { %8647 = vmatpush3.bf16.msra.mxu0 %v8893_v9  ;;  %v6101_v29 = vpack.c.bf16 %v6099_v46, %v6099_v46  ;;  %v6275_v41 = vcombine.low %v6267_v1, %v6274_v33  ;;  %v8919_v35 = vld [vmem:[#allocation6 + $0x18] sm:$0xff]  }
 0x536   :  { %8641 = vmatmul.mubr.msk.bf16.vlgmr.msra.gmra.mxu1 %vm5230_vm11, %v5749_v31  ;;  %8660 = vmatprep.subr.bf16.mxu0 %v12726_v39  ;;  %v6189_v62 = vpack.c.bf16 %v6187_v19, %v6187_v19 }
 0x537   :  { %8653 = vmatpush3.bf16.msra.mxu1 %v8898_v15  ;;  %8656 = vmatprep.mubr.msk.bf16.mxu1 %vm9055_vm10, %v12726_v39  ;;  %v6277_v18 = vpack.c.bf16 %v6275_v41, %v6275_v41 }
 0x538   :  { %8649 = vmatmul.mubr.msk.bf16.vlgmr.msra.gmra.mxu0 %vm5230_vm11, %v5837_v32  ;;  %8654 = vmatprep.subr.bf16.mxu1 %v12726_v39 }
 0x539   :  { %8661 = vmatpush3.bf16.msra.mxu0 %v8899_v10  ;;  %8664 = vmatprep.mubr.msk.bf16.mxu0 %vm9055_vm10, %v12726_v39 }
 0x53a   :  { %8662 = vmatprep.subr.bf16.mxu0 %v12726_v39 }
 0x53b   :  { %8655 = vmatpush3.bf16.msra.mxu1 %v8900_v36 }
 0x53c   :  { %8668 = vmatprep.subr.bf16.mxu1 %v12726_v39 }
 0x53d   :  { %8663 = vmatpush3.bf16.msra.mxu0 %v8901_v28 }
 0x53e   :  { %8657 = vmatmul.mubr.msk.bf16.vlgmr.msra.gmra.mxu1 %vm5230_vm11, %v5925_v38  ;;  %8676 = vmatprep.subr.bf16.mxu0 %v12726_v39 }
 0x53f   :  { %8669 = vmatpush3.bf16.msra.mxu1 %v8906_v25  ;;  %8672 = vmatprep.mubr.msk.bf16.mxu1 %vm9055_vm10, %v12726_v39 }
 0x540   :  { %8665 = vmatmul.mubr.msk.bf16.vlgmr.msra.gmra.mxu0 %vm5230_vm11, %v6013_v20  ;;  %8670 = vmatprep.subr.bf16.mxu1 %v12726_v39 }
 0x541   :  { %8677 = vmatpush3.bf16.msra.mxu0 %v8907_v16  ;;  %8680 = vmatprep.mubr.msk.bf16.mxu0 %vm9055_vm10, %v12726_v39 }
 0x542   :  { %8678 = vmatprep.subr.bf16.mxu0 %v12726_v39 }
 0x543   :  { %8671 = vmatpush3.bf16.msra.mxu1 %v8908_v4 }
 0x544   :  { %8684 = vmatprep.subr.bf16.mxu1 %v12726_v39 }
 0x545   :  { %8679 = vmatpush3.bf16.msra.mxu0 %v8909_v49 }
 0x546   :  { %8673 = vmatmul.mubr.msk.bf16.vlgmr.msra.gmra.mxu1 %vm5230_vm11, %v6101_v29  ;;  %8692 = vmatprep.subr.bf16.mxu0 %v12726_v39 }
 0x547   :  { %8685 = vmatpush3.bf16.msra.mxu1 %v8914_v47  ;;  %8688 = vmatprep.mubr.msk.bf16.mxu1 %vm9055_vm10, %v12726_v39 }
 0x548   :  { %8681 = vmatmul.mubr.msk.bf16.vlgmr.msra.gmra.mxu0 %vm5230_vm11, %v6189_v62  ;;  %8686 = vmatprep.subr.bf16.mxu1 %v12726_v39 }
 0x549   :  { %8700 = vmatprep.mubr.msk.bf16.mxu0 %vm9055_vm10, %v12726_v39  ;;  %8693 = vmatpush3.bf16.msra.mxu0 %v8918_v54 }
 0x54a   :  { %8694 = vmatprep.subr.bf16.mxu0 %v12726_v39 }
 0x54b   :  { %8687 = vmatpush3.bf16.msra.mxu1 %v8915_v12 }
 0x54c   :  { %8704 = vmatprep.subr.bf16.mxu1 %v12726_v39 }
 0x54d   :  { %8695 = vmatpush3.bf16.msra.mxu0 %v8920_v52 }
 0x54e   :  { %8689 = vmatmul.mubr.msk.bf16.vlgmr.msra.gmra.mxu1 %vm5230_vm11, %v6277_v18  ;;  %8696 = vmatprep.subr.bf16.mxu0 %v12726_v39 }
 0x54f   :  { %8712 = vmatprep.mubr.msk.bf16.mxu1 %vm9055_vm10, %v12726_v39  ;;  %8705 = vmatpush3.bf16.msra.mxu1 %v8919_v35 }
 0x550   :  { %8706 = vmatprep.subr.bf16.mxu1 %v12726_v39 }
 0x551   :  { %8697 = vmatpush3.bf16.msra.mxu0 %v8922_v48 }
 0x552   :  { %8698 = vmatprep.subr.bf16.mxu0 %v12726_v39 }
 0x553   :  { %8707 = vmatpush3.bf16.msra.mxu1 %v8921_v0 }
 0x554   :  { %8708 = vmatprep.subr.bf16.mxu1 %v12726_v39 }
 0x555   :  { %8699 = vmatpush3.bf16.msra.mxu0 %v8924_v57 }
 0x556   :  { %8716 = vmatprep.subr.bf16.mxu0 %v12726_v39 }
 0x557   :  { %8709 = vmatpush3.bf16.msra.mxu1 %v8923_v23 }
 0x558   :  { %8710 = vmatprep.subr.bf16.mxu1 %v12726_v39 }
 0x55b   :  { %8711 = vmatpush3.bf16.msra.mxu1 %v8925_v8 }
 0x55c   :  { %8728 = vmatprep.subr.bf16.mxu1 %v12726_v39 }
 0x5ee   :  { %v5662_v17 = vpop.f32.mrf.mxu1 }
 0x5f0   :  { %v5717_v2 = vpop.f32.mrf.mxu0  ;;  %v8626_v60 = vpop.f32.mrf.mxu1 }
 0x5f1   :  { %v5718_v51 = vadd.f32 %v5717_v2, %v5662_v17 }
 0x5f2   :  { %v8634_v34 = vpop.f32.mrf.mxu0  ;;  %v5665_v50 = vpop.f32.mrf.mxu1 }
 0x5f3   :  { %v6359_v50 = vld [vmem:[%s12379_s11] sm:$0x1] }
 0x5f4   :  { %v5720_v55 = vpop.f32.mrf.mxu0  ;;  %v8627_v13 = vpop.f32.mrf.mxu1 }
 0x5f6   :  { %v8635_v6 = vpop.f32.mrf.mxu0  ;;  %v5804_v3 = vpop.f32.mrf.mxu1 }
 0x5f7   :  { %v5810_v31 = vadd.f32 %v5804_v3, %v5718_v51  ;;  %v6363_v6 = vld [vmem:[%s12380_s12] sm:$0x1] }
 0x5f8   :  { %v5892_v9 = vpop.f32.mrf.mxu0  ;;  %v8642_v7 = vpop.f32.mrf.mxu1 }
 0x5f9   :  { %v5898_v10 = vadd.f32 %v5892_v9, %v5810_v31 }
 0x5fa   :  { %v8650_v61 = vpop.f32.mrf.mxu0  ;;  %v5807_v30 = vpop.f32.mrf.mxu1 }
 0x5fc   :  { %v5895_v44 = vpop.f32.mrf.mxu0  ;;  %v8643_v15 = vpop.f32.mrf.mxu1 }
 0x5fe   :  { %v8651_v37 = vpop.f32.mrf.mxu0  ;;  %v5980_v42 = vpop.f32.mrf.mxu1 }
 0x5ff   :  { %v5986_v32 = vadd.f32 %v5980_v42, %v5898_v10 }
 0x600   :  { %v6068_v45 = vpop.f32.mrf.mxu0  ;;  %v8658_v26 = vpop.f32.mrf.mxu1 }
 0x601   :  { %v6074_v43 = vadd.f32 %v6068_v45, %v5986_v32 }
 0x602   :  { %v8666_v14 = vpop.f32.mrf.mxu0  ;;  %v5983_v56 = vpop.f32.mrf.mxu1 }
 0x604   :  { %v6071_v59 = vpop.f32.mrf.mxu0  ;;  %v8659_v27 = vpop.f32.mrf.mxu1 }
 0x606   :  { %v8667_v58 = vpop.f32.mrf.mxu0  ;;  %v6156_v36 = vpop.f32.mrf.mxu1 }
 0x607   :  { %v6162_v11 = vadd.f32 %v6156_v36, %v6074_v43 }
 0x608   :  { %v6244_v53 = vpop.f32.mrf.mxu0  ;;  %v8674_v28 = vpop.f32.mrf.mxu1 }
 0x609   :  { %v6250_v16 = vadd.f32 %v6244_v53, %v6162_v11  ;;  %v8930_v53 = vld [vmem:[#allocation6 + $0x58] sm:$0xff]  }
 0x60a   :  { %v8682_v25 = vpop.f32.mrf.mxu0  ;;  %v6159_v38 = vpop.f32.mrf.mxu1  ;;  %v8931_v28 = vld [vmem:[#allocation6 + $0x78] sm:$0xff]  }
 0x60b   :  { %v8932_v38 = vld [vmem:[#allocation6 + $0x50] sm:$0xff]  }
 0x60c   :  { %v6247_v22 = vpop.f32.mrf.mxu0  ;;  %v8675_v24 = vpop.f32.mrf.mxu1 }
 0x60d   :  { %v8933_v22 = vld [vmem:[#allocation6 + $0x70] sm:$0xff]  }
 0x60e   :  { %v8683_v4 = vpop.f32.mrf.mxu0  ;;  %v6332_v20 = vpop.f32.mrf.mxu1 }
 0x60f   :  { %v6338_v63 = vadd.f32 %v6332_v20, %v6250_v16  ;;  %v8934_v20 = vld [vmem:[#allocation6 + $0x48] sm:$0xff]  }
 0x610   :  { %v8690_v5 = vpop.f32.mrf.mxu1 }
 0x611   :  { %v6339_v46 = vsel %vm105_vm1, %v6338_v63, 0.0  ;;  %v6347_v49 = vmul.f32 %v6338_v63, %v6338_v63  ;;  %v8935_v5 = vld [vmem:[#allocation6 + $0x68] sm:$0xff]  }
 0x612   :  { %v6340_v19 = vrot.slane %v6339_v46, 4  ;;  %v6335_v47 = vpop.f32.mrf.mxu1 }
 0x613   :  { %v6348_v29 = vsel %vm105_vm1, %v6347_v49, 0.0  ;;  %v8936_v47 = vld [vmem:[#allocation6 + $0x40] sm:$0xff]  }
 0x614   :  { %v6341_v1 = vadd.f32 %v6340_v19, %v6339_v46  ;;  %v6349_v33 = vrot.slane %v6348_v29, 4  ;;  %v8691_v62 = vpop.f32.mrf.mxu1 }
 0x616   :  { %v6342_v12 = vrot.slane %v6341_v1, 2  ;;  %v6350_v41 = vadd.f32 %v6349_v33, %v6348_v29 }
 0x618   :  { %v6343_v18 = vadd.f32 %v6342_v12, %v6341_v1  ;;  %v6351_v54 = vrot.slane %v6350_v41, 2  ;;  %v8937_v1 = vld [vmem:[#allocation6 + $0x60] sm:$0xff]   ;;  %v8942_v12 = vld [vmem:[#allocation6 + $0x98] sm:$0xff]  }
 0x61a   :  { %v6344_v35 = vrot.slane %v6343_v18, 1  ;;  %v6352_v52 = vadd.f32 %v6351_v54, %v6350_v41 }
 0x61c   :  { %v6345_v0 = vadd.f32 %v6344_v35, %v6343_v18  ;;  %v6353_v48 = vrot.slane %v6352_v52, 1  ;;  %v8943_v18 = vld [vmem:[#allocation6 + $0xb8] sm:$0xff]   ;;  %v8944_v35 = vld [vmem:[#allocation6 + $0x90] sm:$0xff]  }
 0x61e   :  { %v6346_v23 = vmul.f32 0.125, %v6345_v0  ;;  %v6354_v57 = vadd.f32 %v6353_v48, %v6352_v52  ;;  %v8945_v52 = vld [vmem:[#allocation6 + $0xb0] sm:$0xff]  }
 0x620   :  { %v6355_v8 = vmul.f32 0.125, %v6354_v57  ;;  %v6356_v17 = vmul.f32 %v6346_v23, %v6346_v23  ;;  %v8946_v57 = vld [vmem:[#allocation6 + $0x88] sm:$0xff]  }
 0x622   :  { %v6357_v2 = vsub.f32 %v6355_v8, %v6356_v17  ;;  %v8947_v17 = vld [vmem:[#allocation6 + $0xa8] sm:$0xff]  }
 0x624   :  { %v6358_v60 = vmax.f32 %v6357_v2, 0.0 }
 0x626   :  { %v6360_v34 = vadd.f32 1e-05, %v6358_v60 }
 0x628   :  { %8978 = vrsqrt.f32 %v6360_v34 }
 0x635   :  { %v8979_v55 = vpop.eup %8978 }
 0x636   :  { %v6362_v13 = vmul.f32 %v8979_v55, %v6359_v50  ;;  %v8948_v50 = vld [vmem:[#allocation6 + $0x80] sm:$0xff]  }
 0x638   :  { %v6364_v3 = vmul.f32 %v6362_v13, %v6346_v23  ;;  %v6370_v9 = vrot.slane %v6362_v13, %v12725_v40  ;;  %v8949_v13 = vld [vmem:[#allocation6 + $0xa0] sm:$0xff]  }
 0x63a   :  { %v6365_v7 = vsub.f32 %v6363_v6, %v6364_v3  ;;  %v6372_v61 = vmul.f32 %v6370_v9, %v6338_v63  ;;  %v8954_v9 = vld [vmem:[#allocation6 + $0xd8] sm:$0xff]  }
 0x63c   :  { %v6377_v30 = vrot.slane %v6365_v7, %v12725_v40 }
 0x63e   :  { %v6379_v51 = vadd.f32 %v6377_v30, %v6372_v61  ;;  %v8955_v61 = vld [vmem:[#allocation6 + $0xf8] sm:$0xff]  }
 0x640   :  { %v6380_v44 = vmax.f32 %v6379_v51, 0.0  ;;  %v8956_v51 = vld [vmem:[#allocation6 + $0xd0] sm:$0xff]  }
 0x642   :  { %v6382_v15 = vcombine.high %v6380_v44, %v6380_v44  ;;  %v6389_v31 = vrot.slane %v6380_v44, %v12729_v21  ;;  %v8957_v44 = vld [vmem:[#allocation6 + $0xf0] sm:$0xff]  }
 0x644   :  { %v6396_v37 = vrot.slane %v6382_v15, %v12729_v21  ;;  %v6397_v42 = vcombine.high %v6389_v31, %v6389_v31  ;;  %6443 = vst.msk [vmem:[#allocation2 + $0x11] sm:$0x3] %vm107_vm2, %v6389_v31 }
 0x646   :  { %v6398_v45 = vcombine.high %v6396_v37, %v6396_v37  ;;  %6444 = vst.msk [vmem:[#allocation2 + $0x21] sm:$0x3] %vm107_vm2, %v6397_v42  ;;  %6445 = vst.msk [vmem:[#allocation2 + $0xb1] sm:$0x3] %vm107_vm2, %v6396_v37  ;;  %v8958_v42 = vld [vmem:[#allocation6 + $0xc8] sm:$0xff]  }
 0x648   :  { %6446 = vst.msk [vmem:[#allocation2 + $0xc1] sm:$0x3] %vm107_vm2, %v6398_v45 }
 0x64b   :  { %v8926_v26 = vld [vmem:[#allocation2 + $0x1] ss:$16 sps:$4 sm:$0x33]  }
 0x64c   :  { %v8928_v10 = vld [vmem:[#allocation2] ss:$16 sps:$4 sm:$0x33]   ;;  %v6498_v32 = vrot.slane %v8926_v26, %v12729_v21  ;;  %v8938_v4 = vld [vmem:[#allocation2 + $0x2] ss:$16 sps:$4 sm:$0x33]  }
 0x64d   :  { %v8927_v14 = vld [vmem:[#allocation2 + $0xa1] ss:$16 sps:$4 sm:$0x33]   ;;  %v6463_v27 = vrot.slane %v8928_v10, %v12729_v21  ;;  %v6668_v19 = vrot.slane %v8938_v4, %v12729_v21  ;;  %v8969_v4 = vld [vmem:[#allocation6 + $0x100] sm:$0xff]  }
 0x64e   :  { %v8929_v56 = vld [vmem:[#allocation2 + $0xa0] ss:$16 sps:$4 sm:$0x33]   ;;  %v6505_v59 = vrot.slane %v8927_v14, %v12729_v21  ;;  %v8939_v24 = vld [vmem:[#allocation2 + $0xa2] ss:$16 sps:$4 sm:$0x33]  }
 0x64f   :  { %v6470_v58 = vrot.slane %v8929_v56, %v12729_v21  ;;  %v8941_v16 = vld [vmem:[#allocation2 + $0xb0] ss:$16 sps:$4 sm:$0x33]   ;;  %v6675_v46 = vrot.slane %v8939_v24, %v12729_v21  ;;  %v8953_v48 = vld [vmem:[#allocation2 + $0xb2] ss:$16 sps:$4 sm:$0x33]  }
 0x650   :  { %v6506_v36 = vcombine.low %v6498_v32, %v6505_v59  ;;  %v8940_v63 = vld [vmem:[#allocation2 + $0x10] ss:$16 sps:$4 sm:$0x33]   ;;  %v6779_v49 = vrot.slane %v8941_v16, %v12729_v21  ;;  %v8952_v8 = vld [vmem:[#allocation2 + $0x12] ss:$16 sps:$4 sm:$0x33]   ;;  %v6987_v60 = vrot.slane %v8953_v48, %v12729_v21 }
 0x651   :  { %v6471_v43 = vcombine.low %v6463_v27, %v6470_v58  ;;  %v6772_v29 = vrot.slane %v8940_v63, %v12729_v21  ;;  %v6676_v33 = vcombine.low %v6668_v19, %v6675_v46  ;;  %v8951_v0 = vld [vmem:[#allocation2 + $0xb1] ss:$16 sps:$4 sm:$0x33]   ;;  %v6980_v55 = vrot.slane %v8952_v8, %v12729_v21  ;;  %v8960_v32 = vld [vmem:[#allocation6 + $0xc0] sm:$0xff]  }
 0x652   :  { %v6508_v11 = vpack.c.bf16 %v6506_v36, %v6506_v36  ;;  %v8950_v23 = vld [vmem:[#allocation2 + $0x11] ss:$16 sps:$4 sm:$0x33]   ;;  %v6883_v2 = vrot.slane %v8951_v0, %v12729_v21  ;;  %v8961_v27 = vld [vmem:[#allocation6 + $0xe0] sm:$0xff]  }
 0x653   :  { %v6473_v25 = vpack.c.bf16 %v6471_v43, %v6471_v43  ;;  %v6780_v62 = vcombine.low %v6772_v29, %v6779_v49  ;;  %v6678_v41 = vpack.c.bf16 %v6676_v33, %v6676_v33  ;;  %v6876_v34 = vrot.slane %v8950_v23, %v12729_v21  ;;  %v8963_v15 = vld [vmem:[#allocation2 + $0xc0] ss:$16 sps:$4 sm:$0x33]   ;;  %v7467_v49 = vld [vmem:[%s12384_s16 + $0x28] sm:$0xff]  ;;  %v7465_v29 = vld [vmem:[%s12384_s16 + $0x18] sm:$0xff] }
 0x654   :  { %8701 = vmatmul.mubr.msk.bf16.vlgmr.msra.gmra.mxu0 %vm105_vm1, %v6508_v11  ;;  %v6988_v3 = vcombine.low %v6980_v55, %v6987_v60  ;;  %v8965_v31 = vld [vmem:[#allocation2 + $0xc1] ss:$16 sps:$4 sm:$0x33]   ;;  %v7091_v10 = vrot.slane %v8963_v15, %v12729_v21  ;;  %v8967_v11 = vld [vmem:[#allocation6 + $0x110] sm:$0xff]  }
 0x655   :  { %8713 = vmatmul.mubr.msk.bf16.vlgmr.msra.gmra.mxu1 %vm105_vm1, %v6473_v25  ;;  %8717 = vmatpush3.bf16.msra.mxu0 %v8930_v53  ;;  %v6782_v54 = vpack.c.bf16 %v6780_v62, %v6780_v62  ;;  %v6884_v6 = vcombine.low %v6876_v34, %v6883_v2  ;;  %v8962_v37 = vld [vmem:[#allocation2 + $0x20] ss:$16 sps:$4 sm:$0x33]   ;;  %v7195_v14 = vrot.slane %v8965_v31, %v12729_v21  ;;  %v8971_v25 = vld [vmem:[#allocation2 + $0xc2] ss:$16 sps:$4 sm:$0x33]  }
 0x656   :  { %8729 = vmatpush3.bf16.msra.mxu1 %v8931_v28  ;;  %8718 = vmatprep.subr.bf16.mxu0 %v12726_v39  ;;  %v6990_v30 = vpack.c.bf16 %v6988_v3, %v6988_v3  ;;  %v8964_v45 = vld [vmem:[#allocation2 + $0x21] ss:$16 sps:$4 sm:$0x33]   ;;  %v7084_v56 = vrot.slane %v8962_v37, %v12729_v21  ;;  %v7299_v24 = vrot.slane %v8971_v25, %v12729_v21 }
 0x657   :  { %8730 = vmatprep.subr.bf16.mxu1 %v12726_v39  ;;  %8724 = vmatprep.mubr.msk.bf16.mxu0 %vm9055_vm10, %v12726_v39  ;;  %v6886_v7 = vpack.c.bf16 %v6884_v6, %v6884_v6  ;;  %v8959_v26 = vld [vmem:[#allocation6 + $0xe8] sm:$0xff]   ;;  %v7188_v59 = vrot.slane %v8964_v45, %v12729_v21  ;;  %v8966_v43 = vld [vmem:[#allocation6 + $0x118] sm:$0xff]  }
 0x658   :  { %8736 = vmatprep.mubr.msk.bf16.mxu1 %vm9055_vm10, %v12726_v39  ;;  %v7092_v58 = vcombine.low %v7084_v56, %v7091_v10  ;;  %v7468_v46 = vld [vmem:[%s12384_s16 + $0x30] sm:$0xff]  ;;  %v7466_v19 = vld [vmem:[%s12384_s16 + $0x20] sm:$0xff] }
 0x659   :  { %8719 = vmatpush3.bf16.msra.mxu0 %v8932_v38  ;;  %v7196_v36 = vcombine.low %v7188_v59, %v7195_v14  ;;  %v8970_v38 = vld [vmem:[#allocation2 + $0x22] ss:$16 sps:$4 sm:$0x33]  }
 0x65a   :  { %8731 = vmatpush3.bf16.msra.mxu1 %v8933_v22  ;;  %8720 = vmatprep.subr.bf16.mxu0 %v12726_v39  ;;  %v7094_v53 = vpack.c.bf16 %v7092_v58, %v7092_v58  ;;  %v8968_v22 = vld [vmem:[#allocation6 + $0x108] sm:$0xff]   ;;  %v7292_v16 = vrot.slane %v8970_v38, %v12729_v21 }
 0x65b   :  { %8732 = vmatprep.subr.bf16.mxu1 %v12726_v39  ;;  %v7198_v28 = vpack.c.bf16 %v7196_v36, %v7196_v36  ;;  %v7464_v62 = vld [vmem:[%s12384_s16 + $0x10] sm:$0xff] }
 0x65d   :  { %8721 = vmatpush3.bf16.msra.mxu0 %v8934_v20  ;;  %v7300_v20 = vcombine.low %v7292_v16, %v7299_v24 }
 0x65e   :  { %8733 = vmatpush3.bf16.msra.mxu1 %v8935_v5  ;;  %8722 = vmatprep.subr.bf16.mxu0 %v12726_v39  ;;  %v7469_v5 = vld [vmem:[%s12384_s16 + $0x38] sm:$0xff] }
 0x65f   :  { %8734 = vmatprep.subr.bf16.mxu1 %v12726_v39  ;;  %v7302_v63 = vpack.c.bf16 %v7300_v20, %v7300_v20 }
 0x661   :  { %8723 = vmatpush3.bf16.msra.mxu0 %v8936_v47 }
 0x662   :  { %8735 = vmatpush3.bf16.msra.mxu1 %v8937_v1  ;;  %8740 = vmatprep.subr.bf16.mxu0 %v12726_v39 }
 0x663   :  { %8752 = vmatprep.subr.bf16.mxu1 %v12726_v39 }
 0x664   :  { %8725 = vmatmul.mubr.msk.bf16.vlgmr.msra.gmra.mxu0 %vm105_vm1, %v6678_v41 }
 0x665   :  { %8737 = vmatmul.mubr.msk.bf16.vlgmr.msra.gmra.mxu1 %vm105_vm1, %v6782_v54  ;;  %8741 = vmatpush3.bf16.msra.mxu0 %v8942_v12 }
 0x666   :  { %8753 = vmatpush3.bf16.msra.mxu1 %v8943_v18  ;;  %8742 = vmatprep.subr.bf16.mxu0 %v12726_v39  ;;  %v7463_v18 = vld [vmem:[%s12384_s16 + $0x8] sm:$0xff] }
 0x667   :  { %8754 = vmatprep.subr.bf16.mxu1 %v12726_v39  ;;  %8748 = vmatprep.mubr.msk.bf16.mxu0 %vm9055_vm10, %v12726_v39 }
 0x668   :  { %8760 = vmatprep.mubr.msk.bf16.mxu1 %vm9055_vm10, %v12726_v39 }
 0x669   :  { %8743 = vmatpush3.bf16.msra.mxu0 %v8944_v35 }
 0x66a   :  { %8755 = vmatpush3.bf16.msra.mxu1 %v8945_v52  ;;  %8744 = vmatprep.subr.bf16.mxu0 %v12726_v39  ;;  %v7462_v52 = vld [vmem:[%s12384_s16] sm:$0xff] }
 0x66b   :  { %8756 = vmatprep.subr.bf16.mxu1 %v12726_v39 }
 0x66d   :  { %8745 = vmatpush3.bf16.msra.mxu0 %v8946_v57 }
 0x66e   :  { %8757 = vmatpush3.bf16.msra.mxu1 %v8947_v17  ;;  %8746 = vmatprep.subr.bf16.mxu0 %v12726_v39 }
 0x66f   :  { %8758 = vmatprep.subr.bf16.mxu1 %v12726_v39 }
 0x671   :  { %8747 = vmatpush3.bf16.msra.mxu0 %v8948_v50 }
 0x672   :  { %8759 = vmatpush3.bf16.msra.mxu1 %v8949_v13  ;;  %8764 = vmatprep.subr.bf16.mxu0 %v12726_v39 }
 0x673   :  { %8776 = vmatprep.subr.bf16.mxu1 %v12726_v39 }
 0x674   :  { %8749 = vmatmul.mubr.msk.bf16.vlgmr.msra.gmra.mxu0 %vm105_vm1, %v6886_v7 }
 0x675   :  { %8761 = vmatmul.mubr.msk.bf16.vlgmr.msra.gmra.mxu1 %vm105_vm1, %v6990_v30  ;;  %8765 = vmatpush3.bf16.msra.mxu0 %v8954_v9 }
 0x676   :  { %8777 = vmatpush3.bf16.msra.mxu1 %v8955_v61  ;;  %8766 = vmatprep.subr.bf16.mxu0 %v12726_v39 }
 0x677   :  { %8778 = vmatprep.subr.bf16.mxu1 %v12726_v39  ;;  %8772 = vmatprep.mubr.msk.bf16.mxu0 %vm9055_vm10, %v12726_v39 }
 0x678   :  { %8784 = vmatprep.mubr.msk.bf16.mxu1 %vm9055_vm10, %v12726_v39 }
 0x679   :  { %8767 = vmatpush3.bf16.msra.mxu0 %v8956_v51 }
 0x67a   :  { %8779 = vmatpush3.bf16.msra.mxu1 %v8957_v44  ;;  %8768 = vmatprep.subr.bf16.mxu0 %v12726_v39 }
 0x67b   :  { %8780 = vmatprep.subr.bf16.mxu1 %v12726_v39 }
 0x67d   :  { %8769 = vmatpush3.bf16.msra.mxu0 %v8958_v42 }
 0x67e   :  { %8781 = vmatpush3.bf16.msra.mxu1 %v8959_v26  ;;  %8770 = vmatprep.subr.bf16.mxu0 %v12726_v39 }
 0x67f   :  { %8782 = vmatprep.subr.bf16.mxu1 %v12726_v39 }
 0x681   :  { %8771 = vmatpush3.bf16.msra.mxu0 %v8960_v32 }
 0x682   :  { %8783 = vmatpush3.bf16.msra.mxu1 %v8961_v27  ;;  %8788 = vmatprep.subr.bf16.mxu0 %v12726_v39 }
 0x683   :  { %8800 = vmatprep.subr.mxu1 %v12726_v39 }
 0x684   :  { %8773 = vmatmul.mubr.msk.bf16.vlgmr.msra.gmra.mxu0 %vm105_vm1, %v7094_v53 }
 0x685   :  { %8785 = vmatmul.mubr.msk.bf16.vlgmr.msra.gmra.mxu1 %vm105_vm1, %v7198_v28  ;;  %8789 = vmatpush3.bf16.msra.mxu0 %v8966_v43 }
 0x686   :  { %8790 = vmatprep.subr.bf16.mxu0 %v12726_v39  ;;  %8796 = vmatprep.mubr.msk.bf16.mxu0 %vm9055_vm10, %v12726_v39 }
 0x687   :  { %8816 = vmatprep.mubr.msk.f32.mxu1 %vm9055_vm10, %v12726_v39  ;;  %8801 = vmatpush3.msra.mxu1 %v7469_v5 }
 0x688   :  { %8802 = vmatprep.subr.mxu1 %v12726_v39 }
 0x689   :  { %8791 = vmatpush3.bf16.msra.mxu0 %v8967_v11  ;;  %8803 = vmatpush3.msra.mxu1 %v7468_v46 }
 0x68a   :  { %8792 = vmatprep.subr.bf16.mxu0 %v12726_v39  ;;  %8804 = vmatprep.subr.mxu1 %v12726_v39 }
 0x68b   :  { %8805 = vmatpush3.msra.mxu1 %v7467_v49 }
 0x68c   :  { %8806 = vmatprep.subr.mxu1 %v12726_v39 }
 0x68d   :  { %8793 = vmatpush3.bf16.msra.mxu0 %v8968_v22  ;;  %8807 = vmatpush3.msra.mxu1 %v7466_v19 }
 0x68e   :  { %8794 = vmatprep.subr.bf16.mxu0 %v12726_v39  ;;  %8808 = vmatprep.subr.mxu1 %v12726_v39 }
 0x68f   :  { %8809 = vmatpush3.msra.mxu1 %v7465_v29 }
 0x690   :  { %8810 = vmatprep.subr.mxu1 %v12726_v39 }
 0x691   :  { %8795 = vmatpush3.bf16.msra.mxu0 %v8969_v4  ;;  %8811 = vmatpush3.msra.mxu1 %v7464_v62 }
 0x692   :  { %8812 = vmatprep.subr.mxu1 %v12726_v39 }
 0x693   :  { %8813 = vmatpush3.msra.mxu1 %v7463_v18  ;;  %v7400_v18 = vld [vmem:[%s12382_s14] sm:$0x1] }
 0x694   :  { %8797 = vmatmul.mubr.msk.bf16.vlgmr.msra.gmra.mxu0 %vm105_vm1, %v7302_v63  ;;  %8814 = vmatprep.subr.mxu1 %v12726_v39 }
 0x695   :  { %8815 = vmatpush3.msra.mxu1 %v7462_v52  ;;  %v7404_v52 = vld [vmem:[%s12383_s15] sm:$0x1] }
 0x714   :  { %v6579_v47 = vpop.f32.mrf.mxu0 }
 0x715   :  { %v6646_v1 = vpop.f32.mrf.mxu1 }
 0x716   :  { %v8702_v33 = vpop.f32.mrf.mxu0  ;;  %v6647_v30 = vadd.f32 %v6646_v1, %v6579_v47 }
 0x717   :  { %v8714_v12 = vpop.f32.mrf.mxu1 }
 0x718   :  { %v6582_v41 = vpop.f32.mrf.mxu0 }
 0x719   :  { %v6649_v54 = vpop.f32.mrf.mxu1 }
 0x71a   :  { %v8703_v35 = vpop.f32.mrf.mxu0 }
 0x71b   :  { %v8715_v0 = vpop.f32.mrf.mxu1 }
 0x724   :  { %v6749_v48 = vpop.f32.mrf.mxu0 }
 0x725   :  { %v6853_v23 = vpop.f32.mrf.mxu1  ;;  %v6755_v51 = vadd.f32 %v6749_v48, %v6647_v30 }
 0x726   :  { %v8726_v57 = vpop.f32.mrf.mxu0 }
 0x727   :  { %v8738_v8 = vpop.f32.mrf.mxu1  ;;  %v6859_v31 = vadd.f32 %v6853_v23, %v6755_v51 }
 0x728   :  { %v6752_v17 = vpop.f32.mrf.mxu0 }
 0x729   :  { %v6856_v2 = vpop.f32.mrf.mxu1 }
 0x72a   :  { %v8727_v60 = vpop.f32.mrf.mxu0 }
 0x72b   :  { %v8739_v34 = vpop.f32.mrf.mxu1 }
 0x734   :  { %v6957_v50 = vpop.f32.mrf.mxu0 }
 0x735   :  { %v7061_v55 = vpop.f32.mrf.mxu1  ;;  %v6963_v45 = vadd.f32 %v6957_v50, %v6859_v31 }
 0x736   :  { %v8750_v13 = vpop.f32.mrf.mxu0 }
 0x737   :  { %v8762_v6 = vpop.f32.mrf.mxu1  ;;  %v7067_v56 = vadd.f32 %v7061_v55, %v6963_v45 }
 0x738   :  { %v6960_v3 = vpop.f32.mrf.mxu0 }
 0x739   :  { %v7064_v9 = vpop.f32.mrf.mxu1 }
 0x73a   :  { %v8751_v7 = vpop.f32.mrf.mxu0 }
 0x73b   :  { %v8763_v61 = vpop.f32.mrf.mxu1 }
 0x744   :  { %v7165_v39 = vpop.f32.mrf.mxu0 }
 0x745   :  { %v7269_v44 = vpop.f32.mrf.mxu1  ;;  %v7171_v32 = vadd.f32 %v7165_v39, %v7067_v56 }
 0x746   :  { %v8774_v15 = vpop.f32.mrf.mxu0 }
 0x747   :  { %v8786_v37 = vpop.f32.mrf.mxu1  ;;  %v7275_v59 = vadd.f32 %v7269_v44, %v7171_v32 }
 0x748   :  { %v7168_v42 = vpop.f32.mrf.mxu0 }
 0x749   :  { %v7272_v26 = vpop.f32.mrf.mxu1 }
 0x74a   :  { %v8775_v10 = vpop.f32.mrf.mxu0 }
 0x74b   :  { %v8787_v14 = vpop.f32.mrf.mxu1 }
 0x754   :  { %v7373_v27 = vpop.f32.mrf.mxu0 }
 0x755   :  { %v7379_v58 = vadd.f32 %v7373_v27, %v7275_v59 }
 0x756   :  { %v8798_v36 = vpop.f32.mrf.mxu0 }
 0x757   :  { %v7380_v43 = vsel %vm105_vm1, %v7379_v58, 0.0  ;;  %v7388_v53 = vmul.f32 %v7379_v58, %v7379_v58 }
 0x758   :  { %v7381_v28 = vrot.slane %v7380_v43, 4  ;;  %v7376_v11 = vpop.f32.mrf.mxu0 }
 0x759   :  { %v7389_v25 = vsel %vm105_vm1, %v7388_v53, 0.0 }
 0x75a   :  { %v7382_v38 = vadd.f32 %v7381_v28, %v7380_v43  ;;  %v7390_v22 = vrot.slane %v7389_v25, 4  ;;  %v8799_v24 = vpop.f32.mrf.mxu0 }
 0x75c   :  { %v7383_v16 = vrot.slane %v7382_v38, 2  ;;  %v7391_v4 = vadd.f32 %v7390_v22, %v7389_v25 }
 0x75e   :  { %v7384_v20 = vadd.f32 %v7383_v16, %v7382_v38  ;;  %v7392_v63 = vrot.slane %v7391_v4, 2 }
 0x760   :  { %v7385_v5 = vrot.slane %v7384_v20, 1  ;;  %v7393_v46 = vadd.f32 %v7392_v63, %v7391_v4 }
 0x762   :  { %v7386_v49 = vadd.f32 %v7385_v5, %v7384_v20  ;;  %v7394_v19 = vrot.slane %v7393_v46, 1 }
 0x764   :  { %v7387_v47 = vmul.f32 0.125, %v7386_v49  ;;  %v7395_v29 = vadd.f32 %v7394_v19, %v7393_v46 }
 0x766   :  { %v7396_v1 = vmul.f32 0.125, %v7395_v29  ;;  %v7397_v33 = vmul.f32 %v7387_v47, %v7387_v47 }
 0x768   :  { %v7398_v62 = vsub.f32 %v7396_v1, %v7397_v33 }
 0x76a   :  { %v7399_v12 = vmax.f32 %v7398_v62, 0.0 }
 0x76c   :  { %v7401_v41 = vadd.f32 1e-05, %v7399_v12 }
 0x76e   :  { %8980 = vrsqrt.f32 %v7401_v41 }
 0x77b   :  { %v8981_v54 = vpop.eup %8980 }
 0x77c   :  { %v7403_v35 = vmul.f32 %v8981_v54, %v7400_v18 }
 0x77e   :  { %v7405_v0 = vmul.f32 %v7403_v35, %v7387_v47  ;;  %v7411_v48 = vrot.slane %v7403_v35, %v12725_v40 }
 0x780   :  { %v7406_v23 = vsub.f32 %v7404_v52, %v7405_v0  ;;  %v7413_v57 = vmul.f32 %v7411_v48, %v7379_v58 }
 0x782   :  { %v7418_v8 = vrot.slane %v7406_v23, %v12725_v40 }
 0x784   :  { %v7420_v17 = vadd.f32 %v7418_v8, %v7413_v57 }
 0x786   :  { %v7421_v2 = vmax.f32 %v7420_v17, 0.0 }
 0x788   :  { %v7423_v60 = vcombine.high %v7421_v2, %v7421_v2  ;;  %v7430_v34 = vrot.slane %v7421_v2, %v12729_v21 }
 0x78a   :  { %v7437_v50 = vrot.slane %v7423_v60, %v12729_v21  ;;  %v7438_v55 = vcombine.high %v7430_v34, %v7430_v34  ;;  %v7966_v13 = vrot.slane %v7430_v34, 9  ;;  %v7970_v21 = vld [vmem:[%s12385_s17] ss:$0 sm:$0xff] }
 0x78c   :  { %v7439_v6 = vcombine.high %v7437_v50, %v7437_v50  ;;  %v7967_v3 = vrot.slane %v7437_v50, 9  ;;  %v7450_v9 = vadd.f32 %v7966_v13, %v7430_v34  ;;  %v7968_v30 = vrot.slane %v7438_v55, 9 }
 0x78e   :  { %v7451_v7 = vadd.f32 %v7967_v3, %v7437_v50  ;;  %v7452_v61 = vadd.f32 %v7450_v9, %v7438_v55  ;;  %v7969_v39 = vrot.slane %v7439_v6, 9 }
 0x790   :  { %v7453_v51 = vadd.f32 %v7451_v7, %v7439_v6  ;;  %v7460_v44 = vadd.f32 %v7968_v30, %v7452_v61 }
 0x792   :  { %v7461_v15 = vadd.f32 %v7969_v39, %v7453_v51  ;;  %v7482_v31 = vrot.slane %v7460_v44, %v12725_v40 }
 0x794   :  { %v7486_v37 = vrot.slane %v7461_v15, %v12725_v40 }
 0x796   :  { %v7487_v42 = vsel %vm4349_vm6, %v7486_v37, %v7482_v31 }
 0x797   :  { %8817 = vmatmul.mubr.msk.f32.vlgmr.msra.gmra.mxu1 %vm105_vm1, %v7487_v42 }
 0x857   :  { %v7556_v45 = vpop.f32.mrf.mxu1 }
 0x858   :  { %v7557_v26 = vadd.f32 %v7970_v21, %v7556_v45 }
 0x859   :  { %v8818_v10 = vpop.f32.mrf.mxu1 }
 0x85a   :  { %7561 = vst.msk [vmem:[#allocation8] sm:$0x3] %vm7560_vm13, %v7557_v26 }
 0x85b   :  { %9033 = shalt.err (!%p9030_p0)
}
 0x85c   :  { %7571 = dma.vmem_to_hbm [thread:$0]  %s7569_s27, 32, %s12386_s18, [#allocation5]  }
 0x85d   :  { %9046 = dma.done.wait [#allocation5], 32  }
 0x85e   :  { %9047 = vsyncadd [#allocation5], 4294967264 }
 0x85f   :  { %7575 = vsyncpa [#allocation4], 1 }
 0x860   :  { %7576 = vsyncpa [#allocation7], 1 }
 0x861   :  { %7577 = vsyncpa [#allocation5], 1 }

</bundles_post_ra>
